<compile_context>
chip_gen: v7x
topology: tpu7x:2x2x1
jax: 0.10.0
libtpu: 0.0.40
codegen_flags: <defaults>
</compile_context>

<pallas_src>
import functools
import math

import jax
import jax.numpy as jnp
from jax.experimental import pallas as pl
from jax.experimental.pallas import tpu as pltpu


N_CLASSES = 10       # digit capsules (OC)
N_DIM = 16           # digit-capsule output dim (OD)
P_CAPS = 8           # primary capsule channels
P_DIM = 4            # primary capsule dim (ID)
ROUTING_ITERS = 3
CONV_PAD = 128       # conv output channels padded to a full lane group
FC1_REAL, FC1_PAD = 64, 128
FC2, FC3 = 128, 256
EPS = 1e-8
APPROX_RECIP = True  # exact-division fallback available for tight parity tests


def _recip(x):
    if APPROX_RECIP:
        return pl.reciprocal(x, approx=True)
    return 1.0 / x


# ----------------------------------------------------------------------------
# Kernel 1: matmul + bias + activation (conv-as-matmul), M tiled + parallel
# ----------------------------------------------------------------------------
def _matmul_bias_act_kernel(x_ref, w_ref, b_ref, o_ref, *, activation):
    y = jnp.dot(x_ref[...], w_ref[...], preferred_element_type=jnp.float32)
    y = y + b_ref[...]
    if activation == "relu":
        y = jnp.maximum(y, 0.0)
    elif activation == "sigmoid":
        y = jax.nn.sigmoid(y)
    o_ref[...] = y.astype(o_ref.dtype)


def matmul_bias_act(x, w, b, activation="none", block_m=2048):
    M, K = x.shape
    K2, N = w.shape
    assert K == K2 and b.shape == (N,)
    tm = M if M <= block_m else block_m          # 1 block at toy sizes
    grid = (pl.cdiv(M, tm),)
    return pl.pallas_call(
        functools.partial(_matmul_bias_act_kernel, activation=activation),
        out_shape=jax.ShapeDtypeStruct((M, N), jnp.float32),
        grid=grid,
        in_specs=[
            pl.BlockSpec((tm, K), lambda i: (i, 0)),
            pl.BlockSpec((K, N), lambda i: (0, 0)),
            pl.BlockSpec((1, N), lambda i: (0, 0)),
        ],
        out_specs=pl.BlockSpec((tm, N), lambda i: (i, 0)),
        compiler_params=pltpu.CompilerParams(
            dimension_semantics=("parallel",),
            vmem_limit_bytes=40 * 1024 * 1024),
    )(x, w, b.reshape(1, N))


# ----------------------------------------------------------------------------
# Kernel 2: fused primary-caps squash + predictions + agreement routing +
#           class probabilities + target mask + reconstruction MLP
#   caps:  [B, ID, 1, IC]   (IC = 128 on lanes)
#   W:     [ID, OC, OD, IC]
#   blog:  [OC, 1, IC]      routing logit parameter (zeros)
#   wn:    [OC, OD, OC]     class-gather matrix (eye over OC, tiled over OD)
#   mask:  [B, OC, 1, 1]    one-hot(target)
#   fc1:   [OC, OD, H1], [1,1,H1]   (H1 zero-padded 64->128)
#   fc2T:  [H2, H1], [1,H2,1]       (transposed, padded input cols are zero)
#   fc3:   [H2, H3], [1,1,H3]
#   out:   probs [B,1,1,OC], recon [B,1,1,H3]   (lane-dense last dims)
# ----------------------------------------------------------------------------
def _caps_routing_recon_kernel(caps_ref, w_ref, blog_ref, wn_ref, mask_ref,
                               w1_ref, b1_ref, w2t_ref, b2_ref, w3_ref, b3_ref,
                               probs_ref, recon_ref, *, n_iterations):
    caps = caps_ref[...]                                   # [Bt, ID, 1, IC]
    Bt, ID = caps.shape[0], caps.shape[1]
    OC, OD, IC = w_ref.shape[1], w_ref.shape[2], w_ref.shape[3]

    # squash primary capsules over their dim axis ID:  scale = |s| / (1 + |s|^2)
    l2 = jnp.sum(caps * caps, axis=1, keepdims=True)       # [Bt, 1, 1, IC]
    scale = l2 * jax.lax.rsqrt(l2 + EPS) * _recip(1.0 + l2)
    caps = caps * scale

    # per-class predictions u[b, oc, od, ic] = sum_d caps[b, d, ic] * W[d, oc, od, ic]
    u = caps[:, 0:1] * w_ref[0][None]                      # [Bt, OC, OD, IC]
    for d in range(1, ID):
        u = u + caps[:, d:d + 1] * w_ref[d][None]

    bb = jnp.broadcast_to(blog_ref[...][None], (Bt, OC, 1, IC))   # routing logits

    def class_softmax(x):                                  # softmax over classes (axis 1)
        m = jnp.max(x, axis=1, keepdims=True)
        e = jnp.exp(x - m)
        return e * _recip(jnp.sum(e, axis=1, keepdims=True))

    def weighted_sum(c):                                   # [Bt,OC,1,IC] -> [Bt,OC,OD,1]
        return jnp.sum(c * u, axis=3, keepdims=True)       # lane (IC) reduce

    def squash(s):                                         # over OD (sublanes)
        sl2 = jnp.sum(s * s, axis=2, keepdims=True)        # [Bt, OC, 1, 1]
        sc = sl2 * jax.lax.rsqrt(sl2 + EPS) * _recip(1.0 + sl2)
        return s * sc

    c = class_softmax(bb)
    v = squash(weighted_sum(c))                            # [Bt, OC, OD, 1]
    for _ in range(n_iterations):
        bb = bb + jnp.sum(u * v, axis=2, keepdims=True)    # agreement: [Bt, OC, 1, IC]
        c = class_softmax(bb)
        v = squash(weighted_sum(c))

    # lane-dense class probabilities: ||v_oc|| gathered onto lanes via wn (eye)
    pv = (v * v) * wn_ref[...][None]                       # [Bt, OC, OD, OC]
    pv = jnp.sum(pv, axis=2, keepdims=True)                # sublane reduce
    n2 = jnp.sum(pv, axis=1, keepdims=True)                # [Bt, 1, 1, OC]
    probs_ref[...] = jnp.sqrt(n2 + EPS)

    # fused masked reconstruction MLP (alternating lane / sublane contractions).
    # TODO(synk): at large batch route these matmuls through the MXU on a
    # flattened [B, OC*OD] slab instead of the VPU broadcast-reduce chain.
    mv = v * mask_ref[...]                                 # [Bt, OC, OD, 1]
    h = mv * w1_ref[...][None]                             # [Bt, OC, OD, H1]
    h = jnp.sum(h, axis=2, keepdims=True)                  # [Bt, OC, 1, H1]
    h = jnp.sum(h, axis=1, keepdims=True)                  # [Bt, 1, 1, H1]
    h = jnp.maximum(h + b1_ref[...][None], 0.0)
    h = h * w2t_ref[...][None, None]                       # [Bt, 1, H2, H1]
    h = jnp.sum(h, axis=3, keepdims=True)                  # [Bt, 1, H2, 1]
    h = jnp.maximum(h + b2_ref[...][None], 0.0)
    h = h * w3_ref[...][None, None]                        # [Bt, 1, H2, H3]
    h = jnp.sum(h, axis=2, keepdims=True)                  # [Bt, 1, 1, H3]
    recon_ref[...] = jax.nn.sigmoid(h + b3_ref[...][None])


def caps_routing_recon(caps, params, mask, n_iterations, block_b=8):
    B, ID, _, IC = caps.shape
    OC, OD = N_CLASSES, N_DIM
    H1, H2, H3 = FC1_PAD, FC2, FC3
    tb = B if B <= block_b else block_b
    grid = (pl.cdiv(B, tb),)

    def batch_spec(*trail):
        n = len(trail)
        return pl.BlockSpec((tb,) + trail, lambda i, _n=n: (i,) + (0,) * _n)

    def full_spec(*shape):
        n = len(shape)
        return pl.BlockSpec(shape, lambda i, _n=n: (0,) * _n)

    probs4, recon4 = pl.pallas_call(
        functools.partial(_caps_routing_recon_kernel, n_iterations=n_iterations),
        out_shape=(
            jax.ShapeDtypeStruct((B, 1, 1, OC), jnp.float32),
            jax.ShapeDtypeStruct((B, 1, 1, H3), jnp.float32),
        ),
        grid=grid,
        in_specs=[
            batch_spec(ID, 1, IC),               # primary capsules
            full_spec(ID, OC, OD, IC),           # prediction weights
            full_spec(OC, 1, IC),                # routing logit parameter
            full_spec(OC, OD, OC),               # class-gather (eye) matrix
            batch_spec(OC, 1, 1),                # one-hot target mask
            full_spec(OC, OD, H1),               # fc1 weight (padded to 128)
            full_spec(1, 1, H1),                 # fc1 bias
            full_spec(H2, H1),                   # fc2 weight (transposed, padded)
            full_spec(1, H2, 1),                 # fc2 bias
            full_spec(H2, H3),                   # fc3 weight
            full_spec(1, 1, H3),                 # fc3 bias
        ],
        out_specs=(
            batch_spec(1, 1, OC),
            batch_spec(1, 1, H3),
        ),
        compiler_params=pltpu.CompilerParams(
            dimension_semantics=("parallel",),
            vmem_limit_bytes=32 * 1024 * 1024),
    )(caps, params["caps_w"], params["routing_b"], params["class_eye"], mask,
      params["fc1_w"], params["fc1_b"], params["fc2_wT"], params["fc2_b"],
      params["fc3_w"], params["fc3_b"])
    return probs4.reshape(B, OC), recon4.reshape(B, H3)


# ----------------------------------------------------------------------------
# Glue: NHWC im2col (no transposes) + Pallas matmul
# ----------------------------------------------------------------------------
def _im2col_nhwc(x, ksize, stride):
    B, H, W, C = x.shape
    oh = (H - ksize) // stride + 1
    ow = (W - ksize) // stride + 1
    cols = []
    for i in range(ksize):
        for j in range(ksize):
            cols.append(x[:, i:i + stride * oh:stride, j:j + stride * ow:stride, :])
    p = jnp.concatenate(cols, axis=-1)                     # [B, oh, ow, k*k*C]
    return p.reshape(B * oh * ow, ksize * ksize * C), oh, ow


def conv2d_nhwc(x_nhwc, w_flat, bias, ksize, stride, activation):
    # w_flat rows ordered (kh, kw, c) to match the im2col concat order above.
    B = x_nhwc.shape[0]
    p, oh, ow = _im2col_nhwc(x_nhwc, ksize, stride)
    y = matmul_bias_act(p, w_flat, bias, activation)
    return y.reshape(B, oh, ow, w_flat.shape[1])


# ----------------------------------------------------------------------------
# Parameters (deterministic, PyTorch-like init, stored in kernel-friendly layouts)
# ----------------------------------------------------------------------------
def init_params(key):
    ks = jax.random.split(key, 11)
    p = {}

    # conv1: 1 -> 32 real output channels (zero-padded to CONV_PAD), 5x5, stride 1
    b1 = 1.0 / math.sqrt(1 * 5 * 5)
    w1 = jax.random.uniform(ks[0], (5, 5, 1, 32), jnp.float32, -b1, b1)
    w1 = jnp.pad(w1, ((0, 0), (0, 0), (0, 0), (0, CONV_PAD - 32)))
    p["conv1_w"] = w1.reshape(5 * 5 * 1, CONV_PAD)
    p["conv1_b"] = jnp.pad(
        jax.random.uniform(ks[1], (32,), jnp.float32, -b1, b1), (0, CONV_PAD - 32))

    # conv2 (primary caps): 32 -> P_CAPS*P_DIM = 32 real channels (padded), 5x5, stride 2
    b2 = 1.0 / math.sqrt(32 * 5 * 5)
    w2 = jax.random.uniform(ks[2], (5, 5, 32, P_CAPS * P_DIM), jnp.float32, -b2, b2)
    w2 = jnp.pad(w2, ((0, 0), (0, 0), (0, 0), (0, CONV_PAD - P_CAPS * P_DIM)))
    p["conv2_w"] = w2.reshape(5 * 5 * 32, CONV_PAD)
    p["conv2_b"] = jnp.pad(
        jax.random.uniform(ks[3], (P_CAPS * P_DIM,), jnp.float32, -b2, b2),
        (0, CONV_PAD - P_CAPS * P_DIM))

    IC = P_CAPS * 4 * 4                                    # 128 primary capsules
    stdv = 1.0 / math.sqrt(IC)
    p["caps_w"] = jax.random.uniform(
        ks[4], (P_DIM, N_CLASSES, N_DIM, IC), jnp.float32, -stdv, stdv)
    p["routing_b"] = jnp.zeros((N_CLASSES, 1, IC), jnp.float32)

    # constant class-gather matrix: wn[oc, od, oc2] = 1{oc == oc2}
    p["class_eye"] = jnp.tile(
        jnp.eye(N_CLASSES, dtype=jnp.float32)[:, None, :], (1, N_DIM, 1))

    def lin(kw, kb, fi, fo):
        b = 1.0 / math.sqrt(fi)
        return (jax.random.uniform(kw, (fi, fo), jnp.float32, -b, b),
                jax.random.uniform(kb, (fo,), jnp.float32, -b, b))

    # fc1: 160 -> 64 real units (zero-padded to 128 lanes), stored [OC, OD, H1]
    fw1, fb1 = lin(ks[5], ks[6], N_CLASSES * N_DIM, FC1_REAL)
    p["fc1_w"] = jnp.pad(fw1.reshape(N_CLASSES, N_DIM, FC1_REAL),
                         ((0, 0), (0, 0), (0, FC1_PAD - FC1_REAL)))
    p["fc1_b"] = jnp.pad(fb1, (0, FC1_PAD - FC1_REAL)).reshape(1, 1, FC1_PAD)

    # fc2: 64 -> 128, stored transposed [H2, H1] (padded input columns are zero)
    fw2, fb2 = lin(ks[7], ks[8], FC1_REAL, FC2)
    p["fc2_wT"] = jnp.pad(fw2.T, ((0, 0), (0, FC1_PAD - FC1_REAL)))
    p["fc2_b"] = fb2.reshape(1, FC2, 1)

    # fc3: 128 -> 256 (16x16 reconstruction)
    fw3, fb3 = lin(ks[9], ks[10], FC2, FC3)
    p["fc3_w"] = fw3
    p["fc3_b"] = fb3.reshape(1, 1, FC3)
    return p


# ----------------------------------------------------------------------------
# Full forward: (reconstruction, probs) = CapsNetWithReconstruction(x, target)
# ----------------------------------------------------------------------------
def capsnet_with_reconstruction_forward(params, x, target):
    B = x.shape[0]
    x_nhwc = jnp.transpose(x, (0, 2, 3, 1))                # NCHW -> NHWC once
    # TODO(synk): at real resolution/batch (esp. v5e) fuse im2col into the conv
    # matmul (grid over (kh,kw)) instead of materializing the patch tensor in XLA.
    h1 = conv2d_nhwc(x_nhwc, params["conv1_w"], params["conv1_b"], 5, 1, "relu")
    h2 = conv2d_nhwc(h1[..., :32], params["conv2_w"], params["conv2_b"], 5, 2, "none")
    Hc, Wc = h2.shape[1], h2.shape[2]

    # primary capsules -> [B, P_DIM, 1, IC] with IC = (p_cap, h, w) on the lane axis
    caps = h2[..., :P_CAPS * P_DIM].reshape(B, Hc, Wc, P_CAPS, P_DIM)
    caps = caps.transpose(0, 4, 3, 1, 2).reshape(B, P_DIM, 1, P_CAPS * Hc * Wc)

    # masked reconstruction target (one-hot, like torch scatter_ of ones)
    mask = jax.nn.one_hot(target, N_CLASSES, dtype=jnp.float32)
    mask = mask.reshape(B, N_CLASSES, 1, 1)

    probs, recon = caps_routing_recon(caps, params, mask, ROUTING_ITERS)
    return recon, probs


if __name__ == "__main__":
    key = jax.random.PRNGKey(0)
    kx, kt, kp = jax.random.split(key, 3)
    params = init_params(kp)
    x = jax.random.normal(kx, (2, 1, 16, 16), jnp.float32)             # NCHW, like PyTorch
    target = jax.random.randint(kt, (2,), 0, N_CLASSES, jnp.int32)

    fwd = jax.jit(capsnet_with_reconstruction_forward)
    recon, probs = fwd(params, x, target)
    jax.block_until_ready((recon, probs))

    assert recon.shape == (2, FC3), recon.shape
    assert probs.shape == (2, N_CLASSES), probs.shape
    assert bool(jnp.all(jnp.isfinite(recon))) and bool(jnp.all(jnp.isfinite(probs)))
    print("KERNEL_OK")
</pallas_src>

<mosaic_0001>
module attributes {stable_mosaic.version = 11 : i64} {
  func.func @_matmul_bias_act_kernel(%arg0: i32, %arg1: memref<288x25xf32, #tpu.memory_space<vmem>>, %arg2: memref<25x128xf32, #tpu.memory_space<vmem>>, %arg3: memref<1x128xf32, #tpu.memory_space<vmem>>, %arg4: memref<288x128xf32, #tpu.memory_space<vmem>>) attributes {dimension_semantics = [#tpu.dimension_semantics<parallel>], iteration_bounds = array<i64: 1>, scalar_prefetch = 0 : i64, scratch_operands = 0 : i64, tpu.core_type = #tpu.core_type<tc>, window_params = [{transform_indices = @transform_0, window_bounds = array<i64: 288, 25>}, {pipeline_mode = #tpu.pipeline_mode<synchronous>, transform_indices = @transform_1, window_bounds = array<i64: 25, 128>}, {pipeline_mode = #tpu.pipeline_mode<synchronous>, transform_indices = @transform_2, window_bounds = array<i64: 1, 128>}, {transform_indices = @transform_3, window_bounds = array<i64: 288, 128>}]} {
    %c0 = arith.constant 0 : index
    %c0_0 = arith.constant 0 : index
    %0 = vector.load %arg1[%c0, %c0_0] : memref<288x25xf32, #tpu.memory_space<vmem>>, vector<288x25xf32>
    %c0_1 = arith.constant 0 : index
    %c0_2 = arith.constant 0 : index
    %1 = vector.load %arg2[%c0_1, %c0_2] : memref<25x128xf32, #tpu.memory_space<vmem>>, vector<25x128xf32>
    %cst = arith.constant dense<0.000000e+00> : vector<288x128xf32>
    %2 = tpu.matmul %0, %1, %cst {dimension_numbers = #tpu.dot_dimension_numbers<[1], [0], [0], [1], [0, 0, 1, 1], [], []>} : vector<288x25xf32>, vector<25x128xf32>, vector<288x128xf32> -> vector<288x128xf32>
    %c0_3 = arith.constant 0 : index
    %c0_4 = arith.constant 0 : index
    %3 = vector.load %arg3[%c0_3, %c0_4] : memref<1x128xf32, #tpu.memory_space<vmem>>, vector<1x128xf32>
    %4 = vector.broadcast %3 : vector<1x128xf32> to vector<288x128xf32>
    %5 = arith.addf %2, %4 : vector<288x128xf32>
    %cst_5 = arith.constant 0.000000e+00 : f32
    %6 = vector.broadcast %cst_5 : f32 to vector<288x128xf32>
    %7 = arith.maximumf %5, %6 : vector<288x128xf32>
    %c0_6 = arith.constant 0 : index
    %c0_7 = arith.constant 0 : index
    %8 = vector.load %arg4[%c0_6, %c0_7] : memref<288x128xf32, #tpu.memory_space<vmem>>, vector<288x128xf32>
    tpu.vector_store %arg4[%c0_6, %c0_7], %7 {strides = array<i32>} : memref<288x128xf32, #tpu.memory_space<vmem>>, vector<288x128xf32>,
    return
  }
  func.func @transform_0(%arg0: i32) -> (i32, i32) {
    %c0_i32 = arith.constant 0 : i32
    %c0_i32_0 = arith.constant 0 : i32
    return %arg0, %c0_i32 : i32, i32
  }
  func.func @transform_1(%arg0: i32) -> (i32, i32) {
    %c0_i32 = arith.constant 0 : i32
    %c0_i32_0 = arith.constant 0 : i32
    %c0_i32_1 = arith.constant 0 : i32
    return %c0_i32, %c0_i32_0 : i32, i32
  }
  func.func @transform_2(%arg0: i32) -> (i32, i32) {
    %c0_i32 = arith.constant 0 : i32
    %c0_i32_0 = arith.constant 0 : i32
    %c0_i32_1 = arith.constant 0 : i32
    return %c0_i32, %c0_i32_0 : i32, i32
  }
  func.func @transform_3(%arg0: i32) -> (i32, i32) {
    %c0_i32 = arith.constant 0 : i32
    %c0_i32_0 = arith.constant 0 : i32
    return %arg0, %c0_i32 : i32, i32
  }
}

module attributes {stable_mosaic.version = 11 : i64} {
  func.func @_matmul_bias_act_kernel(%arg0: i32, %arg1: memref<32x800xf32, #tpu.memory_space<vmem>>, %arg2: memref<800x128xf32, #tpu.memory_space<vmem>>, %arg3: memref<1x128xf32, #tpu.memory_space<vmem>>, %arg4: memref<32x128xf32, #tpu.memory_space<vmem>>) attributes {dimension_semantics = [#tpu.dimension_semantics<parallel>], iteration_bounds = array<i64: 1>, scalar_prefetch = 0 : i64, scratch_operands = 0 : i64, tpu.core_type = #tpu.core_type<tc>, window_params = [{transform_indices = @transform_0, window_bounds = array<i64: 32, 800>}, {pipeline_mode = #tpu.pipeline_mode<synchronous>, transform_indices = @transform_1, window_bounds = array<i64: 800, 128>}, {pipeline_mode = #tpu.pipeline_mode<synchronous>, transform_indices = @transform_2, window_bounds = array<i64: 1, 128>}, {transform_indices = @transform_3, window_bounds = array<i64: 32, 128>}]} {
    %c0 = arith.constant 0 : index
    %c0_0 = arith.constant 0 : index
    %0 = vector.load %arg1[%c0, %c0_0] : memref<32x800xf32, #tpu.memory_space<vmem>>, vector<32x800xf32>
    %c0_1 = arith.constant 0 : index
    %c0_2 = arith.constant 0 : index
    %1 = vector.load %arg2[%c0_1, %c0_2] : memref<800x128xf32, #tpu.memory_space<vmem>>, vector<800x128xf32>
    %cst = arith.constant dense<0.000000e+00> : vector<32x128xf32>
    %2 = tpu.matmul %0, %1, %cst {dimension_numbers = #tpu.dot_dimension_numbers<[1], [0], [0], [1], [0, 0, 1, 1], [], []>} : vector<32x800xf32>, vector<800x128xf32>, vector<32x128xf32> -> vector<32x128xf32>
    %c0_3 = arith.constant 0 : index
    %c0_4 = arith.constant 0 : index
    %3 = vector.load %arg3[%c0_3, %c0_4] : memref<1x128xf32, #tpu.memory_space<vmem>>, vector<1x128xf32>
    %4 = vector.broadcast %3 : vector<1x128xf32> to vector<32x128xf32>
    %5 = arith.addf %2, %4 : vector<32x128xf32>
    %c0_5 = arith.constant 0 : index
    %c0_6 = arith.constant 0 : index
    %6 = vector.load %arg4[%c0_5, %c0_6] : memref<32x128xf32, #tpu.memory_space<vmem>>, vector<32x128xf32>
    tpu.vector_store %arg4[%c0_5, %c0_6], %5 {strides = array<i32>} : memref<32x128xf32, #tpu.memory_space<vmem>>, vector<32x128xf32>,
    return
  }
  func.func @transform_0(%arg0: i32) -> (i32, i32) {
    %c0_i32 = arith.constant 0 : i32
    %c0_i32_0 = arith.constant 0 : i32
    return %arg0, %c0_i32 : i32, i32
  }
  func.func @transform_1(%arg0: i32) -> (i32, i32) {
    %c0_i32 = arith.constant 0 : i32
    %c0_i32_0 = arith.constant 0 : i32
    %c0_i32_1 = arith.constant 0 : i32
    return %c0_i32, %c0_i32_0 : i32, i32
  }
  func.func @transform_2(%arg0: i32) -> (i32, i32) {
    %c0_i32 = arith.constant 0 : i32
    %c0_i32_0 = arith.constant 0 : i32
    %c0_i32_1 = arith.constant 0 : i32
    return %c0_i32, %c0_i32_0 : i32, i32
  }
  func.func @transform_3(%arg0: i32) -> (i32, i32) {
    %c0_i32 = arith.constant 0 : i32
    %c0_i32_0 = arith.constant 0 : i32
    return %arg0, %c0_i32 : i32, i32
  }
}

module attributes {stable_mosaic.version = 11 : i64} {
  func.func @_caps_routing_recon_kernel(%arg0: i32, %arg1: memref<2x4x1x128xf32, #tpu.memory_space<vmem>>, %arg2: memref<4x10x16x128xf32, #tpu.memory_space<vmem>>, %arg3: memref<10x1x128xf32, #tpu.memory_space<vmem>>, %arg4: memref<10x16x10xf32, #tpu.memory_space<vmem>>, %arg5: memref<2x10x1x1xf32, #tpu.memory_space<vmem>>, %arg6: memref<10x16x128xf32, #tpu.memory_space<vmem>>, %arg7: memref<1x1x128xf32, #tpu.memory_space<vmem>>, %arg8: memref<128x128xf32, #tpu.memory_space<vmem>>, %arg9: memref<1x128x1xf32, #tpu.memory_space<vmem>>, %arg10: memref<128x256xf32, #tpu.memory_space<vmem>>, %arg11: memref<1x1x256xf32, #tpu.memory_space<vmem>>, %arg12: memref<2x1x1x10xf32, #tpu.memory_space<vmem>>, %arg13: memref<2x1x1x256xf32, #tpu.memory_space<vmem>>) attributes {dimension_semantics = [#tpu.dimension_semantics<parallel>], iteration_bounds = array<i64: 1>, scalar_prefetch = 0 : i64, scratch_operands = 0 : i64, tpu.core_type = #tpu.core_type<tc>, window_params = [{transform_indices = @transform_0, window_bounds = array<i64: 2, 4, 1, 128>}, {pipeline_mode = #tpu.pipeline_mode<synchronous>, transform_indices = @transform_1, window_bounds = array<i64: 4, 10, 16, 128>}, {pipeline_mode = #tpu.pipeline_mode<synchronous>, transform_indices = @transform_2, window_bounds = array<i64: 10, 1, 128>}, {pipeline_mode = #tpu.pipeline_mode<synchronous>, transform_indices = @transform_3, window_bounds = array<i64: 10, 16, 10>}, {transform_indices = @transform_4, window_bounds = array<i64: 2, 10, 1, 1>}, {pipeline_mode = #tpu.pipeline_mode<synchronous>, transform_indices = @transform_5, window_bounds = array<i64: 10, 16, 128>}, {pipeline_mode = #tpu.pipeline_mode<synchronous>, transform_indices = @transform_6, window_bounds = array<i64: 1, 1, 128>}, {pipeline_mode = #tpu.pipeline_mode<synchronous>, transform_indices = @transform_7, window_bounds = array<i64: 128, 128>}, {pipeline_mode = #tpu.pipeline_mode<synchronous>, transform_indices = @transform_8, window_bounds = array<i64: 1, 128, 1>}, {pipeline_mode = #tpu.pipeline_mode<synchronous>, transform_indices = @transform_9, window_bounds = array<i64: 128, 256>}, {pipeline_mode = #tpu.pipeline_mode<synchronous>, transform_indices = @transform_10, window_bounds = array<i64: 1, 1, 256>}, {transform_indices = @transform_11, window_bounds = array<i64: 2, 1, 1, 10>}, {transform_indices = @transform_12, window_bounds = array<i64: 2, 1, 1, 256>}]} {
    %c0 = arith.constant 0 : index
    %c0_0 = arith.constant 0 : index
    %c0_1 = arith.constant 0 : index
    %c0_2 = arith.constant 0 : index
    %0 = vector.load %arg1[%c0, %c0_0, %c0_1, %c0_2] : memref<2x4x1x128xf32, #tpu.memory_space<vmem>>, vector<2x4x1x128xf32>
    %1 = arith.mulf %0, %0 : vector<2x4x1x128xf32>
    %cst = arith.constant dense<0.000000e+00> : vector<2x1x128xf32>
    %2 = vector.multi_reduction <add>, %1, %cst [1] : vector<2x4x1x128xf32> to vector<2x1x128xf32>
    %3 = vector.shape_cast %2 : vector<2x1x128xf32> to vector<2x1x1x128xf32>
    %cst_3 = arith.constant 9.99999993E-9 : f32
    %4 = vector.broadcast %cst_3 : f32 to vector<2x1x1x128xf32>
    %5 = arith.addf %3, %4 : vector<2x1x1x128xf32>
    %6 = math.rsqrt %5 : vector<2x1x1x128xf32>
    %7 = arith.mulf %3, %6 : vector<2x1x1x128xf32>
    %cst_4 = arith.constant 1.000000e+00 : f32
    %8 = vector.broadcast %cst_4 : f32 to vector<2x1x1x128xf32>
    %9 = arith.addf %8, %3 : vector<2x1x1x128xf32>
    %10 = tpu.reciprocal %9 {approx = true} : vector<2x1x1x128xf32> -> vector<2x1x1x128xf32>
    %11 = arith.mulf %7, %10 : vector<2x1x1x128xf32>
    %12 = vector.broadcast %11 : vector<2x1x1x128xf32> to vector<2x4x1x128xf32>
    %13 = arith.mulf %0, %12 : vector<2x4x1x128xf32>
    %14 = vector.extract_strided_slice %13 {offsets = [0, 0, 0, 0], sizes = [2, 1, 1, 128], strides = [1, 1, 1, 1]} : vector<2x4x1x128xf32> to vector<2x1x1x128xf32>
    %c0_5 = arith.constant 0 : index
    %c0_6 = arith.constant 0 : index
    %c0_7 = arith.constant 0 : index
    %c0_8 = arith.constant 0 : index
    %15 = vector.load %arg2[%c0_5, %c0_6, %c0_7, %c0_8] : memref<4x10x16x128xf32, #tpu.memory_space<vmem>>, vector<1x10x16x128xf32>
    %16 = vector.shape_cast %15 : vector<1x10x16x128xf32> to vector<10x16x128xf32>
    %17 = vector.shape_cast %16 : vector<10x16x128xf32> to vector<1x10x16x128xf32>
    %18 = vector.broadcast %14 : vector<2x1x1x128xf32> to vector<2x10x16x128xf32>
    %19 = vector.broadcast %17 : vector<1x10x16x128xf32> to vector<2x10x16x128xf32>
    %20 = arith.mulf %18, %19 : vector<2x10x16x128xf32>
    %21 = vector.extract_strided_slice %13 {offsets = [0, 1, 0, 0], sizes = [2, 1, 1, 128], strides = [1, 1, 1, 1]} : vector<2x4x1x128xf32> to vector<2x1x1x128xf32>
    %c1 = arith.constant 1 : index
    %c0_9 = arith.constant 0 : index
    %c0_10 = arith.constant 0 : index
    %c0_11 = arith.constant 0 : index
    %22 = vector.load %arg2[%c1, %c0_9, %c0_10, %c0_11] : memref<4x10x16x128xf32, #tpu.memory_space<vmem>>, vector<1x10x16x128xf32>
    %23 = vector.shape_cast %22 : vector<1x10x16x128xf32> to vector<10x16x128xf32>
    %24 = vector.shape_cast %23 : vector<10x16x128xf32> to vector<1x10x16x128xf32>
    %25 = vector.broadcast %21 : vector<2x1x1x128xf32> to vector<2x10x16x128xf32>
    %26 = vector.broadcast %24 : vector<1x10x16x128xf32> to vector<2x10x16x128xf32>
    %27 = arith.mulf %25, %26 : vector<2x10x16x128xf32>
    %28 = arith.addf %20, %27 : vector<2x10x16x128xf32>
    %29 = vector.extract_strided_slice %13 {offsets = [0, 2, 0, 0], sizes = [2, 1, 1, 128], strides = [1, 1, 1, 1]} : vector<2x4x1x128xf32> to vector<2x1x1x128xf32>
    %c2 = arith.constant 2 : index
    %c0_12 = arith.constant 0 : index
    %c0_13 = arith.constant 0 : index
    %c0_14 = arith.constant 0 : index
    %30 = vector.load %arg2[%c2, %c0_12, %c0_13, %c0_14] : memref<4x10x16x128xf32, #tpu.memory_space<vmem>>, vector<1x10x16x128xf32>
    %31 = vector.shape_cast %30 : vector<1x10x16x128xf32> to vector<10x16x128xf32>
    %32 = vector.shape_cast %31 : vector<10x16x128xf32> to vector<1x10x16x128xf32>
    %33 = vector.broadcast %29 : vector<2x1x1x128xf32> to vector<2x10x16x128xf32>
    %34 = vector.broadcast %32 : vector<1x10x16x128xf32> to vector<2x10x16x128xf32>
    %35 = arith.mulf %33, %34 : vector<2x10x16x128xf32>
    %36 = arith.addf %28, %35 : vector<2x10x16x128xf32>
    %37 = vector.extract_strided_slice %13 {offsets = [0, 3, 0, 0], sizes = [2, 1, 1, 128], strides = [1, 1, 1, 1]} : vector<2x4x1x128xf32> to vector<2x1x1x128xf32>
    %c3 = arith.constant 3 : index
    %c0_15 = arith.constant 0 : index
    %c0_16 = arith.constant 0 : index
    %c0_17 = arith.constant 0 : index
    %38 = vector.load %arg2[%c3, %c0_15, %c0_16, %c0_17] : memref<4x10x16x128xf32, #tpu.memory_space<vmem>>, vector<1x10x16x128xf32>
    %39 = vector.shape_cast %38 : vector<1x10x16x128xf32> to vector<10x16x128xf32>
    %40 = vector.shape_cast %39 : vector<10x16x128xf32> to vector<1x10x16x128xf32>
    %41 = vector.broadcast %37 : vector<2x1x1x128xf32> to vector<2x10x16x128xf32>
    %42 = vector.broadcast %40 : vector<1x10x16x128xf32> to vector<2x10x16x128xf32>
    %43 = arith.mulf %41, %42 : vector<2x10x16x128xf32>
    %44 = arith.addf %36, %43 : vector<2x10x16x128xf32>
    %c0_18 = arith.constant 0 : index
    %c0_19 = arith.constant 0 : index
    %c0_20 = arith.constant 0 : index
    %45 = vector.load %arg3[%c0_18, %c0_19, %c0_20] : memref<10x1x128xf32, #tpu.memory_space<vmem>>, vector<10x1x128xf32>
    %46 = vector.shape_cast %45 : vector<10x1x128xf32> to vector<1x10x1x128xf32>
    %47 = vector.shape_cast %46 : vector<1x10x1x128xf32> to vector<1x10x1x128xf32>
    %48 = vector.broadcast %47 : vector<1x10x1x128xf32> to vector<2x10x1x128xf32>
    %cst_21 = arith.constant dense<0xFF800000> : vector<2x1x128xf32>
    %49 = vector.multi_reduction <maximumf>, %48, %cst_21 [1] : vector<2x10x1x128xf32> to vector<2x1x128xf32>
    %50 = vector.shape_cast %49 : vector<2x1x128xf32> to vector<2x1x1x128xf32>
    %51 = vector.broadcast %50 : vector<2x1x1x128xf32> to vector<2x10x1x128xf32>
    %52 = arith.subf %48, %51 : vector<2x10x1x128xf32>
    %53 = math.exp %52 : vector<2x10x1x128xf32>
    %cst_22 = arith.constant dense<0.000000e+00> : vector<2x1x128xf32>
    %54 = vector.multi_reduction <add>, %53, %cst_22 [1] : vector<2x10x1x128xf32> to vector<2x1x128xf32>
    %55 = vector.shape_cast %54 : vector<2x1x128xf32> to vector<2x1x1x128xf32>
    %56 = tpu.reciprocal %55 {approx = true} : vector<2x1x1x128xf32> -> vector<2x1x1x128xf32>
    %57 = vector.broadcast %56 : vector<2x1x1x128xf32> to vector<2x10x1x128xf32>
    %58 = arith.mulf %53, %57 : vector<2x10x1x128xf32>
    %59 = vector.broadcast %58 : vector<2x10x1x128xf32> to vector<2x10x16x128xf32>
    %60 = arith.mulf %59, %44 : vector<2x10x16x128xf32>
    %cst_23 = arith.constant dense<0.000000e+00> : vector<2x10x16xf32>
    %61 = vector.multi_reduction <add>, %60, %cst_23 [3] : vector<2x10x16x128xf32> to vector<2x10x16xf32>
    %62 = vector.shape_cast %61 : vector<2x10x16xf32> to vector<2x10x16x1xf32>
    %63 = arith.mulf %62, %62 : vector<2x10x16x1xf32>
    %cst_24 = arith.constant dense<0.000000e+00> : vector<2x10x1xf32>
    %64 = vector.multi_reduction <add>, %63, %cst_24 [2] : vector<2x10x16x1xf32> to vector<2x10x1xf32>
    %65 = vector.shape_cast %64 : vector<2x10x1xf32> to vector<2x10x1x1xf32>
    %cst_25 = arith.constant 9.99999993E-9 : f32
    %66 = vector.broadcast %cst_25 : f32 to vector<2x10x1x1xf32>
    %67 = arith.addf %65, %66 : vector<2x10x1x1xf32>
    %68 = math.rsqrt %67 : vector<2x10x1x1xf32>
    %69 = arith.mulf %65, %68 : vector<2x10x1x1xf32>
    %cst_26 = arith.constant 1.000000e+00 : f32
    %70 = vector.broadcast %cst_26 : f32 to vector<2x10x1x1xf32>
    %71 = arith.addf %70, %65 : vector<2x10x1x1xf32>
    %72 = tpu.reciprocal %71 {approx = true} : vector<2x10x1x1xf32> -> vector<2x10x1x1xf32>
    %73 = arith.mulf %69, %72 : vector<2x10x1x1xf32>
    %74 = vector.broadcast %73 : vector<2x10x1x1xf32> to vector<2x10x16x1xf32>
    %75 = arith.mulf %62, %74 : vector<2x10x16x1xf32>
    %76 = vector.broadcast %75 : vector<2x10x16x1xf32> to vector<2x10x16x128xf32>
    %77 = arith.mulf %44, %76 : vector<2x10x16x128xf32>
    %cst_27 = arith.constant dense<0.000000e+00> : vector<2x10x128xf32>
    %78 = vector.multi_reduction <add>, %77, %cst_27 [2] : vector<2x10x16x128xf32> to vector<2x10x128xf32>
    %79 = vector.shape_cast %78 : vector<2x10x128xf32> to vector<2x10x1x128xf32>
    %80 = arith.addf %48, %79 : vector<2x10x1x128xf32>
    %cst_28 = arith.constant dense<0xFF800000> : vector<2x1x128xf32>
    %81 = vector.multi_reduction <maximumf>, %80, %cst_28 [1] : vector<2x10x1x128xf32> to vector<2x1x128xf32>
    %82 = vector.shape_cast %81 : vector<2x1x128xf32> to vector<2x1x1x128xf32>
    %83 = vector.broadcast %82 : vector<2x1x1x128xf32> to vector<2x10x1x128xf32>
    %84 = arith.subf %80, %83 : vector<2x10x1x128xf32>
    %85 = math.exp %84 : vector<2x10x1x128xf32>
    %cst_29 = arith.constant dense<0.000000e+00> : vector<2x1x128xf32>
    %86 = vector.multi_reduction <add>, %85, %cst_29 [1] : vector<2x10x1x128xf32> to vector<2x1x128xf32>
    %87 = vector.shape_cast %86 : vector<2x1x128xf32> to vector<2x1x1x128xf32>
    %88 = tpu.reciprocal %87 {approx = true} : vector<2x1x1x128xf32> -> vector<2x1x1x128xf32>
    %89 = vector.broadcast %88 : vector<2x1x1x128xf32> to vector<2x10x1x128xf32>
    %90 = arith.mulf %85, %89 : vector<2x10x1x128xf32>
    %91 = vector.broadcast %90 : vector<2x10x1x128xf32> to vector<2x10x16x128xf32>
    %92 = arith.mulf %91, %44 : vector<2x10x16x128xf32>
    %cst_30 = arith.constant dense<0.000000e+00> : vector<2x10x16xf32>
    %93 = vector.multi_reduction <add>, %92, %cst_30 [3] : vector<2x10x16x128xf32> to vector<2x10x16xf32>
    %94 = vector.shape_cast %93 : vector<2x10x16xf32> to vector<2x10x16x1xf32>
    %95 = arith.mulf %94, %94 : vector<2x10x16x1xf32>
    %cst_31 = arith.constant dense<0.000000e+00> : vector<2x10x1xf32>
    %96 = vector.multi_reduction <add>, %95, %cst_31 [2] : vector<2x10x16x1xf32> to vector<2x10x1xf32>
    %97 = vector.shape_cast %96 : vector<2x10x1xf32> to vector<2x10x1x1xf32>
    %cst_32 = arith.constant 9.99999993E-9 : f32
    %98 = vector.broadcast %cst_32 : f32 to vector<2x10x1x1xf32>
    %99 = arith.addf %97, %98 : vector<2x10x1x1xf32>
    %100 = math.rsqrt %99 : vector<2x10x1x1xf32>
    %101 = arith.mulf %97, %100 : vector<2x10x1x1xf32>
    %cst_33 = arith.constant 1.000000e+00 : f32
    %102 = vector.broadcast %cst_33 : f32 to vector<2x10x1x1xf32>
    %103 = arith.addf %102, %97 : vector<2x10x1x1xf32>
    %104 = tpu.reciprocal %103 {approx = true} : vector<2x10x1x1xf32> -> vector<2x10x1x1xf32>
    %105 = arith.mulf %101, %104 : vector<2x10x1x1xf32>
    %106 = vector.broadcast %105 : vector<2x10x1x1xf32> to vector<2x10x16x1xf32>
    %107 = arith.mulf %94, %106 : vector<2x10x16x1xf32>
    %108 = vector.broadcast %107 : vector<2x10x16x1xf32> to vector<2x10x16x128xf32>
    %109 = arith.mulf %44, %108 : vector<2x10x16x128xf32>
    %cst_34 = arith.constant dense<0.000000e+00> : vector<2x10x128xf32>
    %110 = vector.multi_reduction <add>, %109, %cst_34 [2] : vector<2x10x16x128xf32> to vector<2x10x128xf32>
    %111 = vector.shape_cast %110 : vector<2x10x128xf32> to vector<2x10x1x128xf32>
    %112 = arith.addf %80, %111 : vector<2x10x1x128xf32>
    %cst_35 = arith.constant dense<0xFF800000> : vector<2x1x128xf32>
    %113 = vector.multi_reduction <maximumf>, %112, %cst_35 [1] : vector<2x10x1x128xf32> to vector<2x1x128xf32>
    %114 = vector.shape_cast %113 : vector<2x1x128xf32> to vector<2x1x1x128xf32>
    %115 = vector.broadcast %114 : vector<2x1x1x128xf32> to vector<2x10x1x128xf32>
    %116 = arith.subf %112, %115 : vector<2x10x1x128xf32>
    %117 = math.exp %116 : vector<2x10x1x128xf32>
    %cst_36 = arith.constant dense<0.000000e+00> : vector<2x1x128xf32>
    %118 = vector.multi_reduction <add>, %117, %cst_36 [1] : vector<2x10x1x128xf32> to vector<2x1x128xf32>
    %119 = vector.shape_cast %118 : vector<2x1x128xf32> to vector<2x1x1x128xf32>
    %120 = tpu.reciprocal %119 {approx = true} : vector<2x1x1x128xf32> -> vector<2x1x1x128xf32>
    %121 = vector.broadcast %120 : vector<2x1x1x128xf32> to vector<2x10x1x128xf32>
    %122 = arith.mulf %117, %121 : vector<2x10x1x128xf32>
    %123 = vector.broadcast %122 : vector<2x10x1x128xf32> to vector<2x10x16x128xf32>
    %124 = arith.mulf %123, %44 : vector<2x10x16x128xf32>
    %cst_37 = arith.constant dense<0.000000e+00> : vector<2x10x16xf32>
    %125 = vector.multi_reduction <add>, %124, %cst_37 [3] : vector<2x10x16x128xf32> to vector<2x10x16xf32>
    %126 = vector.shape_cast %125 : vector<2x10x16xf32> to vector<2x10x16x1xf32>
    %127 = arith.mulf %126, %126 : vector<2x10x16x1xf32>
    %cst_38 = arith.constant dense<0.000000e+00> : vector<2x10x1xf32>
    %128 = vector.multi_reduction <add>, %127, %cst_38 [2] : vector<2x10x16x1xf32> to vector<2x10x1xf32>
    %129 = vector.shape_cast %128 : vector<2x10x1xf32> to vector<2x10x1x1xf32>
    %cst_39 = arith.constant 9.99999993E-9 : f32
    %130 = vector.broadcast %cst_39 : f32 to vector<2x10x1x1xf32>
    %131 = arith.addf %129, %130 : vector<2x10x1x1xf32>
    %132 = math.rsqrt %131 : vector<2x10x1x1xf32>
    %133 = arith.mulf %129, %132 : vector<2x10x1x1xf32>
    %cst_40 = arith.constant 1.000000e+00 : f32
    %134 = vector.broadcast %cst_40 : f32 to vector<2x10x1x1xf32>
    %135 = arith.addf %134, %129 : vector<2x10x1x1xf32>
    %136 = tpu.reciprocal %135 {approx = true} : vector<2x10x1x1xf32> -> vector<2x10x1x1xf32>
    %137 = arith.mulf %133, %136 : vector<2x10x1x1xf32>
    %138 = vector.broadcast %137 : vector<2x10x1x1xf32> to vector<2x10x16x1xf32>
    %139 = arith.mulf %126, %138 : vector<2x10x16x1xf32>
    %140 = vector.broadcast %139 : vector<2x10x16x1xf32> to vector<2x10x16x128xf32>
    %141 = arith.mulf %44, %140 : vector<2x10x16x128xf32>
    %cst_41 = arith.constant dense<0.000000e+00> : vector<2x10x128xf32>
    %142 = vector.multi_reduction <add>, %141, %cst_41 [2] : vector<2x10x16x128xf32> to vector<2x10x128xf32>
    %143 = vector.shape_cast %142 : vector<2x10x128xf32> to vector<2x10x1x128xf32>
    %144 = arith.addf %112, %143 : vector<2x10x1x128xf32>
    %cst_42 = arith.constant dense<0xFF800000> : vector<2x1x128xf32>
    %145 = vector.multi_reduction <maximumf>, %144, %cst_42 [1] : vector<2x10x1x128xf32> to vector<2x1x128xf32>
    %146 = vector.shape_cast %145 : vector<2x1x128xf32> to vector<2x1x1x128xf32>
    %147 = vector.broadcast %146 : vector<2x1x1x128xf32> to vector<2x10x1x128xf32>
    %148 = arith.subf %144, %147 : vector<2x10x1x128xf32>
    %149 = math.exp %148 : vector<2x10x1x128xf32>
    %cst_43 = arith.constant dense<0.000000e+00> : vector<2x1x128xf32>
    %150 = vector.multi_reduction <add>, %149, %cst_43 [1] : vector<2x10x1x128xf32> to vector<2x1x128xf32>
    %151 = vector.shape_cast %150 : vector<2x1x128xf32> to vector<2x1x1x128xf32>
    %152 = tpu.reciprocal %151 {approx = true} : vector<2x1x1x128xf32> -> vector<2x1x1x128xf32>
    %153 = vector.broadcast %152 : vector<2x1x1x128xf32> to vector<2x10x1x128xf32>
    %154 = arith.mulf %149, %153 : vector<2x10x1x128xf32>
    %155 = vector.broadcast %154 : vector<2x10x1x128xf32> to vector<2x10x16x128xf32>
    %156 = arith.mulf %155, %44 : vector<2x10x16x128xf32>
    %cst_44 = arith.constant dense<0.000000e+00> : vector<2x10x16xf32>
    %157 = vector.multi_reduction <add>, %156, %cst_44 [3] : vector<2x10x16x128xf32> to vector<2x10x16xf32>
    %158 = vector.shape_cast %157 : vector<2x10x16xf32> to vector<2x10x16x1xf32>
    %159 = arith.mulf %158, %158 : vector<2x10x16x1xf32>
    %cst_45 = arith.constant dense<0.000000e+00> : vector<2x10x1xf32>
    %160 = vector.multi_reduction <add>, %159, %cst_45 [2] : vector<2x10x16x1xf32> to vector<2x10x1xf32>
    %161 = vector.shape_cast %160 : vector<2x10x1xf32> to vector<2x10x1x1xf32>
    %cst_46 = arith.constant 9.99999993E-9 : f32
    %162 = vector.broadcast %cst_46 : f32 to vector<2x10x1x1xf32>
    %163 = arith.addf %161, %162 : vector<2x10x1x1xf32>
    %164 = math.rsqrt %163 : vector<2x10x1x1xf32>
    %165 = arith.mulf %161, %164 : vector<2x10x1x1xf32>
    %cst_47 = arith.constant 1.000000e+00 : f32
    %166 = vector.broadcast %cst_47 : f32 to vector<2x10x1x1xf32>
    %167 = arith.addf %166, %161 : vector<2x10x1x1xf32>
    %168 = tpu.reciprocal %167 {approx = true} : vector<2x10x1x1xf32> -> vector<2x10x1x1xf32>
    %169 = arith.mulf %165, %168 : vector<2x10x1x1xf32>
    %170 = vector.broadcast %169 : vector<2x10x1x1xf32> to vector<2x10x16x1xf32>
    %171 = arith.mulf %158, %170 : vector<2x10x16x1xf32>
    %172 = arith.mulf %171, %171 : vector<2x10x16x1xf32>
    %c0_48 = arith.constant 0 : index
    %c0_49 = arith.constant 0 : index
    %c0_50 = arith.constant 0 : index
    %173 = vector.load %arg4[%c0_48, %c0_49, %c0_50] : memref<10x16x10xf32, #tpu.memory_space<vmem>>, vector<10x16x10xf32>
    %174 = vector.shape_cast %173 : vector<10x16x10xf32> to vector<1x10x16x10xf32>
    %175 = vector.broadcast %172 : vector<2x10x16x1xf32> to vector<2x10x16x10xf32>
    %176 = vector.broadcast %174 : vector<1x10x16x10xf32> to vector<2x10x16x10xf32>
    %177 = arith.mulf %175, %176 : vector<2x10x16x10xf32>
    %cst_51 = arith.constant dense<0.000000e+00> : vector<2x10x10xf32>
    %178 = vector.multi_reduction <add>, %177, %cst_51 [2] : vector<2x10x16x10xf32> to vector<2x10x10xf32>
    %179 = vector.shape_cast %178 : vector<2x10x10xf32> to vector<2x10x1x10xf32>
    %cst_52 = arith.constant dense<0.000000e+00> : vector<2x1x10xf32>
    %180 = vector.multi_reduction <add>, %179, %cst_52 [1] : vector<2x10x1x10xf32> to vector<2x1x10xf32>
    %181 = vector.shape_cast %180 : vector<2x1x10xf32> to vector<2x1x1x10xf32>
    %cst_53 = arith.constant 9.99999993E-9 : f32
    %182 = vector.broadcast %cst_53 : f32 to vector<2x1x1x10xf32>
    %183 = arith.addf %181, %182 : vector<2x1x1x10xf32>
    %184 = math.sqrt %183 : vector<2x1x1x10xf32>
    %c0_54 = arith.constant 0 : index
    %c0_55 = arith.constant 0 : index
    %c0_56 = arith.constant 0 : index
    %c0_57 = arith.constant 0 : index
    %185 = vector.load %arg12[%c0_54, %c0_55, %c0_56, %c0_57] : memref<2x1x1x10xf32, #tpu.memory_space<vmem>>, vector<2x1x1x10xf32>
    tpu.vector_store %arg12[%c0_54, %c0_55, %c0_56, %c0_57], %184 {strides = array<i32>} : memref<2x1x1x10xf32, #tpu.memory_space<vmem>>, vector<2x1x1x10xf32>,
    %c0_58 = arith.constant 0 : index
    %c0_59 = arith.constant 0 : index
    %c0_60 = arith.constant 0 : index
    %c0_61 = arith.constant 0 : index
    %186 = vector.load %arg5[%c0_58, %c0_59, %c0_60, %c0_61] : memref<2x10x1x1xf32, #tpu.memory_space<vmem>>, vector<2x10x1x1xf32>
    %187 = vector.broadcast %186 : vector<2x10x1x1xf32> to vector<2x10x16x1xf32>
    %188 = arith.mulf %171, %187 : vector<2x10x16x1xf32>
    %c0_62 = arith.constant 0 : index
    %c0_63 = arith.constant 0 : index
    %c0_64 = arith.constant 0 : index
    %189 = vector.load %arg6[%c0_62, %c0_63, %c0_64] : memref<10x16x128xf32, #tpu.memory_space<vmem>>, vector<10x16x128xf32>
    %190 = vector.shape_cast %189 : vector<10x16x128xf32> to vector<1x10x16x128xf32>
    %191 = vector.broadcast %188 : vector<2x10x16x1xf32> to vector<2x10x16x128xf32>
    %192 = vector.broadcast %190 : vector<1x10x16x128xf32> to vector<2x10x16x128xf32>
    %193 = arith.mulf %191, %192 : vector<2x10x16x128xf32>
    %cst_65 = arith.constant dense<0.000000e+00> : vector<2x10x128xf32>
    %194 = vector.multi_reduction <add>, %193, %cst_65 [2] : vector<2x10x16x128xf32> to vector<2x10x128xf32>
    %195 = vector.shape_cast %194 : vector<2x10x128xf32> to vector<2x10x1x128xf32>
    %cst_66 = arith.constant dense<0.000000e+00> : vector<2x1x128xf32>
    %196 = vector.multi_reduction <add>, %195, %cst_66 [1] : vector<2x10x1x128xf32> to vector<2x1x128xf32>
    %197 = vector.shape_cast %196 : vector<2x1x128xf32> to vector<2x1x1x128xf32>
    %c0_67 = arith.constant 0 : index
    %c0_68 = arith.constant 0 : index
    %c0_69 = arith.constant 0 : index
    %198 = vector.load %arg7[%c0_67, %c0_68, %c0_69] : memref<1x1x128xf32, #tpu.memory_space<vmem>>, vector<1x1x128xf32>
    %199 = vector.shape_cast %198 : vector<1x1x128xf32> to vector<1x1x1x128xf32>
    %200 = vector.broadcast %199 : vector<1x1x1x128xf32> to vector<2x1x1x128xf32>
    %201 = arith.addf %197, %200 : vector<2x1x1x128xf32>
    %cst_70 = arith.constant 0.000000e+00 : f32
    %202 = vector.broadcast %cst_70 : f32 to vector<2x1x1x128xf32>
    %203 = arith.maximumf %201, %202 : vector<2x1x1x128xf32>
    %c0_71 = arith.constant 0 : index
    %c0_72 = arith.constant 0 : index
    %204 = vector.load %arg8[%c0_71, %c0_72] : memref<128x128xf32, #tpu.memory_space<vmem>>, vector<128x128xf32>
    %205 = vector.shape_cast %204 : vector<128x128xf32> to vector<1x1x128x128xf32>
    %206 = vector.broadcast %203 : vector<2x1x1x128xf32> to vector<2x1x128x128xf32>
    %207 = vector.broadcast %205 : vector<1x1x128x128xf32> to vector<2x1x128x128xf32>
    %208 = arith.mulf %206, %207 : vector<2x1x128x128xf32>
    %cst_73 = arith.constant dense<0.000000e+00> : vector<2x1x128xf32>
    %209 = vector.multi_reduction <add>, %208, %cst_73 [3] : vector<2x1x128x128xf32> to vector<2x1x128xf32>
    %210 = vector.shape_cast %209 : vector<2x1x128xf32> to vector<2x1x128x1xf32>
    %c0_74 = arith.constant 0 : index
    %c0_75 = arith.constant 0 : index
    %c0_76 = arith.constant 0 : index
    %211 = vector.load %arg9[%c0_74, %c0_75, %c0_76] : memref<1x128x1xf32, #tpu.memory_space<vmem>>, vector<1x128x1xf32>
    %212 = vector.shape_cast %211 : vector<1x128x1xf32> to vector<1x1x128x1xf32>
    %213 = vector.broadcast %212 : vector<1x1x128x1xf32> to vector<2x1x128x1xf32>
    %214 = arith.addf %210, %213 : vector<2x1x128x1xf32>
    %cst_77 = arith.constant 0.000000e+00 : f32
    %215 = vector.broadcast %cst_77 : f32 to vector<2x1x128x1xf32>
    %216 = arith.maximumf %214, %215 : vector<2x1x128x1xf32>
    %c0_78 = arith.constant 0 : index
    %c0_79 = arith.constant 0 : index
    %217 = vector.load %arg10[%c0_78, %c0_79] : memref<128x256xf32, #tpu.memory_space<vmem>>, vector<128x256xf32>
    %218 = vector.shape_cast %217 : vector<128x256xf32> to vector<1x1x128x256xf32>
    %219 = vector.broadcast %216 : vector<2x1x128x1xf32> to vector<2x1x128x256xf32>
    %220 = vector.broadcast %218 : vector<1x1x128x256xf32> to vector<2x1x128x256xf32>
    %221 = arith.mulf %219, %220 : vector<2x1x128x256xf32>
    %cst_80 = arith.constant dense<0.000000e+00> : vector<2x1x256xf32>
    %222 = vector.multi_reduction <add>, %221, %cst_80 [2] : vector<2x1x128x256xf32> to vector<2x1x256xf32>
    %223 = vector.shape_cast %222 : vector<2x1x256xf32> to vector<2x1x1x256xf32>
    %c0_81 = arith.constant 0 : index
    %c0_82 = arith.constant 0 : index
    %c0_83 = arith.constant 0 : index
    %224 = vector.load %arg11[%c0_81, %c0_82, %c0_83] : memref<1x1x256xf32, #tpu.memory_space<vmem>>, vector<1x1x256xf32>
    %225 = vector.shape_cast %224 : vector<1x1x256xf32> to vector<1x1x1x256xf32>
    %226 = vector.broadcast %225 : vector<1x1x1x256xf32> to vector<2x1x1x256xf32>
    %227 = arith.addf %223, %226 : vector<2x1x1x256xf32>
    %228 = arith.negf %227 : vector<2x1x1x256xf32>
    %229 = math.exp %228 : vector<2x1x1x256xf32>
    %cst_84 = arith.constant 1.000000e+00 : f32
    %230 = vector.broadcast %cst_84 : f32 to vector<2x1x1x256xf32>
    %231 = arith.addf %230, %229 : vector<2x1x1x256xf32>
    %232 = arith.divf %230, %231 : vector<2x1x1x256xf32>
    %c0_85 = arith.constant 0 : index
    %c0_86 = arith.constant 0 : index
    %c0_87 = arith.constant 0 : index
    %c0_88 = arith.constant 0 : index
    %233 = vector.load %arg13[%c0_85, %c0_86, %c0_87, %c0_88] : memref<2x1x1x256xf32, #tpu.memory_space<vmem>>, vector<2x1x1x256xf32>
    tpu.vector_store %arg13[%c0_85, %c0_86, %c0_87, %c0_88], %232 {strides = array<i32>} : memref<2x1x1x256xf32, #tpu.memory_space<vmem>>, vector<2x1x1x256xf32>,
    return
  }
  func.func @transform_0(%arg0: i32) -> (i32, i32, i32, i32) {
    %c0_i32 = arith.constant 0 : i32
    %c0_i32_0 = arith.constant 0 : i32
    %c0_i32_1 = arith.constant 0 : i32
    %c0_i32_2 = arith.constant 0 : i32
    return %arg0, %c0_i32, %c0_i32_0, %c0_i32_1 : i32, i32, i32, i32
  }
  func.func @transform_1(%arg0: i32) -> (i32, i32, i32, i32) {
    %c0_i32 = arith.constant 0 : i32
    %c0_i32_0 = arith.constant 0 : i32
    %c0_i32_1 = arith.constant 0 : i32
    %c0_i32_2 = arith.constant 0 : i32
    %c0_i32_3 = arith.constant 0 : i32
    return %c0_i32, %c0_i32_0, %c0_i32_1, %c0_i32_2 : i32, i32, i32, i32
  }
  func.func @transform_2(%arg0: i32) -> (i32, i32, i32) {
    %c0_i32 = arith.constant 0 : i32
    %c0_i32_0 = arith.constant 0 : i32
    %c0_i32_1 = arith.constant 0 : i32
    %c0_i32_2 = arith.constant 0 : i32
    return %c0_i32, %c0_i32_0, %c0_i32_1 : i32, i32, i32
  }
  func.func @transform_3(%arg0: i32) -> (i32, i32, i32) {
    %c0_i32 = arith.constant 0 : i32
    %c0_i32_0 = arith.constant 0 : i32
    %c0_i32_1 = arith.constant 0 : i32
    %c0_i32_2 = arith.constant 0 : i32
    return %c0_i32, %c0_i32_0, %c0_i32_1 : i32, i32, i32
  }
  func.func @transform_4(%arg0: i32) -> (i32, i32, i32, i32) {
    %c0_i32 = arith.constant 0 : i32
    %c0_i32_0 = arith.constant 0 : i32
    %c0_i32_1 = arith.constant 0 : i32
    %c0_i32_2 = arith.constant 0 : i32
    return %arg0, %c0_i32, %c0_i32_0, %c0_i32_1 : i32, i32, i32, i32
  }
  func.func @transform_5(%arg0: i32) -> (i32, i32, i32) {
    %c0_i32 = arith.constant 0 : i32
    %c0_i32_0 = arith.constant 0 : i32
    %c0_i32_1 = arith.constant 0 : i32
    %c0_i32_2 = arith.constant 0 : i32
    return %c0_i32, %c0_i32_0, %c0_i32_1 : i32, i32, i32
  }
  func.func @transform_6(%arg0: i32) -> (i32, i32, i32) {
    %c0_i32 = arith.constant 0 : i32
    %c0_i32_0 = arith.constant 0 : i32
    %c0_i32_1 = arith.constant 0 : i32
    %c0_i32_2 = arith.constant 0 : i32
    return %c0_i32, %c0_i32_0, %c0_i32_1 : i32, i32, i32
  }
  func.func @transform_7(%arg0: i32) -> (i32, i32) {
    %c0_i32 = arith.constant 0 : i32
    %c0_i32_0 = arith.constant 0 : i32
    %c0_i32_1 = arith.constant 0 : i32
    return %c0_i32, %c0_i32_0 : i32, i32
  }
  func.func @transform_8(%arg0: i32) -> (i32, i32, i32) {
    %c0_i32 = arith.constant 0 : i32
    %c0_i32_0 = arith.constant 0 : i32
    %c0_i32_1 = arith.constant 0 : i32
    %c0_i32_2 = arith.constant 0 : i32
    return %c0_i32, %c0_i32_0, %c0_i32_1 : i32, i32, i32
  }
  func.func @transform_9(%arg0: i32) -> (i32, i32) {
    %c0_i32 = arith.constant 0 : i32
    %c0_i32_0 = arith.constant 0 : i32
    %c0_i32_1 = arith.constant 0 : i32
    return %c0_i32, %c0_i32_0 : i32, i32
  }
  func.func @transform_10(%arg0: i32) -> (i32, i32, i32) {
    %c0_i32 = arith.constant 0 : i32
    %c0_i32_0 = arith.constant 0 : i32
    %c0_i32_1 = arith.constant 0 : i32
    %c0_i32_2 = arith.constant 0 : i32
    return %c0_i32, %c0_i32_0, %c0_i32_1 : i32, i32, i32
  }
  func.func @transform_11(%arg0: i32) -> (i32, i32, i32, i32) {
    %c0_i32 = arith.constant 0 : i32
    %c0_i32_0 = arith.constant 0 : i32
    %c0_i32_1 = arith.constant 0 : i32
    %c0_i32_2 = arith.constant 0 : i32
    return %arg0, %c0_i32, %c0_i32_0, %c0_i32_1 : i32, i32, i32, i32
  }
  func.func @transform_12(%arg0: i32) -> (i32, i32, i32, i32) {
    %c0_i32 = arith.constant 0 : i32
    %c0_i32_0 = arith.constant 0 : i32
    %c0_i32_1 = arith.constant 0 : i32
    %c0_i32_2 = arith.constant 0 : i32
    return %arg0, %c0_i32, %c0_i32_0, %c0_i32_1 : i32, i32, i32, i32
  }
}

</mosaic_0001>

<bundles_post_ra>
// kernel: capsnet_with_reconstruction_forward.3
= control target key start
LH: loop header
LB: loop body
LE: loop exit
PB: predicated region body
PF: predicated region fallthrough
CT: control target
= control target key end

     0   :  { %vm170_vm0 = vcmask 1040384   ;;  %vm61_vm1 = vcmask 203776   ;;  %vm650_vm2 = vmmov 1   ;;  %s976_s1 = inlined_call_operand.vmem [shape: f32[25,128], index: 1, kind: input, shape index: {}]   ;;  %s977_s0 = inlined_call_operand.vmem [shape: f32[288,25], index: 0, kind: input, shape index: {}]   ;;  %s978_s2 = inlined_call_operand.vmem [shape: f32[1,128], index: 2, kind: input, shape index: {}]   ;;  %s979_s3 = inlined_call_operand.vmem [shape: f32[288,128], index: 3, kind: output, shape index: {}]  }
   0x1   :  { %v50_v0 = vld [vmem:[%s976_s1] sm:$0xff]  ;;  %v51_v1 = vld [vmem:[%s976_s1 + $0x8] sm:$0xff]  ;;  %v52_v2 = vld [vmem:[%s976_s1 + $0x10] sm:$0xff] }
   0x2   :  { %v635_v3 = vpack.c.bf16 %v51_v1, %v50_v0  ;;  %v53_v4 = vld [vmem:[%s976_s1 + $0x18] sm:$0x1]  ;;  %v14_v5 = vld [vmem:[%s977_s0] sm:$0xff]  ;;  %vm640_vm3 = vmpackc.low %vm170_vm0, %vm650_vm2 }
   0x3   :  { %v639_v6 = vpack.c.bf16 %v53_v4, %v52_v2  ;;  %581 = vmatprep.mubr.msk.f32.mxu0 %vm61_vm1, %v14_v5  ;;  %v32_v7 = vld [vmem:[%s977_s0 + $0x90] sm:$0xff]  ;;  %v15_v8 = vld [vmem:[%s977_s0 + $0x8] sm:$0xff]  ;;  %v33_v9 = vld [vmem:[%s977_s0 + $0x98] sm:$0xff] }
   0x4   :  { %636 = vmatprep.subr.bf16.mxu0 %v635_v3  ;;  %645 = vmatprep.subr.bf16.mxu1 %v635_v3  ;;  %v16_v10 = vld [vmem:[%s977_s0 + $0x10] sm:$0xff]  ;;  %v34_v11 = vld [vmem:[%s977_s0 + $0xa0] sm:$0xff]  ;;  %v17_v12 = vld [vmem:[%s977_s0 + $0x18] sm:$0xff] }
   0x5   :  { %638 = vmatpush3.bf16.msra.mxu0 %v635_v3  ;;  %647 = vmatpush3.bf16.msra.mxu1 %v635_v3  ;;  %v35_v13 = vld [vmem:[%s977_s0 + $0xa8] sm:$0xff]  ;;  %v18_v14 = vld [vmem:[%s977_s0 + $0x20] sm:$0xff]  ;;  %v36_v15 = vld [vmem:[%s977_s0 + $0xb0] sm:$0xff] }
   0x6   :  { %641 = vmatprep.subr.msk.bf16.mxu0 %vm640_vm3, %v639_v6  ;;  %646 = vmatprep.subr.msk.bf16.mxu1 %vm640_vm3, %v639_v6  ;;  %v19_v16 = vld [vmem:[%s977_s0 + $0x28] sm:$0xff]  ;;  %v37_v17 = vld [vmem:[%s977_s0 + $0xb8] sm:$0xff]  ;;  %v20_v18 = vld [vmem:[%s977_s0 + $0x30] sm:$0xff] }
   0x7   :  { %608 = vmatprep.mubr.msk.f32.mxu1 %vm61_vm1, %v32_v7  ;;  %v38_v19 = vld [vmem:[%s977_s0 + $0xc0] sm:$0xff]  ;;  %v21_v20 = vld [vmem:[%s977_s0 + $0x38] sm:$0xff]  ;;  %v39_v21 = vld [vmem:[%s977_s0 + $0xc8] sm:$0xff] }
   0x8   :  { %v22_v22 = vld [vmem:[%s977_s0 + $0x40] sm:$0xff]  ;;  %v40_v23 = vld [vmem:[%s977_s0 + $0xd0] sm:$0xff]  ;;  %v23_v24 = vld [vmem:[%s977_s0 + $0x48] sm:$0xff] }
   0x9   :  { %644 = vmatpush3.bf16.msk.msra.mxu0 %vm640_vm3, %v639_v6  ;;  %648 = vmatpush3.bf16.msk.msra.mxu1 %vm640_vm3, %v639_v6  ;;  %v41_v25 = vld [vmem:[%s977_s0 + $0xd8] sm:$0xff]  ;;  %v24_v26 = vld [vmem:[%s977_s0 + $0x50] sm:$0xff]  ;;  %v42_v27 = vld [vmem:[%s977_s0 + $0xe0] sm:$0xff] }
   0xa   :  { %v25_v28 = vld [vmem:[%s977_s0 + $0x58] sm:$0xff]  ;;  %v43_v29 = vld [vmem:[%s977_s0 + $0xe8] sm:$0xff]  ;;  %v26_v30 = vld [vmem:[%s977_s0 + $0x60] sm:$0xff] }
   0xb   :  { %v44_v31 = vld [vmem:[%s977_s0 + $0xf0] sm:$0xff]  ;;  %v27_v32 = vld [vmem:[%s977_s0 + $0x68] sm:$0xff]  ;;  %v45_v33 = vld [vmem:[%s977_s0 + $0xf8] sm:$0xff] }
   0xc   :  { %582 = vmatmul.mubr.msk.f32.vlgmr.msra.gmra.mrb[0].mxu0 %vm61_vm1, %v15_v8  ;;  %609 = vmatmul.mubr.msk.f32.vlgmr.msra.gmra.mrb[0].mxu1 %vm61_vm1, %v33_v9  ;;  %v28_v34 = vld [vmem:[%s977_s0 + $0x70] sm:$0xff]  ;;  %v46_v35 = vld [vmem:[%s977_s0 + $0x100] sm:$0xff]  ;;  %v29_v36 = vld [vmem:[%s977_s0 + $0x78] sm:$0xff] }
   0xd   :  { %584 = vmatprep.mubr.msk.f32.mxu0 %vm61_vm1, %v16_v10  ;;  %611 = vmatprep.mubr.msk.f32.mxu1 %vm61_vm1, %v34_v11  ;;  %v47_v37 = vld [vmem:[%s977_s0 + $0x108] sm:$0xff]  ;;  %v30_v38 = vld [vmem:[%s977_s0 + $0x80] sm:$0xff]  ;;  %v48_v39 = vld [vmem:[%s977_s0 + $0x110] sm:$0xff] }
   0xe   :  { %v31_v40 = vld [vmem:[%s977_s0 + $0x88] sm:$0xff]  ;;  %v49_v41 = vld [vmem:[%s977_s0 + $0x118] sm:$0xff]  ;;  %v830_v42 = vld [vmem:[%s978_s2] ss:$0 sm:$0xff] }
  0x10   :  { %585 = vmatmul.mubr.msk.f32.gmra.mrb[2].mxu0 %vm61_vm1, %v17_v12  ;;  %612 = vmatmul.mubr.msk.f32.gmra.mrb[2].mxu1 %vm61_vm1, %v35_v13 }
  0x11   :  { %587 = vmatprep.mubr.msk.f32.mxu0 %vm61_vm1, %v18_v14  ;;  %614 = vmatprep.mubr.msk.f32.mxu1 %vm61_vm1, %v36_v15 }
  0x14   :  { %588 = vmatmul.mubr.msk.f32.gmra.mrb[4].mxu0 %vm61_vm1, %v19_v16  ;;  %615 = vmatmul.mubr.msk.f32.gmra.mrb[4].mxu1 %vm61_vm1, %v37_v17 }
  0x15   :  { %590 = vmatprep.mubr.msk.f32.mxu0 %vm61_vm1, %v20_v18  ;;  %617 = vmatprep.mubr.msk.f32.mxu1 %vm61_vm1, %v38_v19 }
  0x18   :  { %591 = vmatmul.mubr.msk.f32.gmra.mrb[6].mxu0 %vm61_vm1, %v21_v20  ;;  %618 = vmatmul.mubr.msk.f32.gmra.mrb[6].mxu1 %vm61_vm1, %v39_v21 }
  0x19   :  { %593 = vmatprep.mubr.msk.f32.mxu0 %vm61_vm1, %v22_v22  ;;  %620 = vmatprep.mubr.msk.f32.mxu1 %vm61_vm1, %v40_v23 }
  0x1c   :  { %594 = vmatmul.mubr.msk.f32.gmra.mrb[8].mxu0 %vm61_vm1, %v23_v24  ;;  %621 = vmatmul.mubr.msk.f32.gmra.mrb[8].mxu1 %vm61_vm1, %v41_v25 }
  0x1d   :  { %596 = vmatprep.mubr.msk.f32.mxu0 %vm61_vm1, %v24_v26  ;;  %623 = vmatprep.mubr.msk.f32.mxu1 %vm61_vm1, %v42_v27 }
  0x20   :  { %597 = vmatmul.mubr.msk.f32.gmra.mrb[10].mxu0 %vm61_vm1, %v25_v28  ;;  %624 = vmatmul.mubr.msk.f32.gmra.mrb[10].mxu1 %vm61_vm1, %v43_v29 }
  0x21   :  { %599 = vmatprep.mubr.msk.f32.mxu0 %vm61_vm1, %v26_v30  ;;  %626 = vmatprep.mubr.msk.f32.mxu1 %vm61_vm1, %v44_v31 }
  0x24   :  { %600 = vmatmul.mubr.msk.f32.gmra.mrb[12].mxu0 %vm61_vm1, %v27_v32  ;;  %627 = vmatmul.mubr.msk.f32.gmra.mrb[12].mxu1 %vm61_vm1, %v45_v33 }
  0x25   :  { %602 = vmatprep.mubr.msk.f32.mxu0 %vm61_vm1, %v28_v34  ;;  %629 = vmatprep.mubr.msk.f32.mxu1 %vm61_vm1, %v46_v35 }
  0x28   :  { %603 = vmatmul.mubr.msk.f32.gmra.mrb[14].mxu0 %vm61_vm1, %v29_v36  ;;  %630 = vmatmul.mubr.msk.f32.gmra.mrb[14].mxu1 %vm61_vm1, %v47_v37 }
  0x29   :  { %605 = vmatprep.mubr.msk.f32.mxu0 %vm61_vm1, %v30_v38  ;;  %632 = vmatprep.mubr.msk.f32.mxu1 %vm61_vm1, %v48_v39 }
  0x2c   :  { %606 = vmatmul.mubr.msk.f32.gmra.mrb[16].mxu0 %vm61_vm1, %v31_v40  ;;  %633 = vmatmul.mubr.msk.f32.gmra.mrb[16].mxu1 %vm61_vm1, %v49_v41 }
  0xdf   :  { %v583_v43 = vpop.f32.mrb[0].mxu0  ;;  %v610_v44 = vpop.f32.mrb[0].mxu1 }
  0xe0   :  { %v246_v45 = vadd.f32 %v583_v43, %v830_v42  ;;  %v336_v46 = vadd.f32 %v610_v44, %v830_v42  ;;  %v240_v47 = vpop.f32.mrb[1].mxu0  ;;  %v330_v48 = vpop.f32.mrb[1].mxu1 }
  0xe1   :  { %v241_v49 = vadd.f32 %v830_v42, %v240_v47  ;;  %v331_v50 = vadd.f32 %v830_v42, %v330_v48 }
  0xe2   :  { %v420_v51 = vmax.f32 %v246_v45, 0.0  ;;  %v438_v52 = vmax.f32 %v336_v46, 0.0 }
  0xe3   :  { %v419_v53 = vmax.f32 %v241_v49, 0.0  ;;  %v437_v54 = vmax.f32 %v331_v50, 0.0  ;;  %v586_v55 = vpop.f32.mrb[2].mxu0  ;;  %v613_v56 = vpop.f32.mrb[2].mxu1 }
  0xe4   :  { %456 = vst [vmem:[%s979_s3 + $0x8] sm:$0xff] %v420_v51  ;;  %474 = vst [vmem:[%s979_s3 + $0x98] sm:$0xff] %v438_v52  ;;  %v256_v57 = vadd.f32 %v586_v55, %v830_v42  ;;  %v346_v58 = vadd.f32 %v613_v56, %v830_v42  ;;  %v250_v59 = vpop.f32.mrb[3].mxu0  ;;  %v340_v60 = vpop.f32.mrb[3].mxu1 }
  0xe5   :  { %455 = vst [vmem:[%s979_s3] sm:$0xff] %v419_v53  ;;  %473 = vst [vmem:[%s979_s3 + $0x90] sm:$0xff] %v437_v54  ;;  %v251_v61 = vadd.f32 %v830_v42, %v250_v59  ;;  %v341_v62 = vadd.f32 %v830_v42, %v340_v60 }
  0xe6   :  { %v422_v63 = vmax.f32 %v256_v57, 0.0  ;;  %v440_v0 = vmax.f32 %v346_v58, 0.0 }
  0xe7   :  { %v421_v1 = vmax.f32 %v251_v61, 0.0  ;;  %v439_v2 = vmax.f32 %v341_v62, 0.0  ;;  %v589_v3 = vpop.f32.mrb[4].mxu0  ;;  %v616_v4 = vpop.f32.mrb[4].mxu1 }
  0xe8   :  { %458 = vst [vmem:[%s979_s3 + $0x18] sm:$0xff] %v422_v63  ;;  %476 = vst [vmem:[%s979_s3 + $0xa8] sm:$0xff] %v440_v0  ;;  %v266_v5 = vadd.f32 %v589_v3, %v830_v42  ;;  %v356_v6 = vadd.f32 %v616_v4, %v830_v42  ;;  %v260_v7 = vpop.f32.mrb[5].mxu0  ;;  %v350_v8 = vpop.f32.mrb[5].mxu1 }
  0xe9   :  { %457 = vst [vmem:[%s979_s3 + $0x10] sm:$0xff] %v421_v1  ;;  %475 = vst [vmem:[%s979_s3 + $0xa0] sm:$0xff] %v439_v2  ;;  %v261_v9 = vadd.f32 %v830_v42, %v260_v7  ;;  %v351_v10 = vadd.f32 %v830_v42, %v350_v8 }
  0xea   :  { %v424_v11 = vmax.f32 %v266_v5, 0.0  ;;  %v442_v12 = vmax.f32 %v356_v6, 0.0 }
  0xeb   :  { %v423_v13 = vmax.f32 %v261_v9, 0.0  ;;  %v441_v14 = vmax.f32 %v351_v10, 0.0  ;;  %v592_v15 = vpop.f32.mrb[6].mxu0  ;;  %v619_v16 = vpop.f32.mrb[6].mxu1 }
  0xec   :  { %460 = vst [vmem:[%s979_s3 + $0x28] sm:$0xff] %v424_v11  ;;  %478 = vst [vmem:[%s979_s3 + $0xb8] sm:$0xff] %v442_v12  ;;  %v276_v17 = vadd.f32 %v592_v15, %v830_v42  ;;  %v366_v18 = vadd.f32 %v619_v16, %v830_v42  ;;  %v270_v19 = vpop.f32.mrb[7].mxu0  ;;  %v360_v20 = vpop.f32.mrb[7].mxu1 }
  0xed   :  { %459 = vst [vmem:[%s979_s3 + $0x20] sm:$0xff] %v423_v13  ;;  %477 = vst [vmem:[%s979_s3 + $0xb0] sm:$0xff] %v441_v14  ;;  %v271_v21 = vadd.f32 %v830_v42, %v270_v19  ;;  %v361_v22 = vadd.f32 %v830_v42, %v360_v20 }
  0xee   :  { %v426_v23 = vmax.f32 %v276_v17, 0.0  ;;  %v444_v24 = vmax.f32 %v366_v18, 0.0 }
  0xef   :  { %v425_v25 = vmax.f32 %v271_v21, 0.0  ;;  %v443_v26 = vmax.f32 %v361_v22, 0.0  ;;  %v595_v27 = vpop.f32.mrb[8].mxu0  ;;  %v622_v28 = vpop.f32.mrb[8].mxu1 }
  0xf0   :  { %462 = vst [vmem:[%s979_s3 + $0x38] sm:$0xff] %v426_v23  ;;  %480 = vst [vmem:[%s979_s3 + $0xc8] sm:$0xff] %v444_v24  ;;  %v286_v29 = vadd.f32 %v595_v27, %v830_v42  ;;  %v376_v30 = vadd.f32 %v622_v28, %v830_v42  ;;  %v280_v31 = vpop.f32.mrb[9].mxu0  ;;  %v370_v32 = vpop.f32.mrb[9].mxu1 }
  0xf1   :  { %461 = vst [vmem:[%s979_s3 + $0x30] sm:$0xff] %v425_v25  ;;  %479 = vst [vmem:[%s979_s3 + $0xc0] sm:$0xff] %v443_v26  ;;  %v281_v33 = vadd.f32 %v830_v42, %v280_v31  ;;  %v371_v34 = vadd.f32 %v830_v42, %v370_v32 }
  0xf2   :  { %v428_v35 = vmax.f32 %v286_v29, 0.0  ;;  %v446_v36 = vmax.f32 %v376_v30, 0.0 }
  0xf3   :  { %v427_v37 = vmax.f32 %v281_v33, 0.0  ;;  %v445_v38 = vmax.f32 %v371_v34, 0.0  ;;  %v598_v39 = vpop.f32.mrb[10].mxu0  ;;  %v625_v40 = vpop.f32.mrb[10].mxu1 }
  0xf4   :  { %464 = vst [vmem:[%s979_s3 + $0x48] sm:$0xff] %v428_v35  ;;  %482 = vst [vmem:[%s979_s3 + $0xd8] sm:$0xff] %v446_v36  ;;  %v296_v41 = vadd.f32 %v598_v39, %v830_v42  ;;  %v386_v43 = vadd.f32 %v625_v40, %v830_v42  ;;  %v290_v44 = vpop.f32.mrb[11].mxu0  ;;  %v380_v45 = vpop.f32.mrb[11].mxu1 }
  0xf5   :  { %463 = vst [vmem:[%s979_s3 + $0x40] sm:$0xff] %v427_v37  ;;  %481 = vst [vmem:[%s979_s3 + $0xd0] sm:$0xff] %v445_v38  ;;  %v291_v46 = vadd.f32 %v830_v42, %v290_v44  ;;  %v381_v47 = vadd.f32 %v830_v42, %v380_v45 }
  0xf6   :  { %v430_v48 = vmax.f32 %v296_v41, 0.0  ;;  %v448_v49 = vmax.f32 %v386_v43, 0.0 }
  0xf7   :  { %v429_v50 = vmax.f32 %v291_v46, 0.0  ;;  %v447_v51 = vmax.f32 %v381_v47, 0.0  ;;  %v601_v52 = vpop.f32.mrb[12].mxu0  ;;  %v628_v53 = vpop.f32.mrb[12].mxu1 }
  0xf8   :  { %466 = vst [vmem:[%s979_s3 + $0x58] sm:$0xff] %v430_v48  ;;  %484 = vst [vmem:[%s979_s3 + $0xe8] sm:$0xff] %v448_v49  ;;  %v306_v54 = vadd.f32 %v601_v52, %v830_v42  ;;  %v396_v55 = vadd.f32 %v628_v53, %v830_v42  ;;  %v300_v56 = vpop.f32.mrb[13].mxu0  ;;  %v390_v57 = vpop.f32.mrb[13].mxu1 }
  0xf9   :  { %465 = vst [vmem:[%s979_s3 + $0x50] sm:$0xff] %v429_v50  ;;  %483 = vst [vmem:[%s979_s3 + $0xe0] sm:$0xff] %v447_v51  ;;  %v301_v58 = vadd.f32 %v830_v42, %v300_v56  ;;  %v391_v59 = vadd.f32 %v830_v42, %v390_v57 }
  0xfa   :  { %v432_v60 = vmax.f32 %v306_v54, 0.0  ;;  %v450_v61 = vmax.f32 %v396_v55, 0.0 }
  0xfb   :  { %v431_v62 = vmax.f32 %v301_v58, 0.0  ;;  %v449_v63 = vmax.f32 %v391_v59, 0.0  ;;  %v604_v0 = vpop.f32.mrb[14].mxu0  ;;  %v631_v1 = vpop.f32.mrb[14].mxu1 }
  0xfc   :  { %468 = vst [vmem:[%s979_s3 + $0x68] sm:$0xff] %v432_v60  ;;  %486 = vst [vmem:[%s979_s3 + $0xf8] sm:$0xff] %v450_v61  ;;  %v316_v2 = vadd.f32 %v604_v0, %v830_v42  ;;  %v406_v3 = vadd.f32 %v631_v1, %v830_v42  ;;  %v310_v4 = vpop.f32.mrb[15].mxu0  ;;  %v400_v5 = vpop.f32.mrb[15].mxu1 }
  0xfd   :  { %467 = vst [vmem:[%s979_s3 + $0x60] sm:$0xff] %v431_v62  ;;  %485 = vst [vmem:[%s979_s3 + $0xf0] sm:$0xff] %v449_v63  ;;  %v311_v6 = vadd.f32 %v830_v42, %v310_v4  ;;  %v401_v7 = vadd.f32 %v830_v42, %v400_v5 }
  0xfe   :  { %v434_v8 = vmax.f32 %v316_v2, 0.0  ;;  %v452_v9 = vmax.f32 %v406_v3, 0.0 }
  0xff   :  { %v433_v10 = vmax.f32 %v311_v6, 0.0  ;;  %v451_v11 = vmax.f32 %v401_v7, 0.0  ;;  %v607_v12 = vpop.f32.mrb[16].mxu0  ;;  %v634_v13 = vpop.f32.mrb[16].mxu1 }
 0x100   :  { %470 = vst [vmem:[%s979_s3 + $0x78] sm:$0xff] %v434_v8  ;;  %488 = vst [vmem:[%s979_s3 + $0x108] sm:$0xff] %v452_v9  ;;  %v326_v14 = vadd.f32 %v607_v12, %v830_v42  ;;  %v416_v15 = vadd.f32 %v634_v13, %v830_v42  ;;  %v320_v16 = vpop.f32.mrb[17].mxu0  ;;  %v410_v17 = vpop.f32.mrb[17].mxu1 }
 0x101   :  { %469 = vst [vmem:[%s979_s3 + $0x70] sm:$0xff] %v433_v10  ;;  %487 = vst [vmem:[%s979_s3 + $0x100] sm:$0xff] %v451_v11  ;;  %v321_v18 = vadd.f32 %v830_v42, %v320_v16  ;;  %v411_v19 = vadd.f32 %v830_v42, %v410_v17 }
 0x102   :  { %v436_v20 = vmax.f32 %v326_v14, 0.0  ;;  %v454_v21 = vmax.f32 %v416_v15, 0.0 }
 0x103   :  { %v435_v22 = vmax.f32 %v321_v18, 0.0  ;;  %v453_v23 = vmax.f32 %v411_v19, 0.0 }
 0x104   :  { %472 = vst [vmem:[%s979_s3 + $0x88] sm:$0xff] %v436_v20  ;;  %490 = vst [vmem:[%s979_s3 + $0x118] sm:$0xff] %v454_v21 }
 0x105   :  { %471 = vst [vmem:[%s979_s3 + $0x80] sm:$0xff] %v435_v22  ;;  %489 = vst [vmem:[%s979_s3 + $0x110] sm:$0xff] %v453_v23 }

// kernel: capsnet_with_reconstruction_forward.4
= control target key start
LH: loop header
LB: loop body
LE: loop exit
PB: predicated region body
PF: predicated region fallthrough
CT: control target
= control target key end

     0   :  { %vm149_vm0 = vcmask 261120   ;;  %s1196_s1 = inlined_call_operand.vmem [shape: f32[800,128], index: 1, kind: input, shape index: {}]   ;;  %s1197_s0 = inlined_call_operand.vmem [shape: f32[32,800], index: 0, kind: input, shape index: {}]   ;;  %s1198_s2 = inlined_call_operand.vmem [shape: f32[1,128], index: 2, kind: input, shape index: {}]   ;;  %s1199_s3 = inlined_call_operand.vmem [shape: f32[32,128], index: 3, kind: output, shape index: {}]  }
   0x1   :  { %v58_v0 = vld [vmem:[%s1196_s1 + $0x80] sm:$0xff]  ;;  %v59_v1 = vld [vmem:[%s1196_s1 + $0x88] sm:$0xff]  ;;  %v60_v11 = vld [vmem:[%s1196_s1 + $0x90] sm:$0xff] }
   0x2   :  { %v42_v2 = vld [vmem:[%s1196_s1] sm:$0xff]  ;;  %v669_v3 = vpack.c.bf16 %v59_v1, %v58_v0  ;;  %v43_v4 = vld [vmem:[%s1196_s1 + $0x8] sm:$0xff]  ;;  %v61_v13 = vld [vmem:[%s1196_s1 + $0x98] sm:$0xff] }
   0x3   :  { %v90_v5 = vld [vmem:[%s1196_s1 + $0x180] sm:$0xff]  ;;  %v91_v6 = vld [vmem:[%s1196_s1 + $0x188] sm:$0xff]  ;;  %v671_v7 = vpack.c.bf16 %v43_v4, %v42_v2  ;;  %v44_v14 = vld [vmem:[%s1196_s1 + $0x10] sm:$0xff]  ;;  %v673_v16 = vpack.c.bf16 %v61_v13, %v60_v11 }
   0x4   :  { %v701_v8 = vpack.c.bf16 %v91_v6, %v90_v5  ;;  %v74_v9 = vld [vmem:[%s1196_s1 + $0x100] sm:$0xff]  ;;  %v75_v10 = vld [vmem:[%s1196_s1 + $0x108] sm:$0xff]  ;;  %670 = vmatprep.subr.bf16.mxu0 %v669_v3  ;;  %v45_v15 = vld [vmem:[%s1196_s1 + $0x18] sm:$0xff] }
   0x5   :  { %v703_v12 = vpack.c.bf16 %v75_v10, %v74_v9  ;;  %672 = vmatpush3.bf16.msra.mxu0 %v671_v7  ;;  %v675_v17 = vpack.c.bf16 %v45_v15, %v44_v14  ;;  %v92_v18 = vld [vmem:[%s1196_s1 + $0x190] sm:$0xff]  ;;  %v93_v19 = vld [vmem:[%s1196_s1 + $0x198] sm:$0xff]  ;;  %v62_v23 = vld [vmem:[%s1196_s1 + $0xa0] sm:$0xff] }
   0x6   :  { %702 = vmatprep.subr.bf16.mxu1 %v701_v8  ;;  %v76_v20 = vld [vmem:[%s1196_s1 + $0x110] sm:$0xff]  ;;  %v705_v21 = vpack.c.bf16 %v93_v19, %v92_v18  ;;  %v77_v22 = vld [vmem:[%s1196_s1 + $0x118] sm:$0xff]  ;;  %v63_v24 = vld [vmem:[%s1196_s1 + $0xa8] sm:$0xff]  ;;  %674 = vmatprep.subr.bf16.mxu0 %v673_v16 }
   0x7   :  { %704 = vmatpush3.bf16.msra.mxu1 %v703_v12  ;;  %v707_v25 = vpack.c.bf16 %v77_v22, %v76_v20  ;;  %v677_v26 = vpack.c.bf16 %v63_v24, %v62_v23  ;;  %v46_v27 = vld [vmem:[%s1196_s1 + $0x20] sm:$0xff]  ;;  %v47_v28 = vld [vmem:[%s1196_s1 + $0x28] sm:$0xff]  ;;  %v64_v35 = vld [vmem:[%s1196_s1 + $0xb0] sm:$0xff] }
   0x8   :  { %v94_v29 = vld [vmem:[%s1196_s1 + $0x1a0] sm:$0xff]  ;;  %706 = vmatprep.subr.bf16.mxu1 %v705_v21  ;;  %v95_v30 = vld [vmem:[%s1196_s1 + $0x1a8] sm:$0xff]  ;;  %v679_v33 = vpack.c.bf16 %v47_v28, %v46_v27  ;;  %v65_v36 = vld [vmem:[%s1196_s1 + $0xb8] sm:$0xff] }
   0x9   :  { %v78_v31 = vld [vmem:[%s1196_s1 + $0x120] sm:$0xff]  ;;  %v79_v32 = vld [vmem:[%s1196_s1 + $0x128] sm:$0xff]  ;;  %676 = vmatpush3.bf16.msra.mxu0 %v675_v17  ;;  %v709_v34 = vpack.c.bf16 %v95_v30, %v94_v29  ;;  %v48_v37 = vld [vmem:[%s1196_s1 + $0x30] sm:$0xff]  ;;  %v681_v39 = vpack.c.bf16 %v65_v36, %v64_v35 }
   0xa   :  { %678 = vmatprep.subr.bf16.mxu0 %v677_v26  ;;  %v711_v38 = vpack.c.bf16 %v79_v32, %v78_v31  ;;  %v49_v40 = vld [vmem:[%s1196_s1 + $0x38] sm:$0xff]  ;;  %v96_v41 = vld [vmem:[%s1196_s1 + $0x1b0] sm:$0xff]  ;;  %v66_v46 = vld [vmem:[%s1196_s1 + $0xc0] sm:$0xff] }
   0xb   :  { %708 = vmatpush3.bf16.msra.mxu1 %v707_v25  ;;  %v97_v42 = vld [vmem:[%s1196_s1 + $0x1b8] sm:$0xff]  ;;  %v80_v44 = vld [vmem:[%s1196_s1 + $0x130] sm:$0xff]  ;;  %v67_v47 = vld [vmem:[%s1196_s1 + $0xc8] sm:$0xff]  ;;  %v683_v48 = vpack.c.bf16 %v49_v40, %v48_v37 }
   0xc   :  { %710 = vmatprep.subr.bf16.mxu1 %v709_v34  ;;  %v713_v43 = vpack.c.bf16 %v97_v42, %v96_v41  ;;  %v81_v45 = vld [vmem:[%s1196_s1 + $0x138] sm:$0xff]  ;;  %v98_v49 = vld [vmem:[%s1196_s1 + $0x1c0] sm:$0xff]  ;;  %v99_v50 = vld [vmem:[%s1196_s1 + $0x1c8] sm:$0xff]  ;;  %v685_v52 = vpack.c.bf16 %v67_v47, %v66_v46 }
   0xd   :  { %680 = vmatpush3.bf16.msra.mxu0 %v679_v33  ;;  %v715_v51 = vpack.c.bf16 %v81_v45, %v80_v44  ;;  %v50_v53 = vld [vmem:[%s1196_s1 + $0x40] sm:$0xff]  ;;  %v51_v54 = vld [vmem:[%s1196_s1 + $0x48] sm:$0xff]  ;;  %v717_v56 = vpack.c.bf16 %v99_v50, %v98_v49  ;;  %v68_v58 = vld [vmem:[%s1196_s1 + $0xd0] sm:$0xff] }
   0xe   :  { %682 = vmatprep.subr.bf16.mxu0 %v681_v39  ;;  %v82_v55 = vld [vmem:[%s1196_s1 + $0x140] sm:$0xff]  ;;  %v83_v57 = vld [vmem:[%s1196_s1 + $0x148] sm:$0xff]  ;;  %v69_v59 = vld [vmem:[%s1196_s1 + $0xd8] sm:$0xff]  ;;  %v687_v62 = vpack.c.bf16 %v51_v54, %v50_v53 }
   0xf   :  { %712 = vmatpush3.bf16.msra.mxu1 %v711_v38  ;;  %v100_v60 = vld [vmem:[%s1196_s1 + $0x1d0] sm:$0xff]  ;;  %v101_v61 = vld [vmem:[%s1196_s1 + $0x1d8] sm:$0xff]  ;;  %v719_v63 = vpack.c.bf16 %v83_v57, %v82_v55  ;;  %v689_v0 = vpack.c.bf16 %v69_v59, %v68_v58  ;;  %v70_v6 = vld [vmem:[%s1196_s1 + $0xe0] sm:$0xff] }
  0x10   :  { %714 = vmatprep.subr.bf16.mxu1 %v713_v43  ;;  %v52_v1 = vld [vmem:[%s1196_s1 + $0x50] sm:$0xff]  ;;  %v53_v2 = vld [vmem:[%s1196_s1 + $0x58] sm:$0xff]  ;;  %v721_v4 = vpack.c.bf16 %v101_v61, %v100_v60  ;;  %v71_v7 = vld [vmem:[%s1196_s1 + $0xe8] sm:$0xff] }
  0x11   :  { %684 = vmatpush3.bf16.msra.mxu0 %v683_v48  ;;  %v84_v3 = vld [vmem:[%s1196_s1 + $0x150] sm:$0xff]  ;;  %v85_v5 = vld [vmem:[%s1196_s1 + $0x158] sm:$0xff]  ;;  %v102_v8 = vld [vmem:[%s1196_s1 + $0x1e0] sm:$0xff]  ;;  %v691_v10 = vpack.c.bf16 %v53_v2, %v52_v1  ;;  %v693_v14 = vpack.c.bf16 %v71_v7, %v70_v6 }
  0x12   :  { %686 = vmatprep.subr.bf16.mxu0 %v685_v52  ;;  %v103_v9 = vld [vmem:[%s1196_s1 + $0x1e8] sm:$0xff]  ;;  %v54_v11 = vld [vmem:[%s1196_s1 + $0x60] sm:$0xff]  ;;  %v723_v13 = vpack.c.bf16 %v85_v5, %v84_v3  ;;  %v72_v19 = vld [vmem:[%s1196_s1 + $0xf0] sm:$0xff] }
  0x13   :  { %716 = vmatpush3.bf16.msra.mxu1 %v715_v51  ;;  %v15_v12 = vld [vmem:[%s1197_s0 + $0x8] sm:$0xff]  ;;  %v86_v16 = vld [vmem:[%s1196_s1 + $0x160] sm:$0xff]  ;;  %v725_v18 = vpack.c.bf16 %v103_v9, %v102_v8  ;;  %v73_v20 = vld [vmem:[%s1196_s1 + $0xf8] sm:$0xff] }
  0x14   :  { %718 = vmatprep.subr.bf16.mxu1 %v717_v56  ;;  %v55_v15 = vld [vmem:[%s1196_s1 + $0x68] sm:$0xff]  ;;  %226 = vmatprep.mubr.f32.mxu0 %v15_v12  ;;  %v17_v21 = vld [vmem:[%s1197_s0 + $0x18] sm:$0xff]  ;;  %v104_v22 = vld [vmem:[%s1196_s1 + $0x1f0] sm:$0xff]  ;;  %v697_v26 = vpack.c.bf16 %v73_v20, %v72_v19 }
  0x15   :  { %688 = vmatpush3.bf16.msra.mxu0 %v687_v62  ;;  %v87_v17 = vld [vmem:[%s1196_s1 + $0x168] sm:$0xff]  ;;  %v105_v23 = vld [vmem:[%s1196_s1 + $0x1f8] sm:$0xff]  ;;  %311 = vmatprep.mubr.f32.mxu1 %v17_v21  ;;  %v695_v24 = vpack.c.bf16 %v55_v15, %v54_v11  ;;  %v56_v27 = vld [vmem:[%s1196_s1 + $0x70] sm:$0xff] }
  0x16   :  { %690 = vmatprep.subr.bf16.mxu0 %v689_v0  ;;  %v727_v25 = vpack.c.bf16 %v87_v17, %v86_v16  ;;  %v57_v28 = vld [vmem:[%s1196_s1 + $0x78] sm:$0xff]  ;;  %v88_v29 = vld [vmem:[%s1196_s1 + $0x170] sm:$0xff]  ;;  %v729_v30 = vpack.c.bf16 %v105_v23, %v104_v22  ;;  %v122_v32 = vld [vmem:[%s1196_s1 + $0x280] sm:$0xff] }
  0x17   :  { %720 = vmatpush3.bf16.msra.mxu1 %v719_v63  ;;  %v89_v31 = vld [vmem:[%s1196_s1 + $0x178] sm:$0xff]  ;;  %v123_v33 = vld [vmem:[%s1196_s1 + $0x288] sm:$0xff]  ;;  %v699_v34 = vpack.c.bf16 %v57_v28, %v56_v27  ;;  %v106_v37 = vld [vmem:[%s1196_s1 + $0x200] sm:$0xff] }
  0x18   :  { %722 = vmatprep.subr.bf16.mxu1 %v721_v4  ;;  %v731_v35 = vpack.c.bf16 %v89_v31, %v88_v29  ;;  %v733_v36 = vpack.c.bf16 %v123_v33, %v122_v32  ;;  %v107_v38 = vld [vmem:[%s1196_s1 + $0x208] sm:$0xff]  ;;  %v124_v39 = vld [vmem:[%s1196_s1 + $0x290] sm:$0xff]  ;;  %v125_v40 = vld [vmem:[%s1196_s1 + $0x298] sm:$0xff] }
  0x19   :  { %692 = vmatpush3.bf16.msra.mxu0 %v691_v10  ;;  %v14_v41 = vld [vmem:[%s1197_s0] sm:$0xff]  ;;  %v735_v42 = vpack.c.bf16 %v107_v38, %v106_v37  ;;  %v16_v43 = vld [vmem:[%s1197_s0 + $0x10] sm:$0xff]  ;;  %v737_v44 = vpack.c.bf16 %v125_v40, %v124_v39  ;;  %v109_v46 = vld [vmem:[%s1196_s1 + $0x218] sm:$0xff] }
  0x1a   :  { %694 = vmatprep.subr.bf16.mxu0 %v693_v14  ;;  %v108_v45 = vld [vmem:[%s1196_s1 + $0x210] sm:$0xff]  ;;  %v126_v47 = vld [vmem:[%s1196_s1 + $0x2a0] sm:$0xff]  ;;  %v127_v48 = vld [vmem:[%s1196_s1 + $0x2a8] sm:$0xff] }
  0x1b   :  { %724 = vmatpush3.bf16.msra.mxu1 %v723_v13  ;;  %v22_v49 = vld [vmem:[%s1197_s0 + $0x40] sm:$0xff]  ;;  %v24_v50 = vld [vmem:[%s1197_s0 + $0x50] sm:$0xff]  ;;  %v139_v52 = vld [vmem:[%s1196_s1 + $0x308] sm:$0xff]  ;;  %v739_v53 = vpack.c.bf16 %v109_v46, %v108_v45  ;;  %v741_v57 = vpack.c.bf16 %v127_v48, %v126_v47 }
  0x1c   :  { %726 = vmatprep.subr.bf16.mxu1 %v725_v18  ;;  %v138_v51 = vld [vmem:[%s1196_s1 + $0x300] sm:$0xff]  ;;  %v21_v55 = vld [vmem:[%s1197_s0 + $0x38] sm:$0xff]  ;;  %v111_v58 = vld [vmem:[%s1196_s1 + $0x228] sm:$0xff] }
  0x1d   :  { %696 = vmatpush3.bf16.msra.mxu0 %v695_v24  ;;  %v110_v54 = vld [vmem:[%s1196_s1 + $0x220] sm:$0xff]  ;;  %v765_v56 = vpack.c.bf16 %v139_v52, %v138_v51  ;;  %v128_v59 = vld [vmem:[%s1196_s1 + $0x2b0] sm:$0xff]  ;;  %v23_v60 = vld [vmem:[%s1197_s0 + $0x48] sm:$0xff] }
  0x1e   :  { %698 = vmatprep.subr.bf16.mxu0 %v697_v26  ;;  %v129_v61 = vld [vmem:[%s1196_s1 + $0x2b8] sm:$0xff]  ;;  %v140_v63 = vld [vmem:[%s1196_s1 + $0x310] sm:$0xff]  ;;  %v31_v0 = vld [vmem:[%s1197_s0 + $0x88] sm:$0xff]  ;;  %v743_v2 = vpack.c.bf16 %v111_v58, %v110_v54 }
  0x1f   :  { %728 = vmatpush3.bf16.msra.mxu1 %v727_v25  ;;  %v29_v62 = vld [vmem:[%s1197_s0 + $0x78] sm:$0xff]  ;;  %v28_v3 = vld [vmem:[%s1197_s0 + $0x70] sm:$0xff]  ;;  %v745_v5 = vpack.c.bf16 %v129_v61, %v128_v59  ;;  %v30_v8 = vld [vmem:[%s1197_s0 + $0x80] sm:$0xff] }
  0x20   :  { %730 = vmatprep.subr.bf16.mxu1 %v729_v30  ;;  %v141_v1 = vld [vmem:[%s1196_s1 + $0x318] sm:$0xff]  ;;  %v112_v6 = vld [vmem:[%s1196_s1 + $0x230] sm:$0xff]  ;;  %v130_v9 = vld [vmem:[%s1196_s1 + $0x2c0] sm:$0xff] }
  0x21   :  { %700 = vmatpush3.bf16.msra.mxu0 %v699_v34  ;;  %v769_v4 = vpack.c.bf16 %v141_v1, %v140_v63  ;;  %v113_v7 = vld [vmem:[%s1196_s1 + $0x238] sm:$0xff]  ;;  %v131_v10 = vld [vmem:[%s1196_s1 + $0x2c8] sm:$0xff]  ;;  %v36_v11 = vld [vmem:[%s1197_s0 + $0xb0] sm:$0xff] }
  0x22   :  { %734 = vmatprep.subr.bf16.mxu0 %v733_v36  ;;  %v38_v12 = vld [vmem:[%s1197_s0 + $0xc0] sm:$0xff]  ;;  %v747_v13 = vpack.c.bf16 %v113_v7, %v112_v6  ;;  %v35_v14 = vld [vmem:[%s1197_s0 + $0xa8] sm:$0xff]  ;;  %v749_v15 = vpack.c.bf16 %v131_v10, %v130_v9  ;;  %v37_v18 = vld [vmem:[%s1197_s0 + $0xb8] sm:$0xff] }
  0x23   :  { %732 = vmatpush3.bf16.msra.mxu1 %v731_v35  ;;  %v114_v16 = vld [vmem:[%s1196_s1 + $0x240] sm:$0xff]  ;;  %v115_v17 = vld [vmem:[%s1196_s1 + $0x248] sm:$0xff]  ;;  %v132_v19 = vld [vmem:[%s1196_s1 + $0x2d0] sm:$0xff] }
  0x24   :  { %227 = vmatmul.mubr.f32.vlgmr.msra.gmra.mrb[0].mxu0 %v14_v41  ;;  %766 = vmatprep.subr.bf16.mxu1 %v765_v56  ;;  %v133_v20 = vld [vmem:[%s1196_s1 + $0x2d8] sm:$0xff]  ;;  %v19_v21 = vld [vmem:[%s1197_s0 + $0x28] sm:$0xff]  ;;  %v20_v22 = vld [vmem:[%s1197_s0 + $0x30] sm:$0xff]  ;;  %v751_v23 = vpack.c.bf16 %v115_v17, %v114_v16 }
  0x25   :  { %736 = vmatpush3.bf16.msra.mxu0 %v735_v42  ;;  %231 = vmatprep.mubr.f32.mxu0 %v22_v49  ;;  %v753_v24 = vpack.c.bf16 %v133_v20, %v132_v19  ;;  %v116_v25 = vld [vmem:[%s1196_s1 + $0x250] sm:$0xff]  ;;  %v117_v26 = vld [vmem:[%s1196_s1 + $0x258] sm:$0xff]  ;;  %v27_v27 = vld [vmem:[%s1197_s0 + $0x68] sm:$0xff] }
  0x26   :  { %312 = vmatmul.mubr.f32.vlgmr.msra.gmra.mrb[0].mxu1 %v16_v43  ;;  %738 = vmatprep.subr.bf16.mxu0 %v737_v44  ;;  %v134_v28 = vld [vmem:[%s1196_s1 + $0x2e0] sm:$0xff]  ;;  %v135_v29 = vld [vmem:[%s1196_s1 + $0x2e8] sm:$0xff]  ;;  %v755_v31 = vpack.c.bf16 %v117_v26, %v116_v25  ;;  %v41_v35 = vld [vmem:[%s1197_s0 + $0xd8] sm:$0xff] }
  0x27   :  { %316 = vmatprep.mubr.f32.mxu1 %v24_v50  ;;  %768 = vmatpush3.bf16.msra.mxu1 %v765_v56  ;;  %v34_v30 = vld [vmem:[%s1197_s0 + $0xa0] sm:$0xff]  ;;  %v757_v32 = vpack.c.bf16 %v135_v29, %v134_v28  ;;  %v119_v34 = vld [vmem:[%s1196_s1 + $0x268] sm:$0xff]  ;;  %v136_v36 = vld [vmem:[%s1196_s1 + $0x2f0] sm:$0xff] }
  0x28   :  { %232 = vmatmul.mubr.f32.gmra.mrb[2].mxu0 %v21_v55  ;;  %770 = vmatprep.subr.bf16.mxu1 %v769_v4  ;;  %v118_v33 = vld [vmem:[%s1196_s1 + $0x260] sm:$0xff]  ;;  %v137_v37 = vld [vmem:[%s1196_s1 + $0x2f8] sm:$0xff]  ;;  %v120_v40 = vld [vmem:[%s1196_s1 + $0x270] sm:$0xff] }
  0x29   :  { %740 = vmatpush3.bf16.msra.mxu0 %v739_v53  ;;  %236 = vmatprep.mubr.f32.mxu0 %v29_v62  ;;  %v759_v38 = vpack.c.bf16 %v119_v34, %v118_v33  ;;  %v761_v39 = vpack.c.bf16 %v137_v37, %v136_v36  ;;  %v121_v41 = vld [vmem:[%s1196_s1 + $0x278] sm:$0xff]  ;;  %v18_v43 = vld [vmem:[%s1197_s0 + $0x20] sm:$0xff]  ;;  %v32_v47 = vld [vmem:[%s1197_s0 + $0x90] sm:$0xff] }
  0x2a   :  { %317 = vmatmul.mubr.f32.gmra.mrb[2].mxu1 %v23_v60  ;;  %742 = vmatprep.subr.bf16.mxu0 %v741_v57  ;;  %v763_v42 = vpack.c.bf16 %v121_v41, %v120_v40  ;;  %v26_v44 = vld [vmem:[%s1197_s0 + $0x60] sm:$0xff]  ;;  %v25_v45 = vld [vmem:[%s1197_s0 + $0x58] sm:$0xff]  ;;  %v40_v48 = vld [vmem:[%s1197_s0 + $0xd0] sm:$0xff] }
  0x2b   :  { %321 = vmatprep.mubr.f32.mxu1 %v31_v0  ;;  %772 = vmatpush3.bf16.msra.mxu1 %v769_v4  ;;  %v33_v46 = vld [vmem:[%s1197_s0 + $0x98] sm:$0xff]  ;;  %v39_v49 = vld [vmem:[%s1197_s0 + $0xc8] sm:$0xff]  ;;  %v510_v51 = vld [vmem:[%s1198_s2] ss:$0 sm:$0xff] }
  0x2c   :  { %237 = vmatmul.mubr.f32.gmra.mrb[4].mxu0 %v28_v3 }
  0x2d   :  { %744 = vmatpush3.bf16.msra.mxu0 %v743_v2  ;;  %241 = vmatprep.mubr.f32.mxu0 %v36_v11 }
  0x2e   :  { %322 = vmatmul.mubr.f32.gmra.mrb[4].mxu1 %v30_v8  ;;  %746 = vmatprep.subr.bf16.mxu0 %v745_v5 }
  0x2f   :  { %326 = vmatprep.mubr.f32.mxu1 %v38_v12 }
  0x30   :  { %242 = vmatmul.mubr.f32.gmra.mrb[6].mxu0 %v35_v14 }
  0x31   :  { %748 = vmatpush3.bf16.msra.mxu0 %v747_v13  ;;  %396 = vmatprep.mubr.f32.mxu0 %v19_v21 }
  0x32   :  { %327 = vmatmul.mubr.f32.gmra.mrb[6].mxu1 %v37_v18  ;;  %750 = vmatprep.subr.bf16.mxu0 %v749_v15 }
  0x33   :  { %663 = vmatprep.mubr.msk.f32.mxu1 %vm149_vm0, %v20_v22 }
  0x35   :  { %752 = vmatpush3.bf16.msra.mxu0 %v751_v23 }
  0x36   :  { %664 = vmatmul.mubr.msk.f32.vlgmr.msra.gmra.mrb[8].mxu1 %vm149_vm0, %v27_v27  ;;  %754 = vmatprep.subr.bf16.mxu0 %v753_v24 }
  0x37   :  { %666 = vmatprep.mubr.msk.f32.mxu1 %vm149_vm0, %v34_v30 }
  0x39   :  { %756 = vmatpush3.bf16.msra.mxu0 %v755_v31 }
  0x3a   :  { %667 = vmatmul.mubr.msk.f32.gmra.mrb[10].mxu1 %vm149_vm0, %v41_v35  ;;  %758 = vmatprep.subr.bf16.mxu0 %v757_v32 }
  0x3d   :  { %760 = vmatpush3.bf16.msra.mxu0 %v759_v38 }
  0x3e   :  { %762 = vmatprep.subr.bf16.mxu0 %v761_v39 }
  0x41   :  { %764 = vmatpush3.bf16.msra.mxu0 %v763_v42 }
  0x44   :  { %397 = vmatmul.mubr.f32.vlgmr.msra.gmra.mrb[8].mxu0 %v18_v43 }
  0x45   :  { %401 = vmatprep.mubr.f32.mxu0 %v26_v44 }
  0x48   :  { %402 = vmatmul.mubr.f32.gmra.mrb[10].mxu0 %v25_v45 }
  0x49   :  { %406 = vmatprep.mubr.f32.mxu0 %v33_v46 }
  0x4c   :  { %407 = vmatmul.mubr.f32.gmra.mrb[12].mxu0 %v32_v47 }
  0x4d   :  { %411 = vmatprep.mubr.f32.mxu0 %v40_v48 }
  0x50   :  { %412 = vmatmul.mubr.f32.gmra.mrb[14].mxu0 %v39_v49 }
  0xf7   :  { %v547_v50 = vpop.f32.mrb[0].mxu0 }
  0xf8   :  { %v548_v52 = vpop.f32.mrb[1].mxu0 }
  0xf9   :  { %v591_v53 = vpop.f32.mrb[0].mxu1  ;;  %v549_v54 = vadd.f32 %v548_v52, %v547_v50 }
  0xfa   :  { %v592_v55 = vpop.f32.mrb[1].mxu1 }
  0xfb   :  { %v593_v56 = vadd.f32 %v592_v55, %v591_v53  ;;  %v229_v57 = vadd.f32 %v549_v54, %v510_v51  ;;  %v550_v58 = vpop.f32.mrb[2].mxu0 }
  0xfc   :  { %v551_v59 = vpop.f32.mrb[3].mxu0 }
  0xfd   :  { %v594_v60 = vpop.f32.mrb[2].mxu1  ;;  %v314_v61 = vadd.f32 %v593_v56, %v229_v57  ;;  %v552_v62 = vadd.f32 %v551_v59, %v550_v58 }
  0xfe   :  { %v595_v63 = vpop.f32.mrb[3].mxu1 }
  0xff   :  { %v596_v0 = vadd.f32 %v595_v63, %v594_v60  ;;  %v234_v1 = vadd.f32 %v552_v62, %v510_v51  ;;  %v553_v2 = vpop.f32.mrb[4].mxu0 }
 0x100   :  { %v554_v3 = vpop.f32.mrb[5].mxu0 }
 0x101   :  { %v597_v4 = vpop.f32.mrb[4].mxu1  ;;  %v319_v5 = vadd.f32 %v596_v0, %v234_v1  ;;  %v555_v6 = vadd.f32 %v554_v3, %v553_v2 }
 0x102   :  { %v598_v7 = vpop.f32.mrb[5].mxu1 }
 0x103   :  { %v599_v8 = vadd.f32 %v598_v7, %v597_v4  ;;  %v239_v9 = vadd.f32 %v555_v6, %v510_v51  ;;  %v556_v10 = vpop.f32.mrb[6].mxu0 }
 0x104   :  { %v557_v11 = vpop.f32.mrb[7].mxu0 }
 0x105   :  { %v600_v12 = vpop.f32.mrb[6].mxu1  ;;  %v324_v13 = vadd.f32 %v599_v8, %v239_v9  ;;  %v558_v14 = vadd.f32 %v557_v11, %v556_v10 }
 0x106   :  { %v601_v15 = vpop.f32.mrb[7].mxu1 }
 0x107   :  { %v602_v16 = vadd.f32 %v601_v15, %v600_v12  ;;  %v244_v17 = vadd.f32 %v558_v14, %v510_v51 }
 0x109   :  { %v665_v18 = vpop.f32.mrb[8].mxu1  ;;  %v329_v19 = vadd.f32 %v602_v16, %v244_v17 }
 0x10a   :  { %v483_v20 = vpop.f32.mrb[9].mxu1 }
 0x10d   :  { %v668_v21 = vpop.f32.mrb[10].mxu1 }
 0x10e   :  { %v493_v22 = vpop.f32.mrb[11].mxu1 }
 0x117   :  { %v635_v23 = vpop.f32.mrb[8].mxu0 }
 0x118   :  { %v636_v24 = vpop.f32.mrb[9].mxu0 }
 0x119   :  { %v637_v25 = vadd.f32 %v636_v24, %v635_v23 }
 0x11b   :  { %v638_v26 = vpop.f32.mrb[10].mxu0  ;;  %v399_v27 = vadd.f32 %v637_v25, %v314_v61 }
 0x11c   :  { %v639_v28 = vpop.f32.mrb[11].mxu0 }
 0x11d   :  { %v640_v29 = vadd.f32 %v639_v28, %v638_v26  ;;  %v484_v30 = vadd.f32 %v483_v20, %v399_v27 }
 0x11f   :  { %v404_v31 = vadd.f32 %v640_v29, %v319_v5  ;;  %502 = vst [vmem:[%s1199_s3] sm:$0xff] %v484_v30  ;;  %v641_v32 = vpop.f32.mrb[12].mxu0 }
 0x120   :  { %v642_v33 = vpop.f32.mrb[13].mxu0 }
 0x121   :  { %v489_v34 = vadd.f32 %v665_v18, %v404_v31  ;;  %v643_v35 = vadd.f32 %v642_v33, %v641_v32 }
 0x123   :  { %503 = vst [vmem:[%s1199_s3 + $0x8] sm:$0xff] %v489_v34  ;;  %v644_v36 = vpop.f32.mrb[14].mxu0  ;;  %v409_v37 = vadd.f32 %v643_v35, %v324_v13 }
 0x124   :  { %v645_v38 = vpop.f32.mrb[15].mxu0 }
 0x125   :  { %v646_v39 = vadd.f32 %v645_v38, %v644_v36  ;;  %v494_v40 = vadd.f32 %v493_v22, %v409_v37 }
 0x127   :  { %v414_v41 = vadd.f32 %v646_v39, %v329_v19  ;;  %504 = vst [vmem:[%s1199_s3 + $0x10] sm:$0xff] %v494_v40 }
 0x129   :  { %v499_v42 = vadd.f32 %v668_v21, %v414_v41 }
 0x12b   :  { %505 = vst [vmem:[%s1199_s3 + $0x18] sm:$0xff] %v499_v42 }

// kernel: capsnet_with_reconstruction_forward.5
= control target key start
LH: loop header
LB: loop body
LE: loop exit
PB: predicated region body
PF: predicated region fallthrough
CT: control target
= control target key end

     0   :  { %v10549_v3 = vlaneseq  ;;  %vm57_vm0 = vcmask 1040384   ;;  %v10799_v10 = vmov 0  ;;  %s10536_s0 = inlined_call_operand.vmem [shape: f32[2,4,1,128], index: 0, kind: input, shape index: {}]   ;;  %s10537_s1 = inlined_call_operand.vmem [shape: f32[4,10,16,128], index: 1, kind: input, shape index: {}]   ;;  %s10538_s2 = inlined_call_operand.vmem [shape: f32[10,1,128], index: 2, kind: input, shape index: {}]   ;;  %s10539_s3 = inlined_call_operand.vmem [shape: f32[10,16,10], index: 3, kind: input, shape index: {}]   ;;  %s10540_s4 = inlined_call_operand.vmem [shape: f32[2,10,1,1], index: 4, kind: input, shape index: {}]   ;;  %s10541_s5 = inlined_call_operand.vmem [shape: f32[10,16,128], index: 5, kind: input, shape index: {}]   ;;  %s10542_s6 = inlined_call_operand.vmem [shape: f32[1,1,128], index: 6, kind: input, shape index: {}]   ;;  %s10543_s7 = inlined_call_operand.vmem [shape: f32[128,128], index: 7, kind: input, shape index: {}]   ;;  %s10544_s8 = inlined_call_operand.vmem [shape: f32[1,128,1], index: 8, kind: input, shape index: {}]   ;;  %s10545_s9 = inlined_call_operand.vmem [shape: f32[128,256], index: 9, kind: input, shape index: {}]   ;;  %s10546_s10 = inlined_call_operand.vmem [shape: f32[1,1,256], index: 10, kind: input, shape index: {}]   ;;  %s10547_s11 = inlined_call_operand.hbm [shape: f32[2,1,1,10], index: 11, kind: output, shape index: {0}]   ;;  %s10548_s12 = inlined_call_operand.vmem [shape: f32[2,1,1,256], index: 12, kind: output, shape index: {1}]  }
   0x1   :  { %v6211_v0 = vld [vmem:[%s10536_s0] sm:$0x1]  ;;  %v6216_v1 = vld [vmem:[%s10536_s0 + $0x1] sm:$0x1]  ;;  %v6221_v2 = vld [vmem:[%s10536_s0 + $0x2] sm:$0x1] }
   0x2   :  { %v6226_v4 = vld [vmem:[%s10536_s0 + $0x3] sm:$0x1]  ;;  %v49_v5 = vmul.f32 %v6211_v0, %v6211_v0  ;;  %v50_v6 = vmul.f32 %v6216_v1, %v6216_v1  ;;  %v51_v7 = vmul.f32 %v6221_v2, %v6221_v2  ;;  %v503_v9 = vld [vmem:[%s10538_s2] sm:$0x1]  ;;  %vm6240_vm1 = vcmp.lt.s32.totalorder %v10549_v3, 128 }
   0x3   :  { %v52_v8 = vmul.f32 %v6226_v4, %v6226_v4  ;;  %v10800_v10 = vsel %vm6240_vm1, 4294967295, %v10799_v10  ;;  %v504_v15 = vld [vmem:[%s10538_s2 + $0x1] sm:$0x1]  ;;  %v505_v16 = vld [vmem:[%s10538_s2 + $0x2] sm:$0x1]  ;;  %v517_v21 = vsel %vm6240_vm1, %v503_v9, -inf }
   0x4   :  { %10801 = vst [vmem:[#allocation5_spill] sm:$0xff] %v10800_v10  ;;  %v58_v11 = vsel %vm57_vm0, %v49_v5, 0.0  ;;  %v59_v12 = vsel %vm57_vm0, %v50_v6, 0.0  ;;  %v61_v13 = vsel %vm57_vm0, %v51_v7, 0.0  ;;  %v506_v17 = vld [vmem:[%s10538_s2 + $0x3] sm:$0x1] }
   0x5   :  { %v60_v14 = vadd.f32 %v59_v12, %v58_v11  ;;  %v63_v18 = vsel %vm57_vm0, %v52_v8, 0.0  ;;  %v507_v19 = vld [vmem:[%s10538_s2 + $0x4] sm:$0x1]  ;;  %v508_v20 = vld [vmem:[%s10538_s2 + $0x5] sm:$0x1]  ;;  %v518_v25 = vsel %vm6240_vm1, %v504_v15, -inf }
   0x6   :  { %v509_v23 = vld [vmem:[%s10538_s2 + $0x6] sm:$0x1]  ;;  %v510_v24 = vld [vmem:[%s10538_s2 + $0x7] sm:$0x1]  ;;  %v519_v26 = vsel %vm6240_vm1, %v505_v16, -inf  ;;  %v521_v27 = vsel %vm6240_vm1, %v506_v17, -inf }
   0x7   :  { %v62_v22 = vadd.f32 %v61_v13, %v60_v14  ;;  %v523_v28 = vsel %vm6240_vm1, %v507_v19, -inf  ;;  %v511_v30 = vld [vmem:[%s10538_s2 + $0x8] sm:$0x1]  ;;  %v6285_v31 = vld [vmem:[%s10538_s2 + $0x9] sm:$0x1]  ;;  %v520_v32 = vmax.f32 %v517_v21, %v519_v26  ;;  %v522_v33 = vmax.f32 %v518_v25, %v521_v27  ;;  %v6346_v25 = vld [vmem:[%s10537_s1] sm:$0xff] }
   0x8   :  { %v525_v34 = vsel %vm6240_vm1, %v508_v20, -inf  ;;  %v527_v35 = vsel %vm6240_vm1, %v509_v23, -inf  ;;  %v529_v36 = vsel %vm6240_vm1, %v510_v24, -inf  ;;  %v531_v41 = vsel %vm6240_vm1, %v511_v30, -inf  ;;  %v6309_v11 = vld [vmem:[%s10536_s0 + $0x5] sm:$0x1] }
   0x9   :  { %v64_v29 = vadd.f32 %v63_v18, %v62_v22  ;;  %v524_v39 = vmax.f32 %v520_v32, %v523_v28  ;;  %v526_v40 = vmax.f32 %v522_v33, %v525_v34  ;;  %v533_v42 = vsel %vm6240_vm1, %v6285_v31, -inf  ;;  %v6325_v22 = vld [vmem:[%s10536_s0 + $0x6] sm:$0x1] }
   0xa   :  { %v6299_v59 = vshrl.u32 %v10549_v3, 7  ;;  %v6353_v27 = vld [vmem:[%s10537_s1 + $0xa0] sm:$0xff]  ;;  %v55_v28 = vmul.f32 %v6325_v22, %v6325_v22 }
   0xb   :  { %v72_v37 = vadd.f32 1e-08, %v64_v29  ;;  %v78_v38 = vadd.f32 1.0, %v64_v29  ;;  %v528_v43 = vmax.f32 %v524_v39, %v527_v35  ;;  %v530_v44 = vmax.f32 %v526_v40, %v529_v36  ;;  %v6370_v35 = vld [vmem:[%s10537_s1 + $0x18] sm:$0xff] }
   0xc   :  { %10802 = vst [vmem:[#allocation6_spill] sm:$0xff] %v6299_v59  ;;  %v6312_v12 = vsub.s32 0, %v6299_v59  ;;  %v6375_v36 = vld [vmem:[%s10537_s1 + $0xb8] sm:$0xff] }
   0xd   :  { %5602 = vrsqrt.f32 %v72_v37  ;;  %v532_v45 = vmax.f32 %v528_v43, %v531_v41  ;;  %v534_v46 = vmax.f32 %v530_v44, %v533_v42  ;;  %v6390_v41 = vld [vmem:[%s10536_s0 + $0x7] sm:$0x1]  ;;  %v6397_v43 = vld [vmem:[%s10537_s1 + $0x150] sm:$0xff] }
   0xe   :  { %5604 = vrcp.f32 %v78_v38  ;;  %10803 = vst [vmem:[#allocation7_spill] sm:$0xff] %v6312_v12  ;;  %10805 = vst [vmem:[#allocation9_spill] sm:$0xff] %v6397_v43 }
   0xf   :  { %v535_v47 = vmax.f32 %v532_v45, %v534_v46 }
  0x11   :  { %v536_v48 = vsub.f32 %v503_v9, %v535_v47  ;;  %v537_v49 = vsub.f32 %v504_v15, %v535_v47  ;;  %v538_v50 = vsub.f32 %v505_v16, %v535_v47  ;;  %v539_v51 = vsub.f32 %v506_v17, %v535_v47  ;;  %v6304_v9 = vld [vmem:[%s10536_s0 + $0x4] sm:$0x1] }
  0x12   :  { %v540_v52 = vsub.f32 %v507_v19, %v535_v47  ;;  %v541_v53 = vsub.f32 %v508_v20, %v535_v47  ;;  %v542_v60 = vsub.f32 %v509_v23, %v535_v47  ;;  %v543_v5 = vsub.f32 %v510_v24, %v535_v47  ;;  %v6336_v23 = vld [vmem:[%s10537_s1 + $0x10] sm:$0xff] }
  0x13   :  { %v546_v54 = vmul.f32 1.442695, %v536_v48  ;;  %v548_v55 = vmul.f32 1.442695, %v537_v49  ;;  %v550_v56 = vmul.f32 1.442695, %v538_v50  ;;  %v544_v8 = vsub.f32 %v511_v30, %v535_v47 }
  0x14   :  { %v552_v57 = vmul.f32 1.442695, %v539_v51  ;;  %v554_v61 = vmul.f32 1.442695, %v540_v52  ;;  %v556_v6 = vmul.f32 1.442695, %v541_v53  ;;  %v545_v16 = vsub.f32 %v6285_v31, %v535_v47 }
  0x15   :  { %5606 = vpow2.f32 %v546_v54  ;;  %v558_v13 = vmul.f32 1.442695, %v542_v60  ;;  %v560_v17 = vmul.f32 1.442695, %v543_v5  ;;  %v53_v18 = vmul.f32 %v6304_v9, %v6304_v9  ;;  %v6410_v49 = vld [vmem:[%s10537_s1 + $0x140] sm:$0xff]  ;;  %v6419_v53 = vld [vmem:[%s10537_s1 + $0x158] sm:$0xff] }
  0x16   :  { %5608 = vpow2.f32 %v548_v55  ;;  %v54_v19 = vmul.f32 %v6309_v11, %v6309_v11  ;;  %v562_v21 = vmul.f32 1.442695, %v544_v8  ;;  %v564_v24 = vmul.f32 1.442695, %v545_v16 }
  0x17   :  { %v5603_v58 = vpop.eup %5602  ;;  %5610 = vpow2.f32 %v550_v56  ;;  %v56_v54 = vmul.f32 %v6390_v41, %v6390_v41  ;;  %v68_v55 = vsel %vm57_vm0, %v55_v28, 0.0 }
  0x18   :  { %v5605_v62 = vpop.eup %5604  ;;  %v76_v63 = vmul.f32 %v5603_v58, %v64_v29  ;;  %5612 = vpow2.f32 %v552_v57  ;;  %v65_v29 = vsel %vm57_vm0, %v53_v18, 0.0  ;;  %v66_v30 = vsel %vm57_vm0, %v54_v19, 0.0 }
  0x19   :  { %5614 = vpow2.f32 %v554_v61 }
  0x1a   :  { %v82_v7 = vmul.f32 %v5605_v62, %v76_v63  ;;  %5616 = vpow2.f32 %v556_v6 }
  0x1b   :  { %5618 = vpow2.f32 %v558_v13 }
  0x1c   :  { %v84_v14 = vmul.f32 %v82_v7, %v6211_v0  ;;  %v85_v15 = vmul.f32 %v82_v7, %v6216_v1  ;;  %v86_v20 = vmul.f32 %v82_v7, %v6221_v2  ;;  %v6341_v2 = vld [vmem:[%s10537_s1 + $0xb0] sm:$0xff]  ;;  %5620 = vpow2.f32 %v560_v17 }
  0x1d   :  { %10804 = vst [vmem:[#allocation8_spill] sm:$0xff] %v6341_v2  ;;  %v87_v32 = vmul.f32 %v82_v7, %v6226_v4  ;;  %5622 = vpow2.f32 %v562_v21 }
  0x1e   :  { %v6328_v0 = vrot.slane %v84_v14, %v6312_v12  ;;  %v6331_v1 = vrot.slane %v85_v15, %v6312_v12  ;;  %v6363_v33 = vrot.slane %v86_v20, %v6312_v12  ;;  %5624 = vpow2.f32 %v564_v24 }
  0x1f   :  { %v6348_v26 = vpop.eup %5606 }
  0x20   :  { %v6359_v31 = vpop.eup %5608  ;;  %v566_v34 = vsel %vm57_vm0, %v6348_v26, 0.0  ;;  %v126_v4 = vmul.f32 %v6328_v0, %v6336_v23  ;;  %v199_v38 = vmul.f32 %v6341_v2, %v6331_v1  ;;  %v124_v40 = vmul.f32 %v6328_v0, %v6346_v25 }
  0x21   :  { %v6377_v37 = vpop.eup %5610  ;;  %v567_v39 = vsel %vm57_vm0, %v6359_v31, 0.0  ;;  %v197_v46 = vmul.f32 %v6353_v27, %v6331_v1  ;;  %v127_v50 = vmul.f32 %v6328_v0, %v6370_v35  ;;  %v200_v51 = vmul.f32 %v6375_v36, %v6331_v1 }
  0x22   :  { %v6392_v42 = vpop.eup %5612  ;;  %v568_v44 = vadd.f32 %v567_v39, %v566_v34  ;;  %v569_v45 = vsel %vm57_vm0, %v6377_v37, 0.0 }
  0x23   :  { %v6403_v47 = vpop.eup %5614  ;;  %v571_v48 = vsel %vm57_vm0, %v6392_v42, 0.0 }
  0x24   :  { %10806 = vst [vmem:[#allocation10_spill] sm:$0xff] %v6403_v47  ;;  %v570_v52 = vadd.f32 %v569_v45, %v568_v44 }
  0x25   :  { %18 = vsyncpa [#allocation3], 0  ;;  %v6424_v56 = vpop.eup %5616  ;;  %v312_v57 = vmul.f32 %v6397_v43, %v6363_v33  ;;  %v6429_v58 = vrot.slane %v87_v32, %v6312_v12  ;;  %v573_v60 = vsel %vm57_vm0, %v6403_v47, 0.0  ;;  %v6436_v61 = vld [vmem:[%s10537_s1 + $0x8] sm:$0xff]  ;;  %v67_v63 = vadd.f32 %v66_v30, %v65_v29  ;;  %v6446_v6 = vld [vmem:[%s10537_s1 + $0x1f0] sm:$0xff]  ;;  %s6139_s28 = smov [#allocation2]  }
  0x26   :  { %10807 = vst [vmem:[#allocation11_spill] sm:$0xff] %v6424_v56  ;;  %v6441_v62 = vld [vmem:[%s10537_s1 + $0xa8] sm:$0xff]  ;;  %v239_v5 = vadd.f32 %v199_v38, %v126_v4  ;;  %10808 = vst [vmem:[#allocation12_spill] sm:$0xff] %v6446_v6  ;;  %v572_v7 = vadd.f32 %v571_v48, %v570_v52  ;;  %v237_v8 = vadd.f32 %v197_v46, %v124_v40  ;;  %v6453_v14 = vld [vmem:[%s10537_s1 + $0x1e0] sm:$0xff]  ;;  %v6455_v15 = vpop.eup %5618  ;;  %v575_v16 = vsel %vm57_vm0, %v6424_v56, 0.0 }
  0x27   :  { %v310_v13 = vmul.f32 %v6410_v49, %v6363_v33  ;;  %10809 = vst [vmem:[#allocation13_spill] sm:$0xff] %v6455_v15  ;;  %v240_v17 = vadd.f32 %v200_v51, %v127_v50  ;;  %v313_v18 = vmul.f32 %v6419_v53, %v6363_v33  ;;  %v6464_v19 = vld [vmem:[%s10537_s1 + $0x1f8] sm:$0xff]  ;;  %v125_v21 = vmul.f32 %v6328_v0, %v6436_v61  ;;  %v6473_v28 = vld [vmem:[%s10537_s1 + $0x148] sm:$0xff]  ;;  %v6481_v32 = vpop.eup %5620  ;;  %v6562_v59 = vld [vmem:[%s10537_s1 + $0x30] sm:$0xff] }
  0x28   :  { %v574_v20 = vadd.f32 %v573_v60, %v572_v7  ;;  %v198_v24 = vmul.f32 %v6441_v62, %v6331_v1  ;;  %v6478_v29 = vld [vmem:[%s10537_s1 + $0x1e8] sm:$0xff]  ;;  %v70_v30 = vsel %vm57_vm0, %v56_v54, 0.0  ;;  %10810 = vst [vmem:[#allocation14_spill] sm:$0xff] %v6481_v32  ;;  %v6485_v34 = vmul.f32 %v6446_v6, %v6429_v58  ;;  %v6503_v45 = vpop.eup %5622  ;;  %v6521_v54 = vld [vmem:[%s10537_s1 + $0x20] sm:$0xff]  ;;  %10821 = vst [vmem:[#allocation25_spill] sm:$0xff] %v6562_v59 }
  0x29   :  { %v577_v4 = vsel %vm57_vm0, %v6455_v15, 0.0  ;;  %v6491_v38 = vmul.f32 %v6453_v14, %v6429_v58  ;;  %v6496_v39 = vld [vmem:[%s10537_s1 + $0x28] sm:$0xff]  ;;  %v69_v44 = vadd.f32 %v68_v55, %v67_v63  ;;  %10813 = vst [vmem:[#allocation17_spill] sm:$0xff] %v6503_v45  ;;  %v6505_v46 = vadd.f32 %v312_v57, %v239_v5  ;;  %10815 = vst [vmem:[#allocation19_spill] sm:$0xff] %v6521_v54  ;;  %v6526_v55 = vld [vmem:[%s10537_s1 + $0xc0] sm:$0xff] }
  0x2a   :  { %10811 = vst [vmem:[#allocation15_spill] sm:$0xff] %v6496_v39  ;;  %v6501_v40 = vld [vmem:[%s10537_s1 + $0xc8] sm:$0xff]  ;;  %v576_v48 = vadd.f32 %v575_v16, %v574_v20  ;;  %v6507_v50 = vadd.f32 %v310_v13, %v237_v8  ;;  %v6511_v51 = vmul.f32 %v6464_v19, %v6429_v58  ;;  %10816 = vst [vmem:[#allocation20_spill] sm:$0xff] %v6526_v55  ;;  %v579_v57 = vsel %vm57_vm0, %v6481_v32, 0.0  ;;  %v6546_v8 = vld [vmem:[%s10537_s1 + $0x38] sm:$0xff]  ;;  %v6553_v16 = vpop.eup %5624 }
  0x2b   :  { %10812 = vst [vmem:[#allocation16_spill] sm:$0xff] %v6501_v40  ;;  %v6516_v52 = vld [vmem:[%s10537_s1 + $0x168] sm:$0xff]  ;;  %v6530_v60 = vadd.f32 %v313_v18, %v240_v17  ;;  %v311_v63 = vmul.f32 %v6473_v28, %v6363_v33  ;;  %v6536_v5 = vmul.f32 %v6478_v29, %v6429_v58  ;;  %10818 = vst [vmem:[#allocation22_spill] sm:$0xff] %v6546_v8  ;;  %v6551_v13 = vld [vmem:[%s10537_s1 + $0xd8] sm:$0xff]  ;;  %vm4030_vm2 = vcmask 80896  }
  0x2c   :  { %10814 = vst [vmem:[#allocation18_spill] sm:$0xff] %v6516_v52  ;;  %v6541_v7 = vld [vmem:[%s10537_s1 + $0x208] sm:$0xff]  ;;  %10819 = vst [vmem:[#allocation23_spill] sm:$0xff] %v6551_v13  ;;  %v578_v17 = vadd.f32 %v577_v4, %v576_v48  ;;  %v238_v18 = vadd.f32 %v198_v24, %v125_v21  ;;  %v129_v20 = vmul.f32 %v6328_v0, %v6496_v39  ;;  %v6567_v10 = vld [vmem:[%s10537_s1 + $0xd0] sm:$0xff]  ;;  %v581_v4 = vsel %vm57_vm0, %v6503_v45, 0.0 }
  0x2d   :  { %10817 = vst [vmem:[#allocation21_spill] sm:$0xff] %v6541_v7  ;;  %10820 = vst [vmem:[#allocation24_spill] sm:$0xff] %v6553_v16  ;;  %v202_v3 = vmul.f32 %v6501_v40, %v6331_v1  ;;  %v315_v21 = vmul.f32 %v6516_v52, %v6363_v33  ;;  %v128_v24 = vmul.f32 %v6328_v0, %v6521_v54  ;;  %v6580_v32 = vld [vmem:[%s10537_s1 + $0x160] sm:$0xff]  ;;  %v6585_v15 = vld [vmem:[%s10537_s1 + $0x48] sm:$0xff]  ;;  %v583_v52 = vsel %vm57_vm0, %v6553_v16, 0.0 }
  0x2e   :  { %10822 = vst [vmem:[#allocation26_spill] sm:$0xff] %v6567_v10  ;;  %v201_v48 = vmul.f32 %v6526_v55, %v6331_v1  ;;  %10823 = vst [vmem:[#allocation27_spill] sm:$0xff] %v6580_v32  ;;  %v580_v45 = vadd.f32 %v579_v57, %v578_v17  ;;  %v6589_v56 = vmul.f32 %v6541_v7, %v6429_v58  ;;  %v6598_v54 = vld [vmem:[%s10537_s1 + $0xe8] sm:$0xff]  ;;  %v6605_v57 = vld [vmem:[%s10537_s1 + $0x178] sm:$0xff]  ;;  %vm4265_vm4 = vcmask 73728  }
  0x2f   :  { %10824 = vst [vmem:[#allocation28_spill] sm:$0xff] %v6585_v15  ;;  %v131_v47 = vmul.f32 %v6328_v0, %v6546_v8  ;;  %v204_v55 = vmul.f32 %v6551_v13, %v6331_v1  ;;  %10825 = vst [vmem:[#allocation29_spill] sm:$0xff] %v6598_v54  ;;  %v130_v17 = vmul.f32 %v6328_v0, %v6562_v59  ;;  %v6614_v13 = vld [vmem:[%s10537_s1 + $0x170] sm:$0xff]  ;;  %v6625_v59 = vld [vmem:[%s10537_s1 + $0x40] sm:$0xff] }
  0x30   :  { %10826 = vst [vmem:[#allocation30_spill] sm:$0xff] %v6605_v57  ;;  %v203_v8 = vmul.f32 %v6567_v10, %v6331_v1  ;;  %10827 = vst [vmem:[#allocation31_spill] sm:$0xff] %v6614_v13  ;;  %v6616_v7 = vadd.f32 %v70_v30, %v69_v44  ;;  %v582_v40 = vadd.f32 %v581_v4, %v580_v45  ;;  %v6630_v10 = vld [vmem:[%s10537_s1 + $0xe0] sm:$0xff] }
  0x31   :  { %v242_v16 = vadd.f32 %v202_v3, %v129_v20  ;;  %v314_v39 = vmul.f32 %v6580_v32, %v6363_v33  ;;  %v133_v6 = vmul.f32 %v6328_v0, %v6585_v15  ;;  %10828 = vst [vmem:[#allocation32_spill] sm:$0xff] %v6625_v59  ;;  %10829 = vst [vmem:[#allocation33_spill] sm:$0xff] %v6630_v10  ;;  %v6639_v20 = vld [vmem:[%s10537_s1 + $0x188] sm:$0xff]  ;;  %v6644_v15 = vld [vmem:[%s10537_s1 + $0x200] sm:$0xff] }
  0x32   :  { %v241_v30 = vadd.f32 %v201_v48, %v128_v24  ;;  %v73_v44 = vadd.f32 1e-08, %v6616_v7  ;;  %v79_v3 = vadd.f32 1.0, %v6616_v7  ;;  %v206_v45 = vmul.f32 %v6598_v54, %v6331_v1  ;;  %10830 = vst [vmem:[#allocation34_spill] sm:$0xff] %v6639_v20  ;;  %v6653_v54 = vld [vmem:[%s10537_s1 + $0x180] sm:$0xff] }
  0x33   :  { %v584_v4 = vadd.f32 %v583_v52, %v582_v40  ;;  %v244_v32 = vadd.f32 %v204_v55, %v131_v47  ;;  %v317_v24 = vmul.f32 %v6605_v57, %v6363_v33  ;;  %v316_v48 = vmul.f32 %v6614_v13, %v6363_v33  ;;  %10831 = vst [vmem:[#allocation35_spill] sm:$0xff] %v6653_v54  ;;  %v6662_v47 = vld [vmem:[%s10537_s1 + $0x58] sm:$0xff] }
  0x34   :  { %v243_v43 = vadd.f32 %v203_v8, %v130_v17  ;;  %5626 = vrsqrt.f32 %v73_v44  ;;  %v132_v40 = vmul.f32 %v6328_v0, %v6625_v59  ;;  %v205_v52 = vmul.f32 %v6630_v10, %v6331_v1  ;;  %10832 = vst [vmem:[#allocation36_spill] sm:$0xff] %v6662_v47  ;;  %v6667_v55 = vld [vmem:[%s10537_s1 + $0xf8] sm:$0xff]  ;;  %v6677_v17 = vld [vmem:[%s10537_s1 + $0x210] sm:$0xff] }
  0x35   :  { %10833 = vst [vmem:[#allocation37_spill] sm:$0xff] %v6667_v55  ;;  %5628 = vrcp.f32 %v584_v4  ;;  %v351_v13 = vadd.f32 %v311_v63, %v238_v18  ;;  %v6672_v8 = vld [vmem:[%s10537_s1 + $0x218] sm:$0xff]  ;;  %v246_v44 = vadd.f32 %v206_v45, %v133_v6  ;;  %v319_v10 = vmul.f32 %v6639_v20, %v6363_v33  ;;  %v6686_v63 = vld [vmem:[%s10537_s1 + $0x228] sm:$0xff]  ;;  %v6693_v6 = vld [vmem:[%s10537_s1 + $0x220] sm:$0xff] }
  0x36   :  { %v427_v59 = vmul.f32 %v6644_v15, %v6429_v58  ;;  %5630 = vrcp.f32 %v79_v3  ;;  %v245_v18 = vadd.f32 %v205_v52, %v132_v40  ;;  %v318_v4 = vmul.f32 %v6653_v54, %v6363_v33  ;;  %10834 = vst [vmem:[#allocation38_spill] sm:$0xff] %v6693_v6  ;;  %v6702_v40 = vld [vmem:[%s10537_s1 + $0x50] sm:$0xff]  ;;  %v6716_v54 = vld [vmem:[%s10537_s1 + $0x198] sm:$0xff] }
  0x37   :  { %v355_v57 = vadd.f32 %v315_v21, %v242_v16  ;;  %v354_v2 = vadd.f32 %v314_v39, %v241_v30  ;;  %v135_v45 = vmul.f32 %v6328_v0, %v6662_v47  ;;  %v208_v3 = vmul.f32 %v6667_v55, %v6331_v1  ;;  %v6707_v39 = vld [vmem:[%s10537_s1 + $0xf0] sm:$0xff]  ;;  %10836 = vst [vmem:[#allocation40_spill] sm:$0xff] %v6716_v54  ;;  %v6733_v20 = vld [vmem:[%s10537_s1 + $0x238] sm:$0xff] }
  0x38   :  { %10835 = vst [vmem:[#allocation39_spill] sm:$0xff] %v6707_v39  ;;  %v357_v16 = vadd.f32 %v317_v24, %v244_v32  ;;  %v430_v21 = vmul.f32 %v6672_v8, %v6429_v58  ;;  %v356_v30 = vadd.f32 %v316_v48, %v243_v43  ;;  %v429_v52 = vmul.f32 %v6677_v17, %v6429_v58 }
  0x39   :  { %v6720_v55 = vadd.f32 %v6485_v34, %v6505_v46  ;;  %v6724_v47 = vadd.f32 %v6491_v38, %v6507_v50  ;;  %v359_v32 = vadd.f32 %v319_v10, %v246_v44  ;;  %v432_v43 = vmul.f32 %v6686_v63, %v6429_v58  ;;  %10839 = vst [vmem:[#allocation43_spill] sm:$0xff] %v6733_v20  ;;  %v6742_v10 = vld [vmem:[%s10537_s1 + $0x68] sm:$0xff] }
  0x3a   :  { %v358_v24 = vadd.f32 %v318_v4, %v245_v18  ;;  %v431_v48 = vmul.f32 %v6693_v6, %v6429_v58  ;;  %v134_v34 = vmul.f32 %v6328_v0, %v6702_v40  ;;  %v207_v38 = vmul.f32 %v6707_v39, %v6331_v1  ;;  %10840 = vst [vmem:[#allocation44_spill] sm:$0xff] %v6742_v10  ;;  %v6747_v46 = vld [vmem:[%s10537_s1 + $0x108] sm:$0xff]  ;;  %v6761_v6 = vld [vmem:[%s10537_s1 + $0x190] sm:$0xff] }
  0x3b   :  { %10837 = vst [vmem:[#allocation41_spill] sm:$0xff] %v6720_v55  ;;  %10838 = vst [vmem:[#allocation42_spill] sm:$0xff] %v6724_v47  ;;  %v6751_v50 = vadd.f32 %v6511_v51, %v6530_v60  ;;  %v6754_v44 = vadd.f32 %v6536_v5, %v351_v13  ;;  %v248_v18 = vadd.f32 %v208_v3, %v135_v45  ;;  %v6766_v39 = vld [vmem:[%s10537_s1 + $0x230] sm:$0xff]  ;;  %v6780_v45 = vld [vmem:[%s10537_s1 + $0x1a8] sm:$0xff] }
  0x3c   :  { %10841 = vst [vmem:[#allocation45_spill] sm:$0xff] %v6747_v46  ;;  %v321_v4 = vmul.f32 %v6716_v54, %v6363_v33  ;;  %10844 = vst [vmem:[#allocation48_spill] sm:$0xff] %v6766_v39  ;;  %v6769_v51 = vadd.f32 %v6589_v56, %v355_v57  ;;  %v6771_v60 = vadd.f32 %v427_v59, %v354_v2  ;;  %v6785_v3 = vld [vmem:[%s10537_s1 + $0x248] sm:$0xff] }
  0x3d   :  { %10842 = vst [vmem:[#allocation46_spill] sm:$0xff] %v6751_v50  ;;  %10843 = vst [vmem:[#allocation47_spill] sm:$0xff] %v6754_v44  ;;  %v6773_v5 = vadd.f32 %v430_v21, %v357_v16  ;;  %v6775_v13 = vadd.f32 %v429_v52, %v356_v30  ;;  %v6787_v54 = vadd.f32 %v432_v43, %v359_v32  ;;  %v6808_v32 = vld [vmem:[%s10537_s1 + $0x60] sm:$0xff] }
  0x3e   :  { %10845 = vst [vmem:[#allocation49_spill] sm:$0xff] %v6769_v51  ;;  %10846 = vst [vmem:[#allocation50_spill] sm:$0xff] %v6771_v60  ;;  %v6791_v59 = vmul.f32 %v6733_v20, %v6429_v58  ;;  %v137_v2 = vmul.f32 %v6328_v0, %v6742_v10  ;;  %v210_v56 = vmul.f32 %v6747_v46, %v6331_v1  ;;  %v5627_v57 = vpop.eup %5626  ;;  %v6813_v43 = vld [vmem:[%s10537_s1 + $0x100] sm:$0xff] }
  0x3f   :  { %10847 = vst [vmem:[#allocation51_spill] sm:$0xff] %v6773_v5  ;;  %10848 = vst [vmem:[#allocation52_spill] sm:$0xff] %v6775_v13  ;;  %v6797_v16 = vadd.f32 %v431_v48, %v358_v24  ;;  %v247_v21 = vadd.f32 %v207_v38, %v134_v34  ;;  %v320_v30 = vmul.f32 %v6761_v6, %v6363_v33  ;;  %v6815_v24 = vpop.eup %5628 }
  0x40   :  { %10849 = vst [vmem:[#allocation53_spill] sm:$0xff] %v6780_v45  ;;  %10850 = vst [vmem:[#allocation54_spill] sm:$0xff] %v6785_v3  ;;  %v6803_v52 = vmul.f32 %v6766_v39, %v6429_v58  ;;  %v77_v48 = vmul.f32 %v5627_v57, %v6616_v7  ;;  %v6818_v34 = vadd.f32 %v321_v4, %v248_v18  ;;  %v5631_v10 = vpop.eup %5630 }
  0x41   :  { %10851 = vst [vmem:[#allocation55_spill] sm:$0xff] %v6787_v54  ;;  %10852 = vst [vmem:[#allocation56_spill] sm:$0xff] %v6797_v16  ;;  %v6822_v38 = vmul.f32 %v6780_v45, %v6363_v33  ;;  %v6826_v46 = vmul.f32 %v6785_v3, %v6429_v58  ;;  %v587_v39 = vmul.f32 %v6815_v24, %v6359_v31 }
  0x42   :  { %10853 = vst [vmem:[#allocation57_spill] sm:$0xff] %v6808_v32  ;;  %10854 = vst [vmem:[#allocation58_spill] sm:$0xff] %v6813_v43  ;;  %v586_v20 = vmul.f32 %v6815_v24, %v6348_v26  ;;  %v588_v7 = vmul.f32 %v6815_v24, %v6377_v37  ;;  %v589_v18 = vmul.f32 %v6815_v24, %v6392_v42  ;;  %v6849_v26 = vld [vmem:[%s10537_s1 + $0x1a0] sm:$0xff] }
  0x43   :  { %v83_v4 = vmul.f32 %v5631_v10, %v77_v48  ;;  %v6836_v57 = vadd.f32 %v210_v56, %v137_v2  ;;  %v6840_v3 = vmul.f32 %v6328_v0, %v6808_v32  ;;  %v6844_v45 = vmul.f32 %v6813_v43, %v6331_v1  ;;  %v6866_v2 = vld [vmem:[%s10537_s1 + $0x240] sm:$0xff] }
  0x44   :  { %v6852_v31 = vrot.slane %v587_v39, %v6312_v12  ;;  %v6855_v37 = vrot.slane %v586_v20, %v6312_v12  ;;  %v6858_v42 = vrot.slane %v588_v7, %v6312_v12  ;;  %v6861_v10 = vrot.slane %v589_v18, %v6312_v12 }
  0x45   :  { %v88_v56 = vmul.f32 %v83_v4, %v6304_v9  ;;  %v89_v48 = vmul.f32 %v83_v4, %v6309_v11  ;;  %v90_v39 = vmul.f32 %v83_v4, %v6325_v22  ;;  %v91_v20 = vmul.f32 %v83_v4, %v6390_v41 }
  0x46   :  { %v658_v7 = vmul.f32 %v6852_v31, %v6720_v55  ;;  %v656_v18 = vmul.f32 %v6855_v37, %v6724_v47  ;;  %v6876_v43 = vadd.f32 %v320_v30, %v247_v21  ;;  %v6880_v32 = vmul.f32 %v6849_v26, %v6363_v33 }
  0x47   :  { %v659_v9 = vmul.f32 %v6852_v31, %v6751_v50  ;;  %v657_v11 = vmul.f32 %v6855_v37, %v6754_v44  ;;  %v661_v22 = vmul.f32 %v6858_v42, %v6769_v51  ;;  %v6890_v41 = vmul.f32 %v6866_v2, %v6429_v58 }
  0x48   :  { %700 = vadd.xlane.f32.xlu1 %v658_v7  ;;  %696 = vadd.xlane.f32.xlu0 %v656_v18  ;;  %v6893_v21 = vrot.slane %v88_v56, %v6312_v12  ;;  %v6896_v30 = vrot.slane %v89_v48, %v6312_v12  ;;  %v6899_v4 = vrot.slane %v90_v39, %v6312_v12 }
  0x49   :  { %v660_v44 = vmul.f32 %v6858_v42, %v6771_v60  ;;  %v663_v51 = vmul.f32 %v6861_v10, %v6773_v5  ;;  %v662_v47 = vmul.f32 %v6861_v10, %v6775_v13  ;;  %v6908_v7 = vrot.slane %v91_v20, %v6312_v12 }
  0x4a   :  { %v145_v56 = vmul.f32 %v6893_v21, %v6436_v61  ;;  %v218_v48 = vmul.f32 %v6441_v62, %v6896_v30  ;;  %v331_v39 = vmul.f32 %v6473_v28, %v6899_v4  ;;  %v144_v18 = vmul.f32 %v6893_v21, %v6346_v25 }
  0x4b   :  { %v444_v5 = vmul.f32 %v6478_v29, %v6908_v7  ;;  %v217_v13 = vmul.f32 %v6353_v27, %v6896_v30  ;;  %v330_v20 = vmul.f32 %v6410_v49, %v6899_v4  ;;  %v443_v61 = vmul.f32 %v6453_v14, %v6908_v7 }
  0x4c   :  { %702 = vadd.xlane.f32.xlu1 %v659_v9  ;;  %698 = vadd.xlane.f32.xlu0 %v657_v11  ;;  %v258_v62 = vadd.f32 %v218_v48, %v145_v56  ;;  %v147_v28 = vmul.f32 %v6893_v21, %v6370_v35  ;;  %v220_v25 = vmul.f32 %v6375_v36, %v6896_v30  ;;  %v10855_v11 = vld [vmem:[#allocation8_spill] sm:$0xff]  ;;  %v10856_v35 = vld [vmem:[#allocation9_spill] sm:$0xff] }
  0x4d   :  { %v257_v60 = vadd.f32 %v217_v13, %v144_v18  ;;  %v333_v29 = vmul.f32 %v6419_v53, %v6899_v4  ;;  %v446_v27 = vmul.f32 %v6464_v19, %v6908_v7  ;;  %v146_v49 = vmul.f32 %v6893_v21, %v6336_v23  ;;  %v6943_v36 = vld [vmem:[%s10537_s1 + $0x78] sm:$0xff] }
  0x4e   :  { %v371_v14 = vadd.f32 %v331_v39, %v258_v62  ;;  %v260_v9 = vadd.f32 %v220_v25, %v147_v28  ;;  %v219_v56 = vmul.f32 %v10855_v11, %v6896_v30  ;;  %v332_v48 = vmul.f32 %v10856_v35, %v6899_v4  ;;  %v10857_v13 = vld [vmem:[#allocation12_spill] sm:$0xff]  ;;  %v10858_v18 = vld [vmem:[#allocation15_spill] sm:$0xff] }
  0x4f   :  { %v370_v53 = vadd.f32 %v330_v20, %v257_v60  ;;  %v445_v19 = vmul.f32 %v10857_v13, %v6908_v7  ;;  %v149_v23 = vmul.f32 %v6893_v21, %v10858_v18  ;;  %v10859_v39 = vld [vmem:[#allocation16_spill] sm:$0xff]  ;;  %v10862_v60 = vld [vmem:[#allocation18_spill] sm:$0xff]  ;;  %v6959_v13 = vmul.f32 %v6328_v0, %v6943_v36 }
  0x50   :  { %v222_v62 = vmul.f32 %v10859_v39, %v6896_v30  ;;  %706 = vadd.xlane.f32.xlu1 %v661_v22  ;;  %704 = vadd.xlane.f32.xlu0 %v660_v44  ;;  %v6951_v28 = vadd.f32 %v444_v5, %v371_v14  ;;  %v373_v25 = vadd.f32 %v333_v29, %v260_v9  ;;  %v10864_v39 = vld [vmem:[#allocation19_spill] sm:$0xff] }
  0x51   :  { %v259_v11 = vadd.f32 %v219_v56, %v146_v49  ;;  %v6953_v35 = vadd.f32 %v443_v61, %v370_v53  ;;  %v335_v20 = vmul.f32 %v10862_v60, %v6899_v4  ;;  %v148_v44 = vmul.f32 %v6893_v21, %v10864_v39  ;;  %v10866_v61 = vld [vmem:[#allocation21_spill] sm:$0xff]  ;;  %v10867_v49 = vld [vmem:[#allocation20_spill] sm:$0xff]  ;;  %v10868_v9 = vld [vmem:[#allocation27_spill] sm:$0xff] }
  0x52   :  { %10860 = vst [vmem:[#allocation8_spill] sm:$0xff] %v6951_v28  ;;  %v262_v50 = vadd.f32 %v222_v62, %v149_v23  ;;  %v6961_v18 = vadd.f32 %v446_v27, %v373_v25  ;;  %v6967_v5 = vadd.f32 %v6791_v59, %v6818_v34  ;;  %v448_v29 = vmul.f32 %v10866_v61, %v6908_v7  ;;  %v10870_v53 = vld [vmem:[#allocation22_spill] sm:$0xff]  ;;  %v10871_v62 = vld [vmem:[#allocation23_spill] sm:$0xff]  ;;  %v10873_v60 = vld [vmem:[#allocation25_spill] sm:$0xff] }
  0x53   :  { %10861 = vst [vmem:[#allocation9_spill] sm:$0xff] %v6953_v35  ;;  %v372_v55 = vadd.f32 %v332_v48, %v259_v11  ;;  %v221_v14 = vmul.f32 %v10867_v49, %v6896_v30  ;;  %v334_v56 = vmul.f32 %v10868_v9, %v6899_v4  ;;  %v677_v27 = vmul.f32 %v6855_v37, %v6951_v28  ;;  %v10875_v39 = vld [vmem:[#allocation26_spill] sm:$0xff]  ;;  %v7004_v61 = vld [vmem:[%s10537_s1 + $0x118] sm:$0xff] }
  0x54   :  { %10863 = vst [vmem:[#allocation12_spill] sm:$0xff] %v6961_v18  ;;  %10865 = vst [vmem:[#allocation15_spill] sm:$0xff] %v6967_v5  ;;  %v375_v22 = vadd.f32 %v335_v20, %v262_v50  ;;  %710 = vadd.xlane.f32.xlu1 %v663_v51  ;;  %708 = vadd.xlane.f32.xlu0 %v662_v47  ;;  %v676_v48 = vmul.f32 %v6855_v37, %v6953_v35  ;;  %v10872_v51 = vld [vmem:[#allocation30_spill] sm:$0xff] }
  0x55   :  { %v6979_v59 = vadd.f32 %v445_v19, %v372_v55  ;;  %v261_v50 = vadd.f32 %v221_v14, %v148_v44  ;;  %v447_v34 = vmul.f32 %v6644_v15, %v6908_v7  ;;  %v151_v23 = vmul.f32 %v6893_v21, %v10870_v53 }
  0x56   :  { %v224_v25 = vmul.f32 %v10871_v62, %v6896_v30  ;;  %v679_v47 = vmul.f32 %v6852_v31, %v6961_v18  ;;  %v337_v11 = vmul.f32 %v10872_v51, %v6899_v4  ;;  %v150_v55 = vmul.f32 %v6893_v21, %v10873_v60  ;;  %v10880_v62 = vld [vmem:[#allocation10_spill] sm:$0xff]  ;;  %v7035_v51 = vld [vmem:[%s10537_s1 + $0x1b8] sm:$0xff] }
  0x57   :  { %10869 = vst [vmem:[#allocation16_spill] sm:$0xff] %v6979_v59  ;;  %v6995_v37 = vadd.f32 %v6822_v38, %v6836_v57  ;;  %v6997_v15 = vadd.f32 %v448_v29, %v375_v22  ;;  %v374_v19 = vadd.f32 %v334_v56, %v261_v50  ;;  %v223_v44 = vmul.f32 %v10875_v39, %v6896_v30  ;;  %v10876_v57 = vld [vmem:[#allocation31_spill] sm:$0xff]  ;;  %v10878_v50 = vld [vmem:[#allocation28_spill] sm:$0xff]  ;;  %v10886_v39 = vld [vmem:[#allocation33_spill] sm:$0xff] }
  0x58   :  { %v264_v20 = vadd.f32 %v224_v25, %v151_v23  ;;  %738 = vadd.xlane.f32.xlu1 %v677_v27  ;;  %736 = vadd.xlane.f32.xlu0 %v676_v48  ;;  %v678_v49 = vmul.f32 %v6852_v31, %v6979_v59  ;;  %v450_v38 = vmul.f32 %v6672_v8, %v6908_v7  ;;  %v10879_v48 = vld [vmem:[#allocation29_spill] sm:$0xff]  ;;  %v10883_v60 = vld [vmem:[#allocation32_spill] sm:$0xff] }
  0x59   :  { %10874 = vst [vmem:[#allocation18_spill] sm:$0xff] %v6997_v15  ;;  %v336_v22 = vmul.f32 %v10876_v57, %v6899_v4  ;;  %v7012_v29 = vadd.f32 %v447_v34, %v374_v19  ;;  %v263_v9 = vadd.f32 %v223_v44, %v150_v55  ;;  %v449_v56 = vmul.f32 %v6677_v17, %v6908_v7  ;;  %v10885_v19 = vld [vmem:[#allocation34_spill] sm:$0xff]  ;;  %v10887_v57 = vld [vmem:[#allocation36_spill] sm:$0xff] }
  0x5a   :  { %v377_v14 = vadd.f32 %v337_v11, %v264_v20  ;;  %v153_v27 = vmul.f32 %v6893_v21, %v10878_v50  ;;  %v226_v53 = vmul.f32 %v10879_v48, %v6896_v30  ;;  %v249_v31 = vadd.f32 %v6844_v45, %v6840_v3  ;;  %v7040_v45 = vld [vmem:[%s10537_s1 + $0x258] sm:$0xff] }
  0x5b   :  { %10877 = vst [vmem:[#allocation19_spill] sm:$0xff] %v7012_v29  ;;  %v212_v8 = vmul.f32 %v7004_v61, %v6331_v1  ;;  %v681_v34 = vmul.f32 %v6858_v42, %v6997_v15  ;;  %v376_v23 = vadd.f32 %v336_v22, %v263_v9  ;;  %v590_v25 = vmul.f32 %v6815_v24, %v10880_v62  ;;  %v10889_v9 = vld [vmem:[#allocation11_spill] sm:$0xff] }
  0x5c   :  { %v7030_v17 = vadd.f32 %v6803_v52, %v6876_v43  ;;  %742 = vadd.xlane.f32.xlu1 %v679_v47  ;;  %740 = vadd.xlane.f32.xlu0 %v678_v49  ;;  %v680_v3 = vmul.f32 %v6858_v42, %v7012_v29  ;;  %v7044_v11 = vadd.f32 %v450_v38, %v377_v14  ;;  %v10888_v49 = vld [vmem:[#allocation37_spill] sm:$0xff] }
  0x5d   :  { %v152_v52 = vmul.f32 %v6893_v21, %v10883_v60  ;;  %v7048_v43 = vadd.f32 %v449_v56, %v376_v23  ;;  %v266_v55 = vadd.f32 %v226_v53, %v153_v27  ;;  %v339_v20 = vmul.f32 %v10885_v19, %v6899_v4  ;;  %v10890_v27 = vld [vmem:[#allocation35_spill] sm:$0xff] }
  0x5e   :  { %10881 = vst [vmem:[#allocation21_spill] sm:$0xff] %v7030_v17  ;;  %10882 = vst [vmem:[#allocation20_spill] sm:$0xff] %v7044_v11  ;;  %v225_v44 = vmul.f32 %v10886_v39, %v6896_v30  ;;  %v155_v47 = vmul.f32 %v6893_v21, %v10887_v57  ;;  %v228_v42 = vmul.f32 %v10888_v49, %v6896_v30  ;;  %v106_v53 = vld [vmem:[%s10537_s1 + $0x70] sm:$0xff]  ;;  %v10893_v57 = vld [vmem:[#allocation40_spill] sm:$0xff] }
  0x5f   :  { %10884 = vst [vmem:[#allocation27_spill] sm:$0xff] %v7048_v43  ;;  %v325_v38 = vmul.f32 %v7035_v51, %v6363_v33  ;;  %v438_v22 = vmul.f32 %v7040_v45, %v6429_v58  ;;  %v625_v14 = vrot.slane %v590_v25, %v6312_v12  ;;  %v591_v56 = vmul.f32 %v6815_v24, %v10889_v9  ;;  %v10891_v19 = vld [vmem:[#allocation39_spill] sm:$0xff] }
  0x60   :  { %v265_v50 = vadd.f32 %v225_v44, %v152_v52  ;;  %v338_v48 = vmul.f32 %v10890_v27, %v6899_v4  ;;  %746 = vadd.xlane.f32.xlu1 %v681_v34  ;;  %744 = vadd.xlane.f32.xlu0 %v680_v3  ;;  %v683_v23 = vmul.f32 %v6861_v10, %v7044_v11  ;;  %v10892_v44 = vld [vmem:[#allocation13_spill] sm:$0xff] }
  0x61   :  { %v682_v62 = vmul.f32 %v6861_v10, %v7048_v43  ;;  %v154_v25 = vmul.f32 %v6893_v21, %v6702_v40  ;;  %v379_v60 = vadd.f32 %v339_v20, %v266_v55  ;;  %v452_v52 = vmul.f32 %v6686_v63, %v6908_v7  ;;  %v10894_v40 = vld [vmem:[#allocation38_spill] sm:$0xff] }
  0x62   :  { %v227_v39 = vmul.f32 %v10891_v19, %v6896_v30  ;;  %v592_v34 = vmul.f32 %v6815_v24, %v10892_v44  ;;  %v268_v3 = vadd.f32 %v228_v42, %v155_v47  ;;  %v341_v49 = vmul.f32 %v10893_v57, %v6899_v4  ;;  %v5525_v19 = vld [vmem:[%s10537_s1 + $0x110] sm:$0xff] }
  0x63   :  { %v252_v9 = vadd.f32 %v212_v8, %v6959_v13  ;;  %v138_v10 = vmul.f32 %v6328_v0, %v106_v53  ;;  %v378_v27 = vadd.f32 %v338_v48, %v265_v50  ;;  %v451_v55 = vmul.f32 %v10894_v40, %v6908_v7 }
  0x64   :  { %v267_v20 = vadd.f32 %v227_v39, %v154_v25  ;;  %v340_v63 = vmul.f32 %v6761_v6, %v6899_v4  ;;  %750 = vadd.xlane.f32.xlu1 %v683_v23  ;;  %748 = vadd.xlane.f32.xlu0 %v682_v62  ;;  %v665_v47 = vmul.f32 %v625_v14, %v6787_v54  ;;  %v10897_v23 = vld [vmem:[#allocation43_spill] sm:$0xff]  ;;  %v10898_v39 = vld [vmem:[#allocation48_spill] sm:$0xff] }
  0x65   :  { %v664_v13 = vmul.f32 %v625_v14, %v6797_v16  ;;  %v629_v8 = vrot.slane %v591_v56, %v6312_v12  ;;  %v7096_v42 = vadd.f32 %v452_v52, %v379_v60  ;;  %v7100_v50 = vadd.f32 %v6826_v46, %v6995_v37  ;;  %v5545_v46 = vld [vmem:[%s10537_s1 + $0x1b0] sm:$0xff]  ;;  %v10900_v37 = vld [vmem:[#allocation44_spill] sm:$0xff] }
  0x66   :  { %v7103_v6 = vrot.slane %v592_v34, %v6312_v12  ;;  %v362_v48 = vadd.f32 %v6880_v32, %v249_v31  ;;  %v381_v25 = vadd.f32 %v341_v49, %v268_v3  ;;  %v454_v62 = vmul.f32 %v10897_v23, %v6908_v7  ;;  %v10901_v32 = vld [vmem:[#allocation45_spill] sm:$0xff] }
  0x67   :  { %10895 = vst [vmem:[#allocation22_spill] sm:$0xff] %v7096_v42  ;;  %10896 = vst [vmem:[#allocation23_spill] sm:$0xff] %v7100_v50  ;;  %v453_v44 = vmul.f32 %v10898_v39, %v6908_v7  ;;  %v211_v56 = vmul.f32 %v5525_v19, %v6331_v1  ;;  %v7111_v60 = vadd.f32 %v451_v55, %v378_v27  ;;  %v10903_v55 = vld [vmem:[#allocation57_spill] sm:$0xff] }
  0x68   :  { %v380_v52 = vadd.f32 %v340_v63, %v267_v20  ;;  %v157_v34 = vmul.f32 %v6893_v21, %v10900_v37  ;;  %v230_v31 = vmul.f32 %v10901_v32, %v6896_v30  ;;  %714 = vadd.xlane.f32.xlu1 %v665_v47  ;;  %712 = vadd.xlane.f32.xlu0 %v664_v13  ;;  %v10904_v63 = vld [vmem:[#allocation58_spill] sm:$0xff] }
  0x69   :  { %10899 = vst [vmem:[#allocation30_spill] sm:$0xff] %v7111_v60  ;;  %v667_v3 = vmul.f32 %v629_v8, %v6967_v5  ;;  %v666_v57 = vmul.f32 %v629_v8, %v7030_v17  ;;  %v365_v49 = vadd.f32 %v325_v38, %v252_v9  ;;  %v685_v27 = vmul.f32 %v625_v14, %v7096_v42  ;;  %v10906_v47 = vld [vmem:[#allocation14_spill] sm:$0xff] }
  0x6a   :  { %v7124_v40 = vadd.f32 %v6890_v41, %v362_v48  ;;  %v156_v20 = vmul.f32 %v6893_v21, %v10903_v55  ;;  %v229_v23 = vmul.f32 %v10904_v63, %v6896_v30  ;;  %v7130_v39 = vadd.f32 %v454_v62, %v381_v25  ;;  %v5565_v41 = vld [vmem:[%s10537_s1 + $0x250] sm:$0xff]  ;;  %v10908_v55 = vld [vmem:[#allocation53_spill] sm:$0xff] }
  0x6b   :  { %v593_v13 = vmul.f32 %v6815_v24, %v10906_v47  ;;  %v251_v37 = vadd.f32 %v211_v56, %v138_v10  ;;  %v324_v32 = vmul.f32 %v5545_v46, %v6363_v33  ;;  %v684_v38 = vmul.f32 %v625_v14, %v7111_v60 }
  0x6c   :  { %10902 = vst [vmem:[#allocation25_spill] sm:$0xff] %v7124_v40  ;;  %10905 = vst [vmem:[#allocation26_spill] sm:$0xff] %v7130_v39  ;;  %v7136_v9 = vadd.f32 %v453_v44, %v380_v52  ;;  %v270_v48 = vadd.f32 %v230_v31, %v157_v34  ;;  %v343_v63 = vmul.f32 %v10908_v55, %v6899_v4  ;;  %718 = vadd.xlane.f32.xlu1 %v667_v3  ;;  %v7156_v34 = vld [vmem:[%s10537_s1 + $0x88] sm:$0xff] }
  0x6d   :  { %716 = vadd.xlane.f32.xlu0 %v666_v57  ;;  %v7143_v25 = vadd.f32 %v438_v22, %v365_v49  ;;  %v159_v10 = vmul.f32 %v6893_v21, %v6943_v36  ;;  %v232_v14 = vmul.f32 %v7004_v61, %v6896_v30  ;;  %v269_v62 = vadd.f32 %v229_v23, %v156_v20  ;;  %v7161_v36 = vld [vmem:[%s10537_s1 + $0x128] sm:$0xff]  ;;  %v7176_v20 = vld [vmem:[%s10537_s1 + $0x80] sm:$0xff] }
  0x6e   :  { %10907 = vst [vmem:[#allocation31_spill] sm:$0xff] %v7136_v9  ;;  %v342_v44 = vmul.f32 %v6849_v26, %v6899_v4  ;;  %v158_v56 = vmul.f32 %v6893_v21, %v106_v53  ;;  %v231_v52 = vmul.f32 %v5525_v19, %v6896_v30  ;;  %v687_v61 = vmul.f32 %v629_v8, %v7130_v39  ;;  %v10910_v3 = vld [vmem:[#allocation54_spill] sm:$0xff]  ;;  %v7181_v23 = vld [vmem:[%s10537_s1 + $0x120] sm:$0xff] }
  0x6f   :  { %10909 = vst [vmem:[#allocation28_spill] sm:$0xff] %v7143_v25  ;;  %v7165_v22 = vrot.slane %v593_v13, %v6312_v12  ;;  %v364_v26 = vadd.f32 %v324_v32, %v251_v37  ;;  %v437_v53 = vmul.f32 %v5565_v41, %v6429_v58  ;;  %v686_v19 = vmul.f32 %v629_v8, %v7136_v9  ;;  %v7193_v55 = vld [vmem:[%s10537_s1 + $0x1c8] sm:$0xff] }
  0x70   :  { %v383_v31 = vadd.f32 %v343_v63, %v270_v48  ;;  %v456_v57 = vmul.f32 %v10910_v3, %v6908_v7  ;;  %v345_v49 = vmul.f32 %v7035_v51, %v6899_v4  ;;  %754 = vadd.xlane.f32.xlu1 %v685_v27  ;;  %v272_v8 = vadd.f32 %v232_v14, %v159_v10  ;;  %v110_v3 = vld [vmem:[%s10537_s1 + $0x90] sm:$0xff] }
  0x71   :  { %752 = vadd.xlane.f32.xlu0 %v684_v38  ;;  %v141_v47 = vmul.f32 %v6328_v0, %v7156_v34  ;;  %v214_v13 = vmul.f32 %v7161_v36, %v6331_v1  ;;  %v382_v51 = vadd.f32 %v342_v44, %v269_v62  ;;  %v455_v37 = vmul.f32 %v6866_v2, %v6908_v7 }
  0x72   :  { %v271_v32 = vadd.f32 %v231_v52, %v158_v56  ;;  %v344_v48 = vmul.f32 %v5545_v46, %v6899_v4  ;;  %v669_v27 = vmul.f32 %v7103_v6, %v7100_v50  ;;  %v668_v38 = vmul.f32 %v7103_v6, %v7124_v40  ;;  %v7206_v46 = vld [vmem:[%s10537_s1 + $0x1c0] sm:$0xff]  ;;  %v111_v56 = vld [vmem:[%s10537_s1 + $0x98] sm:$0xff] }
  0x73   :  { %v140_v63 = vmul.f32 %v6328_v0, %v7176_v20  ;;  %v213_v2 = vmul.f32 %v7181_v23, %v6331_v1  ;;  %v671_v10 = vmul.f32 %v7165_v22, %v7143_v25  ;;  %v7210_v14 = vadd.f32 %v437_v53, %v364_v26  ;;  %v5530_v52 = vld [vmem:[%s10537_s1 + $0x138] sm:$0xff] }
  0x74   :  { %v7212_v62 = vadd.f32 %v456_v57, %v383_v31  ;;  %v458_v44 = vmul.f32 %v7040_v45, %v6908_v7  ;;  %758 = vadd.xlane.f32.xlu1 %v687_v61  ;;  %v385_v26 = vadd.f32 %v345_v49, %v272_v8  ;;  %v254_v53 = vadd.f32 %v214_v13, %v141_v47  ;;  %v5568_v45 = vld [vmem:[%s10537_s1 + $0x268] sm:$0xff]  ;;  %v5529_v57 = vld [vmem:[%s10537_s1 + $0x130] sm:$0xff]  ;;  %v5567_v49 = vld [vmem:[%s10537_s1 + $0x260] sm:$0xff] }
  0x75   :  { %10911 = vst [vmem:[#allocation29_spill] sm:$0xff] %v7210_v14  ;;  %756 = vadd.xlane.f32.xlu0 %v686_v19  ;;  %v327_v31 = vmul.f32 %v7193_v55, %v6363_v33  ;;  %v7233_v39 = vadd.f32 %v455_v37, %v382_v51  ;;  %v384_v9 = vadd.f32 %v344_v48, %v271_v32  ;;  %v5550_v13 = vld [vmem:[%s10537_s1 + $0x1d8] sm:$0xff] }
  0x76   :  { %10912 = vst [vmem:[#allocation10_spill] sm:$0xff] %v7212_v62  ;;  %v457_v42 = vmul.f32 %v5565_v41, %v6908_v7  ;;  %v326_v61 = vmul.f32 %v7206_v46, %v6363_v33  ;;  %v253_v19 = vadd.f32 %v213_v2, %v140_v63  ;;  %v143_v8 = vmul.f32 %v6328_v0, %v111_v56  ;;  %v5549_v63 = vld [vmem:[%s10537_s1 + $0x1d0] sm:$0xff] }
  0x77   :  { %10913 = vst [vmem:[#allocation32_spill] sm:$0xff] %v7233_v39  ;;  %v216_v47 = vmul.f32 %v5530_v52, %v6331_v1  ;;  %v142_v51 = vmul.f32 %v6328_v0, %v110_v3  ;;  %v670_v41 = vmul.f32 %v7165_v22, %v7210_v14  ;;  %v689_v37 = vmul.f32 %v7103_v6, %v7212_v62  ;;  %v10915_v0 = vld [vmem:[#allocation17_spill] sm:$0xff] }
  0x78   :  { %v440_v32 = vmul.f32 %v5568_v45, %v6429_v58  ;;  %v215_v48 = vmul.f32 %v5529_v57, %v6331_v1  ;;  %722 = vadd.xlane.f32.xlu1 %v669_v27  ;;  %v7256_v2 = vadd.f32 %v458_v44, %v385_v26  ;;  %v367_v60 = vadd.f32 %v327_v31, %v254_v53  ;;  %v5570_v27 = vld [vmem:[%s10537_s1 + $0x278] sm:$0xff]  ;;  %v5569_v26 = vld [vmem:[%s10537_s1 + $0x270] sm:$0xff] }
  0x79   :  { %720 = vadd.xlane.f32.xlu0 %v668_v38  ;;  %v594_v25 = vmul.f32 %v6815_v24, %v10915_v0  ;;  %v688_v14 = vmul.f32 %v7103_v6, %v7233_v39  ;;  %v7262_v62 = vadd.f32 %v457_v42, %v384_v9  ;;  %v439_v50 = vmul.f32 %v5567_v49, %v6429_v58 }
  0x7a   :  { %10914 = vst [vmem:[#allocation34_spill] sm:$0xff] %v7256_v2  ;;  %v329_v1 = vmul.f32 %v5550_v13, %v6363_v33  ;;  %v366_v40 = vadd.f32 %v326_v61, %v253_v19  ;;  %v256_v5 = vadd.f32 %v216_v47, %v143_v8  ;;  %v255_v38 = vadd.f32 %v215_v48, %v142_v51  ;;  %v10918_v19 = vld [vmem:[#allocation24_spill] sm:$0xff] }
  0x7b   :  { %10916 = vst [vmem:[#allocation33_spill] sm:$0xff] %v7262_v62  ;;  %v328_v44 = vmul.f32 %v5549_v63, %v6363_v33  ;;  %v161_v42 = vmul.f32 %v6893_v21, %v7156_v34  ;;  %v234_v6 = vmul.f32 %v7161_v36, %v6896_v30  ;;  %v160_v9 = vmul.f32 %v6893_v21, %v7176_v20 }
  0x7c   :  { %v233_v53 = vmul.f32 %v7181_v23, %v6896_v30  ;;  %726 = vadd.xlane.f32.xlu1 %v671_v10  ;;  %v691_v33 = vmul.f32 %v7165_v22, %v7256_v2  ;;  %v7283_v31 = vadd.f32 %v440_v32, %v367_v60  ;;  %v641_v61 = vrot.slane %v594_v25, %v6312_v12 }
  0x7d   :  { %724 = vadd.xlane.f32.xlu0 %v670_v41  ;;  %v690_v34 = vmul.f32 %v7165_v22, %v7262_v62  ;;  %v442_v36 = vmul.f32 %v5570_v27, %v6429_v58  ;;  %v595_v20 = vmul.f32 %v6815_v24, %v10918_v19  ;;  %v441_v8 = vmul.f32 %v5569_v26, %v6429_v58 }
  0x7e   :  { %10917 = vst [vmem:[#allocation36_spill] sm:$0xff] %v7283_v31  ;;  %v7292_v23 = vadd.f32 %v439_v50, %v366_v40  ;;  %v369_v10 = vadd.f32 %v329_v1, %v256_v5  ;;  %v368_v47 = vadd.f32 %v328_v44, %v255_v38  ;;  %v347_v60 = vmul.f32 %v7193_v55, %v6899_v4 }
  0x7f   :  { %v274_v51 = vadd.f32 %v234_v6, %v161_v42  ;;  %v273_v41 = vadd.f32 %v233_v53, %v160_v9  ;;  %v346_v25 = vmul.f32 %v7206_v46, %v6899_v4  ;;  %v163_v22 = vmul.f32 %v6893_v21, %v111_v56 }
  0x80   :  { %10919 = vst [vmem:[#allocation37_spill] sm:$0xff] %v7292_v23  ;;  %762 = vadd.xlane.f32.xlu1 %v689_v37  ;;  %v236_v24 = vmul.f32 %v5530_v52, %v6896_v30  ;;  %v162_v58 = vmul.f32 %v6893_v21, %v110_v3  ;;  %v235_v50 = vmul.f32 %v5529_v57, %v6896_v30 }
  0x81   :  { %760 = vadd.xlane.f32.xlu0 %v688_v14  ;;  %v673_v5 = vmul.f32 %v641_v61, %v7283_v31  ;;  %v645_v40 = vrot.slane %v595_v20, %v6312_v12  ;;  %v672_v55 = vmul.f32 %v641_v61, %v7292_v23  ;;  %v7305_v32 = vadd.f32 %v442_v36, %v369_v10  ;;  %v10926_v12 = vld [vmem:[#allocation41_spill] sm:$0xff] }
  0x82   :  { %v460_v46 = vmul.f32 %v5568_v45, %v6908_v7  ;;  %v459_v56 = vmul.f32 %v5567_v49, %v6908_v7  ;;  %v7309_v37 = vadd.f32 %v441_v8, %v368_v47  ;;  %v387_v14 = vadd.f32 %v347_v60, %v274_v51 }
  0x83   :  { %10920 = vst [vmem:[#allocation11_spill] sm:$0xff] %v7305_v32  ;;  %v386_v52 = vadd.f32 %v346_v25, %v273_v41  ;;  %v349_v21 = vmul.f32 %v5550_v13, %v6899_v4  ;;  %v276_v30 = vadd.f32 %v236_v24, %v163_v22  ;;  %v275_v3 = vadd.f32 %v235_v50, %v162_v58 }
  0x84   :  { %10921 = vst [vmem:[#allocation35_spill] sm:$0xff] %v7309_v37  ;;  %766 = vadd.xlane.f32.xlu1 %v691_v33  ;;  %v348_v57 = vmul.f32 %v5549_v63, %v6899_v4  ;;  %v675_v48 = vmul.f32 %v645_v40, %v7305_v32  ;;  %v674_v0 = vmul.f32 %v645_v40, %v7309_v37 }
  0x85   :  { %764 = vadd.xlane.f32.xlu0 %v690_v34  ;;  %v7315_v1 = vadd.f32 %v460_v46, %v387_v14  ;;  %v7317_v45 = vadd.f32 %v459_v56, %v386_v52  ;;  %v462_v49 = vmul.f32 %v5570_v27, %v6908_v7  ;;  %v389_v38 = vadd.f32 %v349_v21, %v276_v30 }
  0x86   :  { %v388_v13 = vadd.f32 %v348_v57, %v275_v3  ;;  %v461_v44 = vmul.f32 %v5569_v26, %v6908_v7 }
  0x87   :  { %10922 = vst [vmem:[#allocation39_spill] sm:$0xff] %v7315_v1  ;;  %10923 = vst [vmem:[#allocation13_spill] sm:$0xff] %v7317_v45  ;;  %v693_v42 = vmul.f32 %v641_v61, %v7315_v1  ;;  %v692_v4 = vmul.f32 %v641_v61, %v7317_v45  ;;  %v7323_v63 = vadd.f32 %v462_v49, %v389_v38 }
  0x88   :  { %730 = vadd.xlane.f32.xlu1 %v673_v5  ;;  %v7325_v6 = vadd.f32 %v461_v44, %v388_v13 }
  0x89   :  { %728 = vadd.xlane.f32.xlu0 %v672_v55  ;;  %10924 = vst [vmem:[#allocation40_spill] sm:$0xff] %v7323_v63  ;;  %v695_v27 = vmul.f32 %v645_v40, %v7323_v63 }
  0x8a   :  { %10925 = vst [vmem:[#allocation38_spill] sm:$0xff] %v7325_v6  ;;  %v694_v9 = vmul.f32 %v645_v40, %v7325_v6  ;;  %v10927_v6 = vld [vmem:[#allocation46_spill] sm:$0xff] }
  0x8c   :  { %734 = vadd.xlane.f32.xlu1 %v675_v48 }
  0x8d   :  { %732 = vadd.xlane.f32.xlu0 %v674_v0 }
  0x90   :  { %770 = vadd.xlane.f32.xlu1 %v693_v42 }
  0x91   :  { %768 = vadd.xlane.f32.xlu0 %v692_v4 }
  0x94   :  { %774 = vadd.xlane.f32.xlu1 %v695_v27 }
  0x95   :  { %772 = vadd.xlane.f32.xlu0 %v694_v9 }
  0xd5   :  { %v7329_v53 = vpop.xlane.xlu1 %700  ;;  %v7331_v7 = vpop.xlane.xlu0 %696 }
  0xd6   :  { %v778_v61 = vmul.f32 %v7329_v53, %v7329_v53  ;;  %v776_v34 = vmul.f32 %v7331_v7, %v7331_v7 }
  0xd9   :  { %v7333_v26 = vpop.xlane.xlu1 %702  ;;  %v7335_v33 = vpop.xlane.xlu0 %698 }
  0xda   :  { %v779_v36 = vmul.f32 %v7333_v26, %v7333_v26  ;;  %v777_v19 = vmul.f32 %v7335_v33, %v7335_v33 }
  0xdc   :  { %v823_v20 = vadd.f32 %v779_v36, %v778_v61  ;;  %v816_v8 = vadd.f32 %v777_v19, %v776_v34 }
  0xdd   :  { %v7345_v10 = vpop.xlane.xlu1 %706  ;;  %v7347_v47 = vpop.xlane.xlu0 %704 }
  0xde   :  { %v824_v60 = vrot.slane %v823_v20, 4  ;;  %v817_v51 = vrot.slane %v816_v8, 4  ;;  %v781_v41 = vmul.f32 %v7345_v10, %v7345_v10  ;;  %v780_v25 = vmul.f32 %v7347_v47, %v7347_v47 }
  0xe0   :  { %v825_v22 = vadd.f32 %v824_v60, %v823_v20  ;;  %v818_v24 = vadd.f32 %v817_v51, %v816_v8  ;;  %v830_v58 = vadd.f32 %v781_v41, %v780_v25 }
  0xe1   :  { %v7353_v50 = vpop.xlane.xlu1 %710  ;;  %v7355_v5 = vpop.xlane.xlu0 %708 }
  0xe2   :  { %v826_v40 = vrot.slane %v825_v22, 2  ;;  %v819_v55 = vrot.slane %v818_v24, 2  ;;  %v831_v46 = vrot.slane %v830_v58, 4  ;;  %v783_v56 = vmul.f32 %v7353_v50, %v7353_v50 }
  0xe3   :  { %v782_v14 = vmul.f32 %v7355_v5, %v7355_v5 }
  0xe4   :  { %v827_v52 = vadd.f32 %v826_v40, %v825_v22  ;;  %v820_v21 = vadd.f32 %v819_v55, %v818_v24  ;;  %v832_v30 = vadd.f32 %v831_v46, %v830_v58 }
  0xe5   :  { %v837_v3 = vadd.f32 %v783_v56, %v782_v14  ;;  %v7361_v57 = vpop.xlane.xlu1 %738  ;;  %v7363_v48 = vpop.xlane.xlu0 %736 }
  0xe6   :  { %v828_v0 = vrot.slane %v827_v52, 1  ;;  %v833_v49 = vrot.slane %v832_v30, 2  ;;  %v821_v44 = vrot.slane %v820_v21, 1  ;;  %v797_v42 = vmul.f32 %v7361_v57, %v7361_v57 }
  0xe7   :  { %v838_v38 = vrot.slane %v837_v3, 4  ;;  %v796_v4 = vmul.f32 %v7363_v48, %v7363_v48 }
  0xe8   :  { %v829_v13 = vadd.f32 %v828_v0, %v827_v52  ;;  %v834_v27 = vadd.f32 %v833_v49, %v832_v30  ;;  %v822_v34 = vadd.f32 %v821_v44, %v820_v21 }
  0xe9   :  { %v839_v61 = vadd.f32 %v838_v38, %v837_v3  ;;  %v886_v36 = vadd.f32 %v797_v42, %v796_v4  ;;  %v7369_v20 = vpop.xlane.xlu1 %742  ;;  %v7371_v8 = vpop.xlane.xlu0 %740 }
  0xea   :  { %v957_v9 = vadd.f32 1e-08, %v829_v13  ;;  %v835_v19 = vrot.slane %v834_v27, 1  ;;  %v956_v51 = vadd.f32 1e-08, %v822_v34  ;;  %v1017_v25 = vadd.f32 1.0, %v829_v13 }
  0xeb   :  { %v840_v60 = vrot.slane %v839_v61, 2  ;;  %v887_v41 = vrot.slane %v886_v36, 4  ;;  %v799_v58 = vmul.f32 %v7369_v20, %v7369_v20  ;;  %v798_v40 = vmul.f32 %v7371_v8, %v7371_v8 }
  0xec   :  { %5632 = vrsqrt.f32 %v957_v9  ;;  %v836_v22 = vadd.f32 %v835_v19, %v834_v27  ;;  %v1016_v52 = vadd.f32 1.0, %v822_v34 }
  0xed   :  { %v841_v24 = vadd.f32 %v840_v60, %v839_v61  ;;  %v7377_v55 = vpop.xlane.xlu1 %746  ;;  %v7379_v46 = vpop.xlane.xlu0 %744  ;;  %5634 = vrsqrt.f32 %v956_v51  ;;  %v888_v56 = vadd.f32 %v887_v41, %v886_v36  ;;  %v893_v0 = vadd.f32 %v799_v58, %v798_v40 }
  0xee   :  { %5636 = vrcp.f32 %v1017_v25  ;;  %v958_v14 = vadd.f32 1e-08, %v836_v22  ;;  %v801_v21 = vmul.f32 %v7377_v55, %v7377_v55  ;;  %v800_v30 = vmul.f32 %v7379_v46, %v7379_v46 }
  0xef   :  { %v842_v3 = vrot.slane %v841_v24, 1  ;;  %v889_v49 = vrot.slane %v888_v56, 2  ;;  %v1018_v42 = vadd.f32 1.0, %v836_v22  ;;  %v894_v27 = vrot.slane %v893_v0, 4 }
  0xf0   :  { %5638 = vrsqrt.f32 %v958_v14  ;;  %v900_v44 = vadd.f32 %v801_v21, %v800_v30 }
  0xf1   :  { %5640 = vrcp.f32 %v1016_v52  ;;  %v7385_v4 = vadd.f32 %v842_v3, %v841_v24  ;;  %v7387_v9 = vpop.xlane.xlu1 %750  ;;  %v890_v36 = vadd.f32 %v889_v49, %v888_v56  ;;  %v7389_v19 = vpop.xlane.xlu0 %748  ;;  %v895_v58 = vadd.f32 %v894_v27, %v893_v0 }
  0xf2   :  { %v901_v51 = vrot.slane %v900_v44, 4  ;;  %5642 = vrcp.f32 %v1018_v42  ;;  %v803_v56 = vmul.f32 %v7387_v9, %v7387_v9  ;;  %v802_v49 = vmul.f32 %v7389_v19, %v7389_v19 }
  0xf3   :  { %v959_v25 = vadd.f32 1e-08, %v7385_v4  ;;  %v891_v14 = vrot.slane %v890_v36, 1 }
  0xf4   :  { %v902_v24 = vadd.f32 %v901_v51, %v900_v44 }
  0xf5   :  { %v7392_v21 = vpop.xlane.xlu1 %714  ;;  %v7394_v30 = vpop.xlane.xlu0 %712  ;;  %5644 = vrsqrt.f32 %v959_v25  ;;  %v7403_v27 = vadd.f32 %v891_v14, %v890_v36 }
  0xf6   :  { %v5633_v38 = vpop.eup %5632 }
  0xf7   :  { %v997_v61 = vmul.f32 %v5633_v38, %v829_v13  ;;  %v5635_v60 = vpop.eup %5634  ;;  %v896_v13 = vrot.slane %v895_v58, 2 }
  0xf8   :  { %v5637_v41 = vpop.eup %5636  ;;  %v996_v52 = vmul.f32 %v5635_v60, %v822_v34  ;;  %v1019_v34 = vadd.f32 1.0, %v7385_v4  ;;  %v903_v60 = vrot.slane %v902_v24, 2 }
  0xf9   :  { %v1057_v40 = vmul.f32 %v5637_v41, %v997_v61  ;;  %v897_v51 = vadd.f32 %v896_v13, %v895_v58  ;;  %v907_v41 = vadd.f32 %v803_v56, %v802_v49  ;;  %v7405_v25 = vpop.xlane.xlu1 %718  ;;  %v784_v58 = vmul.f32 %v7394_v30, %v7394_v30 }
  0xfa   :  { %v5639_v3 = vpop.eup %5638  ;;  %5646 = vrcp.f32 %v1019_v34  ;;  %v7410_v45 = vpop.xlane.xlu0 %716 }
  0xfb   :  { %v5641_v38 = vpop.eup %5640  ;;  %v1078_v0 = vmul.f32 %v1057_v40, %v7329_v53  ;;  %v1079_v42 = vmul.f32 %v1057_v40, %v7333_v26  ;;  %v998_v61 = vmul.f32 %v5639_v3, %v836_v22  ;;  %v966_v53 = vadd.f32 1e-08, %v7403_v27 }
  0xfc   :  { %v1056_v44 = vmul.f32 %v5641_v38, %v996_v52  ;;  %v5643_v26 = vpop.eup %5642  ;;  %v785_v22 = vmul.f32 %v7392_v21, %v7392_v21  ;;  %v904_v52 = vadd.f32 %v903_v60, %v902_v24  ;;  %v898_v3 = vrot.slane %v897_v51, 1  ;;  %v10928_v38 = vld [vmem:[#allocation42_spill] sm:$0xff] }
  0xfd   :  { %v1118_v63 = vmul.f32 %v1078_v0, %v10926_v12  ;;  %v1119_v1 = vmul.f32 %v1079_v42, %v10927_v6  ;;  %v1058_v14 = vmul.f32 %v5643_v26, %v998_v61  ;;  %v908_v13 = vrot.slane %v907_v41, 4  ;;  %v10929_v42 = vld [vmem:[#allocation47_spill] sm:$0xff] }
  0xfe   :  { %v1076_v36 = vmul.f32 %v1056_v44, %v7331_v7  ;;  %v1077_v40 = vmul.f32 %v1056_v44, %v7335_v33  ;;  %5648 = vrsqrt.f32 %v966_v53  ;;  %v1026_v7 = vadd.f32 1.0, %v7403_v27  ;;  %v7421_v44 = vpop.xlane.xlu1 %754  ;;  %v7425_v24 = vpop.xlane.xlu0 %752 }
  0xff   :  { %v1163_v56 = vadd.f32 %v1119_v1, %v1118_v63  ;;  %v5645_v49 = vpop.eup %5644  ;;  %v844_v33 = vadd.f32 %v785_v22, %v784_v58  ;;  %10930 = vst [vmem:[#allocation43_spill] sm:$0xff] %v7421_v44  ;;  %v1080_v12 = vmul.f32 %v1058_v14, %v7347_v47  ;;  %v1081_v6 = vmul.f32 %v1058_v14, %v7345_v10  ;;  %v10932_v58 = vld [vmem:[#allocation50_spill] sm:$0xff] }
 0x100   :  { %v1116_v0 = vmul.f32 %v1076_v36, %v10928_v38  ;;  %v1117_v34 = vmul.f32 %v1077_v40, %v10929_v42  ;;  %v905_v61 = vrot.slane %v904_v52, 1  ;;  %10931 = vst [vmem:[#allocation48_spill] sm:$0xff] %v7425_v24  ;;  %v7427_v60 = vadd.f32 %v898_v3, %v897_v51  ;;  %v10933_v38 = vld [vmem:[#allocation49_spill] sm:$0xff] }
 0x101   :  { %v909_v1 = vadd.f32 %v908_v13, %v907_v41  ;;  %v1164_v63 = vrot.slane %v1163_v56, 4  ;;  %v999_v53 = vmul.f32 %v5645_v49, %v7385_v4  ;;  %5650 = vrcp.f32 %v1026_v7 }
 0x102   :  { %v1156_v26 = vadd.f32 %v1117_v34, %v1116_v0  ;;  %v845_v36 = vrot.slane %v844_v33, 4  ;;  %v787_v40 = vmul.f32 %v7405_v25, %v7405_v25  ;;  %v1120_v47 = vmul.f32 %v1080_v12, %v10932_v58  ;;  %v7439_v4 = vpop.xlane.xlu1 %758  ;;  %v7441_v0 = vpop.xlane.xlu0 %756 }
 0x103   :  { %v1121_v10 = vmul.f32 %v1081_v6, %v10933_v38  ;;  %v7434_v14 = vadd.f32 %v905_v61, %v904_v52  ;;  %v786_v51 = vmul.f32 %v7410_v45, %v7410_v45  ;;  %v967_v41 = vadd.f32 1e-08, %v7427_v60  ;;  %10934 = vst [vmem:[#allocation44_spill] sm:$0xff] %v7439_v4  ;;  %10935 = vst [vmem:[#allocation45_spill] sm:$0xff] %v7441_v0 }
 0x104   :  { %v5647_v22 = vpop.eup %5646  ;;  %v910_v3 = vrot.slane %v909_v1, 2  ;;  %v1165_v13 = vadd.f32 %v1164_v63, %v1163_v56  ;;  %v1157_v34 = vrot.slane %v1156_v26, 4  ;;  %v846_v7 = vadd.f32 %v845_v36, %v844_v33 }
 0x105   :  { %v1059_v49 = vmul.f32 %v5647_v22, %v999_v53  ;;  %v1170_v12 = vadd.f32 %v1121_v10, %v1120_v47  ;;  %v968_v6 = vadd.f32 1e-08, %v7434_v14  ;;  %v851_v52 = vadd.f32 %v787_v40, %v786_v51  ;;  %v10937_v51 = vld [vmem:[#allocation51_spill] sm:$0xff] }
 0x106   :  { %5652 = vrsqrt.f32 %v967_v41  ;;  %v911_v61 = vadd.f32 %v910_v3, %v909_v1  ;;  %v1166_v58 = vrot.slane %v1165_v13, 2  ;;  %v1158_v37 = vadd.f32 %v1157_v34, %v1156_v26  ;;  %v7447_v53 = vpop.xlane.xlu1 %722  ;;  %v7450_v47 = vpop.xlane.xlu0 %720 }
 0x107   :  { %v1082_v38 = vmul.f32 %v1059_v49, %v7355_v5  ;;  %v1083_v32 = vmul.f32 %v1059_v49, %v7353_v50  ;;  %v847_v63 = vrot.slane %v846_v7, 2  ;;  %v1171_v22 = vrot.slane %v1170_v12, 4 }
 0x108   :  { %v5649_v42 = vpop.eup %5648  ;;  %v1027_v33 = vadd.f32 1.0, %v7427_v60  ;;  %5654 = vrsqrt.f32 %v968_v6  ;;  %v852_v36 = vrot.slane %v851_v52, 4  ;;  %v1028_v1 = vadd.f32 1.0, %v7434_v14 }
 0x109   :  { %v1006_v56 = vmul.f32 %v5649_v42, %v7403_v27  ;;  %v912_v10 = vrot.slane %v911_v61, 1  ;;  %v805_v50 = vmul.f32 %v7421_v44, %v7421_v44  ;;  %v804_v5 = vmul.f32 %v7425_v24, %v7425_v24  ;;  %v10936_v42 = vld [vmem:[#allocation52_spill] sm:$0xff] }
 0x10a   :  { %v1167_v27 = vadd.f32 %v1166_v58, %v1165_v13  ;;  %v1122_v26 = vmul.f32 %v1082_v38, %v10936_v42  ;;  %v1123_v41 = vmul.f32 %v1083_v32, %v10937_v51  ;;  %v789_v3 = vmul.f32 %v7447_v53, %v7447_v53  ;;  %v7467_v32 = vpop.xlane.xlu1 %726 }
 0x10b   :  { %v5651_v40 = vpop.eup %5650  ;;  %v1159_v49 = vrot.slane %v1158_v37, 2  ;;  %v848_v6 = vadd.f32 %v847_v63, %v846_v7  ;;  %v788_v2 = vmul.f32 %v7450_v47, %v7450_v47  ;;  %v1172_v62 = vadd.f32 %v1171_v22, %v1170_v12 }
 0x10c   :  { %v1066_v34 = vmul.f32 %v5651_v40, %v1006_v56  ;;  %v853_v31 = vadd.f32 %v852_v36, %v851_v52  ;;  %5656 = vrcp.f32 %v1027_v33  ;;  %v914_v23 = vadd.f32 %v805_v50, %v804_v5  ;;  %v7471_v56 = vpop.xlane.xlu0 %724 }
 0x10d   :  { %v807_v58 = vmul.f32 %v7439_v4, %v7439_v4  ;;  %v806_v38 = vmul.f32 %v7441_v0, %v7441_v0  ;;  %v1177_v13 = vadd.f32 %v1123_v41, %v1122_v26  ;;  %5658 = vrcp.f32 %v1028_v1 }
 0x10e   :  { %v7469_v42 = vadd.f32 %v912_v10, %v911_v61  ;;  %v858_v7 = vadd.f32 %v789_v3, %v788_v2  ;;  %v1168_v12 = vrot.slane %v1167_v27, 1  ;;  %v1160_v52 = vadd.f32 %v1159_v49, %v1158_v37 }
 0x10f   :  { %v1096_v22 = vmul.f32 %v1066_v34, %v7363_v48  ;;  %v849_v33 = vrot.slane %v848_v6, 1  ;;  %v1173_v36 = vrot.slane %v1172_v62, 2  ;;  %v1097_v40 = vmul.f32 %v1066_v34, %v7361_v57  ;;  %v7484_v34 = vpop.xlane.xlu1 %762 }
 0x110   :  { %v5653_v63 = vpop.eup %5652  ;;  %v854_v50 = vrot.slane %v853_v31, 2  ;;  %v915_v5 = vrot.slane %v914_v23, 4  ;;  %v921_v51 = vadd.f32 %v807_v58, %v806_v38  ;;  %v791_v1 = vmul.f32 %v7467_v32, %v7467_v32  ;;  %10938 = vst [vmem:[#allocation57_spill] sm:$0xff] %v7484_v34  ;;  %v7489_v0 = vpop.xlane.xlu0 %760 }
 0x111   :  { %v790_v2 = vmul.f32 %v7471_v56, %v7471_v56  ;;  %v1178_v10 = vrot.slane %v1177_v13, 4  ;;  %v1007_v26 = vmul.f32 %v5653_v63, %v7427_v60  ;;  %v969_v37 = vadd.f32 1e-08, %v7469_v42  ;;  %10939 = vst [vmem:[#allocation58_spill] sm:$0xff] %v7489_v0 }
 0x112   :  { %v5655_v61 = vpop.eup %5654  ;;  %v859_v48 = vrot.slane %v858_v7, 4  ;;  %v1169_v41 = vadd.f32 %v1168_v12, %v1167_v27  ;;  %v1161_v3 = vrot.slane %v1160_v52, 1  ;;  %v1136_v57 = vmul.f32 %v1096_v22, %v6953_v35 }
 0x113   :  { %v7482_v49 = vadd.f32 %v849_v33, %v848_v6  ;;  %v7486_v58 = vadd.f32 %v1173_v36, %v1172_v62  ;;  %v1137_v38 = vmul.f32 %v1097_v40, %v6951_v28  ;;  %v855_v39 = vadd.f32 %v854_v50, %v853_v31 }
 0x114   :  { %v860_v4 = vadd.f32 %v859_v48, %v858_v7  ;;  %v1008_v60 = vmul.f32 %v5655_v61, %v7434_v14  ;;  %v916_v63 = vadd.f32 %v915_v5, %v914_v23  ;;  %v922_v44 = vrot.slane %v921_v51, 4  ;;  %v7501_v23 = vld [vmem:[%s10538_s2 + $0x1] sm:$0x1]  ;;  %v7509_v24 = vpop.xlane.xlu0 %764 }
 0x115   :  { %v865_v27 = vadd.f32 %v791_v1, %v790_v2  ;;  %5660 = vrsqrt.f32 %v969_v37  ;;  %v1029_v12 = vadd.f32 1.0, %v7469_v42  ;;  %v809_v22 = vmul.f32 %v7484_v34, %v7484_v34 }
 0x116   :  { %v861_v6 = vrot.slane %v860_v4, 2  ;;  %v5657_v62 = vpop.eup %5656  ;;  %v1179_v33 = vadd.f32 %v1178_v10, %v1177_v13  ;;  %v960_v36 = vadd.f32 1e-08, %v7482_v49  ;;  %v808_v7 = vmul.f32 %v7489_v0, %v7489_v0  ;;  %v7506_v10 = vpop.xlane.xlu1 %766 }
 0x117   :  { %v866_v31 = vrot.slane %v865_v27, 4  ;;  %v5659_v40 = vpop.eup %5658  ;;  %v7504_v14 = vadd.f32 %v7501_v23, %v1169_v41  ;;  %v1067_v50 = vmul.f32 %v5657_v62, %v1007_v26  ;;  %v856_v5 = vrot.slane %v855_v39, 1 }
 0x118   :  { %v1162_v1 = vadd.f32 %v1161_v3, %v1160_v52  ;;  %v1068_v2 = vmul.f32 %v5659_v40, %v1008_v60  ;;  %v917_v13 = vrot.slane %v916_v63, 2  ;;  %v923_v61 = vadd.f32 %v922_v44, %v921_v51 }
 0x119   :  { %5662 = vrcp.f32 %v1029_v12  ;;  %v862_v37 = vadd.f32 %v861_v6, %v860_v4  ;;  %v867_v48 = vadd.f32 %v866_v31, %v865_v27  ;;  %v928_v35 = vadd.f32 %v809_v22, %v808_v7 }
 0x11a   :  { %v1175_v28 = vrot.slane %v7486_v58, 1  ;;  %v1180_v34 = vrot.slane %v1179_v33, 2  ;;  %v1226_v0 = vadd.f32 %v1137_v38, %v1136_v57  ;;  %5664 = vrsqrt.f32 %v960_v36 }
 0x11b   :  { %v7511_v41 = vadd.f32 %v856_v5, %v855_v39  ;;  %v868_v26 = vrot.slane %v867_v48, 2  ;;  %v929_v52 = vrot.slane %v928_v35, 4  ;;  %v811_v44 = vmul.f32 %v7506_v10, %v7506_v10 }
 0x11c   :  { %v1100_v51 = vmul.f32 %v1068_v2, %v7379_v46  ;;  %v1020_v4 = vadd.f32 1.0, %v7482_v49  ;;  %v918_v3 = vadd.f32 %v917_v13, %v916_v63  ;;  %v924_v60 = vrot.slane %v923_v61, 2 }
 0x11d   :  { %v863_v27 = vrot.slane %v862_v37, 1  ;;  %v869_v12 = vadd.f32 %v868_v26, %v867_v48  ;;  %v930_v6 = vadd.f32 %v929_v52, %v928_v35  ;;  %v810_v57 = vmul.f32 %v7509_v24, %v7509_v24  ;;  %v7529_v35 = vld [vmem:[%s10538_s2] sm:$0x1] }
 0x11e   :  { %v1098_v22 = vmul.f32 %v1067_v50, %v7371_v8  ;;  %v1099_v62 = vmul.f32 %v1067_v50, %v7369_v20  ;;  %v1101_v46 = vmul.f32 %v1068_v2, %v7377_v55  ;;  %v961_v63 = vadd.f32 1e-08, %v7511_v41 }
 0x11f   :  { %v5661_v36 = vpop.eup %5660  ;;  %v870_v31 = vrot.slane %v869_v12, 1  ;;  %v931_v7 = vrot.slane %v930_v6, 2  ;;  %v935_v40 = vadd.f32 %v811_v44, %v810_v57  ;;  %v7532_v5 = vadd.f32 %v7529_v35, %v1162_v1  ;;  %v7541_v57 = vpop.xlane.xlu1 %730 }
 0x120   :  { %v1227_v13 = vrot.slane %v1226_v0, 4  ;;  %5666 = vrcp.f32 %v1020_v4  ;;  %v925_v8 = vadd.f32 %v924_v60, %v923_v61  ;;  %v1181_v20 = vadd.f32 %v1180_v34, %v1179_v33  ;;  %v7543_v1 = vpop.xlane.xlu0 %728 }
 0x121   :  { %v1140_v55 = vmul.f32 %v1100_v51, %v7012_v29  ;;  %v919_v50 = vrot.slane %v918_v3, 1  ;;  %v7535_v2 = vadd.f32 %v863_v27, %v862_v37  ;;  %v1141_v48 = vmul.f32 %v1101_v46, %v6997_v15 }
 0x122   :  { %v1009_v26 = vmul.f32 %v5661_v36, %v7469_v42  ;;  %v7539_v52 = vadd.f32 %v870_v31, %v869_v12  ;;  %v936_v44 = vrot.slane %v935_v40, 4  ;;  %v1138_v61 = vmul.f32 %v1098_v22, %v6979_v59 }
 0x123   :  { %v5663_v38 = vpop.eup %5662  ;;  %v1139_v34 = vmul.f32 %v1099_v62, %v6961_v18  ;;  %5668 = vrsqrt.f32 %v961_v63  ;;  %v932_v33 = vadd.f32 %v931_v7, %v930_v6  ;;  %v1228_v51 = vadd.f32 %v1227_v13, %v1226_v0 }
 0x124   :  { %v5665_v37 = vpop.eup %5664  ;;  %v1021_v4 = vadd.f32 1.0, %v7511_v41  ;;  %v926_v60 = vrot.slane %v925_v8, 1  ;;  %v937_v42 = vadd.f32 %v936_v44, %v935_v40  ;;  %v7548_v27 = vadd.f32 %v919_v50, %v918_v3 }
 0x125   :  { %v962_v12 = vadd.f32 1e-08, %v7535_v2  ;;  %v793_v46 = vmul.f32 %v7541_v57, %v7541_v57  ;;  %v792_v22 = vmul.f32 %v7543_v1, %v7543_v1  ;;  %v1176_v62 = vadd.f32 %v1175_v28, %v7486_v58 }
 0x126   :  { %v1240_v36 = vadd.f32 %v1141_v48, %v1140_v55  ;;  %v1069_v6 = vmul.f32 %v5663_v38, %v1009_v26  ;;  %v963_v0 = vadd.f32 1e-08, %v7539_v52  ;;  %v1182_v63 = vrot.slane %v1181_v20, 1 }
 0x127   :  { %v1000_v31 = vmul.f32 %v5665_v37, %v7482_v49  ;;  %v933_v7 = vrot.slane %v932_v33, 1  ;;  %v938_v3 = vrot.slane %v937_v42, 2  ;;  %v1229_v40 = vrot.slane %v1228_v51, 2  ;;  %v7566_v49 = vld [vmem:[%s10538_s2 + $0x2] sm:$0x1] }
 0x128   :  { %v1233_v13 = vadd.f32 %v1139_v34, %v1138_v61  ;;  %5670 = vrcp.f32 %v1021_v4  ;;  %v7558_v50 = vadd.f32 %v926_v60, %v925_v8  ;;  %v970_v44 = vadd.f32 1e-08, %v7548_v27 }
 0x129   :  { %5672 = vrsqrt.f32 %v962_v12  ;;  %v939_v29 = vadd.f32 %v938_v3, %v937_v42  ;;  %v872_v15 = vadd.f32 %v793_v46, %v792_v22  ;;  %v1241_v58 = vrot.slane %v1240_v36, 4 }
 0x12a   :  { %v5667_v28 = vpop.eup %5666  ;;  %v1102_v38 = vmul.f32 %v1069_v6, %v7389_v19  ;;  %v1103_v55 = vmul.f32 %v1069_v6, %v7387_v9  ;;  %5674 = vrsqrt.f32 %v963_v0  ;;  %v7569_v8 = vadd.f32 %v7566_v49, %v1176_v62 }
 0x12b   :  { %v1060_v48 = vmul.f32 %v5667_v28, %v1000_v31  ;;  %v1022_v26 = vadd.f32 1.0, %v7535_v2  ;;  %v7572_v61 = vadd.f32 %v933_v7, %v932_v33  ;;  %v1183_v34 = vadd.f32 %v1182_v63, %v1181_v20  ;;  %v7591_v7 = vld [vmem:[%s10538_s2 + $0x3] sm:$0x1] }
 0x12c   :  { %10941 = vst [vmem:[#allocation14_spill] sm:$0xff] %v7569_v8  ;;  %v1234_v37 = vrot.slane %v1233_v13, 4  ;;  %v1023_v19 = vadd.f32 1.0, %v7539_v52  ;;  %v940_v4 = vrot.slane %v939_v29, 1  ;;  %v1230_v60 = vadd.f32 %v1229_v40, %v1228_v51 }
 0x12d   :  { %v5669_v9 = vpop.eup %5668  ;;  %5676 = vrsqrt.f32 %v970_v44  ;;  %v971_v42 = vadd.f32 1e-08, %v7558_v50  ;;  %v873_v12 = vrot.slane %v872_v15, 4  ;;  %v1242_v46 = vadd.f32 %v1241_v58, %v1240_v36 }
 0x12e   :  { %v1142_v22 = vmul.f32 %v1102_v38, %v7048_v43  ;;  %v1143_v62 = vmul.f32 %v1103_v55, %v7044_v11  ;;  %v1030_v6 = vadd.f32 1.0, %v7548_v27  ;;  %v1084_v33 = vmul.f32 %v1060_v48, %v7394_v30  ;;  %v7600_v38 = vpop.xlane.xlu1 %734  ;;  %v10957_v11 = vld [vmem:[#allocation57_spill] sm:$0xff] }
 0x12f   :  { %5678 = vrcp.f32 %v1022_v26  ;;  %v972_v20 = vadd.f32 1e-08, %v7572_v61  ;;  %v874_v0 = vadd.f32 %v873_v12, %v872_v15  ;;  %v1085_v63 = vmul.f32 %v1060_v48, %v7392_v21 }
 0x130   :  { %v1001_v51 = vmul.f32 %v5669_v9, %v7511_v41  ;;  %5680 = vrcp.f32 %v1023_v19  ;;  %v7583_v31 = vadd.f32 %v940_v4, %v939_v29  ;;  %v1316_v36 = vsel %vm6240_vm1, %v7532_v5, -inf }
 0x131   :  { %v7594_v30 = vadd.f32 %v7591_v7, %v1183_v34  ;;  %v1235_v15 = vadd.f32 %v1234_v37, %v1233_v13  ;;  %5682 = vrsqrt.f32 %v971_v42  ;;  %v1231_v3 = vrot.slane %v1230_v60, 1  ;;  %v7605_v37 = vpop.xlane.xlu0 %732 }
 0x132   :  { %v5671_v21 = vpop.eup %5670  ;;  %v1243_v41 = vrot.slane %v1242_v46, 2  ;;  %5684 = vrcp.f32 %v1030_v6  ;;  %v1031_v29 = vadd.f32 1.0, %v7558_v50  ;;  %v1318_v44 = vsel %vm6240_vm1, %v7569_v8, -inf }
 0x133   :  { %10942 = vst [vmem:[#allocation53_spill] sm:$0xff] %v7594_v30  ;;  %v5673_v40 = vpop.eup %5672  ;;  %v1247_v28 = vadd.f32 %v1143_v62, %v1142_v22  ;;  %5686 = vrsqrt.f32 %v972_v20  ;;  %v875_v58 = vrot.slane %v874_v0, 2  ;;  %v1124_v13 = vmul.f32 %v1084_v33, %v6797_v16 }
 0x134   :  { %v5675_v55 = vpop.eup %5674  ;;  %v1125_v48 = vmul.f32 %v1085_v63, %v6787_v54  ;;  %v1061_v26 = vmul.f32 %v5671_v21, %v1001_v51  ;;  %v973_v34 = vadd.f32 1e-08, %v7583_v31  ;;  %v1320_v19 = vsel %vm6240_vm1, %v7594_v30, -inf  ;;  %v10958_v30 = vld [vmem:[#allocation31_spill] sm:$0xff] }
 0x135   :  { %v1236_v4 = vrot.slane %v1235_v15, 2  ;;  %v1032_v9 = vadd.f32 1.0, %v7572_v61  ;;  %v876_v42 = vadd.f32 %v875_v58, %v874_v0  ;;  %v1232_v12 = vadd.f32 %v1231_v3, %v1230_v60 }
 0x136   :  { %v7611_v22 = vadd.f32 %v1243_v41, %v1242_v46  ;;  %5688 = vrcp.f32 %v1031_v29  ;;  %v795_v62 = vmul.f32 %v7600_v38, %v7600_v38  ;;  %v1002_v33 = vmul.f32 %v5673_v40, %v7535_v2 }
 0x137   :  { %v5677_v6 = vpop.eup %5676  ;;  %v1003_v20 = vmul.f32 %v5675_v55, %v7539_v52  ;;  %v877_v63 = vrot.slane %v876_v42, 1  ;;  %v794_v51 = vmul.f32 %v7605_v37, %v7605_v37  ;;  %v1248_v21 = vrot.slane %v1247_v28, 4  ;;  %v7633_v55 = vpop.xlane.xlu1 %770 }
 0x138   :  { %v1184_v16 = vadd.f32 %v1125_v48, %v1124_v13  ;;  %v1086_v0 = vmul.f32 %v1061_v26, %v7410_v45  ;;  %5690 = vrsqrt.f32 %v973_v34  ;;  %v1087_v46 = vmul.f32 %v1061_v26, %v7405_v25 }
 0x139   :  { %v5679_v60 = vpop.eup %5678  ;;  %5692 = vrcp.f32 %v1032_v9  ;;  %v1033_v3 = vadd.f32 1.0, %v7583_v31  ;;  %v7622_v41 = vadd.f32 %v877_v63, %v876_v42  ;;  %v7624_v29 = vmax.f32 %v1316_v36, %v1318_v44  ;;  %v7645_v42 = vpop.xlane.xlu0 %768  ;;  %v10951_v9 = vld [vmem:[#allocation28_spill] sm:$0xff] }
 0x13a   :  { %v5681_v2 = vpop.eup %5680  ;;  %v10943_v52 = vsel %vm6240_vm1, %v7504_v14, -inf  ;;  %v1010_v45 = vmul.f32 %v5677_v6, %v7548_v27  ;;  %v879_v58 = vadd.f32 %v795_v62, %v794_v51  ;;  %v7635_v13 = vadd.f32 %v1236_v4, %v1235_v15  ;;  %v10945_v4 = vld [vmem:[#allocation15_spill] sm:$0xff] }
 0x13b   :  { %v7630_v40 = vmax.f32 %v10943_v52, %v1320_v19  ;;  %v5683_v25 = vpop.eup %5682  ;;  %v1062_v48 = vmul.f32 %v5679_v60, %v1002_v33  ;;  %v1063_v26 = vmul.f32 %v5681_v2, %v1003_v20  ;;  %v964_v34 = vadd.f32 1e-08, %v7622_v41  ;;  %v7657_v2 = vpop.xlane.xlu1 %774 }
 0x13c   :  { %v5685_v36 = vpop.eup %5684  ;;  %v7639_v44 = vadd.f32 %v7529_v35, %v1232_v12  ;;  %v7642_v19 = vadd.f32 %v1248_v21, %v1247_v28  ;;  %v1024_v27 = vadd.f32 1.0, %v7622_v41  ;;  %v1185_v6 = vrot.slane %v1184_v16, 4 }
 0x13d   :  { %v5687_v62 = vpop.eup %5686  ;;  %v1126_v15 = vmul.f32 %v1086_v0, %v7030_v17  ;;  %v1127_v33 = vmul.f32 %v1087_v46, %v10945_v4  ;;  %5694 = vrcp.f32 %v1033_v3  ;;  %v1070_v20 = vmul.f32 %v5685_v36, %v1010_v45  ;;  %v10946_v45 = vld [vmem:[#allocation48_spill] sm:$0xff]  ;;  %v10948_v36 = vld [vmem:[#allocation25_spill] sm:$0xff] }
 0x13e   :  { %10944 = vst [vmem:[#allocation54_spill] sm:$0xff] %v7639_v44  ;;  %v1011_v63 = vmul.f32 %v5683_v25, %v7558_v50  ;;  %5696 = vrsqrt.f32 %v964_v34  ;;  %v880_v35 = vrot.slane %v879_v58, 4  ;;  %v1088_v12 = vmul.f32 %v1062_v48, %v7450_v47 }
 0x13f   :  { %v1089_v28 = vmul.f32 %v1062_v48, %v7447_v53  ;;  %v1090_v51 = vmul.f32 %v1063_v26, %v7471_v56  ;;  %v813_v21 = vmul.f32 %v7633_v55, %v7633_v55  ;;  %v1091_v0 = vmul.f32 %v1063_v26, %v7467_v32  ;;  %v10947_v48 = vld [vmem:[#allocation43_spill] sm:$0xff] }
 0x140   :  { %v5689_v60 = vpop.eup %5688  ;;  %v1012_v46 = vmul.f32 %v5687_v62, %v7572_v61  ;;  %5698 = vrcp.f32 %v1024_v27  ;;  %v881_v3 = vadd.f32 %v880_v35, %v879_v58  ;;  %v7660_v52 = vadd.f32 %v1185_v6, %v1184_v16  ;;  %v7666_v61 = vpop.xlane.xlu0 %772  ;;  %v10949_v62 = vld [vmem:[#allocation23_spill] sm:$0xff] }
 0x141   :  { %v1191_v47 = vadd.f32 %v1127_v33, %v1126_v15  ;;  %v812_v53 = vmul.f32 %v7645_v42, %v7645_v42  ;;  %v1104_v25 = vmul.f32 %v1070_v20, %v10946_v45  ;;  %v1105_v34 = vmul.f32 %v1070_v20, %v10947_v48  ;;  %v10950_v15 = vld [vmem:[#allocation29_spill] sm:$0xff] }
 0x142   :  { %v5691_v56 = vpop.eup %5690  ;;  %v1071_v32 = vmul.f32 %v5689_v60, %v1011_v63  ;;  %v882_v26 = vrot.slane %v881_v3, 2  ;;  %v1128_v27 = vmul.f32 %v1088_v12, %v10948_v36  ;;  %v1129_v35 = vmul.f32 %v1089_v28, %v10949_v62  ;;  %v10952_v28 = vld [vmem:[#allocation30_spill] sm:$0xff] }
 0x143   :  { %v5693_v58 = vpop.eup %5692  ;;  %v942_v16 = vadd.f32 %v813_v21, %v812_v53  ;;  %v815_v6 = vmul.f32 %v7657_v2, %v7657_v2  ;;  %v1130_v33 = vmul.f32 %v1090_v51, %v10950_v15  ;;  %v1131_v50 = vmul.f32 %v1091_v0, %v10951_v9  ;;  %v10953_v53 = vld [vmem:[#allocation45_spill] sm:$0xff]  ;;  %v10954_v51 = vld [vmem:[#allocation44_spill] sm:$0xff] }
 0x144   :  { %v1072_v45 = vmul.f32 %v5693_v58, %v1012_v46  ;;  %v883_v17 = vadd.f32 %v882_v26, %v881_v3  ;;  %v1187_v20 = vrot.slane %v7660_v52, 2  ;;  %v1013_v63 = vmul.f32 %v5691_v56, %v7583_v31  ;;  %v10955_v58 = vld [vmem:[#allocation22_spill] sm:$0xff] }
 0x145   :  { %v943_v60 = vrot.slane %v942_v16, 4  ;;  %v814_v12 = vmul.f32 %v7666_v61, %v7666_v61  ;;  %v1192_v48 = vrot.slane %v1191_v47, 4  ;;  %v1144_v21 = vmul.f32 %v1104_v25, %v10952_v28  ;;  %v10956_v56 = vld [vmem:[#allocation58_spill] sm:$0xff] }
 0x146   :  { %v1106_v36 = vmul.f32 %v1071_v32, %v10953_v53  ;;  %v884_v62 = vrot.slane %v883_v17, 1  ;;  %v1107_v15 = vmul.f32 %v1071_v32, %v10954_v51  ;;  %v1198_v0 = vadd.f32 %v1129_v35, %v1128_v27 }
 0x147   :  { %v5695_v4 = vpop.eup %5694  ;;  %v944_v46 = vadd.f32 %v943_v60, %v942_v16  ;;  %v949_v3 = vadd.f32 %v815_v6, %v814_v12  ;;  %v1145_v9 = vmul.f32 %v1105_v34, %v10955_v58  ;;  %v1205_v31 = vadd.f32 %v1131_v50, %v1130_v33  ;;  %v10959_v16 = vld [vmem:[#allocation26_spill] sm:$0xff]  ;;  %v10960_v12 = vld [vmem:[#allocation32_spill] sm:$0xff] }
 0x148   :  { %v5697_v26 = vpop.eup %5696  ;;  %v1108_v54 = vmul.f32 %v1072_v45, %v10956_v56  ;;  %v885_v43 = vadd.f32 %v884_v62, %v883_v17  ;;  %v1109_v59 = vmul.f32 %v1072_v45, %v10957_v11  ;;  %v1073_v18 = vmul.f32 %v5695_v4, %v1013_v63  ;;  %v10961_v4 = vld [vmem:[#allocation10_spill] sm:$0xff] }
 0x149   :  { %v1004_v25 = vmul.f32 %v5697_v26, %v7622_v41  ;;  %v945_v53 = vrot.slane %v944_v46, 2  ;;  %v1146_v8 = vmul.f32 %v1106_v36, %v10958_v30  ;;  %v950_v35 = vrot.slane %v949_v3, 4  ;;  %v10962_v26 = vld [vmem:[#allocation37_spill] sm:$0xff] }
 0x14a   :  { %v5699_v28 = vpop.eup %5698  ;;  %v965_v32 = vadd.f32 1e-08, %v885_v43  ;;  %v1025_v27 = vadd.f32 1.0, %v885_v43  ;;  %v1147_v6 = vmul.f32 %v1107_v15, %v10959_v16  ;;  %v1199_v60 = vrot.slane %v1198_v0, 4 }
 0x14b   :  { %v1064_v34 = vmul.f32 %v5699_v28, %v1004_v25  ;;  %v946_v50 = vadd.f32 %v945_v53, %v944_v46  ;;  %v1206_v33 = vrot.slane %v1205_v31, 4  ;;  %v1148_v17 = vmul.f32 %v1108_v54, %v10960_v12  ;;  %v10963_v54 = vld [vmem:[#allocation36_spill] sm:$0xff] }
 0x14c   :  { %5700 = vrsqrt.f32 %v965_v32  ;;  %v951_v11 = vadd.f32 %v950_v35, %v949_v3  ;;  %v1149_v62 = vmul.f32 %v1109_v59, %v10961_v4  ;;  %v1110_v41 = vmul.f32 %v1073_v18, %v7509_v24  ;;  %v10964_v35 = vld [vmem:[#allocation33_spill] sm:$0xff] }
 0x14d   :  { %v1092_v45 = vmul.f32 %v1064_v34, %v7543_v1  ;;  %v1093_v36 = vmul.f32 %v1064_v34, %v7541_v57  ;;  %v1111_v63 = vmul.f32 %v1073_v18, %v7506_v10  ;;  %5702 = vrcp.f32 %v1025_v27  ;;  %v10965_v18 = vld [vmem:[#allocation34_spill] sm:$0xff] }
 0x14e   :  { %v947_v15 = vrot.slane %v946_v50, 1  ;;  %v952_v51 = vrot.slane %v951_v11, 2  ;;  %v1193_v28 = vadd.f32 %v1192_v48, %v1191_v47  ;;  %v1254_v46 = vadd.f32 %v1145_v9, %v1144_v21 }
 0x14f   :  { %v1132_v56 = vmul.f32 %v1092_v45, %v10962_v26  ;;  %v1133_v25 = vmul.f32 %v1093_v36, %v10963_v54  ;;  %v1261_v3 = vadd.f32 %v1147_v6, %v1146_v8  ;;  %v1200_v53 = vadd.f32 %v1199_v60, %v1198_v0 }
 0x150   :  { %v7695_v59 = vadd.f32 %v947_v15, %v946_v50  ;;  %v953_v24 = vadd.f32 %v952_v51, %v951_v11  ;;  %v1207_v32 = vadd.f32 %v1206_v33, %v1205_v31  ;;  %v1268_v1 = vadd.f32 %v1149_v62, %v1148_v17 }
 0x151   :  { %v1150_v57 = vmul.f32 %v1110_v41, %v10964_v35  ;;  %v1212_v34 = vadd.f32 %v1133_v25, %v1132_v56  ;;  %v1151_v10 = vmul.f32 %v1111_v63, %v10965_v18  ;;  %v10966_v48 = vrot.slane %v7642_v19, 2 }
 0x152   :  { %v974_v27 = vadd.f32 1e-08, %v7695_v59  ;;  %v1034_v9 = vadd.f32 1.0, %v7695_v59  ;;  %v954_v47 = vrot.slane %v953_v24, 1  ;;  %v1188_v21 = vadd.f32 %v1187_v20, %v7660_v52 }
 0x153   :  { %v1251_v8 = vadd.f32 %v10966_v48, %v7642_v19  ;;  %v1194_v0 = vrot.slane %v1193_v28, 2  ;;  %v1213_v6 = vrot.slane %v1212_v34, 4  ;;  %v1255_v31 = vrot.slane %v1254_v46, 4 }
 0x154   :  { %v1262_v60 = vrot.slane %v1261_v3, 4  ;;  %5704 = vrsqrt.f32 %v974_v27  ;;  %v7705_v50 = vadd.f32 %v954_v47, %v953_v24  ;;  %v1201_v33 = vrot.slane %v1200_v53, 2 }
 0x155   :  { %v1208_v17 = vrot.slane %v1207_v32, 2  ;;  %v1214_v11 = vadd.f32 %v1213_v6, %v1212_v34  ;;  %5706 = vrcp.f32 %v1034_v9  ;;  %v1269_v41 = vrot.slane %v1268_v1, 4 }
 0x156   :  { %v5701_v62 = vpop.eup %5700  ;;  %v1275_v45 = vadd.f32 %v1151_v10, %v1150_v57  ;;  %v975_v36 = vadd.f32 1e-08, %v7705_v50  ;;  %v1035_v19 = vadd.f32 1.0, %v7705_v50  ;;  %v1238_v52 = vrot.slane %v7635_v13, 1 }
 0x157   :  { %v10967_v20 = vrot.slane %v7611_v22, 1  ;;  %v1195_v15 = vadd.f32 %v1194_v0, %v1193_v28  ;;  %v1005_v51 = vmul.f32 %v5701_v62, %v885_v43  ;;  %v5703_v56 = vpop.eup %5702  ;;  %v1256_v25 = vadd.f32 %v1255_v31, %v1254_v46  ;;  %v10969_v62 = vld [vmem:[#allocation35_spill] sm:$0xff] }
 0x158   :  { %v1263_v24 = vadd.f32 %v1262_v60, %v1261_v3  ;;  %v1215_v34 = vrot.slane %v1214_v11, 2  ;;  %5708 = vrsqrt.f32 %v975_v36  ;;  %v1252_v27 = vrot.slane %v1251_v8, 1 }
 0x159   :  { %v1246_v63 = vadd.f32 %v10967_v20, %v7611_v22  ;;  %v1189_v9 = vrot.slane %v1188_v21, 1  ;;  %v1065_v57 = vmul.f32 %v5703_v56, %v1005_v51  ;;  %5710 = vrcp.f32 %v1035_v19 }
 0x15a   :  { %v1202_v10 = vadd.f32 %v1201_v33, %v1200_v53  ;;  %v1209_v47 = vadd.f32 %v1208_v17, %v1207_v32  ;;  %v1270_v48 = vadd.f32 %v1269_v41, %v1268_v1  ;;  %v1276_v6 = vrot.slane %v1275_v45, 4  ;;  %v10970_v32 = vld [vmem:[#allocation11_spill] sm:$0xff] }
 0x15b   :  { %v1239_v26 = vadd.f32 %v1238_v52, %v7635_v13  ;;  %v7715_v54 = vadd.f32 %v7566_v49, %v1246_v63  ;;  %v1094_v43 = vmul.f32 %v1065_v57, %v7605_v37  ;;  %v1095_v22 = vmul.f32 %v1065_v57, %v7600_v38 }
 0x15c   :  { %v1196_v28 = vrot.slane %v1195_v15, 1  ;;  %v1257_v46 = vrot.slane %v1256_v25, 2  ;;  %v1264_v3 = vrot.slane %v1263_v24, 2  ;;  %v1216_v0 = vadd.f32 %v1215_v34, %v1214_v11 }
 0x15d   :  { %10968 = vst [vmem:[#allocation17_spill] sm:$0xff] %v7715_v54  ;;  %v1253_v31 = vadd.f32 %v1252_v27, %v1251_v8  ;;  %v1190_v60 = vadd.f32 %v1189_v9, %v1188_v21  ;;  %v1134_v53 = vmul.f32 %v1094_v43, %v10969_v62  ;;  %v1135_v1 = vmul.f32 %v1095_v22, %v10970_v32 }
 0x15e   :  { %v5705_v33 = vpop.eup %5704  ;;  %v1203_v17 = vrot.slane %v1202_v10, 1  ;;  %v1210_v13 = vrot.slane %v1209_v47, 1  ;;  %v1271_v41 = vrot.slane %v1270_v48, 2  ;;  %v1277_v49 = vadd.f32 %v1276_v6, %v1275_v45  ;;  %v6108_v45 = vld [vmem:[%s10538_s2 + $0x4] sm:$0x1] }
 0x15f   :  { %v5707_v36 = vpop.eup %5706  ;;  %v7722_v37 = vadd.f32 %v7501_v23, %v1239_v26  ;;  %v1337_v38 = vsel %vm6240_vm1, %v7715_v54, -inf  ;;  %v1219_v11 = vadd.f32 %v1135_v1, %v1134_v53  ;;  %v1014_v8 = vmul.f32 %v5705_v33, %v7695_v59  ;;  %v6109_v6 = vld [vmem:[%s10538_s2 + $0x5] sm:$0x1] }
 0x160   :  { %v1197_v21 = vadd.f32 %v1196_v28, %v1195_v15  ;;  %v1258_v19 = vadd.f32 %v1257_v46, %v1256_v25  ;;  %v1265_v52 = vadd.f32 %v1264_v3, %v1263_v24  ;;  %v1217_v20 = vrot.slane %v1216_v0, 1  ;;  %v10976_v3 = vld [vmem:[#allocation39_spill] sm:$0xff] }
 0x161   :  { %10971 = vst [vmem:[#allocation24_spill] sm:$0xff] %v7722_v37  ;;  %v7729_v63 = vadd.f32 %v7591_v7, %v1253_v31  ;;  %v7734_v23 = vadd.f32 %v6108_v45, %v1190_v60  ;;  %v1220_v26 = vrot.slane %v1219_v11, 4  ;;  %v1074_v51 = vmul.f32 %v5707_v36, %v1014_v8 }
 0x162   :  { %v5709_v56 = vpop.eup %5708  ;;  %v1204_v34 = vadd.f32 %v1203_v17, %v1202_v10  ;;  %v1211_v27 = vadd.f32 %v1210_v13, %v1209_v47  ;;  %v1272_v9 = vadd.f32 %v1271_v41, %v1270_v48  ;;  %v1278_v59 = vrot.slane %v1277_v49, 2  ;;  %v10975_v48 = vld [vmem:[#allocation13_spill] sm:$0xff] }
 0x163   :  { %10972 = vst [vmem:[#allocation5_spill] sm:$0xff] %v7729_v63  ;;  %10973 = vst [vmem:[#allocation48_spill] sm:$0xff] %v7734_v23  ;;  %v5711_v15 = vpop.eup %5710  ;;  %v1221_v25 = vadd.f32 %v1220_v26, %v1219_v11  ;;  %v1112_v24 = vmul.f32 %v1074_v51, %v7645_v42  ;;  %v1113_v7 = vmul.f32 %v1074_v51, %v7633_v55  ;;  %v1259_v22 = vrot.slane %v1258_v19, 1  ;;  %v6110_v55 = vld [vmem:[%s10538_s2 + $0x6] sm:$0x1] }
 0x164   :  { %v1015_v57 = vmul.f32 %v5709_v56, %v7705_v50  ;;  %v7742_v43 = vadd.f32 %v6109_v6, %v1197_v21  ;;  %v1266_v28 = vrot.slane %v1265_v52, 1  ;;  %v1218_v10 = vadd.f32 %v1217_v20, %v1216_v0  ;;  %v6111_v50 = vld [vmem:[%s10538_s2 + $0x7] sm:$0x1]  ;;  %v6112_v21 = vld [vmem:[%s10538_s2 + $0x8] sm:$0x1] }
 0x165   :  { %v1222_v47 = vrot.slane %v1221_v25, 2  ;;  %v1152_v46 = vmul.f32 %v1112_v24, %v10975_v48  ;;  %v1153_v31 = vmul.f32 %v1113_v7, %v10976_v3  ;;  %v7749_v42 = vadd.f32 %v6110_v55, %v1204_v34 }
 0x166   :  { %10974 = vst [vmem:[#allocation43_spill] sm:$0xff] %v7742_v43  ;;  %v1075_v60 = vmul.f32 %v5711_v15, %v1015_v57  ;;  %v7754_v53 = vadd.f32 %v6111_v50, %v1211_v27  ;;  %v1273_v1 = vrot.slane %v1272_v9, 1  ;;  %v1279_v0 = vadd.f32 %v1278_v59, %v1277_v49 }
 0x167   :  { %10977 = vst [vmem:[#allocation45_spill] sm:$0xff] %v7749_v42  ;;  %v1223_v33 = vadd.f32 %v1222_v47, %v1221_v25  ;;  %v1282_v17 = vadd.f32 %v1153_v31, %v1152_v46  ;;  %v1322_v36 = vsel %vm6240_vm1, %v7734_v23, -inf  ;;  %v1324_v11 = vsel %vm6240_vm1, %v7742_v43, -inf }
 0x168   :  { %10978 = vst [vmem:[#allocation44_spill] sm:$0xff] %v7754_v53  ;;  %v1114_v13 = vmul.f32 %v1075_v60, %v7666_v61  ;;  %v1115_v41 = vmul.f32 %v1075_v60, %v7657_v2  ;;  %v1260_v8 = vadd.f32 %v1259_v22, %v1258_v19  ;;  %v7767_v49 = vadd.f32 %v6112_v21, %v1218_v10  ;;  %v10980_v61 = vld [vmem:[#allocation38_spill] sm:$0xff]  ;;  %v10981_v2 = vld [vmem:[#allocation40_spill] sm:$0xff] }
 0x169   :  { %v1224_v20 = vrot.slane %v1223_v33, 1  ;;  %v1283_v26 = vrot.slane %v1282_v17, 4  ;;  %v1267_v34 = vadd.f32 %v1266_v28, %v1265_v52  ;;  %v1326_v27 = vsel %vm6240_vm1, %v7749_v42, -inf }
 0x16a   :  { %10979 = vst [vmem:[#allocation58_spill] sm:$0xff] %v7767_v49  ;;  %v1154_v51 = vmul.f32 %v1114_v13, %v10980_v61  ;;  %v1155_v56 = vmul.f32 %v1115_v41, %v10981_v2  ;;  %v1328_v19 = vsel %vm6240_vm1, %v7754_v53, -inf  ;;  %v1274_v59 = vadd.f32 %v1273_v1, %v1272_v9  ;;  %v6113_v9 = vld [vmem:[%s10538_s2 + $0x9] sm:$0x1]  ;;  %s5496_s2 = sshll.u32 %s6139_s28, 4  ;;  %s5497_s2 = int_to_ptr.vmem [resolvable:$true] %s5496_s2 }
 0x16b   :  { %v1280_v15 = vrot.slane %v1279_v0, 1  ;;  %v1225_v25 = vadd.f32 %v1224_v20, %v1223_v33  ;;  %v1284_v24 = vadd.f32 %v1283_v26, %v1282_v17  ;;  %v1339_v57 = vsel %vm6240_vm1, %v7729_v63, -inf  ;;  %s6114_s1 = scalar_lea.vmem %s5497_s2, 32  ;;  %p6119_p1 = scmp.lt.s32.totalorder %s5497_s2, %s5497_s2 }
 0x16c   :  { %v1289_v7 = vadd.f32 %v1155_v56, %v1154_v51  ;;  %v1323_v22 = vmax.f32 %v7624_v29, %v1322_v36  ;;  %v1325_v52 = vmax.f32 %v7630_v40, %v1324_v11  ;;  %v7782_v28 = vadd.f32 %v6108_v45, %v1260_v8  ;;  %p6115_p0 = scmp.ne.s32.totalorder %s5497_s2, %s6114_s1  ;;  %p6120_p2 = scmp.lt.s32.totalorder %s6114_s1, %s6114_s1 }
 0x16d   :  { %v1330_v10 = vsel %vm6240_vm1, %v7767_v49, -inf  ;;  %v7790_v47 = vadd.f32 %v6113_v9, %v1225_v25  ;;  %v1285_v46 = vrot.slane %v1284_v24, 2  ;;  %v7792_v60 = vadd.f32 %v6109_v6, %v1267_v34 }
 0x16e   :  { %10982 = vst [vmem:[#allocation57_spill] sm:$0xff] %v7782_v28  ;;  %v1290_v31 = vrot.slane %v1289_v7, 4  ;;  %v1327_v1 = vmax.f32 %v1323_v22, %v1326_v27  ;;  %v1329_v29 = vmax.f32 %v1325_v52, %v1328_v19  ;;  %v7794_v33 = vadd.f32 %v6110_v55, %v1274_v59  ;;  %v10989_v52 = vld [vmem:[#allocation53_spill] sm:$0xff]  ;;  %p6121_p3 = por %p6120_p2, %p6119_p1 }
 0x16f   :  { %10983 = vst [vmem:[#allocation59_spill] sm:$0xff] %v7790_v47  ;;  %10984 = vst [vmem:[#allocation60_spill] sm:$0xff] %v7792_v60  ;;  %v1281_v40 = vadd.f32 %v1280_v15, %v1279_v0  ;;  %v1332_v45 = vsel %vm6240_vm1, %v7790_v47, -inf  ;;  %v1286_v17 = vadd.f32 %v1285_v46, %v1284_v24  ;;  %v1335_v41 = vsel %vm6240_vm1, %v7639_v44, -inf }
 0x170   :  { %10985 = vst [vmem:[#allocation61_spill] sm:$0xff] %v7794_v33  ;;  %v1291_v13 = vadd.f32 %v1290_v31, %v1289_v7  ;;  %v1331_v36 = vmax.f32 %v1327_v1, %v1330_v10  ;;  %v1333_v11 = vmax.f32 %v1329_v29, %v1332_v45  ;;  %v1336_v6 = vsel %vm6240_vm1, %v7722_v37, -inf  ;;  %p6122_p4 = pnand %p6121_p3, %p6115_p0 }
 0x171   :  { %v1341_v55 = vsel %vm6240_vm1, %v7782_v28, -inf  ;;  %v1287_v0 = vrot.slane %v1286_v17, 1  ;;  %v1338_v20 = vmax.f32 %v1335_v41, %v1337_v38  ;;  %v1340_v26 = vmax.f32 %v1336_v6, %v1339_v57  ;;  %v10987_v38 = vld [vmem:[#allocation14_spill] sm:$0xff] }
 0x172   :  { %v1292_v8 = vrot.slane %v1291_v13, 2  ;;  %v1343_v51 = vsel %vm6240_vm1, %v7792_v60, -inf  ;;  %v1334_v56 = vmax.f32 %v1331_v36, %v1333_v11  ;;  %v1345_v34 = vsel %vm6240_vm1, %v7794_v33, -inf }
 0x173   :  { %v7818_v27 = vadd.f32 %v6111_v50, %v1281_v40  ;;  %v1288_v19 = vadd.f32 %v1287_v0, %v1286_v17  ;;  %v1342_v15 = vmax.f32 %v1338_v20, %v1341_v55  ;;  %v1344_v46 = vmax.f32 %v1340_v26, %v1343_v51 }
 0x174   :  { %v1293_v59 = vadd.f32 %v1292_v8, %v1291_v13  ;;  %v1354_v25 = vsub.f32 %v7532_v5, %v1334_v56  ;;  %v1355_v24 = vsub.f32 %v7504_v14, %v1334_v56  ;;  %v1356_v7 = vsub.f32 %v10987_v38, %v1334_v56 }
 0x175   :  { %10986 = vst [vmem:[#allocation62_spill] sm:$0xff] %v7818_v27  ;;  %v7823_v57 = vadd.f32 %v6112_v21, %v1288_v19  ;;  %v1357_v10 = vsub.f32 %v10989_v52, %v1334_v56  ;;  %v1346_v31 = vmax.f32 %v1342_v15, %v1345_v34  ;;  %v1358_v1 = vsub.f32 %v7734_v23, %v1334_v56 }
 0x176   :  { %v1294_v22 = vrot.slane %v1293_v59, 1  ;;  %v1347_v50 = vsel %vm6240_vm1, %v7818_v27, -inf  ;;  %v1363_v29 = vsub.f32 %v7790_v47, %v1334_v56  ;;  %v1374_v45 = vmul.f32 1.442695, %v1354_v25  ;;  %v11001_v47 = vld [vmem:[#allocation9_spill] sm:$0xff] }
 0x177   :  { %10988 = vst [vmem:[#allocation14_spill] sm:$0xff] %v7823_v57  ;;  %v1359_v17 = vsub.f32 %v7742_v43, %v1334_v56  ;;  %v1360_v21 = vsub.f32 %v7749_v42, %v1334_v56  ;;  %v1376_v13 = vmul.f32 1.442695, %v1355_v24  ;;  %v1378_v41 = vmul.f32 1.442695, %v1356_v7  ;;  %v11007_v42 = vld [vmem:[#allocation27_spill] sm:$0xff] }
 0x178   :  { %v1295_v40 = vadd.f32 %v1294_v22, %v1293_v59  ;;  %v1349_v36 = vsel %vm6240_vm1, %v7823_v57, -inf  ;;  %5712 = vpow2.f32 %v1374_v45  ;;  %v1380_v6 = vmul.f32 1.442695, %v1357_v10 }
 0x179   :  { %v1348_v55 = vmax.f32 %v1344_v46, %v1347_v50  ;;  %v1361_v0 = vsub.f32 %v7754_v53, %v1334_v56  ;;  %5714 = vpow2.f32 %v1376_v13  ;;  %v1382_v8 = vmul.f32 1.442695, %v1358_v1 }
 0x17a   :  { %v7836_v11 = vadd.f32 %v6113_v9, %v1295_v40  ;;  %v1392_v20 = vmul.f32 1.442695, %v1363_v29  ;;  %v1362_v51 = vsub.f32 %v7767_v49, %v1334_v56  ;;  %5716 = vpow2.f32 %v1378_v41 }
 0x17b   :  { %v1350_v34 = vmax.f32 %v1346_v31, %v1349_v36  ;;  %5718 = vpow2.f32 %v1380_v6  ;;  %v1384_v9 = vmul.f32 1.442695, %v1359_v17  ;;  %v1386_v59 = vmul.f32 1.442695, %v1360_v21 }
 0x17c   :  { %10990 = vst [vmem:[#allocation53_spill] sm:$0xff] %v7836_v11  ;;  %v1351_v26 = vsel %vm6240_vm1, %v7836_v11, -inf  ;;  %5720 = vpow2.f32 %v1382_v8  ;;  %v1388_v25 = vmul.f32 1.442695, %v1361_v0  ;;  %v1390_v24 = vmul.f32 1.442695, %v1362_v51 }
 0x17d   :  { %v1352_v19 = vmax.f32 %v1348_v55, %v1351_v26  ;;  %5722 = vpow2.f32 %v1392_v20 }
 0x17e   :  { %5724 = vpow2.f32 %v1384_v9 }
 0x17f   :  { %v1353_v15 = vmax.f32 %v1350_v34, %v1352_v19  ;;  %5726 = vpow2.f32 %v1386_v59 }
 0x180   :  { %5728 = vpow2.f32 %v1388_v25 }
 0x181   :  { %v1364_v7 = vsub.f32 %v7639_v44, %v1353_v15  ;;  %v1365_v22 = vsub.f32 %v7722_v37, %v1353_v15  ;;  %v1366_v10 = vsub.f32 %v7715_v54, %v1353_v15  ;;  %v1367_v56 = vsub.f32 %v7729_v63, %v1353_v15  ;;  %v10999_v63 = vld [vmem:[#allocation52_spill] sm:$0xff] }
 0x182   :  { %v1368_v46 = vsub.f32 %v7782_v28, %v1353_v15  ;;  %v7848_v31 = vpop.eup %5712  ;;  %5730 = vpow2.f32 %v1390_v24  ;;  %v1369_v45 = vsub.f32 %v7792_v60, %v1353_v15  ;;  %v1370_v55 = vsub.f32 %v7794_v33, %v1353_v15  ;;  %v11000_v54 = vld [vmem:[#allocation8_spill] sm:$0xff] }
 0x183   :  { %v1394_v1 = vmul.f32 1.442695, %v1364_v7  ;;  %v1396_v50 = vmul.f32 1.442695, %v1365_v22  ;;  %v7850_v29 = vpop.eup %5714  ;;  %v1414_v40 = vsel %vm57_vm0, %v7848_v31, 0.0  ;;  %v1371_v51 = vsub.f32 %v7818_v27, %v1353_v15 }
 0x184   :  { %v1398_v17 = vmul.f32 1.442695, %v1366_v10  ;;  %v1400_v21 = vmul.f32 1.442695, %v1367_v56  ;;  %v7855_v13 = vpop.eup %5716  ;;  %v1415_v41 = vsel %vm57_vm0, %v7850_v29, 0.0  ;;  %v1372_v24 = vsub.f32 %v7823_v57, %v1353_v15 }
 0x185   :  { %5732 = vpow2.f32 %v1394_v1  ;;  %v7859_v36 = vpop.eup %5718  ;;  %v1416_v6 = vadd.f32 %v1415_v41, %v1414_v40  ;;  %v1402_v0 = vmul.f32 1.442695, %v1368_v46  ;;  %v1417_v8 = vsel %vm57_vm0, %v7855_v13, 0.0 }
 0x186   :  { %5734 = vpow2.f32 %v1396_v50  ;;  %v7864_v20 = vpop.eup %5720  ;;  %v1404_v34 = vmul.f32 1.442695, %v1369_v45  ;;  %v1419_v9 = vsel %vm57_vm0, %v7859_v36, 0.0  ;;  %v1406_v7 = vmul.f32 1.442695, %v1370_v55 }
 0x187   :  { %5736 = vpow2.f32 %v1398_v17  ;;  %v1418_v26 = vadd.f32 %v1417_v8, %v1416_v6  ;;  %v7867_v19 = vpop.eup %5722  ;;  %v1421_v10 = vsel %vm57_vm0, %v7864_v20, 0.0  ;;  %v1373_v46 = vsub.f32 %v7836_v11, %v1353_v15 }
 0x188   :  { %5738 = vpow2.f32 %v1400_v21  ;;  %v7871_v59 = vpop.eup %5724  ;;  %v1408_v50 = vmul.f32 1.442695, %v1371_v51  ;;  %v1410_v21 = vmul.f32 1.442695, %v1372_v24 }
 0x189   :  { %v1420_v25 = vadd.f32 %v1419_v9, %v1418_v26  ;;  %5740 = vpow2.f32 %v1402_v0  ;;  %v7874_v22 = vpop.eup %5726  ;;  %v1423_v45 = vsel %vm57_vm0, %v7871_v59, 0.0  ;;  %v1412_v0 = vmul.f32 1.442695, %v1373_v46 }
 0x18a   :  { %v7878_v56 = vpop.eup %5728  ;;  %5742 = vpow2.f32 %v1404_v34  ;;  %v1425_v6 = vsel %vm57_vm0, %v7874_v22, 0.0 }
 0x18b   :  { %v1422_v1 = vadd.f32 %v1421_v10, %v1420_v25  ;;  %5744 = vpow2.f32 %v1406_v7  ;;  %v1427_v51 = vsel %vm57_vm0, %v7878_v56, 0.0 }
 0x18c   :  { %v5731_v40 = vpop.eup %5730  ;;  %5746 = vpow2.f32 %v1408_v50 }
 0x18d   :  { %v1424_v17 = vadd.f32 %v1423_v45, %v1422_v1  ;;  %5748 = vpow2.f32 %v1410_v21  ;;  %v1429_v7 = vsel %vm57_vm0, %v5731_v40, 0.0  ;;  %v1431_v45 = vsel %vm57_vm0, %v7867_v19, 0.0 }
 0x18e   :  { %5750 = vpow2.f32 %v1412_v0 }
 0x18f   :  { %v7883_v41 = vpop.eup %5732  ;;  %v1426_v8 = vadd.f32 %v1425_v6, %v1424_v17 }
 0x190   :  { %v7887_v55 = vpop.eup %5734  ;;  %v1433_v15 = vsel %vm57_vm0, %v7883_v41, 0.0 }
 0x191   :  { %v7891_v26 = vpop.eup %5736  ;;  %v1434_v34 = vsel %vm57_vm0, %v7887_v55, 0.0  ;;  %v1428_v25 = vadd.f32 %v1427_v51, %v1426_v8 }
 0x192   :  { %v7897_v9 = vpop.eup %5738  ;;  %v1435_v24 = vadd.f32 %v1434_v34, %v1433_v15  ;;  %v1436_v10 = vsel %vm57_vm0, %v7891_v26, 0.0 }
 0x193   :  { %v7902_v46 = vpop.eup %5740  ;;  %v1430_v1 = vadd.f32 %v1429_v7, %v1428_v25  ;;  %v1438_v17 = vsel %vm57_vm0, %v7897_v9, 0.0 }
 0x194   :  { %v1437_v50 = vadd.f32 %v1436_v10, %v1435_v24  ;;  %v7908_v6 = vpop.eup %5742  ;;  %v1440_v15 = vsel %vm57_vm0, %v7902_v46, 0.0 }
 0x195   :  { %v1432_v21 = vadd.f32 %v1431_v45, %v1430_v1  ;;  %v7912_v51 = vpop.eup %5744  ;;  %v1442_v0 = vsel %vm57_vm0, %v7908_v6, 0.0 }
 0x196   :  { %v1439_v8 = vadd.f32 %v1438_v17, %v1437_v50  ;;  %v7916_v25 = vpop.eup %5746  ;;  %v1444_v7 = vsel %vm57_vm0, %v7912_v51, 0.0 }
 0x197   :  { %5752 = vrcp.f32 %v1432_v21  ;;  %v5749_v10 = vpop.eup %5748  ;;  %v1446_v1 = vsel %vm57_vm0, %v7916_v25, 0.0 }
 0x198   :  { %v1441_v34 = vadd.f32 %v1440_v15, %v1439_v8  ;;  %v5751_v50 = vpop.eup %5750  ;;  %v1448_v17 = vsel %vm57_vm0, %v5749_v10, 0.0 }
 0x199   :  { %v1450_v8 = vsel %vm57_vm0, %v5751_v50, 0.0 }
 0x19a   :  { %v1443_v24 = vadd.f32 %v1442_v0, %v1441_v34 }
 0x19c   :  { %v1445_v11 = vadd.f32 %v1444_v7, %v1443_v24  ;;  %v10991_v24 = vld [vmem:[#allocation7_spill] sm:$0xff] }
 0x19e   :  { %v1447_v45 = vadd.f32 %v1446_v1, %v1445_v11  ;;  %v10992_v1 = vld [vmem:[#allocation47_spill] sm:$0xff] }
 0x1a0   :  { %v1449_v21 = vadd.f32 %v1448_v17, %v1447_v45  ;;  %v10993_v45 = vld [vmem:[#allocation42_spill] sm:$0xff] }
 0x1a1   :  { %v7924_v15 = vpop.eup %5752 }
 0x1a2   :  { %v1451_v57 = vadd.f32 %v1450_v8, %v1449_v21  ;;  %v1454_v34 = vmul.f32 %v7924_v15, %v7848_v31  ;;  %v1455_v0 = vmul.f32 %v7924_v15, %v7850_v29  ;;  %v1456_v11 = vmul.f32 %v7924_v15, %v7855_v13  ;;  %v10994_v29 = vld [vmem:[#allocation46_spill] sm:$0xff]  ;;  %v10995_v8 = vld [vmem:[#allocation41_spill] sm:$0xff] }
 0x1a3   :  { %v1457_v31 = vmul.f32 %v7924_v15, %v7859_v36  ;;  %v7942_v60 = vmul.f32 %v7924_v15, %v5731_v40  ;;  %v7946_v13 = vmul.f32 %v7924_v15, %v7867_v19  ;;  %v10998_v40 = vld [vmem:[#allocation51_spill] sm:$0xff] }
 0x1a4   :  { %5754 = vrcp.f32 %v1451_v57  ;;  %v1497_v7 = vrot.slane %v1454_v34, %v10991_v24  ;;  %v1501_v33 = vrot.slane %v1455_v0, %v10991_v24  ;;  %v1505_v21 = vrot.slane %v1456_v11, %v10991_v24  ;;  %v10996_v0 = vld [vmem:[#allocation49_spill] sm:$0xff]  ;;  %v10997_v11 = vld [vmem:[#allocation50_spill] sm:$0xff] }
 0x1a5   :  { %v1509_v36 = vrot.slane %v1457_v31, %v10991_v24 }
 0x1a6   :  { %v1595_v27 = vmul.f32 %v1497_v7, %v10992_v1  ;;  %v1594_v17 = vmul.f32 %v1497_v7, %v10993_v45  ;;  %v1597_v57 = vmul.f32 %v1501_v33, %v10994_v29  ;;  %v1596_v34 = vmul.f32 %v1501_v33, %v10995_v8 }
 0x1a7   :  { %v1599_v7 = vmul.f32 %v1505_v21, %v10996_v0  ;;  %v1601_v28 = vmul.f32 %v1509_v36, %v10998_v40  ;;  %v1600_v19 = vmul.f32 %v1509_v36, %v10999_v63  ;;  %v11003_v36 = vld [vmem:[#allocation16_spill] sm:$0xff] }
 0x1a8   :  { %1636 = vadd.xlane.f32.xlu1 %v1595_v27  ;;  %1634 = vadd.xlane.f32.xlu0 %v1594_v17  ;;  %v1598_v17 = vmul.f32 %v1505_v21, %v10997_v11 }
 0x1ac   :  { %1640 = vadd.xlane.f32.xlu1 %v1597_v57  ;;  %1638 = vadd.xlane.f32.xlu0 %v1596_v34 }
 0x1ae   :  { %v7948_v27 = vpop.eup %5754 }
 0x1af   :  { %v1464_v33 = vmul.f32 %v7948_v27, %v7883_v41  ;;  %v1465_v34 = vmul.f32 %v7948_v27, %v7887_v55  ;;  %v1466_v41 = vmul.f32 %v7948_v27, %v7891_v26  ;;  %v11002_v55 = vld [vmem:[#allocation12_spill] sm:$0xff]  ;;  %v11004_v26 = vld [vmem:[#allocation18_spill] sm:$0xff] }
 0x1b0   :  { %1644 = vadd.xlane.f32.xlu1 %v1599_v7  ;;  %1642 = vadd.xlane.f32.xlu0 %v1598_v17  ;;  %v7966_v7 = vmul.f32 %v7948_v27, %v5749_v10  ;;  %v7969_v17 = vmul.f32 %v7948_v27, %v5751_v50  ;;  %v11005_v10 = vld [vmem:[#allocation19_spill] sm:$0xff] }
 0x1b1   :  { %v1537_v57 = vrot.slane %v1464_v33, %v10991_v24  ;;  %v1541_v49 = vrot.slane %v1465_v34, %v10991_v24 }
 0x1b3   :  { %v1615_v21 = vmul.f32 %v1537_v57, %v11000_v54  ;;  %v1614_v31 = vmul.f32 %v1537_v57, %v11001_v47  ;;  %v1616_v33 = vmul.f32 %v1541_v49, %v11003_v36  ;;  %v1467_v57 = vmul.f32 %v7948_v27, %v7897_v9 }
 0x1b4   :  { %1648 = vadd.xlane.f32.xlu1 %v1601_v28  ;;  %1646 = vadd.xlane.f32.xlu0 %v1600_v19  ;;  %v1617_v28 = vmul.f32 %v1541_v49, %v11002_v55  ;;  %v1545_v19 = vrot.slane %v1466_v41, %v10991_v24  ;;  %v1459_v9 = vmul.f32 %v7924_v15, %v7871_v59 }
 0x1b5   :  { %v1549_v50 = vrot.slane %v1467_v57, %v10991_v24  ;;  %v1469_v59 = vmul.f32 %v7948_v27, %v7908_v6  ;;  %v1461_v6 = vmul.f32 %v7924_v15, %v7878_v56  ;;  %v1471_v56 = vmul.f32 %v7948_v27, %v7916_v25  ;;  %v11017_v25 = vld [vmem:[#allocation36_spill] sm:$0xff] }
 0x1b6   :  { %v1619_v34 = vmul.f32 %v1545_v19, %v11004_v26  ;;  %v1618_v53 = vmul.f32 %v1545_v19, %v11005_v10  ;;  %v11009_v19 = vld [vmem:[#allocation56_spill] sm:$0xff]  ;;  %v1517_v23 = vrot.slane %v1459_v9, %v10991_v24 }
 0x1b7   :  { %v1620_v41 = vmul.f32 %v1549_v50, %v11007_v42  ;;  %v1557_v9 = vrot.slane %v1469_v59, %v10991_v24  ;;  %v1525_v59 = vrot.slane %v1461_v6, %v10991_v24  ;;  %v1529_v6 = vrot.slane %v7942_v60, %v10991_v24 }
 0x1b8   :  { %1676 = vadd.xlane.f32.xlu1 %v1615_v21  ;;  %1674 = vadd.xlane.f32.xlu0 %v1614_v31  ;;  %v1458_v21 = vmul.f32 %v7924_v15, %v7864_v20  ;;  %v11006_v31 = vld [vmem:[#allocation20_spill] sm:$0xff]  ;;  %v11010_v20 = vld [vmem:[#allocation15_spill] sm:$0xff] }
 0x1b9   :  { %v1621_v49 = vmul.f32 %v1549_v50, %v11006_v31  ;;  %v11011_v50 = vld [vmem:[#allocation21_spill] sm:$0xff] }
 0x1ba   :  { %v1513_v43 = vrot.slane %v1458_v21, %v10991_v24  ;;  %v1604_v21 = vmul.f32 %v1517_v23, %v11011_v50 }
 0x1bc   :  { %1680 = vadd.xlane.f32.xlu1 %v1617_v28  ;;  %1678 = vadd.xlane.f32.xlu0 %v1616_v33  ;;  %v11008_v28 = vld [vmem:[#allocation55_spill] sm:$0xff]  ;;  %v1602_v57 = vmul.f32 %v1513_v43, %v11009_v19 }
 0x1bd   :  { %v1603_v33 = vmul.f32 %v1513_v43, %v11008_v28 }
 0x1c0   :  { %1684 = vadd.xlane.f32.xlu1 %v1619_v34  ;;  %1682 = vadd.xlane.f32.xlu0 %v1618_v53  ;;  %v1468_v53 = vmul.f32 %v7948_v27, %v7902_v46  ;;  %v1605_v34 = vmul.f32 %v1517_v23, %v11010_v20  ;;  %v1460_v46 = vmul.f32 %v7924_v15, %v7874_v22 }
 0x1c1   :  { %v1625_v23 = vmul.f32 %v1557_v9, %v10959_v16  ;;  %v1470_v22 = vmul.f32 %v7948_v27, %v7912_v51  ;;  %v1611_v27 = vmul.f32 %v1529_v6, %v11017_v25 }
 0x1c2   :  { %v1553_v37 = vrot.slane %v1468_v53, %v10991_v24  ;;  %v11013_v53 = vld [vmem:[#allocation23_spill] sm:$0xff] }
 0x1c3   :  { %v1561_v16 = vrot.slane %v1470_v22, %v10991_v24 }
 0x1c4   :  { %1688 = vadd.xlane.f32.xlu1 %v1621_v49  ;;  %1686 = vadd.xlane.f32.xlu0 %v1620_v41  ;;  %v1623_v43 = vmul.f32 %v1553_v37, %v10955_v58  ;;  %v11012_v49 = vld [vmem:[#allocation30_spill] sm:$0xff] }
 0x1c5   :  { %v1622_v41 = vmul.f32 %v1553_v37, %v11012_v49  ;;  %v1627_v15 = vmul.f32 %v1561_v16, %v10961_v4 }
 0x1c8   :  { %1652 = vadd.xlane.f32.xlu1 %v1603_v33  ;;  %1650 = vadd.xlane.f32.xlu0 %v1602_v57  ;;  %v1624_v33 = vmul.f32 %v1557_v9, %v10958_v30  ;;  %v1521_v57 = vrot.slane %v1460_v46, %v10991_v24  ;;  %v11016_v9 = vld [vmem:[#allocation29_spill] sm:$0xff] }
 0x1c9   :  { %v1608_v46 = vmul.f32 %v1525_v59, %v11016_v9 }
 0x1ca   :  { %v1607_v37 = vmul.f32 %v1521_v57, %v11013_v53 }
 0x1cc   :  { %1656 = vadd.xlane.f32.xlu1 %v1605_v34  ;;  %1654 = vadd.xlane.f32.xlu0 %v1604_v21  ;;  %v11014_v34 = vld [vmem:[#allocation25_spill] sm:$0xff] }
 0x1cd   :  { %v1606_v21 = vmul.f32 %v1521_v57, %v11014_v34 }
 0x1d0   :  { %1692 = vadd.xlane.f32.xlu1 %v1623_v43  ;;  %1690 = vadd.xlane.f32.xlu0 %v1622_v41  ;;  %v11015_v43 = vld [vmem:[#allocation28_spill] sm:$0xff] }
 0x1d1   :  { %v1609_v41 = vmul.f32 %v1525_v59, %v11015_v43 }
 0x1d4   :  { %1696 = vadd.xlane.f32.xlu1 %v1625_v23  ;;  %1694 = vadd.xlane.f32.xlu0 %v1624_v33  ;;  %v1626_v23 = vmul.f32 %v1561_v16, %v10960_v12  ;;  %v1565_v33 = vrot.slane %v1471_v56, %v10991_v24  ;;  %v1533_v16 = vrot.slane %v7946_v13, %v10991_v24 }
 0x1d5   :  { %v1573_v56 = vrot.slane %v7969_v17, %v10991_v24 }
 0x1d6   :  { %v1629_v51 = vmul.f32 %v1565_v33, %v10965_v18  ;;  %v1628_v57 = vmul.f32 %v1565_v33, %v10964_v35  ;;  %v1613_v59 = vmul.f32 %v1533_v16, %v10970_v32  ;;  %v1612_v22 = vmul.f32 %v1533_v16, %v10969_v62 }
 0x1d7   :  { %v1633_v13 = vmul.f32 %v1573_v56, %v10981_v2 }
 0x1d8   :  { %1660 = vadd.xlane.f32.xlu1 %v1607_v37  ;;  %1658 = vadd.xlane.f32.xlu0 %v1606_v21  ;;  %v11018_v37 = vld [vmem:[#allocation37_spill] sm:$0xff] }
 0x1d9   :  { %v1610_v21 = vmul.f32 %v1529_v6, %v11018_v37 }
 0x1dc   :  { %1664 = vadd.xlane.f32.xlu1 %v1609_v41  ;;  %1662 = vadd.xlane.f32.xlu0 %v1608_v46  ;;  %v1569_v41 = vrot.slane %v7966_v7, %v10991_v24 }
 0x1de   :  { %v1631_v60 = vmul.f32 %v1569_v41, %v10976_v3  ;;  %v1630_v46 = vmul.f32 %v1569_v41, %v10975_v48 }
 0x1e0   :  { %1700 = vadd.xlane.f32.xlu1 %v1627_v15  ;;  %1698 = vadd.xlane.f32.xlu0 %v1626_v23  ;;  %v1632_v15 = vmul.f32 %v1573_v56, %v10980_v61 }
 0x1e4   :  { %1704 = vadd.xlane.f32.xlu1 %v1629_v51  ;;  %1702 = vadd.xlane.f32.xlu0 %v1628_v57 }
 0x1e8   :  { %1668 = vadd.xlane.f32.xlu1 %v1611_v27  ;;  %1666 = vadd.xlane.f32.xlu0 %v1610_v21 }
 0x1ec   :  { %1672 = vadd.xlane.f32.xlu1 %v1613_v59  ;;  %1670 = vadd.xlane.f32.xlu0 %v1612_v22 }
 0x1f0   :  { %1708 = vadd.xlane.f32.xlu1 %v1631_v60  ;;  %1706 = vadd.xlane.f32.xlu0 %v1630_v46 }
 0x1f4   :  { %1712 = vadd.xlane.f32.xlu1 %v1633_v13  ;;  %1710 = vadd.xlane.f32.xlu0 %v1632_v15 }
 0x235   :  { %v8037_v23 = vpop.xlane.xlu1 %1636  ;;  %v8039_v7 = vpop.xlane.xlu0 %1634 }
 0x236   :  { %v1715_v33 = vmul.f32 %v8037_v23, %v8037_v23  ;;  %v1714_v51 = vmul.f32 %v8039_v7, %v8039_v7 }
 0x238   :  { %v1754_v57 = vadd.f32 %v1715_v33, %v1714_v51 }
 0x239   :  { %v8045_v17 = vpop.xlane.xlu1 %1640  ;;  %v8047_v6 = vpop.xlane.xlu0 %1638 }
 0x23a   :  { %v1755_v27 = vrot.slane %v1754_v57, 4  ;;  %v1717_v21 = vmul.f32 %v8045_v17, %v8045_v17  ;;  %v1716_v16 = vmul.f32 %v8047_v6, %v8047_v6 }
 0x23c   :  { %v1756_v59 = vadd.f32 %v1755_v27, %v1754_v57  ;;  %v1761_v22 = vadd.f32 %v1717_v21, %v1716_v16 }
 0x23d   :  { %v8053_v41 = vpop.xlane.xlu1 %1644  ;;  %v8055_v60 = vpop.xlane.xlu0 %1642 }
 0x23e   :  { %v1757_v46 = vrot.slane %v1756_v59, 2  ;;  %v1762_v56 = vrot.slane %v1761_v22, 4  ;;  %v1719_v13 = vmul.f32 %v8053_v41, %v8053_v41  ;;  %v1718_v15 = vmul.f32 %v8055_v60, %v8055_v60 }
 0x240   :  { %v1758_v33 = vadd.f32 %v1757_v46, %v1756_v59  ;;  %v1763_v51 = vadd.f32 %v1762_v56, %v1761_v22  ;;  %v1768_v24 = vadd.f32 %v1719_v13, %v1718_v15 }
 0x241   :  { %v8061_v2 = vpop.xlane.xlu1 %1648  ;;  %v8063_v61 = vpop.xlane.xlu0 %1646 }
 0x242   :  { %v1759_v57 = vrot.slane %v1758_v33, 1  ;;  %v1764_v27 = vrot.slane %v1763_v51, 2  ;;  %v1769_v21 = vrot.slane %v1768_v24, 4  ;;  %v1721_v16 = vmul.f32 %v8061_v2, %v8061_v2 }
 0x243   :  { %v1720_v3 = vmul.f32 %v8063_v61, %v8063_v61 }
 0x244   :  { %v1760_v48 = vadd.f32 %v1759_v57, %v1758_v33  ;;  %v1765_v32 = vadd.f32 %v1764_v27, %v1763_v51  ;;  %v1770_v62 = vadd.f32 %v1769_v21, %v1768_v24 }
 0x245   :  { %v1775_v18 = vadd.f32 %v1721_v16, %v1720_v3  ;;  %v8069_v59 = vpop.xlane.xlu1 %1676  ;;  %v8071_v13 = vpop.xlane.xlu0 %1674 }
 0x246   :  { %v1894_v22 = vadd.f32 1e-08, %v1760_v48  ;;  %v1766_v46 = vrot.slane %v1765_v32, 1  ;;  %v1771_v56 = vrot.slane %v1770_v62, 2  ;;  %v1735_v35 = vmul.f32 %v8069_v59, %v8069_v59 }
 0x247   :  { %v1776_v15 = vrot.slane %v1775_v18, 4  ;;  %v1734_v4 = vmul.f32 %v8071_v13, %v8071_v13  ;;  %v1954_v24 = vadd.f32 1.0, %v1760_v48 }
 0x248   :  { %5756 = vrsqrt.f32 %v1894_v22  ;;  %v1767_v12 = vadd.f32 %v1766_v46, %v1765_v32  ;;  %v1772_v33 = vadd.f32 %v1771_v56, %v1770_v62 }
 0x249   :  { %v8077_v51 = vpop.xlane.xlu1 %1680  ;;  %v1777_v3 = vadd.f32 %v1776_v15, %v1775_v18  ;;  %v8079_v57 = vpop.xlane.xlu0 %1678  ;;  %v1824_v27 = vadd.f32 %v1735_v35, %v1734_v4  ;;  %5758 = vrcp.f32 %v1954_v24 }
 0x24a   :  { %v1895_v21 = vadd.f32 1e-08, %v1767_v12  ;;  %v1773_v16 = vrot.slane %v1772_v33, 1  ;;  %v1737_v25 = vmul.f32 %v8077_v51, %v8077_v51  ;;  %v1736_v62 = vmul.f32 %v8079_v57, %v8079_v57 }
 0x24b   :  { %v1778_v30 = vrot.slane %v1777_v3, 2  ;;  %v1825_v49 = vrot.slane %v1824_v27, 4  ;;  %v1955_v4 = vadd.f32 1.0, %v1767_v12 }
 0x24c   :  { %5760 = vrsqrt.f32 %v1895_v21  ;;  %v1774_v32 = vadd.f32 %v1773_v16, %v1772_v33  ;;  %v1831_v56 = vadd.f32 %v1737_v25, %v1736_v62 }
 0x24d   :  { %v8081_v58 = vpop.xlane.xlu1 %1684  ;;  %v8087_v18 = vpop.xlane.xlu0 %1682  ;;  %v1779_v22 = vadd.f32 %v1778_v30, %v1777_v3  ;;  %v1826_v35 = vadd.f32 %v1825_v49, %v1824_v27  ;;  %5762 = vrcp.f32 %v1955_v4 }
 0x24e   :  { %v1896_v15 = vadd.f32 1e-08, %v1774_v32  ;;  %v1832_v53 = vrot.slane %v1831_v56, 4  ;;  %v1739_v33 = vmul.f32 %v8081_v58, %v8081_v58  ;;  %v1738_v30 = vmul.f32 %v8087_v18, %v8087_v18 }
 0x24f   :  { %v1780_v43 = vrot.slane %v1779_v22, 1  ;;  %v1827_v44 = vrot.slane %v1826_v35, 2  ;;  %v1956_v27 = vadd.f32 1.0, %v1774_v32 }
 0x250   :  { %5764 = vrsqrt.f32 %v1896_v15  ;;  %v1833_v16 = vadd.f32 %v1832_v53, %v1831_v56  ;;  %v1838_v62 = vadd.f32 %v1739_v33, %v1738_v30 }
 0x251   :  { %v8089_v24 = vpop.xlane.xlu1 %1688  ;;  %v8091_v9 = vpop.xlane.xlu0 %1686  ;;  %v1781_v25 = vadd.f32 %v1780_v43, %v1779_v22  ;;  %5766 = vrcp.f32 %v1956_v27 }
 0x252   :  { %v5757_v46 = vpop.eup %5756  ;;  %v1740_v4 = vmul.f32 %v8091_v9, %v8091_v9  ;;  %v1834_v50 = vrot.slane %v1833_v16, 2  ;;  %v1839_v53 = vrot.slane %v1838_v62, 4 }
 0x253   :  { %v1934_v37 = vmul.f32 %v5757_v46, %v1760_v48  ;;  %v5759_v34 = vpop.eup %5758  ;;  %v1828_v48 = vadd.f32 %v1827_v44, %v1826_v35  ;;  %v1741_v46 = vmul.f32 %v8089_v24, %v8089_v24 }
 0x255   :  { %v1994_v49 = vmul.f32 %v5759_v34, %v1934_v37  ;;  %v8097_v21 = vpop.xlane.xlu1 %1652  ;;  %v8103_v15 = vpop.xlane.xlu0 %1650  ;;  %v1897_v37 = vadd.f32 1e-08, %v1781_v25  ;;  %v1829_v22 = vrot.slane %v1828_v48, 1  ;;  %v1845_v35 = vadd.f32 %v1741_v46, %v1740_v4 }
 0x256   :  { %v5761_v3 = vpop.eup %5760 }
 0x257   :  { %v2014_v20 = vmul.f32 %v1994_v49, %v8039_v7  ;;  %v2015_v34 = vmul.f32 %v1994_v49, %v8037_v23  ;;  %v1935_v43 = vmul.f32 %v5761_v3, %v1767_v12  ;;  %v5763_v44 = vpop.eup %5762  ;;  %5768 = vrsqrt.f32 %v1897_v37 }
 0x258   :  { %v1957_v7 = vadd.f32 1.0, %v1781_v25  ;;  %v8113_v12 = vadd.f32 %v1829_v22, %v1828_v48  ;;  %v1835_v23 = vadd.f32 %v1834_v50, %v1833_v16  ;;  %v1840_v49 = vadd.f32 %v1839_v53, %v1838_v62 }
 0x259   :  { %v8107_v56 = vpop.xlane.xlu1 %1656  ;;  %v2054_v33 = vmul.f32 %v2014_v20, %v10993_v45  ;;  %v2055_v30 = vmul.f32 %v2015_v34, %v10992_v1  ;;  %v1995_v28 = vmul.f32 %v5763_v44, %v1935_v43  ;;  %v8111_v31 = vpop.xlane.xlu0 %1654  ;;  %v1846_v3 = vrot.slane %v1845_v35, 4 }
 0x25a   :  { %11019 = vst [vmem:[#allocation63_spill] sm:$0xff] %v8107_v56  ;;  %v5765_v19 = vpop.eup %5764  ;;  %5770 = vrcp.f32 %v1957_v7  ;;  %v1904_v34 = vadd.f32 1e-08, %v8113_v12  ;;  %v1836_v43 = vrot.slane %v1835_v23, 1  ;;  %v1723_v37 = vmul.f32 %v8097_v21, %v8097_v21 }
 0x25b   :  { %v2094_v27 = vadd.f32 %v2055_v30, %v2054_v33  ;;  %v2016_v46 = vmul.f32 %v1995_v28, %v8047_v6  ;;  %v2017_v4 = vmul.f32 %v1995_v28, %v8045_v17  ;;  %v1936_v42 = vmul.f32 %v5765_v19, %v1774_v32  ;;  %v5767_v48 = vpop.eup %5766 }
 0x25c   :  { %v1722_v50 = vmul.f32 %v8103_v15, %v8103_v15  ;;  %v1841_v16 = vrot.slane %v1840_v49, 2  ;;  %v1847_v62 = vadd.f32 %v1846_v3, %v1845_v35  ;;  %5772 = vrsqrt.f32 %v1904_v34 }
 0x25d   :  { %v8117_v20 = vpop.xlane.xlu1 %1692  ;;  %v8124_v22 = vpop.xlane.xlu0 %1690  ;;  %v2095_v6 = vrot.slane %v2094_v27, 4  ;;  %v2056_v28 = vmul.f32 %v2016_v46, %v10995_v8  ;;  %v2057_v19 = vmul.f32 %v2017_v4, %v10994_v29  ;;  %v1996_v17 = vmul.f32 %v5767_v48, %v1936_v42 }
 0x25e   :  { %11020 = vst [vmem:[#allocation64_spill] sm:$0xff] %v8117_v20  ;;  %11021 = vst [vmem:[#allocation65_spill] sm:$0xff] %v8124_v22  ;;  %v8128_v44 = vadd.f32 %v1836_v43, %v1835_v23  ;;  %v1782_v53 = vadd.f32 %v1723_v37, %v1722_v50  ;;  %v1964_v33 = vadd.f32 1.0, %v8113_v12  ;;  %v1842_v30 = vadd.f32 %v1841_v16, %v1840_v49 }
 0x25f   :  { %v1848_v7 = vrot.slane %v1847_v62, 2  ;;  %v2096_v35 = vadd.f32 %v2095_v6, %v2094_v27  ;;  %v2101_v3 = vadd.f32 %v2057_v19, %v2056_v28  ;;  %v2018_v1 = vmul.f32 %v1996_v17, %v8055_v60 }
 0x260   :  { %v2019_v46 = vmul.f32 %v1996_v17, %v8053_v41  ;;  %v1725_v42 = vmul.f32 %v8107_v56, %v8107_v56  ;;  %v1724_v23 = vmul.f32 %v8111_v31, %v8111_v31  ;;  %v1905_v49 = vadd.f32 1e-08, %v8128_v44 }
 0x261   :  { %v5769_v32 = vpop.eup %5768  ;;  %v8131_v45 = vpop.xlane.xlu1 %1696  ;;  %v1783_v34 = vrot.slane %v1782_v53, 4  ;;  %5774 = vrcp.f32 %v1964_v33  ;;  %v1843_v27 = vrot.slane %v1842_v30, 1  ;;  %v1849_v37 = vadd.f32 %v1848_v7, %v1847_v62 }
 0x262   :  { %11022 = vst [vmem:[#allocation66_spill] sm:$0xff] %v8131_v45  ;;  %v1937_v8 = vmul.f32 %v5769_v32, %v1781_v25  ;;  %v8139_v4 = vpop.xlane.xlu0 %1694  ;;  %v2097_v50 = vrot.slane %v2096_v35, 2  ;;  %v2102_v60 = vrot.slane %v2101_v3, 4  ;;  %v2058_v41 = vmul.f32 %v2018_v1, %v10997_v11 }
 0x263   :  { %v2059_v25 = vmul.f32 %v2019_v46, %v10996_v0  ;;  %v1789_v16 = vadd.f32 %v1725_v42, %v1724_v23  ;;  %5776 = vrsqrt.f32 %v1905_v49  ;;  %v1784_v28 = vadd.f32 %v1783_v34, %v1782_v53 }
 0x264   :  { %v5771_v43 = vpop.eup %5770  ;;  %v8146_v19 = vadd.f32 %v1843_v27, %v1842_v30  ;;  %v1850_v17 = vrot.slane %v1849_v37, 1  ;;  %v2098_v29 = vadd.f32 %v2097_v50, %v2096_v35  ;;  %v2103_v62 = vadd.f32 %v2102_v60, %v2101_v3 }
 0x265   :  { %v1997_v48 = vmul.f32 %v5771_v43, %v1937_v8  ;;  %v8144_v6 = vpop.xlane.xlu1 %1660  ;;  %v2108_v7 = vadd.f32 %v2059_v25, %v2058_v41  ;;  %v1965_v56 = vadd.f32 1.0, %v8128_v44  ;;  %v1790_v46 = vrot.slane %v1789_v16, 4 }
 0x266   :  { %v8148_v32 = vpop.xlane.xlu0 %1658  ;;  %v5773_v33 = vpop.eup %5772  ;;  %v1785_v42 = vrot.slane %v1784_v28, 2  ;;  %v1906_v53 = vadd.f32 1e-08, %v8146_v19  ;;  %v8155_v30 = vadd.f32 %v1850_v17, %v1849_v37  ;;  %v2099_v34 = vrot.slane %v2098_v29, 1 }
 0x267   :  { %v2020_v1 = vmul.f32 %v1997_v48, %v8063_v61  ;;  %v2021_v8 = vmul.f32 %v1997_v48, %v8061_v2  ;;  %v1944_v23 = vmul.f32 %v5773_v33, %v8113_v12  ;;  %v2104_v35 = vrot.slane %v2103_v62, 2 }
 0x268   :  { %v2109_v3 = vrot.slane %v2108_v7, 4  ;;  %5778 = vrcp.f32 %v1965_v56  ;;  %v1791_v2 = vadd.f32 %v1790_v46, %v1789_v16  ;;  %v1786_v60 = vadd.f32 %v1785_v42, %v1784_v28 }
 0x269   :  { %v8157_v49 = vpop.xlane.xlu1 %1664  ;;  %v2060_v27 = vmul.f32 %v2020_v1, %v10999_v63  ;;  %v2061_v61 = vmul.f32 %v2021_v8, %v10998_v40  ;;  %v1727_v12 = vmul.f32 %v8144_v6, %v8144_v6  ;;  %v1726_v37 = vmul.f32 %v8148_v32, %v8148_v32 }
 0x26a   :  { %v8161_v50 = vpop.xlane.xlu0 %1662  ;;  %5780 = vrsqrt.f32 %v1906_v53  ;;  %v1966_v25 = vadd.f32 1.0, %v8146_v19  ;;  %v1907_v56 = vadd.f32 1e-08, %v8155_v30  ;;  %v2100_v17 = vadd.f32 %v2099_v34, %v2098_v29 }
 0x26b   :  { %v5775_v43 = vpop.eup %5774  ;;  %v2105_v33 = vadd.f32 %v2104_v35, %v2103_v62  ;;  %v2110_v1 = vadd.f32 %v2109_v3, %v2108_v7  ;;  %v1796_v16 = vadd.f32 %v1727_v12, %v1726_v37  ;;  %v2115_v8 = vadd.f32 %v2061_v61, %v2060_v27 }
 0x26c   :  { %v2004_v41 = vmul.f32 %v5775_v43, %v1944_v23  ;;  %v1792_v46 = vrot.slane %v1791_v2, 2  ;;  %v1743_v28 = vmul.f32 %v8117_v20, %v8117_v20  ;;  %v1742_v42 = vmul.f32 %v8124_v22, %v8124_v22 }
 0x26d   :  { %v5777_v48 = vpop.eup %5776  ;;  %v8173_v63 = vpop.xlane.xlu1 %1700  ;;  %v1787_v23 = vrot.slane %v1786_v60, 1  ;;  %v1797_v53 = vrot.slane %v1796_v16, 4  ;;  %v1729_v43 = vmul.f32 %v8157_v49, %v8157_v49  ;;  %v1728_v29 = vmul.f32 %v8161_v50, %v8161_v50 }
 0x26e   :  { %11023 = vst [vmem:[#allocation67_spill] sm:$0xff] %v8173_v63  ;;  %v2034_v62 = vmul.f32 %v2004_v41, %v8071_v13  ;;  %v2035_v7 = vmul.f32 %v2004_v41, %v8069_v59  ;;  %v1945_v34 = vmul.f32 %v5777_v48, %v8128_v44  ;;  %v1967_v35 = vadd.f32 1.0, %v8155_v30  ;;  %v8183_v3 = vpop.xlane.xlu0 %1698 }
 0x26f   :  { %11024 = vst [vmem:[#allocation68_spill] sm:$0xff] %v8183_v3  ;;  %v2106_v27 = vrot.slane %v2105_v33, 1  ;;  %v2111_v61 = vrot.slane %v2110_v1, 2  ;;  %5782 = vrcp.f32 %v1966_v25  ;;  %v1798_v12 = vadd.f32 %v1797_v53, %v1796_v16 }
 0x270   :  { %v2116_v37 = vrot.slane %v2115_v8, 4  ;;  %5784 = vrsqrt.f32 %v1907_v56  ;;  %v1793_v40 = vadd.f32 %v1792_v46, %v1791_v2  ;;  %v1852_v11 = vadd.f32 %v1743_v28, %v1742_v42 }
 0x271   :  { %v8186_v20 = vadd.f32 %v2100_v17, %v7532_v5  ;;  %v8188_v13 = vadd.f32 %v1787_v23, %v1786_v60  ;;  %v1799_v59 = vrot.slane %v1798_v12, 2  ;;  %v1803_v44 = vadd.f32 %v1729_v43, %v1728_v29  ;;  %v8192_v25 = vpop.xlane.xlu1 %1704 }
 0x272   :  { %v5779_v0 = vpop.eup %5778  ;;  %v2074_v41 = vmul.f32 %v2034_v62, %v11001_v47  ;;  %v2075_v48 = vmul.f32 %v2035_v7, %v11000_v54  ;;  %5786 = vrcp.f32 %v1967_v35  ;;  %11025 = vst [vmem:[#allocation69_spill] sm:$0xff] %v8192_v25  ;;  %v2107_v16 = vadd.f32 %v2106_v27, %v2105_v33  ;;  %v8198_v23 = vpop.xlane.xlu0 %1702 }
 0x273   :  { %v2005_v22 = vmul.f32 %v5779_v0, %v1945_v34  ;;  %v2112_v56 = vadd.f32 %v2111_v61, %v2110_v1  ;;  %v1745_v2 = vmul.f32 %v8131_v45, %v8131_v45  ;;  %v1744_v5 = vmul.f32 %v8139_v4, %v8139_v4  ;;  %11026 = vst [vmem:[#allocation70_spill] sm:$0xff] %v8198_v23 }
 0x274   :  { %v5781_v60 = vpop.eup %5780  ;;  %v2117_v17 = vadd.f32 %v2116_v37, %v2115_v8  ;;  %v1794_v46 = vrot.slane %v1793_v40, 1  ;;  %v1853_v28 = vrot.slane %v1852_v11, 4  ;;  %v1804_v42 = vrot.slane %v1803_v44, 4 }
 0x275   :  { %v1898_v33 = vadd.f32 1e-08, %v8188_v13  ;;  %v1800_v1 = vadd.f32 %v1799_v59, %v1798_v12  ;;  %v1747_v53 = vmul.f32 %v8173_v63, %v8173_v63  ;;  %v2164_v43 = vadd.f32 %v2075_v48, %v2074_v41  ;;  %v8215_v0 = vpop.xlane.xlu1 %1668 }
 0x276   :  { %v2036_v29 = vmul.f32 %v2005_v22, %v8079_v57  ;;  %v1805_v62 = vadd.f32 %v1804_v42, %v1803_v44  ;;  %v1746_v8 = vmul.f32 %v8183_v3, %v8183_v3  ;;  %v8210_v7 = vadd.f32 %v2107_v16, %v7504_v14 }
 0x277   :  { %v2113_v34 = vrot.slane %v2112_v56, 1  ;;  %v2037_v35 = vmul.f32 %v2005_v22, %v8077_v51  ;;  %v1859_v27 = vadd.f32 %v1745_v2, %v1744_v5  ;;  %v2118_v61 = vrot.slane %v2117_v17, 2 }
 0x278   :  { %v8213_v37 = vadd.f32 %v1794_v46, %v1793_v40  ;;  %v1854_v12 = vadd.f32 %v1853_v28, %v1852_v11  ;;  %v1806_v59 = vrot.slane %v1805_v62, 2  ;;  %5788 = vrsqrt.f32 %v1898_v33  ;;  %v8221_v40 = vpop.xlane.xlu0 %1666 }
 0x279   :  { %v5783_v41 = vpop.eup %5782  ;;  %v1801_v57 = vrot.slane %v1800_v1, 1  ;;  %v1866_v44 = vadd.f32 %v1747_v53, %v1746_v8  ;;  %v1749_v48 = vmul.f32 %v8192_v25, %v8192_v25  ;;  %v2165_v16 = vrot.slane %v2164_v43, 4 }
 0x27a   :  { %v5785_v14 = vpop.eup %5784  ;;  %v2076_v42 = vmul.f32 %v2036_v29, %v11003_v36  ;;  %v1946_v51 = vmul.f32 %v5781_v60, %v8146_v19  ;;  %v1807_v22 = vadd.f32 %v1806_v59, %v1805_v62  ;;  %v1958_v11 = vadd.f32 1.0, %v8188_v13 }
 0x27b   :  { %v1860_v2 = vrot.slane %v1859_v27, 4  ;;  %v1748_v5 = vmul.f32 %v8198_v23, %v8198_v23  ;;  %v1731_v46 = vmul.f32 %v8215_v0, %v8215_v0  ;;  %v2077_v33 = vmul.f32 %v2037_v35, %v11002_v55 }
 0x27c   :  { %v5787_v28 = vpop.eup %5786  ;;  %v1899_v53 = vadd.f32 1e-08, %v8213_v37  ;;  %v1855_v29 = vrot.slane %v1854_v12, 2  ;;  %v1808_v8 = vrot.slane %v1807_v22, 1  ;;  %v8230_v19 = vadd.f32 %v1801_v57, %v1800_v1 }
 0x27d   :  { %v1867_v60 = vrot.slane %v1866_v44, 4  ;;  %v1873_v62 = vadd.f32 %v1749_v48, %v1748_v5  ;;  %v1730_v59 = vmul.f32 %v8221_v40, %v8221_v40  ;;  %v2114_v36 = vadd.f32 %v2113_v34, %v2112_v56 }
 0x27e   :  { %v2119_v47 = vadd.f32 %v2118_v61, %v2117_v17  ;;  %v2166_v54 = vadd.f32 %v2165_v16, %v2164_v43  ;;  %v8234_v25 = vadd.f32 %v1808_v8, %v1807_v22  ;;  %5790 = vrcp.f32 %v1958_v11 }
 0x27f   :  { %v1861_v23 = vadd.f32 %v1860_v2, %v1859_v27  ;;  %v1874_v63 = vrot.slane %v1873_v62, 4  ;;  %v1810_v35 = vadd.f32 %v1731_v46, %v1730_v59  ;;  %v2171_v55 = vadd.f32 %v2077_v33, %v2076_v42 }
 0x280   :  { %v2006_v3 = vmul.f32 %v5783_v41, %v1946_v51  ;;  %5792 = vrsqrt.f32 %v1899_v53  ;;  %v1959_v1 = vadd.f32 1.0, %v8213_v37  ;;  %v1856_v57 = vadd.f32 %v1855_v29, %v1854_v12 }
 0x281   :  { %v1900_v48 = vadd.f32 1e-08, %v8230_v19  ;;  %v1868_v5 = vadd.f32 %v1867_v60, %v1866_v44  ;;  %v1811_v45 = vrot.slane %v1810_v35, 4  ;;  %v8239_v56 = vadd.f32 %v2114_v36, %v10987_v38 }
 0x282   :  { %v2120_v17 = vrot.slane %v2119_v47, 1  ;;  %v1947_v43 = vmul.f32 %v5785_v14, %v8155_v30  ;;  %v1901_v34 = vadd.f32 1e-08, %v8234_v25  ;;  %v5789_v27 = vpop.eup %5788  ;;  %v2167_v61 = vrot.slane %v2166_v54, 2 }
 0x283   :  { %v1862_v16 = vrot.slane %v1861_v23, 2  ;;  %v1875_v41 = vadd.f32 %v1874_v63, %v1873_v62  ;;  %v1812_v42 = vadd.f32 %v1811_v45, %v1810_v35  ;;  %v2172_v51 = vrot.slane %v2171_v55, 4 }
 0x284   :  { %v2038_v12 = vmul.f32 %v2006_v3, %v8087_v18  ;;  %v2039_v22 = vmul.f32 %v2006_v3, %v8081_v58  ;;  %5794 = vrcp.f32 %v1959_v1  ;;  %v1857_v44 = vrot.slane %v1856_v57, 1 }
 0x285   :  { %5796 = vrsqrt.f32 %v1900_v48  ;;  %v1869_v38 = vrot.slane %v1868_v5, 2  ;;  %v1813_v36 = vrot.slane %v1812_v42, 2  ;;  %v2256_v30 = vsel %vm6240_vm1, %v8239_v56, -inf  ;;  %v8266_v48 = vpop.xlane.xlu1 %1672 }
 0x286   :  { %v2007_v14 = vmul.f32 %v5787_v28, %v1947_v43  ;;  %v1938_v11 = vmul.f32 %v5789_v27, %v8188_v13  ;;  %5798 = vrsqrt.f32 %v1901_v34  ;;  %v2255_v63 = vsel %vm6240_vm1, %v8210_v7, -inf }
 0x287   :  { %v1863_v45 = vadd.f32 %v1862_v16, %v1861_v23  ;;  %v1960_v58 = vadd.f32 1.0, %v8230_v19  ;;  %v1876_v18 = vrot.slane %v1875_v41, 2  ;;  %v2121_v3 = vadd.f32 %v2120_v17, %v2119_v47  ;;  %v8268_v17 = vpop.xlane.xlu0 %1670 }
 0x288   :  { %v2168_v2 = vadd.f32 %v2167_v61, %v2166_v54  ;;  %v2173_v46 = vadd.f32 %v2172_v51, %v2171_v55  ;;  %v1961_v33 = vadd.f32 1.0, %v8234_v25  ;;  %v5791_v53 = vpop.eup %5790  ;;  %v11027_v28 = vsel %vm6240_vm1, %v8186_v20, -inf }
 0x289   :  { %v8258_v13 = vmax.f32 %v11027_v28, %v2256_v30  ;;  %v8260_v29 = vadd.f32 %v1857_v44, %v1856_v57  ;;  %v1870_v8 = vadd.f32 %v1869_v38, %v1868_v5  ;;  %v1814_v60 = vadd.f32 %v1813_v36, %v1812_v42 }
 0x28a   :  { %v5793_v23 = vpop.eup %5792  ;;  %v2078_v62 = vmul.f32 %v2038_v12, %v11005_v10  ;;  %v2079_v47 = vmul.f32 %v2039_v22, %v11004_v26  ;;  %v2040_v54 = vmul.f32 %v2007_v14, %v8091_v9  ;;  %v1998_v55 = vmul.f32 %v5791_v53, %v1938_v11  ;;  %v11028_v22 = vld [vmem:[#allocation27_spill] sm:$0xff] }
 0x28b   :  { %v2041_v59 = vmul.f32 %v2007_v14, %v8089_v24  ;;  %v1864_v35 = vrot.slane %v1863_v45, 1  ;;  %5800 = vrcp.f32 %v1960_v58  ;;  %v1877_v1 = vadd.f32 %v1876_v18, %v1875_v41  ;;  %v11031_v53 = vld [vmem:[#allocation55_spill] sm:$0xff] }
 0x28c   :  { %v8271_v57 = vadd.f32 %v2121_v3, %v10989_v52  ;;  %v2169_v5 = vrot.slane %v2168_v2, 1  ;;  %v2174_v43 = vrot.slane %v2173_v46, 2  ;;  %5802 = vrcp.f32 %v1961_v33  ;;  %v11030_v33 = vld [vmem:[#allocation56_spill] sm:$0xff] }
 0x28d   :  { %v1939_v34 = vmul.f32 %v5793_v23, %v8213_v37  ;;  %v1908_v9 = vadd.f32 1e-08, %v8260_v29  ;;  %v1871_v27 = vrot.slane %v1870_v8, 1  ;;  %v1815_v61 = vrot.slane %v1814_v60, 1 }
 0x28e   :  { %v5795_v24 = vpop.eup %5794  ;;  %v2022_v16 = vmul.f32 %v1998_v55, %v8103_v15  ;;  %v2023_v41 = vmul.f32 %v1998_v55, %v8097_v21  ;;  %v1733_v42 = vmul.f32 %v8266_v48, %v8266_v48  ;;  %v1732_v52 = vmul.f32 %v8268_v17, %v8268_v17  ;;  %v11029_v21 = vld [vmem:[#allocation20_spill] sm:$0xff] }
 0x28f   :  { %v5797_v51 = vpop.eup %5796  ;;  %v2178_v12 = vadd.f32 %v2079_v47, %v2078_v62  ;;  %v2080_v44 = vmul.f32 %v2040_v54, %v11028_v22  ;;  %v8282_v37 = vadd.f32 %v1864_v35, %v1863_v45  ;;  %v1878_v38 = vrot.slane %v1877_v1, 1 }
 0x290   :  { %v5799_v36 = vpop.eup %5798  ;;  %v2258_v15 = vsel %vm6240_vm1, %v8271_v57, -inf  ;;  %v2175_v30 = vadd.f32 %v2174_v43, %v2173_v46  ;;  %v2081_v14 = vmul.f32 %v2041_v59, %v11029_v21  ;;  %v1968_v11 = vadd.f32 1.0, %v8260_v29 }
 0x291   :  { %v1999_v58 = vmul.f32 %v5795_v24, %v1939_v34  ;;  %5804 = vrsqrt.f32 %v1908_v9  ;;  %v8289_v18 = vadd.f32 %v1871_v27, %v1870_v8  ;;  %v8291_v3 = vadd.f32 %v1815_v61, %v1814_v60  ;;  %v11032_v9 = vld [vmem:[#allocation63_spill] sm:$0xff]  ;;  %v8305_v61 = vpop.xlane.xlu1 %1708 }
 0x292   :  { %v2062_v45 = vmul.f32 %v2022_v16, %v11030_v33  ;;  %v2063_v28 = vmul.f32 %v2023_v41, %v11031_v53  ;;  %v1940_v23 = vmul.f32 %v5797_v51, %v8230_v19  ;;  %v1817_v62 = vadd.f32 %v1733_v42, %v1732_v52 }
 0x293   :  { %v1909_v47 = vadd.f32 1e-08, %v8282_v37  ;;  %v1941_v46 = vmul.f32 %v5799_v36, %v8234_v25  ;;  %v8298_v54 = vadd.f32 %v1878_v38, %v1877_v1  ;;  %v1902_v55 = vadd.f32 1e-08, %v8291_v3  ;;  %v8307_v25 = vpop.xlane.xlu0 %1706  ;;  %v11034_v36 = vld [vmem:[#allocation15_spill] sm:$0xff] }
 0x294   :  { %v2170_v59 = vadd.f32 %v2169_v5, %v2168_v2  ;;  %v2179_v8 = vrot.slane %v2178_v12, 4  ;;  %v2185_v35 = vadd.f32 %v2081_v14, %v2080_v44  ;;  %v1962_v60 = vadd.f32 1.0, %v8291_v3  ;;  %v11033_v44 = vld [vmem:[#allocation21_spill] sm:$0xff] }
 0x295   :  { %v5801_v43 = vpop.eup %5800  ;;  %v2024_v34 = vmul.f32 %v1999_v58, %v8111_v31  ;;  %v2025_v27 = vmul.f32 %v1999_v58, %v11032_v9  ;;  %5806 = vrcp.f32 %v1968_v11  ;;  %v1910_v19 = vadd.f32 1e-08, %v8289_v18 }
 0x296   :  { %v5803_v1 = vpop.eup %5802  ;;  %v2176_v24 = vrot.slane %v2175_v30, 1  ;;  %v2000_v16 = vmul.f32 %v5801_v43, %v1940_v23  ;;  %5808 = vrsqrt.f32 %v1902_v55  ;;  %v1818_v2 = vrot.slane %v1817_v62, 4 }
 0x297   :  { %v2122_v5 = vadd.f32 %v2063_v28, %v2062_v45  ;;  %5810 = vrsqrt.f32 %v1909_v47  ;;  %v2001_v41 = vmul.f32 %v5803_v1, %v1941_v46  ;;  %v1911_v42 = vadd.f32 1e-08, %v8298_v54  ;;  %v11036_v1 = vld [vmem:[#allocation23_spill] sm:$0xff] }
 0x298   :  { %5812 = vrcp.f32 %v1962_v60  ;;  %v1819_v31 = vadd.f32 %v1818_v2, %v1817_v62  ;;  %v1751_v52 = vmul.f32 %v8305_v61, %v8305_v61  ;;  %v1750_v51 = vmul.f32 %v8307_v25, %v8307_v25 }
 0x299   :  { %v2064_v38 = vmul.f32 %v2024_v34, %v11033_v44  ;;  %v2065_v14 = vmul.f32 %v2025_v27, %v11034_v36  ;;  %v1969_v11 = vadd.f32 1.0, %v8282_v37  ;;  %5814 = vrsqrt.f32 %v1910_v19  ;;  %v11046_v36 = vld [vmem:[#allocation30_spill] sm:$0xff] }
 0x29a   :  { %v8317_v58 = vadd.f32 %v2179_v8, %v2178_v12  ;;  %v2026_v45 = vmul.f32 %v2000_v16, %v8148_v32  ;;  %v2027_v28 = vmul.f32 %v2000_v16, %v8144_v6  ;;  %v1820_v23 = vrot.slane %v1819_v31, 2  ;;  %v11035_v8 = vld [vmem:[#allocation25_spill] sm:$0xff] }
 0x29b   :  { %v5805_v62 = vpop.eup %5804  ;;  %v2186_v47 = vrot.slane %v2185_v35, 4  ;;  %v2028_v46 = vmul.f32 %v2001_v41, %v8161_v50  ;;  %v2029_v55 = vmul.f32 %v2001_v41, %v8157_v49  ;;  %5816 = vrsqrt.f32 %v1911_v42  ;;  %v11039_v42 = vld [vmem:[#allocation28_spill] sm:$0xff] }
 0x29c   :  { %v2177_v60 = vadd.f32 %v2176_v24, %v2175_v30  ;;  %v1970_v43 = vadd.f32 1.0, %v8289_v18  ;;  %v1821_v34 = vadd.f32 %v1820_v23, %v1819_v31  ;;  %v1880_v9 = vadd.f32 %v1751_v52, %v1750_v51  ;;  %v11037_v30 = vld [vmem:[#allocation54_spill] sm:$0xff] }
 0x29d   :  { %v2123_v27 = vrot.slane %v2122_v5, 4  ;;  %v2129_v12 = vadd.f32 %v2065_v14, %v2064_v38  ;;  %5818 = vrcp.f32 %v1969_v11  ;;  %v1971_v32 = vadd.f32 1.0, %v8298_v54 }
 0x29e   :  { %v1948_v6 = vmul.f32 %v5805_v62, %v8260_v29  ;;  %v2066_v19 = vmul.f32 %v2026_v45, %v11035_v8  ;;  %v2067_v16 = vmul.f32 %v2027_v28, %v11036_v1  ;;  %v1822_v50 = vrot.slane %v1821_v34, 1  ;;  %v11038_v29 = vld [vmem:[#allocation29_spill] sm:$0xff]  ;;  %v8351_v28 = vpop.xlane.xlu0 %1710  ;;  %v11040_v62 = vld [vmem:[#allocation24_spill] sm:$0xff] }
 0x29f   :  { %v5807_v2 = vpop.eup %5806  ;;  %v8336_v49 = vmax.f32 %v2255_v63, %v2258_v15  ;;  %v8339_v24 = vadd.f32 %v2170_v59, %v11037_v30  ;;  %v2068_v41 = vmul.f32 %v2028_v46, %v11038_v29  ;;  %v2069_v31 = vmul.f32 %v2029_v55, %v11039_v42  ;;  %v8349_v59 = vpop.xlane.xlu1 %1712 }
 0x2a0   :  { %v5809_v52 = vpop.eup %5808  ;;  %v8344_v38 = vadd.f32 %v2186_v47, %v2185_v35  ;;  %5820 = vrcp.f32 %v1970_v43  ;;  %v1881_v14 = vrot.slane %v1880_v9, 4  ;;  %v2130_v45 = vrot.slane %v2129_v12, 4 }
 0x2a1   :  { %v5811_v11 = vpop.eup %5810  ;;  %5822 = vrcp.f32 %v1971_v32  ;;  %v1942_v63 = vmul.f32 %v5809_v52, %v8291_v3  ;;  %v8347_v15 = vadd.f32 %v1822_v50, %v1821_v34  ;;  %v8354_v46 = vadd.f32 %v2177_v60, %v11040_v62 }
 0x2a2   :  { %v5813_v23 = vpop.eup %5812  ;;  %v2124_v55 = vadd.f32 %v2123_v27, %v2122_v5  ;;  %v2008_v35 = vmul.f32 %v5807_v2, %v1948_v6  ;;  %v2136_v47 = vadd.f32 %v2067_v16, %v2066_v19  ;;  %v2143_v30 = vadd.f32 %v2069_v31, %v2068_v41  ;;  %v11042_v31 = vld [vmem:[#allocation37_spill] sm:$0xff] }
 0x2a3   :  { %11041 = vst [vmem:[#allocation56_spill] sm:$0xff] %v8354_v46  ;;  %v5815_v43 = vpop.eup %5814  ;;  %v2002_v51 = vmul.f32 %v5813_v23, %v1942_v63  ;;  %v1903_v32 = vadd.f32 1e-08, %v8347_v15  ;;  %v1963_v3 = vadd.f32 1.0, %v8347_v15  ;;  %v1949_v34 = vmul.f32 %v5811_v11, %v8282_v37  ;;  %v11043_v11 = vld [vmem:[#allocation36_spill] sm:$0xff]  ;;  %v11044_v23 = vld [vmem:[#allocation65_spill] sm:$0xff] }
 0x2a4   :  { %v1882_v50 = vadd.f32 %v1881_v14, %v1880_v9  ;;  %v1753_v52 = vmul.f32 %v8349_v59, %v8349_v59  ;;  %v1752_v60 = vmul.f32 %v8351_v28, %v8351_v28  ;;  %v2131_v5 = vadd.f32 %v2130_v45, %v2129_v12 }
 0x2a5   :  { %v5817_v62 = vpop.eup %5816  ;;  %v2030_v27 = vmul.f32 %v2002_v51, %v8221_v40  ;;  %v2031_v6 = vmul.f32 %v2002_v51, %v8215_v0  ;;  %5824 = vrsqrt.f32 %v1903_v32  ;;  %v2125_v19 = vrot.slane %v2124_v55, 2  ;;  %v11045_v51 = vld [vmem:[#allocation64_spill] sm:$0xff] }
 0x2a6   :  { %v2137_v16 = vrot.slane %v2136_v47, 4  ;;  %v1950_v2 = vmul.f32 %v5815_v43, %v8289_v18  ;;  %v1883_v41 = vrot.slane %v1882_v50, 2  ;;  %v2144_v9 = vrot.slane %v2143_v30, 4 }
 0x2a7   :  { %v5819_v37 = vpop.eup %5818  ;;  %v2070_v14 = vmul.f32 %v2030_v27, %v11042_v31  ;;  %v2071_v63 = vmul.f32 %v2031_v6, %v11043_v11  ;;  %5826 = vrcp.f32 %v1963_v3  ;;  %v2042_v29 = vmul.f32 %v2008_v35, %v11044_v23 }
 0x2a8   :  { %v1951_v12 = vmul.f32 %v5817_v62, %v8298_v54  ;;  %v1884_v40 = vadd.f32 %v1883_v41, %v1882_v50  ;;  %v1887_v45 = vadd.f32 %v1753_v52, %v1752_v60  ;;  %v2132_v0 = vrot.slane %v2131_v5, 2 }
 0x2a9   :  { %v2043_v32 = vmul.f32 %v2008_v35, %v11045_v51  ;;  %v2009_v42 = vmul.f32 %v5819_v37, %v1949_v34  ;;  %v2150_v8 = vadd.f32 %v2071_v63, %v2070_v14  ;;  %v2138_v1 = vadd.f32 %v2137_v16, %v2136_v47  ;;  %v11047_v34 = vld [vmem:[#allocation22_spill] sm:$0xff] }
 0x2aa   :  { %v5821_v18 = vpop.eup %5820  ;;  %v1885_v44 = vrot.slane %v1884_v40, 1  ;;  %v1888_v27 = vrot.slane %v1887_v45, 4  ;;  %v2126_v6 = vadd.f32 %v2125_v19, %v2124_v55  ;;  %v2145_v3 = vadd.f32 %v2144_v9, %v2143_v30  ;;  %v11048_v37 = vld [vmem:[#allocation66_spill] sm:$0xff] }
 0x2ab   :  { %v5823_v31 = vpop.eup %5822  ;;  %v2010_v11 = vmul.f32 %v5821_v18, %v1950_v2  ;;  %v2151_v23 = vrot.slane %v2150_v8, 4  ;;  %v2082_v54 = vmul.f32 %v2042_v29, %v11046_v36  ;;  %v2133_v35 = vadd.f32 %v2132_v0, %v2131_v5  ;;  %v11049_v29 = vld [vmem:[#allocation68_spill] sm:$0xff]  ;;  %v11051_v5 = vld [vmem:[#allocation70_spill] sm:$0xff]  ;;  %v11053_v0 = vld [vmem:[#allocation31_spill] sm:$0xff] }
 0x2ac   :  { %v2011_v50 = vmul.f32 %v5823_v31, %v1951_v12  ;;  %v8373_v52 = vadd.f32 %v1885_v44, %v1884_v40  ;;  %v1889_v60 = vadd.f32 %v1888_v27, %v1887_v45  ;;  %v2083_v62 = vmul.f32 %v2043_v32, %v11047_v34  ;;  %v11050_v44 = vld [vmem:[#allocation67_spill] sm:$0xff]  ;;  %v11052_v40 = vld [vmem:[#allocation69_spill] sm:$0xff]  ;;  %v11054_v32 = vld [vmem:[#allocation26_spill] sm:$0xff] }
 0x2ad   :  { %v2044_v41 = vmul.f32 %v2009_v42, %v8139_v4  ;;  %v2045_v47 = vmul.f32 %v2009_v42, %v11048_v37  ;;  %v2139_v16 = vrot.slane %v2138_v1, 2  ;;  %v2152_v14 = vadd.f32 %v2151_v23, %v2150_v8 }
 0x2ae   :  { %v1912_v55 = vadd.f32 1e-08, %v8373_v52  ;;  %v1972_v30 = vadd.f32 1.0, %v8373_v52  ;;  %v2146_v2 = vrot.slane %v2145_v3, 2  ;;  %v2046_v9 = vmul.f32 %v2010_v11, %v11049_v29 }
 0x2af   :  { %v5825_v19 = vpop.eup %5824  ;;  %v2047_v31 = vmul.f32 %v2010_v11, %v11050_v44  ;;  %v1890_v63 = vrot.slane %v1889_v60, 2  ;;  %v2048_v12 = vmul.f32 %v2011_v50, %v11051_v5  ;;  %v2049_v45 = vmul.f32 %v2011_v50, %v11052_v40  ;;  %v11055_v44 = vld [vmem:[#allocation32_spill] sm:$0xff]  ;;  %v11056_v5 = vld [vmem:[#allocation10_spill] sm:$0xff]  ;;  %v11057_v40 = vld [vmem:[#allocation33_spill] sm:$0xff] }
 0x2b0   :  { %v1943_v4 = vmul.f32 %v5825_v19, %v8347_v15  ;;  %5828 = vrsqrt.f32 %v1912_v55  ;;  %v2192_v8 = vadd.f32 %v2083_v62, %v2082_v54  ;;  %v2084_v51 = vmul.f32 %v2044_v41, %v11053_v0  ;;  %v11058_v55 = vld [vmem:[#allocation34_spill] sm:$0xff] }
 0x2b1   :  { %v5827_v42 = vpop.eup %5826  ;;  %v2085_v18 = vmul.f32 %v2045_v47, %v11054_v32  ;;  %v1891_v27 = vadd.f32 %v1890_v63, %v1889_v60  ;;  %v2140_v23 = vadd.f32 %v2139_v16, %v2138_v1  ;;  %v2153_v37 = vrot.slane %v2152_v14, 2 }
 0x2b2   :  { %v2003_v29 = vmul.f32 %v5827_v42, %v1943_v4  ;;  %5830 = vrcp.f32 %v1972_v30  ;;  %v2147_v11 = vadd.f32 %v2146_v2, %v2145_v3  ;;  %v2086_v43 = vmul.f32 %v2046_v9, %v11055_v44  ;;  %v11059_v30 = vld [vmem:[#allocation35_spill] sm:$0xff] }
 0x2b3   :  { %v2087_v36 = vmul.f32 %v2047_v31, %v11056_v5  ;;  %v1892_v50 = vrot.slane %v1891_v27, 1  ;;  %v2088_v15 = vmul.f32 %v2048_v12, %v11057_v40  ;;  %v2089_v19 = vmul.f32 %v2049_v45, %v11058_v55  ;;  %v11060_v9 = vld [vmem:[#allocation11_spill] sm:$0xff] }
 0x2b4   :  { %v2032_v54 = vmul.f32 %v2003_v29, %v8268_v17  ;;  %v2033_v62 = vmul.f32 %v2003_v29, %v8266_v48  ;;  %v2127_v41 = vrot.slane %v2126_v6, 1  ;;  %v2134_v60 = vrot.slane %v2133_v35, 1 }
 0x2b5   :  { %v2199_v1 = vadd.f32 %v2085_v18, %v2084_v51  ;;  %v8393_v47 = vadd.f32 %v1892_v50, %v1891_v27  ;;  %v2193_v16 = vrot.slane %v2192_v8, 4  ;;  %v2154_v3 = vadd.f32 %v2153_v37, %v2152_v14 }
 0x2b6   :  { %v2072_v2 = vmul.f32 %v2032_v54, %v11059_v30  ;;  %v2073_v31 = vmul.f32 %v2033_v62, %v11060_v9  ;;  %v2141_v63 = vrot.slane %v2140_v23, 1  ;;  %v2206_v4 = vadd.f32 %v2087_v36, %v2086_v43 }
 0x2b7   :  { %v1913_v12 = vadd.f32 1e-08, %v8393_v47  ;;  %v1973_v45 = vadd.f32 1.0, %v8393_v47  ;;  %v11061_v48 = vrot.slane %v8317_v58, 2  ;;  %v2148_v42 = vrot.slane %v2147_v11, 1 }
 0x2b8   :  { %v2213_v51 = vadd.f32 %v2089_v19, %v2088_v15  ;;  %v2157_v18 = vadd.f32 %v2073_v31, %v2072_v2  ;;  %v11062_v14 = vrot.slane %v8344_v38, 2  ;;  %v2128_v37 = vadd.f32 %v2127_v41, %v2126_v6 }
 0x2b9   :  { %v2182_v17 = vadd.f32 %v11061_v48, %v8317_v58  ;;  %v2200_v29 = vrot.slane %v2199_v1, 4  ;;  %5832 = vrsqrt.f32 %v1913_v12  ;;  %v2135_v36 = vadd.f32 %v2134_v60, %v2133_v35  ;;  %v11065_v35 = vld [vmem:[#allocation43_spill] sm:$0xff] }
 0x2ba   :  { %v2189_v27 = vadd.f32 %v11062_v14, %v8344_v38  ;;  %v5829_v50 = vpop.eup %5828  ;;  %v2194_v43 = vadd.f32 %v2193_v16, %v2192_v8  ;;  %v2155_v54 = vrot.slane %v2154_v3, 1  ;;  %v2158_v62 = vrot.slane %v2157_v18, 4  ;;  %v11063_v38 = vld [vmem:[#allocation48_spill] sm:$0xff] }
 0x2bb   :  { %v2142_v30 = vadd.f32 %v2141_v63, %v2140_v23  ;;  %v2207_v9 = vrot.slane %v2206_v4, 4  ;;  %v1952_v40 = vmul.f32 %v5829_v50, %v8373_v52  ;;  %5834 = vrcp.f32 %v1973_v45  ;;  %v11067_v63 = vld [vmem:[#allocation45_spill] sm:$0xff]  ;;  %v11069_v14 = vld [vmem:[#allocation44_spill] sm:$0xff] }
 0x2bc   :  { %v5831_v58 = vpop.eup %5830  ;;  %v2183_v15 = vrot.slane %v2182_v17, 1  ;;  %v2149_v19 = vadd.f32 %v2148_v42, %v2147_v11  ;;  %v2214_v2 = vrot.slane %v2213_v51, 4  ;;  %v2159_v31 = vadd.f32 %v2158_v62, %v2157_v18  ;;  %v11071_v50 = vld [vmem:[#allocation13_spill] sm:$0xff] }
 0x2bd   :  { %v2190_v48 = vrot.slane %v2189_v27, 1  ;;  %v8407_v6 = vadd.f32 %v2128_v37, %v11063_v38  ;;  %v2201_v41 = vadd.f32 %v2200_v29, %v2199_v1  ;;  %v2012_v12 = vmul.f32 %v5831_v58, %v1952_v40 }
 0x2be   :  { %v8410_v8 = vadd.f32 %v2135_v36, %v11065_v35  ;;  %v2195_v60 = vrot.slane %v2194_v43, 2  ;;  %v2156_v23 = vadd.f32 %v2155_v54, %v2154_v3  ;;  %v2160_v16 = vrot.slane %v2159_v31, 2 }
 0x2bf   :  { %11064 = vst [vmem:[#allocation55_spill] sm:$0xff] %v8407_v6  ;;  %v8413_v52 = vadd.f32 %v2142_v30, %v11067_v63  ;;  %v2208_v45 = vadd.f32 %v2207_v9, %v2206_v4  ;;  %v2050_v11 = vmul.f32 %v2012_v12, %v8307_v25  ;;  %v2051_v42 = vmul.f32 %v2012_v12, %v8305_v61  ;;  %v11072_v30 = vld [vmem:[#allocation39_spill] sm:$0xff]  ;;  %v11073_v9 = vld [vmem:[#allocation58_spill] sm:$0xff] }
 0x2c0   :  { %11066 = vst [vmem:[#allocation63_spill] sm:$0xff] %v8410_v8  ;;  %v2184_v18 = vadd.f32 %v2183_v15, %v2182_v17  ;;  %v8418_v37 = vadd.f32 %v2149_v19, %v11069_v14  ;;  %v2215_v1 = vadd.f32 %v2214_v2, %v2213_v51  ;;  %v2161_v40 = vadd.f32 %v2160_v16, %v2159_v31  ;;  %v11075_v63 = vld [vmem:[#allocation59_spill] sm:$0xff] }
 0x2c1   :  { %11068 = vst [vmem:[#allocation54_spill] sm:$0xff] %v8413_v52  ;;  %v2260_v29 = vsel %vm6240_vm1, %v8407_v6, -inf  ;;  %v2202_v3 = vrot.slane %v2201_v41, 2  ;;  %v2090_v36 = vmul.f32 %v2050_v11, %v11071_v50  ;;  %v2091_v54 = vmul.f32 %v2051_v42, %v11072_v30 }
 0x2c2   :  { %11070 = vst [vmem:[#allocation24_spill] sm:$0xff] %v8418_v37  ;;  %v2262_v25 = vsel %vm6240_vm1, %v8410_v8, -inf  ;;  %v2196_v61 = vadd.f32 %v2195_v60, %v2194_v43  ;;  %v8429_v4 = vadd.f32 %v2156_v23, %v11073_v9  ;;  %v2162_v17 = vrot.slane %v2161_v40, 1 }
 0x2c3   :  { %v5833_v51 = vpop.eup %5832  ;;  %v2191_v62 = vadd.f32 %v2190_v48, %v2189_v27  ;;  %v2264_v58 = vsel %vm6240_vm1, %v8413_v52, -inf  ;;  %v2209_v15 = vrot.slane %v2208_v45, 2  ;;  %v2220_v19 = vadd.f32 %v2091_v54, %v2090_v36 }
 0x2c4   :  { %11074 = vst [vmem:[#allocation65_spill] sm:$0xff] %v8429_v4  ;;  %v2266_v2 = vsel %vm6240_vm1, %v8418_v37, -inf  ;;  %v2216_v31 = vrot.slane %v2215_v1, 2  ;;  %v2163_v38 = vadd.f32 %v2162_v17, %v2161_v40  ;;  %v1953_v43 = vmul.f32 %v5833_v51, %v8393_v47  ;;  %v11077_v17 = vld [vmem:[#allocation17_spill] sm:$0xff] }
 0x2c5   :  { %v5835_v12 = vpop.eup %5834  ;;  %v2261_v35 = vmax.f32 %v8258_v13, %v2260_v29  ;;  %v2263_v60 = vmax.f32 %v8336_v49, %v2262_v25  ;;  %v2203_v27 = vadd.f32 %v2202_v3, %v2201_v41  ;;  %v2221_v48 = vrot.slane %v2220_v19, 4 }
 0x2c6   :  { %v2197_v23 = vrot.slane %v2196_v61, 1  ;;  %v2268_v16 = vsel %vm6240_vm1, %v8429_v4, -inf  ;;  %v8444_v11 = vadd.f32 %v2163_v38, %v11075_v63  ;;  %v2013_v42 = vmul.f32 %v5835_v12, %v1953_v43 }
 0x2c7   :  { %v2265_v14 = vmax.f32 %v2261_v35, %v2264_v58  ;;  %v2267_v40 = vmax.f32 %v2263_v60, %v2266_v2  ;;  %v2210_v36 = vadd.f32 %v2209_v15, %v2208_v45  ;;  %v2222_v47 = vadd.f32 %v2221_v48, %v2220_v19  ;;  %v11079_v58 = vld [vmem:[#allocation38_spill] sm:$0xff]  ;;  %v11080_v45 = vld [vmem:[#allocation40_spill] sm:$0xff] }
 0x2c8   :  { %11076 = vst [vmem:[#allocation64_spill] sm:$0xff] %v8444_v11  ;;  %v2217_v54 = vadd.f32 %v2216_v31, %v2215_v1  ;;  %v2270_v13 = vsel %vm6240_vm1, %v8444_v11, -inf  ;;  %v2052_v49 = vmul.f32 %v2013_v42, %v8351_v28  ;;  %v2053_v41 = vmul.f32 %v2013_v42, %v8349_v59  ;;  %v11081_v1 = vld [vmem:[#allocation5_spill] sm:$0xff] }
 0x2c9   :  { %v2204_v29 = vrot.slane %v2203_v27, 1  ;;  %v2269_v3 = vmax.f32 %v2265_v14, %v2268_v16  ;;  %v2271_v25 = vmax.f32 %v2267_v40, %v2270_v13  ;;  %v2223_v9 = vrot.slane %v2222_v47, 2 }
 0x2ca   :  { %v8452_v51 = vadd.f32 %v2184_v18, %v11077_v17  ;;  %v2092_v2 = vmul.f32 %v2052_v49, %v11079_v58  ;;  %v2093_v15 = vmul.f32 %v2053_v41, %v11080_v45  ;;  %v8457_v19 = vadd.f32 %v2191_v62, %v11081_v1 }
 0x2cb   :  { %v2211_v31 = vrot.slane %v2210_v36, 1  ;;  %v8459_v38 = vmax.f32 %v2269_v3, %v2271_v25  ;;  %v2224_v28 = vadd.f32 %v2223_v9, %v2222_v47  ;;  %v2273_v59 = vsel %vm6240_vm1, %v8339_v24, -inf  ;;  %v11085_v25 = vld [vmem:[#allocation60_spill] sm:$0xff] }
 0x2cc   :  { %11078 = vst [vmem:[#allocation66_spill] sm:$0xff] %v8452_v51  ;;  %11082 = vst [vmem:[#allocation68_spill] sm:$0xff] %v8457_v19  ;;  %v2274_v18 = vsel %vm6240_vm1, %v8354_v46, -inf  ;;  %v2218_v43 = vrot.slane %v2217_v54, 1  ;;  %v2227_v12 = vadd.f32 %v2093_v15, %v2092_v2  ;;  %v2198_v35 = vadd.f32 %v2197_v23, %v2196_v61 }
 0x2cd   :  { %v2205_v60 = vadd.f32 %v2204_v29, %v2203_v27  ;;  %v2292_v62 = vsub.f32 %v8186_v20, %v8459_v38  ;;  %v2293_v48 = vsub.f32 %v8210_v7, %v8459_v38  ;;  %v2225_v16 = vrot.slane %v2224_v28, 1  ;;  %v11083_v29 = vld [vmem:[#allocation57_spill] sm:$0xff] }
 0x2ce   :  { %v2228_v63 = vrot.slane %v2227_v12, 4  ;;  %v2294_v42 = vsub.f32 %v8239_v56, %v8459_v38  ;;  %v2295_v14 = vsub.f32 %v8271_v57, %v8459_v38  ;;  %v2275_v40 = vsel %vm6240_vm1, %v8452_v51, -inf }
 0x2cf   :  { %v2277_v61 = vsel %vm6240_vm1, %v8457_v19, -inf  ;;  %v2212_v27 = vadd.f32 %v2211_v31, %v2210_v36  ;;  %v2296_v23 = vsub.f32 %v8407_v6, %v8459_v38  ;;  %v2219_v47 = vadd.f32 %v2218_v43, %v2217_v54  ;;  %v11087_v31 = vld [vmem:[#allocation61_spill] sm:$0xff] }
 0x2d0   :  { %v2229_v13 = vadd.f32 %v2228_v63, %v2227_v12  ;;  %v2297_v49 = vsub.f32 %v8410_v8, %v8459_v38  ;;  %v2312_v41 = vmul.f32 1.442695, %v2292_v62  ;;  %v8486_v3 = vadd.f32 %v2198_v35, %v11083_v29  ;;  %v11089_v12 = vld [vmem:[#allocation62_spill] sm:$0xff] }
 0x2d1   :  { %v8489_v9 = vadd.f32 %v2205_v60, %v11085_v25  ;;  %v2314_v17 = vmul.f32 1.442695, %v2293_v48  ;;  %v2316_v2 = vmul.f32 1.442695, %v2294_v42  ;;  %v2226_v15 = vadd.f32 %v2225_v16, %v2224_v28 }
 0x2d2   :  { %11084 = vst [vmem:[#allocation67_spill] sm:$0xff] %v8486_v3  ;;  %v2230_v1 = vrot.slane %v2229_v13, 2  ;;  %5836 = vpow2.f32 %v2312_v41  ;;  %v2318_v36 = vmul.f32 1.442695, %v2295_v14  ;;  %v8492_v6 = vadd.f32 %v2212_v27, %v11087_v31  ;;  %v11091_v14 = vld [vmem:[#allocation14_spill] sm:$0xff] }
 0x2d3   :  { %11086 = vst [vmem:[#allocation70_spill] sm:$0xff] %v8489_v9  ;;  %v2298_v54 = vsub.f32 %v8413_v52, %v8459_v38  ;;  %5838 = vpow2.f32 %v2314_v17  ;;  %v2320_v43 = vmul.f32 1.442695, %v2296_v23  ;;  %v8497_v35 = vadd.f32 %v2219_v47, %v11089_v12  ;;  %v11093_v17 = vld [vmem:[#allocation53_spill] sm:$0xff]  ;;  %v11107_v52 = vld [vmem:[#allocation16_spill] sm:$0xff] }
 0x2d4   :  { %11088 = vst [vmem:[#allocation69_spill] sm:$0xff] %v8492_v6  ;;  %v2231_v62 = vadd.f32 %v2230_v1, %v2229_v13  ;;  %5840 = vpow2.f32 %v2316_v2  ;;  %v2322_v60 = vmul.f32 1.442695, %v2297_v49  ;;  %v2276_v48 = vmax.f32 %v2273_v59, %v2275_v40 }
 0x2d5   :  { %11090 = vst [vmem:[#allocation48_spill] sm:$0xff] %v8497_v35  ;;  %v2278_v63 = vmax.f32 %v2274_v18, %v2277_v61  ;;  %v2299_v28 = vsub.f32 %v8418_v37, %v8459_v38  ;;  %5842 = vpow2.f32 %v2318_v36  ;;  %v2279_v16 = vsel %vm6240_vm1, %v8486_v3, -inf }
 0x2d6   :  { %v2281_v42 = vsel %vm6240_vm1, %v8489_v9, -inf  ;;  %v8508_v27 = vadd.f32 %v2226_v15, %v11091_v14  ;;  %v2232_v23 = vrot.slane %v2231_v62, 1  ;;  %v2283_v59 = vsel %vm6240_vm1, %v8492_v6, -inf }
 0x2d7   :  { %v2300_v18 = vsub.f32 %v8429_v4, %v8459_v38  ;;  %5844 = vpow2.f32 %v2320_v43  ;;  %v2324_v40 = vmul.f32 1.442695, %v2298_v54  ;;  %v2285_v61 = vsel %vm6240_vm1, %v8497_v35, -inf  ;;  %v11103_v4 = vld [vmem:[#allocation52_spill] sm:$0xff] }
 0x2d8   :  { %11092 = vst [vmem:[#allocation43_spill] sm:$0xff] %v8508_v27  ;;  %v2301_v47 = vsub.f32 %v8444_v11, %v8459_v38  ;;  %v2233_v13 = vadd.f32 %v2232_v23, %v2231_v62  ;;  %5846 = vpow2.f32 %v2322_v60  ;;  %v2280_v49 = vmax.f32 %v2276_v48, %v2279_v16 }
 0x2d9   :  { %v2282_v41 = vmax.f32 %v2278_v63, %v2281_v42  ;;  %v2326_v29 = vmul.f32 1.442695, %v2299_v28  ;;  %v2287_v25 = vsel %vm6240_vm1, %v8508_v27, -inf  ;;  %5848 = vpow2.f32 %v2324_v40 }
 0x2da   :  { %v8524_v2 = vadd.f32 %v2233_v13, %v11093_v17  ;;  %v2284_v15 = vmax.f32 %v2280_v49, %v2283_v59  ;;  %v2328_v36 = vmul.f32 1.442695, %v2300_v18  ;;  %v2330_v54 = vmul.f32 1.442695, %v2301_v47 }
 0x2db   :  { %v2286_v1 = vmax.f32 %v2282_v41, %v2285_v61  ;;  %5850 = vpow2.f32 %v2326_v29 }
 0x2dc   :  { %11094 = vst [vmem:[#allocation45_spill] sm:$0xff] %v8524_v2  ;;  %v8526_v31 = vpop.eup %5836  ;;  %v2289_v38 = vsel %vm6240_vm1, %v8524_v2, -inf  ;;  %v2288_v12 = vmax.f32 %v2284_v15, %v2287_v25  ;;  %5852 = vpow2.f32 %v2328_v36 }
 0x2dd   :  { %v8531_v43 = vpop.eup %5838  ;;  %v2290_v62 = vmax.f32 %v2286_v1, %v2289_v38  ;;  %v2352_v60 = vsel %vm57_vm0, %v8526_v31, 0.0  ;;  %5854 = vpow2.f32 %v2330_v54 }
 0x2de   :  { %v8535_v48 = vpop.eup %5840  ;;  %v2353_v63 = vsel %vm57_vm0, %v8531_v43, 0.0 }
 0x2df   :  { %v8539_v28 = vpop.eup %5842  ;;  %v2291_v16 = vmax.f32 %v2288_v12, %v2290_v62  ;;  %v2354_v42 = vadd.f32 %v2353_v63, %v2352_v60  ;;  %v2355_v14 = vsel %vm57_vm0, %v8535_v48, 0.0 }
 0x2e0   :  { %v2357_v40 = vsel %vm57_vm0, %v8539_v28, 0.0 }
 0x2e1   :  { %v8543_v23 = vpop.eup %5844  ;;  %v2356_v59 = vadd.f32 %v2355_v14, %v2354_v42  ;;  %v2302_v61 = vsub.f32 %v8339_v24, %v2291_v16  ;;  %v2303_v47 = vsub.f32 %v8354_v46, %v2291_v16  ;;  %v2304_v13 = vsub.f32 %v8452_v51, %v2291_v16 }
 0x2e2   :  { %v8545_v18 = vpop.eup %5846  ;;  %v2305_v41 = vsub.f32 %v8457_v19, %v2291_v16  ;;  %v2359_v29 = vsel %vm57_vm0, %v8543_v23, 0.0  ;;  %v2306_v1 = vsub.f32 %v8486_v3, %v2291_v16  ;;  %v2307_v60 = vsub.f32 %v8489_v9, %v2291_v16  ;;  %v11098_v19 = vld [vmem:[#allocation46_spill] sm:$0xff] }
 0x2e3   :  { %v2358_v49 = vadd.f32 %v2357_v40, %v2356_v59  ;;  %v8555_v25 = vpop.eup %5848  ;;  %v2361_v15 = vsel %vm57_vm0, %v8545_v18, 0.0  ;;  %v2332_v36 = vmul.f32 1.442695, %v2302_v61  ;;  %v2334_v54 = vmul.f32 1.442695, %v2303_v47 }
 0x2e4   :  { %v2336_v38 = vmul.f32 1.442695, %v2304_v13  ;;  %v2338_v63 = vmul.f32 1.442695, %v2305_v41  ;;  %v2363_v42 = vsel %vm57_vm0, %v8555_v25, 0.0  ;;  %v2308_v14 = vsub.f32 %v8492_v6, %v2291_v16 }
 0x2e5   :  { %v2360_v17 = vadd.f32 %v2359_v29, %v2358_v49  ;;  %v8560_v12 = vpop.eup %5850  ;;  %5856 = vpow2.f32 %v2332_v36  ;;  %v2340_v49 = vmul.f32 1.442695, %v2306_v1  ;;  %v2342_v41 = vmul.f32 1.442695, %v2307_v60 }
 0x2e6   :  { %v8566_v59 = vpop.eup %5852  ;;  %5858 = vpow2.f32 %v2334_v54  ;;  %v2365_v61 = vsel %vm57_vm0, %v8560_v12, 0.0 }
 0x2e7   :  { %v2362_v62 = vadd.f32 %v2361_v15, %v2360_v17  ;;  %5860 = vpow2.f32 %v2336_v38  ;;  %v8570_v47 = vpop.eup %5854  ;;  %v2367_v29 = vsel %vm57_vm0, %v8566_v59, 0.0  ;;  %v2309_v17 = vsub.f32 %v8497_v35, %v2291_v16  ;;  %v11096_v35 = vld [vmem:[#allocation47_spill] sm:$0xff] }
 0x2e8   :  { %5862 = vpow2.f32 %v2338_v63  ;;  %v2344_v15 = vmul.f32 1.442695, %v2308_v14  ;;  %v2369_v1 = vsel %vm57_vm0, %v8570_v47, 0.0  ;;  %v2311_v38 = vsub.f32 %v8524_v2, %v2291_v16 }
 0x2e9   :  { %v2364_v40 = vadd.f32 %v2363_v42, %v2362_v62  ;;  %v2310_v62 = vsub.f32 %v8508_v27, %v2291_v16  ;;  %5864 = vpow2.f32 %v2340_v49  ;;  %v2346_v63 = vmul.f32 1.442695, %v2309_v17 }
 0x2ea   :  { %5866 = vpow2.f32 %v2342_v41  ;;  %v2350_v49 = vmul.f32 1.442695, %v2311_v38 }
 0x2eb   :  { %v2366_v13 = vadd.f32 %v2365_v61, %v2364_v40  ;;  %5868 = vpow2.f32 %v2344_v15  ;;  %v2348_v60 = vmul.f32 1.442695, %v2310_v62 }
 0x2ed   :  { %v2368_v36 = vadd.f32 %v2367_v29, %v2366_v13 }
 0x2ef   :  { %v2370_v54 = vadd.f32 %v2369_v1, %v2368_v36  ;;  %v8579_v42 = vpop.eup %5856 }
 0x2f0   :  { %v8581_v40 = vpop.eup %5858  ;;  %v2371_v14 = vsel %vm57_vm0, %v8579_v42, 0.0 }
 0x2f1   :  { %5870 = vrcp.f32 %v2370_v54  ;;  %v8585_v61 = vpop.eup %5860  ;;  %v2372_v13 = vsel %vm57_vm0, %v8581_v40, 0.0 }
 0x2f2   :  { %5872 = vpow2.f32 %v2346_v63  ;;  %v8589_v41 = vpop.eup %5862  ;;  %v2373_v16 = vadd.f32 %v2372_v13, %v2371_v14  ;;  %v2374_v29 = vsel %vm57_vm0, %v8585_v61, 0.0 }
 0x2f3   :  { %5874 = vpow2.f32 %v2348_v60  ;;  %v8593_v17 = vpop.eup %5864  ;;  %v2376_v36 = vsel %vm57_vm0, %v8589_v41, 0.0 }
 0x2f4   :  { %v2375_v15 = vadd.f32 %v2374_v29, %v2373_v16  ;;  %5876 = vpow2.f32 %v2350_v49  ;;  %v8597_v62 = vpop.eup %5866  ;;  %v2378_v38 = vsel %vm57_vm0, %v8593_v17, 0.0 }
 0x2f5   :  { %v8599_v54 = vpop.eup %5868  ;;  %v2380_v13 = vsel %vm57_vm0, %v8597_v62, 0.0 }
 0x2f6   :  { %v2377_v1 = vadd.f32 %v2376_v36, %v2375_v15  ;;  %v11095_v36 = vld [vmem:[#allocation7_spill] sm:$0xff] }
 0x2f8   :  { %v2379_v60 = vadd.f32 %v2378_v38, %v2377_v1  ;;  %v2382_v1 = vsel %vm57_vm0, %v8599_v54, 0.0 }
 0x2fa   :  { %v2381_v16 = vadd.f32 %v2380_v13, %v2379_v60  ;;  %v11097_v13 = vld [vmem:[#allocation42_spill] sm:$0xff] }
 0x2fb   :  { %v8603_v63 = vpop.eup %5870 }
 0x2fc   :  { %v2392_v14 = vmul.f32 %v8603_v63, %v8526_v31  ;;  %v2393_v49 = vmul.f32 %v8603_v63, %v8531_v43  ;;  %v8613_v29 = vmul.f32 %v8603_v63, %v8555_v25  ;;  %v8615_v15 = vpop.eup %5872  ;;  %v2394_v43 = vmul.f32 %v8603_v63, %v8535_v48 }
 0x2fd   :  { %v5875_v38 = vpop.eup %5874  ;;  %v2383_v27 = vadd.f32 %v2382_v1, %v2381_v16  ;;  %v2384_v25 = vsel %vm57_vm0, %v8615_v15, 0.0  ;;  %v2395_v16 = vmul.f32 %v8603_v63, %v8539_v28 }
 0x2fe   :  { %v2435_v2 = vrot.slane %v2392_v14, %v11095_v36  ;;  %v2439_v31 = vrot.slane %v2393_v49, %v11095_v36  ;;  %v5877_v9 = vpop.eup %5876  ;;  %v2386_v3 = vsel %vm57_vm0, %v5875_v38, 0.0  ;;  %v11099_v49 = vld [vmem:[#allocation41_spill] sm:$0xff]  ;;  %v2443_v48 = vrot.slane %v2394_v43, %v11095_v36 }
 0x2ff   :  { %v2385_v14 = vadd.f32 %v2384_v25, %v2383_v27  ;;  %v8643_v27 = vmul.f32 %v8603_v63, %v8570_v47 }
 0x300   :  { %v2533_v60 = vmul.f32 %v2435_v2, %v11096_v35  ;;  %v2532_v6 = vmul.f32 %v2435_v2, %v11097_v13  ;;  %v2535_v46 = vmul.f32 %v2439_v31, %v11098_v19  ;;  %v2534_v11 = vmul.f32 %v2439_v31, %v11099_v49 }
 0x301   :  { %v2387_v1 = vadd.f32 %v2386_v3, %v2385_v14  ;;  %v8635_v2 = vmul.f32 %v8603_v63, %v8560_v12  ;;  %v2388_v31 = vsel %vm57_vm0, %v5877_v9, 0.0  ;;  %v11101_v3 = vld [vmem:[#allocation50_spill] sm:$0xff]  ;;  %v2447_v12 = vrot.slane %v2395_v16, %v11095_v36 }
 0x302   :  { %2574 = vadd.xlane.f32.xlu1 %v2533_v60  ;;  %2572 = vadd.xlane.f32.xlu0 %v2532_v6  ;;  %v8639_v6 = vmul.f32 %v8603_v63, %v8566_v59  ;;  %v11100_v60 = vld [vmem:[#allocation49_spill] sm:$0xff]  ;;  %v2536_v25 = vmul.f32 %v2443_v48, %v11101_v3  ;;  %v11102_v59 = vld [vmem:[#allocation51_spill] sm:$0xff] }
 0x303   :  { %v2389_v43 = vadd.f32 %v2388_v31, %v2387_v1  ;;  %v2537_v28 = vmul.f32 %v2443_v48, %v11100_v60  ;;  %v2539_v14 = vmul.f32 %v2447_v12, %v11102_v59  ;;  %v2538_v37 = vmul.f32 %v2447_v12, %v11103_v4  ;;  %v11104_v31 = vld [vmem:[#allocation8_spill] sm:$0xff] }
 0x305   :  { %5878 = vrcp.f32 %v2389_v43  ;;  %v11105_v43 = vld [vmem:[#allocation9_spill] sm:$0xff] }
 0x306   :  { %2578 = vadd.xlane.f32.xlu1 %v2535_v46  ;;  %2576 = vadd.xlane.f32.xlu0 %v2534_v11 }
 0x30a   :  { %2582 = vadd.xlane.f32.xlu1 %v2537_v28  ;;  %2580 = vadd.xlane.f32.xlu0 %v2536_v25 }
 0x30e   :  { %2586 = vadd.xlane.f32.xlu1 %v2539_v14  ;;  %2584 = vadd.xlane.f32.xlu0 %v2538_v37  ;;  %v11106_v14 = vld [vmem:[#allocation12_spill] sm:$0xff] }
 0x30f   :  { %v5879_v47 = vpop.eup %5878 }
 0x310   :  { %v2402_v46 = vmul.f32 %v5879_v47, %v8579_v42  ;;  %v2403_v11 = vmul.f32 %v5879_v47, %v8581_v40  ;;  %v2404_v48 = vmul.f32 %v5879_v47, %v8585_v61  ;;  %v2405_v37 = vmul.f32 %v5879_v47, %v8589_v41 }
 0x311   :  { %v8662_v8 = vmul.f32 %v5879_v47, %v5875_v38 }
 0x312   :  { %v2475_v1 = vrot.slane %v2402_v46, %v11095_v36  ;;  %v2479_v25 = vrot.slane %v2403_v11, %v11095_v36  ;;  %v2483_v12 = vrot.slane %v2404_v48, %v11095_v36  ;;  %v8664_v46 = vmul.f32 %v5879_v47, %v5877_v9 }
 0x313   :  { %v2396_v48 = vmul.f32 %v8603_v63, %v8543_v23  ;;  %v2406_v23 = vmul.f32 %v5879_v47, %v8593_v17 }
 0x314   :  { %v2553_v16 = vmul.f32 %v2475_v1, %v11104_v31  ;;  %v2552_v28 = vmul.f32 %v2475_v1, %v11105_v43  ;;  %v2555_v42 = vmul.f32 %v2479_v25, %v11106_v14  ;;  %v2554_v40 = vmul.f32 %v2479_v25, %v11107_v52 }
 0x315   :  { %v2557_v61 = vmul.f32 %v2483_v12, %v11004_v26  ;;  %v2556_v11 = vmul.f32 %v2483_v12, %v11005_v10  ;;  %v2487_v1 = vrot.slane %v2405_v37, %v11095_v36  ;;  %v2451_v9 = vrot.slane %v2396_v48, %v11095_v36  ;;  %v11108_v37 = vld [vmem:[#allocation15_spill] sm:$0xff] }
 0x316   :  { %2614 = vadd.xlane.f32.xlu1 %v2553_v16  ;;  %2612 = vadd.xlane.f32.xlu0 %v2552_v28  ;;  %v2397_v16 = vmul.f32 %v8603_v63, %v8545_v18  ;;  %v2407_v18 = vmul.f32 %v5879_v47, %v8597_v62  ;;  %v11111_v62 = vld [vmem:[#allocation23_spill] sm:$0xff] }
 0x317   :  { %v2559_v41 = vmul.f32 %v2487_v1, %v11029_v21  ;;  %v2558_v38 = vmul.f32 %v2487_v1, %v11028_v22  ;;  %v2541_v28 = vmul.f32 %v2451_v9, %v11031_v53  ;;  %v2540_v25 = vmul.f32 %v2451_v9, %v11030_v33  ;;  %v11110_v1 = vld [vmem:[#allocation30_spill] sm:$0xff] }
 0x318   :  { %v2455_v12 = vrot.slane %v2397_v16, %v11095_v36  ;;  %v2459_v9 = vrot.slane %v8613_v29, %v11095_v36  ;;  %v2409_v29 = vmul.f32 %v5879_v47, %v8615_v15  ;;  %v11116_v15 = vld [vmem:[#allocation36_spill] sm:$0xff] }
 0x31a   :  { %2618 = vadd.xlane.f32.xlu1 %v2555_v42  ;;  %2616 = vadd.xlane.f32.xlu0 %v2554_v40  ;;  %v2543_v42 = vmul.f32 %v2455_v12, %v11108_v37  ;;  %v11109_v40 = vld [vmem:[#allocation21_spill] sm:$0xff]  ;;  %v2545_v16 = vmul.f32 %v2459_v9, %v11111_v62 }
 0x31e   :  { %2622 = vadd.xlane.f32.xlu1 %v2557_v61  ;;  %2620 = vadd.xlane.f32.xlu0 %v2556_v11  ;;  %v2542_v61 = vmul.f32 %v2455_v12, %v11109_v40  ;;  %v2491_v11 = vrot.slane %v2406_v23, %v11095_v36  ;;  %v2463_v12 = vrot.slane %v8635_v2, %v11095_v36 }
 0x31f   :  { %v2408_v23 = vmul.f32 %v5879_v47, %v8599_v54  ;;  %v2503_v2 = vrot.slane %v2409_v29, %v11095_v36  ;;  %v2507_v29 = vrot.slane %v8662_v8, %v11095_v36 }
 0x320   :  { %v2561_v63 = vmul.f32 %v2491_v11, %v11047_v34  ;;  %v2560_v48 = vmul.f32 %v2491_v11, %v11110_v1  ;;  %v11114_v11 = vld [vmem:[#allocation29_spill] sm:$0xff] }
 0x321   :  { %v2567_v54 = vmul.f32 %v2503_v2, %v11058_v55 }
 0x322   :  { %2626 = vadd.xlane.f32.xlu1 %v2559_v41  ;;  %2624 = vadd.xlane.f32.xlu0 %v2558_v38  ;;  %v2495_v41 = vrot.slane %v2407_v18, %v11095_v36  ;;  %v2546_v18 = vmul.f32 %v2463_v12, %v11114_v11 }
 0x324   :  { %v2563_v17 = vmul.f32 %v2495_v41, %v11054_v32  ;;  %v2562_v38 = vmul.f32 %v2495_v41, %v11053_v0 }
 0x326   :  { %2590 = vadd.xlane.f32.xlu1 %v2541_v28  ;;  %2588 = vadd.xlane.f32.xlu0 %v2540_v25  ;;  %v11112_v28 = vld [vmem:[#allocation25_spill] sm:$0xff] }
 0x327   :  { %v2544_v25 = vmul.f32 %v2459_v9, %v11112_v28  ;;  %v2467_v9 = vrot.slane %v8639_v6, %v11095_v36  ;;  %v2569_v6 = vmul.f32 %v2507_v29, %v11072_v30 }
 0x329   :  { %v2549_v47 = vmul.f32 %v2467_v9, %v11116_v15 }
 0x32a   :  { %2594 = vadd.xlane.f32.xlu1 %v2543_v42  ;;  %2592 = vadd.xlane.f32.xlu0 %v2542_v61  ;;  %v11113_v42 = vld [vmem:[#allocation28_spill] sm:$0xff] }
 0x32b   :  { %v2547_v61 = vmul.f32 %v2463_v12, %v11113_v42  ;;  %v2471_v12 = vrot.slane %v8643_v27, %v11095_v36 }
 0x32e   :  { %2630 = vadd.xlane.f32.xlu1 %v2561_v63  ;;  %2628 = vadd.xlane.f32.xlu0 %v2560_v48  ;;  %v2499_v63 = vrot.slane %v2408_v23, %v11095_v36  ;;  %v11118_v23 = vld [vmem:[#allocation11_spill] sm:$0xff] }
 0x330   :  { %v2565_v48 = vmul.f32 %v2499_v63, %v11056_v5  ;;  %v2564_v41 = vmul.f32 %v2499_v63, %v11055_v44 }
 0x332   :  { %2634 = vadd.xlane.f32.xlu1 %v2563_v17  ;;  %2632 = vadd.xlane.f32.xlu0 %v2562_v38  ;;  %v11115_v17 = vld [vmem:[#allocation33_spill] sm:$0xff] }
 0x333   :  { %v2566_v38 = vmul.f32 %v2503_v2, %v11115_v17 }
 0x336   :  { %2598 = vadd.xlane.f32.xlu1 %v2545_v16  ;;  %2596 = vadd.xlane.f32.xlu0 %v2544_v25  ;;  %v11117_v16 = vld [vmem:[#allocation37_spill] sm:$0xff] }
 0x337   :  { %v2548_v25 = vmul.f32 %v2467_v9, %v11117_v16 }
 0x33a   :  { %2602 = vadd.xlane.f32.xlu1 %v2547_v61  ;;  %2600 = vadd.xlane.f32.xlu0 %v2546_v18  ;;  %v2551_v61 = vmul.f32 %v2471_v12, %v11118_v23  ;;  %v11119_v18 = vld [vmem:[#allocation35_spill] sm:$0xff] }
 0x33b   :  { %v2550_v63 = vmul.f32 %v2471_v12, %v11119_v18 }
 0x33e   :  { %2638 = vadd.xlane.f32.xlu1 %v2565_v48  ;;  %2636 = vadd.xlane.f32.xlu0 %v2564_v41  ;;  %v2568_v48 = vmul.f32 %v2507_v29, %v11071_v50  ;;  %v2511_v41 = vrot.slane %v8664_v46, %v11095_v36 }
 0x340   :  { %v2571_v27 = vmul.f32 %v2511_v41, %v11080_v45  ;;  %v2570_v2 = vmul.f32 %v2511_v41, %v11079_v58 }
 0x342   :  { %2642 = vadd.xlane.f32.xlu1 %v2567_v54  ;;  %2640 = vadd.xlane.f32.xlu0 %v2566_v38 }
 0x346   :  { %2606 = vadd.xlane.f32.xlu1 %v2549_v47  ;;  %2604 = vadd.xlane.f32.xlu0 %v2548_v25 }
 0x34a   :  { %2610 = vadd.xlane.f32.xlu1 %v2551_v61  ;;  %2608 = vadd.xlane.f32.xlu0 %v2550_v63 }
 0x34e   :  { %2646 = vadd.xlane.f32.xlu1 %v2569_v6  ;;  %2644 = vadd.xlane.f32.xlu0 %v2568_v48 }
 0x352   :  { %2650 = vadd.xlane.f32.xlu1 %v2571_v27  ;;  %2648 = vadd.xlane.f32.xlu0 %v2570_v2 }
 0x38f   :  { %v8721_v54 = vpop.xlane.xlu1 %2574  ;;  %v8723_v8 = vpop.xlane.xlu0 %2572 }
 0x390   :  { %v2653_v38 = vmul.f32 %v8721_v54, %v8721_v54  ;;  %v2652_v9 = vmul.f32 %v8723_v8, %v8723_v8 }
 0x392   :  { %v2692_v47 = vadd.f32 %v2653_v38, %v2652_v9 }
 0x393   :  { %v8729_v46 = vpop.xlane.xlu1 %2578  ;;  %v8731_v25 = vpop.xlane.xlu0 %2576 }
 0x394   :  { %v2693_v12 = vrot.slane %v2692_v47, 4  ;;  %v2655_v61 = vmul.f32 %v8729_v46, %v8729_v46  ;;  %v2654_v63 = vmul.f32 %v8731_v25, %v8731_v25 }
 0x396   :  { %v2694_v29 = vadd.f32 %v2693_v12, %v2692_v47  ;;  %v2699_v6 = vadd.f32 %v2655_v61, %v2654_v63 }
 0x397   :  { %v8737_v48 = vpop.xlane.xlu1 %2582  ;;  %v8739_v41 = vpop.xlane.xlu0 %2580 }
 0x398   :  { %v2695_v27 = vrot.slane %v2694_v29, 2  ;;  %v2700_v2 = vrot.slane %v2699_v6, 4  ;;  %v2657_v38 = vmul.f32 %v8737_v48, %v8737_v48  ;;  %v2656_v9 = vmul.f32 %v8739_v41, %v8739_v41 }
 0x39a   :  { %v2696_v36 = vadd.f32 %v2695_v27, %v2694_v29  ;;  %v2701_v45 = vadd.f32 %v2700_v2, %v2699_v6  ;;  %v2706_v58 = vadd.f32 %v2657_v38, %v2656_v9 }
 0x39b   :  { %v8745_v30 = vpop.xlane.xlu1 %2586  ;;  %v8747_v50 = vpop.xlane.xlu0 %2584 }
 0x39c   :  { %v2697_v47 = vrot.slane %v2696_v36, 1  ;;  %v2702_v12 = vrot.slane %v2701_v45, 2  ;;  %v2707_v61 = vrot.slane %v2706_v58, 4  ;;  %v2659_v63 = vmul.f32 %v8745_v30, %v8745_v30 }
 0x39d   :  { %v2658_v51 = vmul.f32 %v8747_v50, %v8747_v50 }
 0x39e   :  { %v2698_v23 = vadd.f32 %v2697_v47, %v2696_v36  ;;  %v2708_v18 = vadd.f32 %v2707_v61, %v2706_v58  ;;  %v2703_v55 = vadd.f32 %v2702_v12, %v2701_v45 }
 0x39f   :  { %v2713_v17 = vadd.f32 %v2659_v63, %v2658_v51 }
 0x3a0   :  { %v2709_v29 = vrot.slane %v2708_v18, 2  ;;  %v2832_v27 = vadd.f32 1e-08, %v2698_v23  ;;  %v2704_v38 = vrot.slane %v2703_v55, 1  ;;  %v2892_v45 = vadd.f32 1.0, %v2698_v23 }
 0x3a1   :  { %v2714_v6 = vrot.slane %v2713_v17, 4 }
 0x3a2   :  { %v2710_v2 = vadd.f32 %v2709_v29, %v2708_v18  ;;  %5880 = vrsqrt.f32 %v2832_v27  ;;  %v2705_v32 = vadd.f32 %v2704_v38, %v2703_v55 }
 0x3a3   :  { %v2715_v9 = vadd.f32 %v2714_v6, %v2713_v17  ;;  %v8753_v5 = vpop.xlane.xlu1 %2614  ;;  %v8755_v44 = vpop.xlane.xlu0 %2612  ;;  %5882 = vrcp.f32 %v2892_v45 }
 0x3a4   :  { %v2711_v15 = vrot.slane %v2710_v2, 1  ;;  %v2673_v58 = vmul.f32 %v8753_v5, %v8753_v5  ;;  %v2672_v51 = vmul.f32 %v8755_v44, %v8755_v44  ;;  %v2833_v61 = vadd.f32 1e-08, %v2705_v32 }
 0x3a5   :  { %v2716_v16 = vrot.slane %v2715_v9, 2 }
 0x3a6   :  { %v2712_v36 = vadd.f32 %v2711_v15, %v2710_v2  ;;  %v2762_v47 = vadd.f32 %v2673_v58, %v2672_v51  ;;  %5884 = vrsqrt.f32 %v2833_v61 }
 0x3a7   :  { %v2717_v0 = vadd.f32 %v2716_v16, %v2715_v9  ;;  %v8761_v17 = vpop.xlane.xlu1 %2618  ;;  %v8763_v12 = vpop.xlane.xlu0 %2616 }
 0x3a8   :  { %v2763_v29 = vrot.slane %v2762_v47, 4  ;;  %v2675_v55 = vmul.f32 %v8761_v17, %v8761_v17  ;;  %v2674_v16 = vmul.f32 %v8763_v12, %v8763_v12  ;;  %v2834_v6 = vadd.f32 1e-08, %v2712_v36 }
 0x3a9   :  { %v2718_v18 = vrot.slane %v2717_v0, 1 }
 0x3aa   :  { %v2764_v27 = vadd.f32 %v2763_v29, %v2762_v47  ;;  %v2769_v38 = vadd.f32 %v2675_v55, %v2674_v16  ;;  %5886 = vrsqrt.f32 %v2834_v6  ;;  %v2894_v47 = vadd.f32 1.0, %v2712_v36 }
 0x3ab   :  { %v2719_v63 = vadd.f32 %v2718_v18, %v2717_v0  ;;  %v8769_v9 = vpop.xlane.xlu1 %2622  ;;  %v8771_v58 = vpop.xlane.xlu0 %2620  ;;  %v2893_v0 = vadd.f32 1.0, %v2705_v32 }
 0x3ac   :  { %v2765_v2 = vrot.slane %v2764_v27, 2  ;;  %v5881_v51 = vpop.eup %5880  ;;  %v2770_v18 = vrot.slane %v2769_v38, 4  ;;  %v2677_v45 = vmul.f32 %v8769_v9, %v8769_v9  ;;  %v2676_v34 = vmul.f32 %v8771_v58, %v8771_v58 }
 0x3ad   :  { %v2835_v15 = vadd.f32 1e-08, %v2719_v63  ;;  %v2872_v1 = vmul.f32 %v5881_v51, %v2698_v23  ;;  %v2895_v29 = vadd.f32 1.0, %v2719_v63  ;;  %v5883_v16 = vpop.eup %5882 }
 0x3ae   :  { %v2766_v61 = vadd.f32 %v2765_v2, %v2764_v27  ;;  %v2771_v55 = vadd.f32 %v2770_v18, %v2769_v38  ;;  %v2776_v42 = vadd.f32 %v2677_v45, %v2676_v34 }
 0x3af   :  { %5888 = vrsqrt.f32 %v2835_v15  ;;  %v2932_v11 = vmul.f32 %v5883_v16, %v2872_v1  ;;  %v8777_v21 = vpop.xlane.xlu1 %2626  ;;  %v8779_v37 = vpop.xlane.xlu0 %2624 }
 0x3b0   :  { %5890 = vrcp.f32 %v2893_v0  ;;  %v2767_v62 = vrot.slane %v2766_v61, 1  ;;  %v5885_v6 = vpop.eup %5884  ;;  %v2772_v28 = vrot.slane %v2771_v55, 2  ;;  %v2777_v40 = vrot.slane %v2776_v42, 4 }
 0x3b1   :  { %5892 = vrcp.f32 %v2894_v47  ;;  %v2952_v15 = vmul.f32 %v2932_v11, %v8723_v8  ;;  %v2953_v27 = vmul.f32 %v2932_v11, %v8721_v54  ;;  %v2873_v38 = vmul.f32 %v5885_v6, %v2705_v32 }
 0x3b2   :  { %5894 = vrcp.f32 %v2895_v29  ;;  %v8783_v2 = vadd.f32 %v2767_v62, %v2766_v61  ;;  %v2773_v1 = vadd.f32 %v2772_v28, %v2771_v55  ;;  %v2778_v0 = vadd.f32 %v2777_v40, %v2776_v42 }
 0x3b3   :  { %v2992_v45 = vmul.f32 %v2952_v15, %v11097_v13  ;;  %v2993_v47 = vmul.f32 %v2953_v27, %v11096_v35  ;;  %v8788_v16 = vpop.xlane.xlu1 %2590  ;;  %v8790_v22 = vpop.xlane.xlu0 %2588  ;;  %v2679_v40 = vmul.f32 %v8777_v21, %v8777_v21  ;;  %v2678_v55 = vmul.f32 %v8779_v37, %v8779_v37 }
 0x3b4   :  { %v5887_v23 = vpop.eup %5886  ;;  %v2842_v29 = vadd.f32 1e-08, %v8783_v2  ;;  %v2774_v54 = vrot.slane %v2773_v1, 1  ;;  %v2779_v61 = vrot.slane %v2778_v0, 2  ;;  %v2661_v28 = vmul.f32 %v8788_v16, %v8788_v16 }
 0x3b5   :  { %v2874_v51 = vmul.f32 %v5887_v23, %v2712_v36  ;;  %v3032_v36 = vadd.f32 %v2993_v47, %v2992_v45  ;;  %v2660_v6 = vmul.f32 %v8790_v22, %v8790_v22  ;;  %v2902_v27 = vadd.f32 1.0, %v8783_v2 }
 0x3b6   :  { %5896 = vrsqrt.f32 %v2842_v29  ;;  %v2780_v47 = vadd.f32 %v2779_v61, %v2778_v0  ;;  %v2783_v13 = vadd.f32 %v2679_v40, %v2678_v55 }
 0x3b7   :  { %v2720_v29 = vadd.f32 %v2661_v28, %v2660_v6  ;;  %5898 = vrcp.f32 %v2902_v27 }
 0x3b8   :  { %v2781_v61 = vrot.slane %v2780_v47, 1 }
 0x3b9   :  { %v5889_v34 = vpop.eup %5888 }
 0x3ba   :  { %v5891_v18 = vpop.eup %5890  ;;  %v2875_v11 = vmul.f32 %v5889_v34, %v2719_v63  ;;  %v8805_v34 = vpop.xlane.xlu1 %2594 }
 0x3bb   :  { %v2933_v8 = vmul.f32 %v5891_v18, %v2873_v38  ;;  %v5893_v62 = vpop.eup %5892  ;;  %v8803_v38 = vadd.f32 %v2774_v54, %v2773_v1  ;;  %v2721_v1 = vrot.slane %v2720_v29, 4  ;;  %v2663_v54 = vmul.f32 %v8805_v34, %v8805_v34 }
 0x3bc   :  { %v2934_v32 = vmul.f32 %v5893_v62, %v2874_v51  ;;  %v5895_v42 = vpop.eup %5894  ;;  %v8807_v51 = vpop.xlane.xlu0 %2592  ;;  %v3033_v62 = vrot.slane %v3032_v36, 4 }
 0x3bd   :  { %v2954_v63 = vmul.f32 %v2933_v8, %v8731_v25  ;;  %v2935_v23 = vmul.f32 %v5895_v42, %v2875_v11  ;;  %v2955_v15 = vmul.f32 %v2933_v8, %v8729_v46  ;;  %v2843_v11 = vadd.f32 1e-08, %v8803_v38 }
 0x3be   :  { %v2956_v18 = vmul.f32 %v2934_v32, %v8739_v41  ;;  %v2957_v45 = vmul.f32 %v2934_v32, %v8737_v48  ;;  %v2662_v48 = vmul.f32 %v8807_v51, %v8807_v51  ;;  %v8822_v40 = vpop.xlane.xlu1 %2630  ;;  %v2722_v55 = vadd.f32 %v2721_v1, %v2720_v29 }
 0x3bf   :  { %v2994_v25 = vmul.f32 %v2954_v63, %v11099_v49  ;;  %v2958_v46 = vmul.f32 %v2935_v23, %v8747_v50  ;;  %v2959_v8 = vmul.f32 %v2935_v23, %v8745_v30  ;;  %v2995_v41 = vmul.f32 %v2955_v15, %v11098_v19  ;;  %11120 = vst [vmem:[#allocation44_spill] sm:$0xff] %v8822_v40 }
 0x3c0   :  { %v2996_v0 = vmul.f32 %v2956_v18, %v11101_v3  ;;  %v2997_v32 = vmul.f32 %v2957_v45, %v11100_v60  ;;  %v2784_v50 = vrot.slane %v2783_v13, 4  ;;  %v8824_v30 = vpop.xlane.xlu0 %2628  ;;  %v5897_v6 = vpop.eup %5896  ;;  %5900 = vrsqrt.f32 %v2843_v11 }
 0x3c1   :  { %11121 = vst [vmem:[#allocation58_spill] sm:$0xff] %v8824_v30  ;;  %v2998_v28 = vmul.f32 %v2958_v46, %v11103_v4  ;;  %v2999_v42 = vmul.f32 %v2959_v8, %v11102_v59  ;;  %v2727_v63 = vadd.f32 %v2663_v54, %v2662_v48  ;;  %v3034_v23 = vadd.f32 %v3033_v62, %v3032_v36  ;;  %v5899_v62 = vpop.eup %5898 }
 0x3c2   :  { %v3039_v15 = vadd.f32 %v2995_v41, %v2994_v25  ;;  %v3046_v27 = vadd.f32 %v2997_v32, %v2996_v0  ;;  %v8828_v18 = vadd.f32 %v2781_v61, %v2780_v47  ;;  %v2903_v45 = vadd.f32 1.0, %v8803_v38  ;;  %v8832_v46 = vpop.xlane.xlu1 %2634 }
 0x3c3   :  { %v2785_v3 = vadd.f32 %v2784_v50, %v2783_v13  ;;  %v3053_v60 = vadd.f32 %v2999_v42, %v2998_v28  ;;  %v2882_v49 = vmul.f32 %v5897_v6, %v8783_v2  ;;  %v2723_v19 = vrot.slane %v2722_v55, 2  ;;  %11122 = vst [vmem:[#allocation59_spill] sm:$0xff] %v8832_v46 }
 0x3c4   :  { %v2728_v35 = vrot.slane %v2727_v63, 4  ;;  %v8834_v8 = vpop.xlane.xlu0 %2632  ;;  %v3035_v29 = vrot.slane %v3034_v23, 2  ;;  %v3040_v1 = vrot.slane %v3039_v15, 4  ;;  %v3047_v11 = vrot.slane %v3046_v27, 4 }
 0x3c5   :  { %11123 = vst [vmem:[#allocation17_spill] sm:$0xff] %v8834_v8  ;;  %v2844_v36 = vadd.f32 1e-08, %v8828_v18  ;;  %5902 = vrcp.f32 %v2903_v45  ;;  %v2786_v47 = vrot.slane %v2785_v3, 2  ;;  %v3054_v25 = vrot.slane %v3053_v60, 4 }
 0x3c6   :  { %v2942_v54 = vmul.f32 %v5899_v62, %v2882_v49  ;;  %v2724_v13 = vadd.f32 %v2723_v19, %v2722_v55  ;;  %v2729_v48 = vadd.f32 %v2728_v35, %v2727_v63  ;;  %v3036_v41 = vadd.f32 %v3035_v29, %v3034_v23  ;;  %v8842_v6 = vpop.xlane.xlu1 %2598 }
 0x3c7   :  { %v3041_v2 = vadd.f32 %v3040_v1, %v3039_v15  ;;  %v3048_v0 = vadd.f32 %v3047_v11, %v3046_v27  ;;  %5904 = vrsqrt.f32 %v2844_v36  ;;  %v2904_v61 = vadd.f32 1.0, %v8828_v18 }
 0x3c8   :  { %v2787_v50 = vadd.f32 %v2786_v47, %v2785_v3  ;;  %v2681_v28 = vmul.f32 %v8822_v40, %v8822_v40  ;;  %v2680_v42 = vmul.f32 %v8824_v30, %v8824_v30  ;;  %v8844_v45 = vpop.xlane.xlu0 %2596  ;;  %v3055_v19 = vadd.f32 %v3054_v25, %v3053_v60 }
 0x3c9   :  { %v2972_v35 = vmul.f32 %v2942_v54, %v8755_v44  ;;  %v2973_v49 = vmul.f32 %v2942_v54, %v8753_v5  ;;  %v2725_v55 = vrot.slane %v2724_v13, 1  ;;  %v2730_v63 = vrot.slane %v2729_v48, 2 }
 0x3ca   :  { %v5901_v32 = vpop.eup %5900  ;;  %v3037_v23 = vrot.slane %v3036_v41, 1  ;;  %v3042_v15 = vrot.slane %v3041_v2, 2  ;;  %v3049_v27 = vrot.slane %v3048_v0, 2  ;;  %5906 = vrcp.f32 %v2904_v61 }
 0x3cb   :  { %v2883_v3 = vmul.f32 %v5901_v32, %v8803_v38  ;;  %v2788_v29 = vrot.slane %v2787_v50, 1  ;;  %v2790_v1 = vadd.f32 %v2681_v28, %v2680_v42  ;;  %v3056_v11 = vrot.slane %v3055_v19, 2  ;;  %v8857_v38 = vpop.xlane.xlu1 %2602 }
 0x3cc   :  { %v3012_v36 = vmul.f32 %v2972_v35, %v11105_v43  ;;  %v3013_v62 = vmul.f32 %v2973_v49, %v11104_v31  ;;  %v8851_v60 = vadd.f32 %v2725_v55, %v2724_v13  ;;  %v2731_v47 = vadd.f32 %v2730_v63, %v2729_v48  ;;  %v8859_v54 = vpop.xlane.xlu0 %2600 }
 0x3cd   :  { %v2683_v5 = vmul.f32 %v8832_v46, %v8832_v46  ;;  %v2682_v25 = vmul.f32 %v8834_v8, %v8834_v8  ;;  %v3038_v32 = vadd.f32 %v3037_v23, %v3036_v41  ;;  %v3043_v61 = vadd.f32 %v3042_v15, %v3041_v2 }
 0x3ce   :  { %v3050_v42 = vadd.f32 %v3049_v27, %v3048_v0  ;;  %v8861_v35 = vadd.f32 %v2788_v29, %v2787_v50  ;;  %v2791_v13 = vrot.slane %v2790_v1, 4  ;;  %v2665_v48 = vmul.f32 %v8842_v6, %v8842_v6 }
 0x3cf   :  { %v5903_v44 = vpop.eup %5902  ;;  %v3057_v55 = vadd.f32 %v3056_v11, %v3055_v19  ;;  %v3102_v63 = vadd.f32 %v3013_v62, %v3012_v36  ;;  %v2836_v43 = vadd.f32 1e-08, %v8851_v60  ;;  %v2664_v31 = vmul.f32 %v8844_v45, %v8844_v45  ;;  %v8878_v29 = vpop.xlane.xlu1 %2638 }
 0x3d0   :  { %v2943_v28 = vmul.f32 %v5903_v44, %v2883_v3  ;;  %v2732_v4 = vrot.slane %v2731_v47, 1  ;;  %v2797_v59 = vadd.f32 %v2683_v5, %v2682_v25  ;;  %v2667_v41 = vmul.f32 %v8857_v38, %v8857_v38  ;;  %11124 = vst [vmem:[#allocation5_spill] sm:$0xff] %v8878_v29  ;;  %v8880_v11 = vpop.xlane.xlu0 %2636 }
 0x3d1   :  { %v5905_v49 = vpop.eup %5904  ;;  %v2666_v2 = vmul.f32 %v8859_v54, %v8859_v54  ;;  %v8873_v0 = vadd.f32 %v3038_v32, %v8186_v20  ;;  %v3044_v50 = vrot.slane %v3043_v61, 1  ;;  %v2792_v3 = vadd.f32 %v2791_v13, %v2790_v1  ;;  %11125 = vst [vmem:[#allocation57_spill] sm:$0xff] %v8880_v11 }
 0x3d2   :  { %v2974_v19 = vmul.f32 %v2943_v28, %v8763_v12  ;;  %v2975_v23 = vmul.f32 %v2943_v28, %v8761_v17  ;;  %v2884_v15 = vmul.f32 %v5905_v49, %v8828_v18  ;;  %v2734_v27 = vadd.f32 %v2665_v48, %v2664_v31 }
 0x3d3   :  { %v3051_v36 = vrot.slane %v3050_v42, 1  ;;  %v3058_v62 = vrot.slane %v3057_v55, 1  ;;  %v2845_v44 = vadd.f32 1e-08, %v8861_v35  ;;  %v2741_v5 = vadd.f32 %v2667_v41, %v2666_v2 }
 0x3d4   :  { %v5907_v20 = vpop.eup %5906  ;;  %v3103_v25 = vrot.slane %v3102_v63, 4  ;;  %5908 = vrsqrt.f32 %v2836_v43  ;;  %v8883_v32 = vadd.f32 %v2732_v4, %v2731_v47  ;;  %v2798_v12 = vrot.slane %v2797_v59, 4 }
 0x3d5   :  { %v2735_v17 = vrot.slane %v2734_v27, 4  ;;  %v2742_v28 = vrot.slane %v2741_v5, 4  ;;  %v2685_v31 = vmul.f32 %v8878_v29, %v8878_v29  ;;  %v2684_v18 = vmul.f32 %v8880_v11, %v8880_v11 }
 0x3d6   :  { %v3014_v1 = vmul.f32 %v2974_v19, %v11107_v52  ;;  %v3015_v13 = vmul.f32 %v2975_v23, %v11106_v14  ;;  %v2944_v48 = vmul.f32 %v5907_v20, %v2884_v15  ;;  %v2793_v49 = vrot.slane %v2792_v3, 2  ;;  %v8894_v19 = vpop.xlane.xlu1 %2642  ;;  %v11136_v14 = vld [vmem:[#allocation30_spill] sm:$0xff] }
 0x3d7   :  { %v3045_v41 = vadd.f32 %v3044_v50, %v3043_v61  ;;  %v3052_v2 = vadd.f32 %v3051_v36, %v3050_v42  ;;  %v2896_v4 = vadd.f32 1.0, %v8851_v60  ;;  %v2736_v43 = vadd.f32 %v2735_v17, %v2734_v27  ;;  %v8897_v50 = vpop.xlane.xlu0 %2640 }
 0x3d8   :  { %5910 = vrsqrt.f32 %v2845_v44  ;;  %v2905_v47 = vadd.f32 1.0, %v8861_v35  ;;  %v2837_v46 = vadd.f32 1e-08, %v8883_v32  ;;  %v2799_v29 = vadd.f32 %v2798_v12, %v2797_v59 }
 0x3d9   :  { %v3059_v8 = vadd.f32 %v3058_v62, %v3057_v55  ;;  %v2737_v40 = vrot.slane %v2736_v43, 2  ;;  %v2743_v11 = vadd.f32 %v2742_v28, %v2741_v5  ;;  %v2804_v30 = vadd.f32 %v2685_v31, %v2684_v18 }
 0x3da   :  { %v3104_v23 = vadd.f32 %v3103_v25, %v3102_v63  ;;  %v3109_v15 = vadd.f32 %v3015_v13, %v3014_v1  ;;  %v2976_v61 = vmul.f32 %v2944_v48, %v8771_v58  ;;  %v2794_v42 = vadd.f32 %v2793_v49, %v2792_v3 }
 0x3db   :  { %5912 = vrcp.f32 %v2896_v4  ;;  %v2738_v27 = vadd.f32 %v2737_v40, %v2736_v43  ;;  %v2744_v36 = vrot.slane %v2743_v11, 2  ;;  %v2805_v44 = vrot.slane %v2804_v30, 4 }
 0x3dc   :  { %v2977_v20 = vmul.f32 %v2944_v48, %v8769_v9  ;;  %5914 = vrsqrt.f32 %v2837_v46  ;;  %v2800_v59 = vrot.slane %v2799_v29, 2  ;;  %v2687_v55 = vmul.f32 %v8894_v19, %v8894_v19 }
 0x3dd   :  { %v2739_v62 = vrot.slane %v2738_v27, 1  ;;  %v2745_v5 = vadd.f32 %v2744_v36, %v2743_v11  ;;  %v2806_v63 = vadd.f32 %v2805_v44, %v2804_v30  ;;  %v2686_v58 = vmul.f32 %v8897_v50, %v8897_v50 }
 0x3de   :  { %v5909_v3 = vpop.eup %5908  ;;  %v3105_v25 = vrot.slane %v3104_v23, 2  ;;  %5916 = vrcp.f32 %v2905_v47  ;;  %v2897_v40 = vadd.f32 1.0, %v8883_v32  ;;  %v2795_v12 = vrot.slane %v2794_v42, 1 }
 0x3df   :  { %v3110_v17 = vrot.slane %v3109_v15, 4  ;;  %v3016_v9 = vmul.f32 %v2976_v61, %v11005_v10  ;;  %v8906_v46 = vadd.f32 %v2739_v62, %v2738_v27  ;;  %v2746_v28 = vrot.slane %v2745_v5, 1 }
 0x3e0   :  { %v3017_v31 = vmul.f32 %v2977_v20, %v11004_v26  ;;  %v2801_v18 = vadd.f32 %v2800_v59, %v2799_v29  ;;  %v2807_v11 = vrot.slane %v2806_v63, 2  ;;  %v2811_v30 = vadd.f32 %v2687_v55, %v2686_v58 }
 0x3e1   :  { %v8910_v1 = vadd.f32 %v3052_v2, %v8239_v56  ;;  %v8913_v13 = vadd.f32 %v3059_v8, %v8271_v57  ;;  %v2838_v48 = vadd.f32 1e-08, %v8906_v46  ;;  %v8916_v49 = vadd.f32 %v2746_v28, %v2745_v5 }
 0x3e2   :  { %v5911_v4 = vpop.eup %5910  ;;  %v3106_v43 = vadd.f32 %v3105_v25, %v3104_v23  ;;  %v2876_v47 = vmul.f32 %v5909_v3, %v8851_v60  ;;  %5918 = vrcp.f32 %v2897_v40  ;;  %v8919_v61 = vadd.f32 %v2795_v12, %v2794_v42  ;;  %v8932_v42 = vpop.xlane.xlu1 %2606 }
 0x3e3   :  { %v3111_v29 = vadd.f32 %v3110_v17, %v3109_v15  ;;  %5920 = vrsqrt.f32 %v2838_v48  ;;  %v2839_v27 = vadd.f32 1e-08, %v8916_v49  ;;  %v2812_v56 = vrot.slane %v2811_v30, 4 }
 0x3e4   :  { %v3192_v57 = vsel %vm6240_vm1, %v8873_v0, -inf  ;;  %v3116_v8 = vadd.f32 %v3017_v31, %v3016_v9  ;;  %v2802_v2 = vrot.slane %v2801_v18, 1  ;;  %v2808_v36 = vadd.f32 %v2807_v11, %v2806_v63 }
 0x3e5   :  { %v5913_v44 = vpop.eup %5912  ;;  %v8926_v23 = vadd.f32 %v3045_v41, %v8210_v7  ;;  %v3194_v60 = vsel %vm6240_vm1, %v8910_v1, -inf  ;;  %v2898_v15 = vadd.f32 1.0, %v8906_v46  ;;  %5922 = vrsqrt.f32 %v2839_v27  ;;  %v8939_v41 = vpop.xlane.xlu0 %2604 }
 0x3e6   :  { %v5915_v20 = vpop.eup %5914  ;;  %v3196_v59 = vsel %vm6240_vm1, %v8913_v13, -inf  ;;  %v2885_v55 = vmul.f32 %v5911_v4, %v8861_v35  ;;  %v2936_v62 = vmul.f32 %v5913_v44, %v2876_v47  ;;  %v2846_v7 = vadd.f32 1e-08, %v8919_v61 }
 0x3e7   :  { %v3107_v5 = vrot.slane %v3106_v43, 1  ;;  %v3112_v63 = vrot.slane %v3111_v29, 2  ;;  %v2899_v58 = vadd.f32 1.0, %v8916_v49  ;;  %v2813_v3 = vadd.f32 %v2812_v56, %v2811_v30 }
 0x3e8   :  { %v5917_v25 = vpop.eup %5916  ;;  %v3117_v40 = vrot.slane %v3116_v8, 4  ;;  %v8942_v12 = vadd.f32 %v2802_v2, %v2801_v18  ;;  %v2809_v17 = vrot.slane %v2808_v36, 1  ;;  %v2669_v9 = vmul.f32 %v8932_v42, %v8932_v42 }
 0x3e9   :  { %v2877_v35 = vmul.f32 %v5915_v20, %v8883_v32  ;;  %5924 = vrcp.f32 %v2898_v15  ;;  %v2814_v28 = vrot.slane %v2813_v3, 2  ;;  %v2668_v31 = vmul.f32 %v8939_v41, %v8939_v41  ;;  %v8962_v15 = vpop.xlane.xlu0 %2608 }
 0x3ea   :  { %v2945_v11 = vmul.f32 %v5917_v25, %v2885_v55  ;;  %v2960_v48 = vmul.f32 %v2936_v62, %v8790_v22  ;;  %5926 = vrsqrt.f32 %v2846_v7  ;;  %v2906_v30 = vadd.f32 1.0, %v8919_v61  ;;  %v8960_v22 = vpop.xlane.xlu1 %2610 }
 0x3eb   :  { %v3193_v18 = vsel %vm6240_vm1, %v8926_v23, -inf  ;;  %v8954_v4 = vmax.f32 %v3192_v57, %v3194_v60  ;;  %v2961_v47 = vmul.f32 %v2936_v62, %v8788_v16  ;;  %5928 = vrcp.f32 %v2899_v58 }
 0x3ec   :  { %v5919_v32 = vpop.eup %5918  ;;  %v2847_v27 = vadd.f32 1e-08, %v8942_v12  ;;  %v8958_v56 = vadd.f32 %v2809_v17, %v2808_v36  ;;  %v2815_v2 = vadd.f32 %v2814_v28, %v2813_v3  ;;  %v2748_v44 = vadd.f32 %v2669_v9, %v2668_v31 }
 0x3ed   :  { %v5921_v20 = vpop.eup %5920  ;;  %v8964_v55 = vmax.f32 %v3193_v18, %v3196_v59  ;;  %v3108_v7 = vadd.f32 %v3107_v5, %v3106_v43  ;;  %v8966_v57 = vadd.f32 %v3112_v63, %v3111_v29  ;;  %v2937_v60 = vmul.f32 %v5919_v32, %v2877_v35  ;;  %v11126_v32 = vld [vmem:[#allocation27_spill] sm:$0xff] }
 0x3ee   :  { %v3118_v16 = vadd.f32 %v3117_v40, %v3116_v8  ;;  %v2978_v62 = vmul.f32 %v2945_v11, %v8779_v37  ;;  %v3000_v58 = vmul.f32 %v2960_v48, %v11030_v33  ;;  %5930 = vrcp.f32 %v2906_v30 }
 0x3ef   :  { %v5923_v36 = vpop.eup %5922  ;;  %v2816_v3 = vrot.slane %v2815_v2, 1  ;;  %v2749_v25 = vrot.slane %v2748_v44, 4  ;;  %v2671_v17 = vmul.f32 %v8960_v22, %v8960_v22  ;;  %v2670_v59 = vmul.f32 %v8962_v15, %v8962_v15 }
 0x3f0   :  { %v3001_v43 = vmul.f32 %v2961_v47, %v11031_v53  ;;  %5932 = vrsqrt.f32 %v2847_v27  ;;  %v2878_v29 = vmul.f32 %v5921_v20, %v8906_v46  ;;  %v2848_v8 = vadd.f32 1e-08, %v8958_v56  ;;  %v11127_v20 = vld [vmem:[#allocation21_spill] sm:$0xff] }
 0x3f1   :  { %v2962_v37 = vmul.f32 %v2937_v60, %v8807_v51  ;;  %v2963_v5 = vmul.f32 %v2937_v60, %v8805_v34  ;;  %v8979_v63 = vadd.f32 %v2816_v3, %v2815_v2  ;;  %v2750_v40 = vadd.f32 %v2749_v25, %v2748_v44  ;;  %v11129_v60 = vld [vmem:[#allocation20_spill] sm:$0xff] }
 0x3f2   :  { %v8982_v9 = vadd.f32 %v3108_v7, %v8339_v24  ;;  %v3119_v35 = vrot.slane %v3118_v16, 2  ;;  %v2979_v28 = vmul.f32 %v2945_v11, %v8777_v21  ;;  %v2879_v31 = vmul.f32 %v5923_v36, %v8916_v49  ;;  %v11128_v11 = vld [vmem:[#allocation15_spill] sm:$0xff] }
 0x3f3   :  { %v5925_v48 = vpop.eup %5924  ;;  %v2907_v46 = vadd.f32 1.0, %v8942_v12  ;;  %v2849_v30 = vadd.f32 1e-08, %v8979_v63  ;;  %v2751_v18 = vrot.slane %v2750_v40, 2  ;;  %v2755_v51 = vadd.f32 %v2671_v17, %v2670_v59  ;;  %v8994_v17 = vpop.xlane.xlu1 %2646 }
 0x3f4   :  { %v5927_v47 = vpop.eup %5926  ;;  %v3018_v27 = vmul.f32 %v2978_v62, %v11126_v32  ;;  %v2938_v2 = vmul.f32 %v5925_v48, %v2878_v29  ;;  %5934 = vrsqrt.f32 %v2848_v8  ;;  %v3060_v44 = vadd.f32 %v3001_v43, %v3000_v58  ;;  %v8998_v8 = vpop.xlane.xlu0 %2644  ;;  %v11132_v32 = vld [vmem:[#allocation29_spill] sm:$0xff] }
 0x3f5   :  { %v5929_v24 = vpop.eup %5928  ;;  %v3002_v21 = vmul.f32 %v2962_v37, %v11127_v20  ;;  %v3003_v49 = vmul.f32 %v2963_v5, %v11128_v11  ;;  %v2752_v7 = vadd.f32 %v2751_v18, %v2750_v40  ;;  %v3019_v36 = vmul.f32 %v2979_v28, %v11129_v60 }
 0x3f6   :  { %v2939_v3 = vmul.f32 %v5929_v24, %v2879_v31  ;;  %v2908_v25 = vadd.f32 1.0, %v8958_v56  ;;  %5936 = vrsqrt.f32 %v2849_v30  ;;  %v8996_v59 = vadd.f32 %v3119_v35, %v3118_v16  ;;  %v11130_v24 = vld [vmem:[#allocation25_spill] sm:$0xff] }
 0x3f7   :  { %5938 = vrcp.f32 %v2907_v46  ;;  %v2753_v62 = vrot.slane %v2752_v7, 1  ;;  %v2756_v29 = vrot.slane %v2755_v51, 4  ;;  %v2886_v43 = vmul.f32 %v5927_v47, %v8919_v61 }
 0x3f8   :  { %v5931_v58 = vpop.eup %5930  ;;  %v2964_v37 = vmul.f32 %v2938_v2, %v8844_v45  ;;  %v2965_v5 = vmul.f32 %v2938_v2, %v8842_v6  ;;  %v2909_v40 = vadd.f32 1.0, %v8979_v63  ;;  %v3061_v28 = vrot.slane %v3060_v44, 4 }
 0x3f9   :  { %v3067_v31 = vadd.f32 %v3003_v49, %v3002_v21  ;;  %v9004_v48 = vadd.f32 %v2753_v62, %v2752_v7  ;;  %v2757_v16 = vadd.f32 %v2756_v29, %v2755_v51  ;;  %v2966_v46 = vmul.f32 %v2939_v3, %v8859_v54  ;;  %v11131_v21 = vld [vmem:[#allocation23_spill] sm:$0xff]  ;;  %v9016_v54 = vpop.xlane.xlu1 %2650 }
 0x3fa   :  { %v5933_v35 = vpop.eup %5932  ;;  %v2967_v30 = vmul.f32 %v2939_v3, %v8857_v38  ;;  %5940 = vrcp.f32 %v2908_v25  ;;  %v2689_v61 = vmul.f32 %v8994_v17, %v8994_v17  ;;  %v2688_v47 = vmul.f32 %v8998_v8, %v8998_v8  ;;  %v9018_v25 = vpop.xlane.xlu0 %2648 }
 0x3fb   :  { %v2840_v45 = vadd.f32 1e-08, %v9004_v48  ;;  %v2900_v6 = vadd.f32 1.0, %v9004_v48  ;;  %v2758_v18 = vrot.slane %v2757_v16, 2  ;;  %v2946_v2 = vmul.f32 %v5931_v58, %v2886_v43  ;;  %v11133_v58 = vld [vmem:[#allocation28_spill] sm:$0xff] }
 0x3fc   :  { %v3004_v51 = vmul.f32 %v2964_v37, %v11130_v24  ;;  %v3005_v49 = vmul.f32 %v2965_v5, %v11131_v21  ;;  %5942 = vrcp.f32 %v2909_v40  ;;  %v3123_v38 = vadd.f32 %v3019_v36, %v3018_v27 }
 0x3fd   :  { %v3062_v7 = vadd.f32 %v3061_v28, %v3060_v44  ;;  %5944 = vrsqrt.f32 %v2840_v45  ;;  %v2759_v3 = vadd.f32 %v2758_v18, %v2757_v16  ;;  %v3068_v29 = vrot.slane %v3067_v31, 4  ;;  %v11134_v44 = vld [vmem:[#allocation58_spill] sm:$0xff]  ;;  %v11135_v28 = vld [vmem:[#allocation44_spill] sm:$0xff] }
 0x3fe   :  { %v5935_v62 = vpop.eup %5934  ;;  %v2887_v34 = vmul.f32 %v5933_v35, %v8942_v12  ;;  %v3006_v60 = vmul.f32 %v2966_v46, %v11132_v32  ;;  %v3007_v43 = vmul.f32 %v2967_v30, %v11133_v58  ;;  %5946 = vrcp.f32 %v2900_v6  ;;  %v11137_v58 = vld [vmem:[#allocation22_spill] sm:$0xff] }
 0x3ff   :  { %v2760_v37 = vrot.slane %v2759_v3, 1  ;;  %v2818_v5 = vadd.f32 %v2689_v61, %v2688_v47  ;;  %v2691_v40 = vmul.f32 %v9016_v54, %v9016_v54  ;;  %v2980_v36 = vmul.f32 %v2946_v2, %v11134_v44 }
 0x400   :  { %v5937_v27 = vpop.eup %5936  ;;  %v2981_v16 = vmul.f32 %v2946_v2, %v11135_v28  ;;  %v3074_v45 = vadd.f32 %v3005_v49, %v3004_v51  ;;  %v2690_v18 = vmul.f32 %v9018_v25, %v9018_v25  ;;  %v3124_v35 = vrot.slane %v3123_v38, 4 }
 0x401   :  { %v5939_v12 = vpop.eup %5938  ;;  %v2888_v46 = vmul.f32 %v5935_v62, %v8958_v56  ;;  %v9030_v30 = vadd.f32 %v2760_v37, %v2759_v3  ;;  %v2819_v6 = vrot.slane %v2818_v5, 4  ;;  %v3063_v61 = vrot.slane %v3062_v7, 2 }
 0x402   :  { %v2947_v47 = vmul.f32 %v5939_v12, %v2887_v34  ;;  %v3081_v10 = vadd.f32 %v3007_v43, %v3006_v60  ;;  %v2825_v26 = vadd.f32 %v2691_v40, %v2690_v18  ;;  %v2889_v52 = vmul.f32 %v5937_v27, %v8979_v63  ;;  %v11138_v40 = vld [vmem:[#allocation17_spill] sm:$0xff] }
 0x403   :  { %v2841_v44 = vadd.f32 1e-08, %v9030_v30  ;;  %v2901_v2 = vadd.f32 1.0, %v9030_v30  ;;  %v2820_v51 = vadd.f32 %v2819_v6, %v2818_v5  ;;  %v3069_v28 = vadd.f32 %v3068_v29, %v3067_v31 }
 0x404   :  { %v5941_v49 = vpop.eup %5940  ;;  %v3020_v32 = vmul.f32 %v2980_v36, %v11136_v14  ;;  %v3021_v56 = vmul.f32 %v2981_v16, %v11137_v58  ;;  %v3075_v3 = vrot.slane %v3074_v45, 4  ;;  %v2826_v34 = vrot.slane %v2825_v26, 4  ;;  %v11139_v36 = vld [vmem:[#allocation59_spill] sm:$0xff] }
 0x405   :  { %v2948_v62 = vmul.f32 %v5941_v49, %v2888_v46  ;;  %5948 = vrsqrt.f32 %v2841_v44  ;;  %v2821_v37 = vrot.slane %v2820_v51, 2  ;;  %v9038_v63 = vadd.f32 %v3124_v35, %v3123_v38  ;;  %v11140_v38 = vld [vmem:[#allocation57_spill] sm:$0xff] }
 0x406   :  { %v5943_v60 = vpop.eup %5942  ;;  %v2982_v27 = vmul.f32 %v2947_v47, %v11138_v40  ;;  %v3082_v18 = vrot.slane %v3081_v10, 4  ;;  %v9041_v12 = vadd.f32 %v3063_v61, %v3062_v7  ;;  %5950 = vrcp.f32 %v2901_v2  ;;  %v11141_v40 = vld [vmem:[#allocation31_spill] sm:$0xff]  ;;  %v11142_v7 = vld [vmem:[#allocation5_spill] sm:$0xff] }
 0x407   :  { %v5945_v5 = vpop.eup %5944  ;;  %v2949_v31 = vmul.f32 %v5943_v60, %v2889_v52  ;;  %v2822_v29 = vadd.f32 %v2821_v37, %v2820_v51  ;;  %v2983_v16 = vmul.f32 %v2947_v47, %v11139_v36  ;;  %v3076_v46 = vadd.f32 %v3075_v3, %v3074_v45  ;;  %v11144_v37 = vld [vmem:[#allocation32_spill] sm:$0xff]  ;;  %v11148_v36 = vld [vmem:[#allocation33_spill] sm:$0xff] }
 0x408   :  { %v2880_v6 = vmul.f32 %v5945_v5, %v9004_v48  ;;  %v2827_v44 = vadd.f32 %v2826_v34, %v2825_v26  ;;  %v5947_v49 = vpop.eup %5946  ;;  %v3070_v14 = vrot.slane %v3069_v28, 2  ;;  %v3130_v43 = vadd.f32 %v3021_v56, %v3020_v32  ;;  %v11143_v26 = vld [vmem:[#allocation26_spill] sm:$0xff]  ;;  %v11147_v5 = vld [vmem:[#allocation36_spill] sm:$0xff] }
 0x409   :  { %v2984_v35 = vmul.f32 %v2948_v62, %v11140_v38  ;;  %v2823_v58 = vrot.slane %v2822_v29, 1  ;;  %v3022_v24 = vmul.f32 %v2982_v27, %v11141_v40  ;;  %v3083_v21 = vadd.f32 %v3082_v18, %v3081_v10  ;;  %v11145_v27 = vld [vmem:[#allocation10_spill] sm:$0xff] }
 0x40a   :  { %v2985_v61 = vmul.f32 %v2948_v62, %v11142_v7  ;;  %v2940_v52 = vmul.f32 %v5947_v49, %v2880_v6  ;;  %v2986_v2 = vmul.f32 %v2949_v31, %v8897_v50  ;;  %v2987_v47 = vmul.f32 %v2949_v31, %v8894_v19 }
 0x40b   :  { %v9050_v45 = vadd.f32 %v2823_v58, %v2822_v29  ;;  %v2828_v48 = vrot.slane %v2827_v44, 2  ;;  %v3023_v51 = vmul.f32 %v2983_v16, %v11143_v26  ;;  %v3077_v3 = vrot.slane %v3076_v46, 2  ;;  %v11146_v58 = vld [vmem:[#allocation37_spill] sm:$0xff] }
 0x40c   :  { %v2968_v32 = vmul.f32 %v2940_v52, %v8939_v41  ;;  %v2969_v56 = vmul.f32 %v2940_v52, %v8932_v42  ;;  %v3024_v34 = vmul.f32 %v2984_v35, %v11144_v37  ;;  %v3084_v50 = vrot.slane %v3083_v21, 2  ;;  %v11149_v41 = vld [vmem:[#allocation34_spill] sm:$0xff] }
 0x40d   :  { %v2850_v10 = vadd.f32 1e-08, %v9050_v45  ;;  %v2910_v62 = vadd.f32 1.0, %v9050_v45  ;;  %v2829_v60 = vadd.f32 %v2828_v48, %v2827_v44  ;;  %v3025_v19 = vmul.f32 %v2985_v61, %v11145_v27 }
 0x40e   :  { %v3008_v18 = vmul.f32 %v2968_v32, %v11146_v58  ;;  %v3009_v31 = vmul.f32 %v2969_v56, %v11147_v5  ;;  %v3026_v16 = vmul.f32 %v2986_v2, %v11148_v36  ;;  %v3027_v6 = vmul.f32 %v2987_v47, %v11149_v41 }
 0x40f   :  { %v5949_v29 = vpop.eup %5948  ;;  %5952 = vrsqrt.f32 %v2850_v10  ;;  %v2830_v42 = vrot.slane %v2829_v60, 1  ;;  %v3126_v49 = vrot.slane %v9038_v63, 2  ;;  %v3071_v38 = vadd.f32 %v3070_v14, %v3069_v28 }
 0x410   :  { %v3088_v35 = vadd.f32 %v3009_v31, %v3008_v18  ;;  %v2881_v44 = vmul.f32 %v5949_v29, %v9030_v30  ;;  %v5951_v7 = vpop.eup %5950  ;;  %v3131_v52 = vrot.slane %v3130_v43, 4  ;;  %v3137_v61 = vadd.f32 %v3023_v51, %v3022_v24 }
 0x411   :  { %5954 = vrcp.f32 %v2910_v62  ;;  %v9065_v48 = vadd.f32 %v2830_v42, %v2829_v60  ;;  %v3065_v32 = vrot.slane %v9041_v12, 1  ;;  %v3078_v56 = vadd.f32 %v3077_v3, %v3076_v46 }
 0x412   :  { %v3089_v2 = vrot.slane %v3088_v35, 4  ;;  %v2941_v36 = vmul.f32 %v5951_v7, %v2881_v44  ;;  %v3085_v47 = vadd.f32 %v3084_v50, %v3083_v21  ;;  %v3144_v10 = vadd.f32 %v3025_v19, %v3024_v34  ;;  %v11151_v34 = vld [vmem:[#allocation35_spill] sm:$0xff] }
 0x413   :  { %v3151_v41 = vadd.f32 %v3027_v6, %v3026_v16  ;;  %v2851_v37 = vadd.f32 1e-08, %v9065_v48  ;;  %v2911_v24 = vadd.f32 1.0, %v9065_v48  ;;  %v3072_v51 = vrot.slane %v3071_v38, 1  ;;  %v11152_v19 = vld [vmem:[#allocation11_spill] sm:$0xff] }
 0x414   :  { %v3090_v14 = vadd.f32 %v3089_v2, %v3088_v35  ;;  %v2970_v28 = vmul.f32 %v2941_v36, %v8962_v15  ;;  %v2971_v30 = vmul.f32 %v2941_v36, %v8960_v22  ;;  %v3132_v62 = vadd.f32 %v3131_v52, %v3130_v43 }
 0x415   :  { %v3138_v60 = vrot.slane %v3137_v61, 4  ;;  %5956 = vrsqrt.f32 %v2851_v37  ;;  %v11150_v46 = vrot.slane %v8996_v59, 1  ;;  %v3066_v31 = vadd.f32 %v3065_v32, %v9041_v12 }
 0x416   :  { %v3091_v21 = vrot.slane %v3090_v14, 2  ;;  %v3010_v50 = vmul.f32 %v2970_v28, %v11151_v34  ;;  %v3011_v18 = vmul.f32 %v2971_v30, %v11152_v19  ;;  %v3079_v15 = vrot.slane %v3078_v56, 1  ;;  %v11154_v28 = vld [vmem:[#allocation55_spill] sm:$0xff] }
 0x417   :  { %v3122_v3 = vadd.f32 %v11150_v46, %v8996_v59  ;;  %v3086_v29 = vrot.slane %v3085_v47, 1  ;;  %v3145_v22 = vrot.slane %v3144_v10, 4  ;;  %v3152_v36 = vrot.slane %v3151_v41, 4 }
 0x418   :  { %v3092_v16 = vadd.f32 %v3091_v21, %v3090_v14  ;;  %v3095_v6 = vadd.f32 %v3011_v18, %v3010_v50  ;;  %5958 = vrcp.f32 %v2911_v24  ;;  %v3127_v37 = vadd.f32 %v3126_v49, %v9038_v63  ;;  %v11155_v63 = vld [vmem:[#allocation66_spill] sm:$0xff] }
 0x419   :  { %v5953_v43 = vpop.eup %5952  ;;  %v3073_v42 = vadd.f32 %v3072_v51, %v3071_v38  ;;  %v3133_v35 = vrot.slane %v3132_v62, 2  ;;  %v3139_v59 = vadd.f32 %v3138_v60, %v3137_v61  ;;  %v11153_v44 = vrot.slane %v8966_v57, 1 }
 0x41a   :  { %v3093_v52 = vrot.slane %v3092_v16, 1  ;;  %v3096_v12 = vrot.slane %v3095_v6, 4  ;;  %v2890_v32 = vmul.f32 %v5953_v43, %v9050_v45  ;;  %v9086_v14 = vadd.f32 %v3066_v31, %v11154_v28 }
 0x41b   :  { %v9082_v7 = vadd.f32 %v11153_v44, %v8966_v57  ;;  %v5955_v2 = vpop.eup %5954  ;;  %v3080_v30 = vadd.f32 %v3079_v15, %v3078_v56  ;;  %v3087_v24 = vadd.f32 %v3086_v29, %v3085_v47  ;;  %v3146_v46 = vadd.f32 %v3145_v22, %v3144_v10  ;;  %v11156_v57 = vld [vmem:[#allocation63_spill] sm:$0xff]  ;;  %v11158_v15 = vld [vmem:[#allocation24_spill] sm:$0xff] }
 0x41c   :  { %v9089_v49 = vadd.f32 %v3122_v3, %v11155_v63  ;;  %v3153_v38 = vadd.f32 %v3152_v36, %v3151_v41  ;;  %v3097_v61 = vadd.f32 %v3096_v12, %v3095_v6  ;;  %v2950_v51 = vmul.f32 %v5955_v2, %v2890_v32  ;;  %v11157_v41 = vld [vmem:[#allocation54_spill] sm:$0xff]  ;;  %v11161_v2 = vld [vmem:[#allocation65_spill] sm:$0xff] }
 0x41d   :  { %v3128_v60 = vrot.slane %v3127_v37, 1  ;;  %v9092_v21 = vadd.f32 %v3073_v42, %v11156_v57  ;;  %v3134_v50 = vadd.f32 %v3133_v35, %v3132_v62  ;;  %v3140_v18 = vrot.slane %v3139_v59, 2  ;;  %v11160_v42 = vld [vmem:[#allocation39_spill] sm:$0xff] }
 0x41e   :  { %v3094_v45 = vadd.f32 %v3093_v52, %v3092_v16  ;;  %v3098_v43 = vrot.slane %v3097_v61, 2  ;;  %v2988_v31 = vmul.f32 %v2950_v51, %v8998_v8  ;;  %v2989_v56 = vmul.f32 %v2950_v51, %v8994_v17  ;;  %v11159_v16 = vld [vmem:[#allocation13_spill] sm:$0xff] }
 0x41f   :  { %v5957_v47 = vpop.eup %5956  ;;  %v3198_v10 = vsel %vm6240_vm1, %v9086_v14, -inf  ;;  %v9100_v3 = vadd.f32 %v3080_v30, %v11157_v41  ;;  %v9103_v29 = vadd.f32 %v3087_v24, %v11158_v15  ;;  %v3147_v22 = vrot.slane %v3146_v46, 2  ;;  %v11163_v15 = vld [vmem:[#allocation38_spill] sm:$0xff] }
 0x420   :  { %v3154_v62 = vrot.slane %v3153_v38, 2  ;;  %v3099_v36 = vadd.f32 %v3098_v43, %v3097_v61  ;;  %v3028_v6 = vmul.f32 %v2988_v31, %v11159_v16  ;;  %v3029_v8 = vmul.f32 %v2989_v56, %v11160_v42  ;;  %v11162_v56 = vld [vmem:[#allocation64_spill] sm:$0xff] }
 0x421   :  { %v3129_v35 = vadd.f32 %v3128_v60, %v3127_v37  ;;  %v3200_v17 = vsel %vm6240_vm1, %v9092_v21, -inf  ;;  %v3135_v44 = vrot.slane %v3134_v50, 1  ;;  %v2891_v52 = vmul.f32 %v5957_v47, %v9065_v48 }
 0x422   :  { %v5959_v12 = vpop.eup %5958  ;;  %v3141_v32 = vadd.f32 %v3140_v18, %v3139_v59  ;;  %v9112_v28 = vadd.f32 %v3094_v45, %v11161_v2  ;;  %v3100_v30 = vrot.slane %v3099_v36, 1  ;;  %v3158_v24 = vadd.f32 %v3029_v8, %v3028_v6  ;;  %v11165_v6 = vld [vmem:[#allocation56_spill] sm:$0xff] }
 0x423   :  { %v3199_v63 = vmax.f32 %v8954_v4, %v3198_v10  ;;  %v3202_v37 = vsel %vm6240_vm1, %v9100_v3, -inf  ;;  %v3148_v61 = vadd.f32 %v3147_v22, %v3146_v46  ;;  %v2951_v51 = vmul.f32 %v5959_v12, %v2891_v52 }
 0x424   :  { %v3204_v60 = vsel %vm6240_vm1, %v9103_v29, -inf  ;;  %v3155_v48 = vadd.f32 %v3154_v62, %v3153_v38  ;;  %v3101_v57 = vadd.f32 %v3100_v30, %v3099_v36  ;;  %v3159_v59 = vrot.slane %v3158_v24, 4  ;;  %v11164_v62 = vld [vmem:[#allocation40_spill] sm:$0xff] }
 0x425   :  { %v3201_v18 = vmax.f32 %v8964_v55, %v3200_v17  ;;  %v3136_v45 = vadd.f32 %v3135_v44, %v3134_v50  ;;  %v2990_v43 = vmul.f32 %v2951_v51, %v9018_v25  ;;  %v2991_v4 = vmul.f32 %v2951_v51, %v9016_v54 }
 0x426   :  { %v3142_v31 = vrot.slane %v3141_v32, 1  ;;  %v3206_v46 = vsel %vm6240_vm1, %v9112_v28, -inf  ;;  %v9128_v47 = vadd.f32 %v3101_v57, %v11162_v56  ;;  %v3160_v10 = vadd.f32 %v3159_v59, %v3158_v24 }
 0x427   :  { %v3203_v41 = vmax.f32 %v3199_v63, %v3202_v37  ;;  %v3205_v38 = vmax.f32 %v3201_v18, %v3204_v60  ;;  %v3030_v22 = vmul.f32 %v2990_v43, %v11163_v15  ;;  %v3031_v55 = vmul.f32 %v2991_v4, %v11164_v62  ;;  %v11166_v63 = vld [vmem:[#allocation68_spill] sm:$0xff] }
 0x428   :  { %v3149_v50 = vrot.slane %v3148_v61, 1  ;;  %v3156_v36 = vrot.slane %v3155_v48, 1  ;;  %v3208_v54 = vsel %vm6240_vm1, %v9128_v47, -inf  ;;  %v3161_v25 = vrot.slane %v3160_v10, 2 }
 0x429   :  { %v9137_v8 = vadd.f32 %v9082_v7, %v11165_v6  ;;  %v3207_v17 = vmax.f32 %v3203_v41, %v3206_v46  ;;  %v3209_v44 = vmax.f32 %v3205_v38, %v3208_v54  ;;  %v3165_v52 = vadd.f32 %v3031_v55, %v3030_v22  ;;  %v11167_v7 = vld [vmem:[#allocation67_spill] sm:$0xff] }
 0x42a   :  { %v3211_v12 = vsel %vm6240_vm1, %v8982_v9, -inf  ;;  %v3143_v2 = vadd.f32 %v3142_v31, %v3141_v32  ;;  %v3162_v30 = vadd.f32 %v3161_v25, %v3160_v10  ;;  %v3213_v24 = vsel %vm6240_vm1, %v9089_v49, -inf }
 0x42b   :  { %v9146_v37 = vadd.f32 %v3129_v35, %v11166_v63  ;;  %v3210_v51 = vmax.f32 %v3207_v17, %v3209_v44  ;;  %v3166_v60 = vrot.slane %v3165_v52, 4  ;;  %v9149_v57 = vadd.f32 %v3136_v45, %v11167_v7  ;;  %v11168_v35 = vld [vmem:[#allocation70_spill] sm:$0xff] }
 0x42c   :  { %v3150_v59 = vadd.f32 %v3149_v50, %v3148_v61  ;;  %v3157_v18 = vadd.f32 %v3156_v36, %v3155_v48  ;;  %v3163_v43 = vrot.slane %v3162_v30, 1  ;;  %v3212_v32 = vsel %vm6240_vm1, %v9137_v8, -inf  ;;  %v11170_v50 = vld [vmem:[#allocation48_spill] sm:$0xff] }
 0x42d   :  { %v3167_v4 = vadd.f32 %v3166_v60, %v3165_v52  ;;  %v3230_v31 = vsub.f32 %v8873_v0, %v3210_v51  ;;  %v3231_v46 = vsub.f32 %v8926_v23, %v3210_v51  ;;  %v3214_v56 = vmax.f32 %v3211_v12, %v3213_v24  ;;  %v11169_v23 = vld [vmem:[#allocation69_spill] sm:$0xff]  ;;  %v11171_v52 = vld [vmem:[#allocation43_spill] sm:$0xff] }
 0x42e   :  { %v9157_v10 = vadd.f32 %v3143_v2, %v11168_v35  ;;  %v3232_v41 = vsub.f32 %v8910_v1, %v3210_v51  ;;  %v3233_v45 = vsub.f32 %v8913_v13, %v3210_v51  ;;  %v3215_v61 = vsel %vm6240_vm1, %v9146_v37, -inf }
 0x42f   :  { %v3164_v48 = vadd.f32 %v3163_v43, %v3162_v30  ;;  %v3168_v38 = vrot.slane %v3167_v4, 2  ;;  %v3234_v22 = vsub.f32 %v9086_v14, %v3210_v51  ;;  %v3217_v0 = vsel %vm6240_vm1, %v9149_v57, -inf }
 0x430   :  { %v9169_v55 = vadd.f32 %v3150_v59, %v11169_v23  ;;  %v9172_v36 = vadd.f32 %v3157_v18, %v11170_v50  ;;  %v3250_v1 = vmul.f32 1.442695, %v3230_v31  ;;  %v3235_v54 = vsub.f32 %v9092_v21, %v3210_v51 }
 0x431   :  { %v3169_v13 = vadd.f32 %v3168_v38, %v3167_v4  ;;  %v3252_v25 = vmul.f32 1.442695, %v3231_v46  ;;  %v3254_v6 = vmul.f32 1.442695, %v3232_v41  ;;  %v3219_v14 = vsel %vm6240_vm1, %v9157_v10, -inf  ;;  %v11172_v4 = vld [vmem:[#allocation45_spill] sm:$0xff] }
 0x432   :  { %v3236_v17 = vsub.f32 %v9100_v3, %v3210_v51  ;;  %5960 = vpow2.f32 %v3250_v1  ;;  %v3256_v44 = vmul.f32 1.442695, %v3233_v45  ;;  %v9180_v12 = vadd.f32 %v3164_v48, %v11171_v52 }
 0x433   :  { %v3170_v2 = vrot.slane %v3169_v13, 1  ;;  %5962 = vpow2.f32 %v3252_v25  ;;  %v3258_v30 = vmul.f32 1.442695, %v3234_v22  ;;  %v3216_v24 = vmax.f32 %v3212_v32, %v3215_v61 }
 0x434   :  { %v3221_v21 = vsel %vm6240_vm1, %v9169_v55, -inf  ;;  %v3223_v63 = vsel %vm6240_vm1, %v9172_v36, -inf  ;;  %5964 = vpow2.f32 %v3254_v6  ;;  %v3237_v3 = vsub.f32 %v9103_v29, %v3210_v51 }
 0x435   :  { %v3171_v60 = vadd.f32 %v3170_v2, %v3169_v13  ;;  %5966 = vpow2.f32 %v3256_v44  ;;  %v3260_v7 = vmul.f32 1.442695, %v3235_v54  ;;  %v3218_v59 = vmax.f32 %v3214_v56, %v3217_v0 }
 0x436   :  { %v3220_v18 = vmax.f32 %v3216_v24, %v3219_v14  ;;  %v3238_v43 = vsub.f32 %v9112_v28, %v3210_v51  ;;  %v3225_v32 = vsel %vm6240_vm1, %v9180_v12, -inf  ;;  %5968 = vpow2.f32 %v3258_v30 }
 0x437   :  { %v9194_v31 = vadd.f32 %v3171_v60, %v11172_v4  ;;  %v3262_v46 = vmul.f32 1.442695, %v3236_v17  ;;  %v3222_v35 = vmax.f32 %v3218_v59, %v3221_v21  ;;  %v3239_v45 = vsub.f32 %v9128_v47, %v3210_v51 }
 0x438   :  { %v3224_v41 = vmax.f32 %v3220_v18, %v3223_v63  ;;  %5970 = vpow2.f32 %v3260_v7  ;;  %v3264_v56 = vmul.f32 1.442695, %v3237_v3  ;;  %v3266_v48 = vmul.f32 1.442695, %v3238_v43 }
 0x439   :  { %v3227_v29 = vsel %vm6240_vm1, %v9194_v31, -inf  ;;  %v3226_v28 = vmax.f32 %v3222_v35, %v3225_v32  ;;  %5972 = vpow2.f32 %v3262_v46  ;;  %v3268_v23 = vmul.f32 1.442695, %v3239_v45 }
 0x43a   :  { %v3228_v61 = vmax.f32 %v3224_v41, %v3227_v29  ;;  %5974 = vpow2.f32 %v3264_v56 }
 0x43b   :  { %5976 = vpow2.f32 %v3266_v48 }
 0x43c   :  { %v9200_v38 = vpop.eup %5960  ;;  %v9202_v22 = vmax.f32 %v3226_v28, %v3228_v61  ;;  %5978 = vpow2.f32 %v3268_v23 }
 0x43d   :  { %v9204_v0 = vpop.eup %5962  ;;  %v3290_v47 = vsel %vm57_vm0, %v9200_v38, 0.0 }
 0x43e   :  { %v9208_v51 = vpop.eup %5964  ;;  %v3291_v39 = vsel %vm57_vm0, %v9204_v0, 0.0  ;;  %v3240_v50 = vsub.f32 %v8982_v9, %v9202_v22  ;;  %v3241_v54 = vsub.f32 %v9137_v8, %v9202_v22  ;;  %v3242_v25 = vsub.f32 %v9089_v49, %v9202_v22 }
 0x43f   :  { %v9214_v1 = vpop.eup %5966  ;;  %v3292_v13 = vadd.f32 %v3291_v39, %v3290_v47  ;;  %v3293_v6 = vsel %vm57_vm0, %v9208_v51, 0.0  ;;  %v3243_v9 = vsub.f32 %v9146_v37, %v9202_v22  ;;  %v3244_v60 = vsub.f32 %v9149_v57, %v9202_v22 }
 0x440   :  { %v9222_v14 = vpop.eup %5968  ;;  %v3295_v44 = vsel %vm57_vm0, %v9214_v1, 0.0  ;;  %v3270_v52 = vmul.f32 1.442695, %v3240_v50  ;;  %v3272_v30 = vmul.f32 1.442695, %v3241_v54  ;;  %v3245_v43 = vsub.f32 %v9157_v10, %v9202_v22 }
 0x441   :  { %v3294_v17 = vadd.f32 %v3293_v6, %v3292_v13  ;;  %v3274_v24 = vmul.f32 1.442695, %v3242_v25  ;;  %v3297_v49 = vsel %vm57_vm0, %v9222_v14, 0.0  ;;  %v3276_v37 = vmul.f32 1.442695, %v3243_v9 }
 0x442   :  { %v9228_v2 = vpop.eup %5970  ;;  %5980 = vpow2.f32 %v3270_v52  ;;  %v3278_v57 = vmul.f32 1.442695, %v3244_v60  ;;  %v3280_v29 = vmul.f32 1.442695, %v3245_v43  ;;  %v3246_v28 = vsub.f32 %v9169_v55, %v9202_v22 }
 0x443   :  { %v3296_v8 = vadd.f32 %v3295_v44, %v3294_v17  ;;  %v9232_v21 = vpop.eup %5972  ;;  %5982 = vpow2.f32 %v3272_v30  ;;  %v3299_v3 = vsel %vm57_vm0, %v9228_v2, 0.0  ;;  %v3247_v55 = vsub.f32 %v9172_v36, %v9202_v22 }
 0x444   :  { %5984 = vpow2.f32 %v3274_v24  ;;  %v9238_v7 = vpop.eup %5974  ;;  %v3301_v18 = vsel %vm57_vm0, %v9232_v21, 0.0  ;;  %v3282_v13 = vmul.f32 1.442695, %v3246_v28  ;;  %v3248_v9 = vsub.f32 %v9180_v12, %v9202_v22 }
 0x445   :  { %v3298_v63 = vadd.f32 %v3297_v49, %v3296_v8  ;;  %v9244_v32 = vpop.eup %5976  ;;  %5986 = vpow2.f32 %v3276_v37  ;;  %v3303_v46 = vsel %vm57_vm0, %v9238_v7, 0.0  ;;  %v3284_v44 = vmul.f32 1.442695, %v3247_v55 }
 0x446   :  { %v9248_v35 = vpop.eup %5978  ;;  %v3305_v45 = vsel %vm57_vm0, %v9244_v32, 0.0  ;;  %5988 = vpow2.f32 %v3278_v57  ;;  %v3249_v36 = vsub.f32 %v9194_v31, %v9202_v22  ;;  %v3286_v24 = vmul.f32 1.442695, %v3248_v9  ;;  %v11174_v57 = vld [vmem:[#allocation47_spill] sm:$0xff] }
 0x447   :  { %v3300_v59 = vadd.f32 %v3299_v3, %v3298_v63  ;;  %v3307_v61 = vsel %vm57_vm0, %v9248_v35, 0.0  ;;  %5990 = vpow2.f32 %v3280_v29 }
 0x449   :  { %v3302_v4 = vadd.f32 %v3301_v18, %v3300_v59  ;;  %v3288_v59 = vmul.f32 1.442695, %v3249_v36  ;;  %v11173_v18 = vld [vmem:[#allocation7_spill] sm:$0xff] }
 0x44b   :  { %v3304_v41 = vadd.f32 %v3303_v46, %v3302_v4 }
 0x44c   :  { %v9254_v10 = vpop.eup %5980 }
 0x44d   :  { %v3306_v56 = vadd.f32 %v3305_v45, %v3304_v41  ;;  %v9258_v48 = vpop.eup %5982  ;;  %v3309_v47 = vsel %vm57_vm0, %v9254_v10, 0.0  ;;  %v11175_v41 = vld [vmem:[#allocation42_spill] sm:$0xff] }
 0x44e   :  { %v9262_v39 = vpop.eup %5984  ;;  %v3310_v50 = vsel %vm57_vm0, %v9258_v48, 0.0 }
 0x44f   :  { %v3308_v23 = vadd.f32 %v3307_v61, %v3306_v56  ;;  %v3311_v54 = vadd.f32 %v3310_v50, %v3309_v47  ;;  %v3312_v25 = vsel %vm57_vm0, %v9262_v39, 0.0  ;;  %v9270_v6 = vpop.eup %5986  ;;  %v11176_v61 = vld [vmem:[#allocation46_spill] sm:$0xff]  ;;  %v11177_v47 = vld [vmem:[#allocation41_spill] sm:$0xff] }
 0x450   :  { %v3314_v52 = vsel %vm57_vm0, %v9270_v6, 0.0  ;;  %v9276_v8 = vpop.eup %5988 }
 0x451   :  { %5992 = vrcp.f32 %v3308_v23  ;;  %v3313_v17 = vadd.f32 %v3312_v25, %v3311_v54  ;;  %v9280_v49 = vpop.eup %5990  ;;  %v3316_v63 = vsel %vm57_vm0, %v9276_v8, 0.0 }
 0x452   :  { %5994 = vpow2.f32 %v3282_v13  ;;  %v3318_v22 = vsel %vm57_vm0, %v9280_v49, 0.0 }
 0x453   :  { %v3315_v30 = vadd.f32 %v3314_v52, %v3313_v17  ;;  %5996 = vpow2.f32 %v3284_v44  ;;  %v11178_v17 = vld [vmem:[#allocation49_spill] sm:$0xff]  ;;  %v11179_v44 = vld [vmem:[#allocation50_spill] sm:$0xff] }
 0x454   :  { %5998 = vpow2.f32 %v3286_v24 }
 0x455   :  { %v3317_v12 = vadd.f32 %v3316_v63, %v3315_v30  ;;  %6000 = vpow2.f32 %v3288_v59 }
 0x457   :  { %v3319_v4 = vadd.f32 %v3318_v22, %v3317_v12  ;;  %v11180_v12 = vld [vmem:[#allocation51_spill] sm:$0xff] }
 0x45b   :  { %v9284_v60 = vpop.eup %5992 }
 0x45c   :  { %v3330_v37 = vmul.f32 %v9284_v60, %v9200_v38  ;;  %v3331_v3 = vmul.f32 %v9284_v60, %v9204_v0  ;;  %v9293_v43 = vpop.eup %5994  ;;  %v3332_v38 = vmul.f32 %v9284_v60, %v9208_v51  ;;  %v3333_v13 = vmul.f32 %v9284_v60, %v9214_v1 }
 0x45d   :  { %v3320_v0 = vsel %vm57_vm0, %v9293_v43, 0.0  ;;  %v9302_v56 = vpop.eup %5996  ;;  %v3334_v36 = vmul.f32 %v9284_v60, %v9222_v14  ;;  %v3335_v22 = vmul.f32 %v9284_v60, %v9228_v2 }
 0x45e   :  { %v3373_v31 = vrot.slane %v3330_v37, %v11173_v18  ;;  %v3377_v29 = vrot.slane %v3331_v3, %v11173_v18  ;;  %v3321_v28 = vadd.f32 %v3320_v0, %v3319_v4  ;;  %v3381_v55 = vrot.slane %v3332_v38, %v11173_v18  ;;  %v9311_v54 = vpop.eup %5998  ;;  %v11181_v3 = vld [vmem:[#allocation52_spill] sm:$0xff] }
 0x45f   :  { %v3322_v51 = vsel %vm57_vm0, %v9302_v56, 0.0  ;;  %v3385_v30 = vrot.slane %v3333_v13, %v11173_v18  ;;  %v3324_v1 = vsel %vm57_vm0, %v9311_v54, 0.0  ;;  %v9320_v24 = vpop.eup %6000  ;;  %v3337_v0 = vmul.f32 %v9284_v60, %v9238_v7 }
 0x460   :  { %v3471_v46 = vmul.f32 %v3373_v31, %v11174_v57  ;;  %v3470_v45 = vmul.f32 %v3373_v31, %v11175_v41  ;;  %v3473_v23 = vmul.f32 %v3377_v29, %v11176_v61  ;;  %v3472_v50 = vmul.f32 %v3377_v29, %v11177_v47  ;;  %v11185_v47 = vld [vmem:[#allocation29_spill] sm:$0xff] }
 0x461   :  { %v3323_v25 = vadd.f32 %v3322_v51, %v3321_v28  ;;  %v3475_v9 = vmul.f32 %v3381_v55, %v11178_v17  ;;  %v3474_v52 = vmul.f32 %v3381_v55, %v11179_v44  ;;  %v3477_v37 = vmul.f32 %v3385_v30, %v11180_v12  ;;  %v11183_v28 = vld [vmem:[#allocation25_spill] sm:$0xff] }
 0x462   :  { %3512 = vadd.xlane.f32.xlu1 %v3471_v46  ;;  %3510 = vadd.xlane.f32.xlu0 %v3470_v45  ;;  %v3476_v59 = vmul.f32 %v3385_v30, %v11181_v3  ;;  %v3389_v31 = vrot.slane %v3334_v36, %v11173_v18  ;;  %v3326_v14 = vsel %vm57_vm0, %v9320_v24, 0.0  ;;  %v3393_v41 = vrot.slane %v3335_v22, %v11173_v18  ;;  %v11187_v30 = vld [vmem:[#allocation9_spill] sm:$0xff] }
 0x463   :  { %v3325_v63 = vadd.f32 %v3324_v1, %v3323_v25  ;;  %v3336_v45 = vmul.f32 %v9284_v60, %v9232_v21  ;;  %v3401_v21 = vrot.slane %v3337_v0, %v11173_v18  ;;  %v3339_v7 = vmul.f32 %v9284_v60, %v9248_v35  ;;  %v11188_v1 = vld [vmem:[#allocation12_spill] sm:$0xff] }
 0x464   :  { %v3479_v57 = vmul.f32 %v3389_v31, %v11031_v53  ;;  %v3478_v46 = vmul.f32 %v3389_v31, %v11030_v33  ;;  %v3481_v2 = vmul.f32 %v3393_v41, %v11128_v11  ;;  %v3480_v29 = vmul.f32 %v3393_v41, %v11127_v20  ;;  %v11182_v33 = vld [vmem:[#allocation23_spill] sm:$0xff]  ;;  %v11184_v11 = vld [vmem:[#allocation28_spill] sm:$0xff] }
 0x465   :  { %v3327_v4 = vadd.f32 %v3326_v14, %v3325_v63  ;;  %v3397_v38 = vrot.slane %v3336_v45, %v11173_v18  ;;  %v3485_v20 = vmul.f32 %v3401_v21, %v11184_v11  ;;  %v11189_v63 = vld [vmem:[#allocation16_spill] sm:$0xff]  ;;  %v11194_v45 = vld [vmem:[#allocation22_spill] sm:$0xff] }
 0x466   :  { %3516 = vadd.xlane.f32.xlu1 %v3473_v23  ;;  %3514 = vadd.xlane.f32.xlu0 %v3472_v50  ;;  %v3338_v23 = vmul.f32 %v9284_v60, %v9244_v32  ;;  %v3484_v50 = vmul.f32 %v3401_v21, %v11185_v47  ;;  %v3409_v32 = vrot.slane %v3339_v7, %v11173_v18  ;;  %v11186_v60 = vld [vmem:[#allocation8_spill] sm:$0xff]  ;;  %v11198_v47 = vld [vmem:[#allocation33_spill] sm:$0xff] }
 0x467   :  { %6002 = vrcp.f32 %v3327_v4  ;;  %v3483_v53 = vmul.f32 %v3397_v38, %v11182_v33  ;;  %v3482_v61 = vmul.f32 %v3397_v38, %v11183_v28  ;;  %v11192_v14 = vld [vmem:[#allocation20_spill] sm:$0xff] }
 0x468   :  { %v3405_v55 = vrot.slane %v3338_v23, %v11173_v18  ;;  %v3488_v44 = vmul.f32 %v3409_v32, %v11151_v34  ;;  %v11196_v21 = vld [vmem:[#allocation32_spill] sm:$0xff] }
 0x46a   :  { %3520 = vadd.xlane.f32.xlu1 %v3475_v9  ;;  %3518 = vadd.xlane.f32.xlu0 %v3474_v52  ;;  %v3487_v51 = vmul.f32 %v3405_v55, %v11147_v5  ;;  %v3486_v25 = vmul.f32 %v3405_v55, %v11146_v58  ;;  %v3489_v9 = vmul.f32 %v3409_v32, %v11152_v19 }
 0x46e   :  { %3524 = vadd.xlane.f32.xlu1 %v3477_v37  ;;  %3522 = vadd.xlane.f32.xlu0 %v3476_v59  ;;  %v11190_v37 = vld [vmem:[#allocation18_spill] sm:$0xff]  ;;  %v11191_v59 = vld [vmem:[#allocation19_spill] sm:$0xff] }
 0x471   :  { %v6003_v13 = vpop.eup %6002 }
 0x472   :  { %3528 = vadd.xlane.f32.xlu1 %v3479_v57  ;;  %3526 = vadd.xlane.f32.xlu0 %v3478_v46  ;;  %v3340_v17 = vmul.f32 %v6003_v13, %v9254_v10  ;;  %v3341_v35 = vmul.f32 %v6003_v13, %v9258_v48  ;;  %v3342_v10 = vmul.f32 %v6003_v13, %v9262_v39  ;;  %v11193_v57 = vld [vmem:[#allocation27_spill] sm:$0xff] }
 0x473   :  { %v3343_v48 = vmul.f32 %v6003_v13, %v9270_v6  ;;  %v3344_v39 = vmul.f32 %v6003_v13, %v9276_v8  ;;  %v3345_v6 = vmul.f32 %v6003_v13, %v9280_v49  ;;  %v3346_v8 = vmul.f32 %v6003_v13, %v9293_v43 }
 0x474   :  { %v3413_v52 = vrot.slane %v3340_v17, %v11173_v18  ;;  %v3417_v36 = vrot.slane %v3341_v35, %v11173_v18  ;;  %v3421_v12 = vrot.slane %v3342_v10, %v11173_v18  ;;  %v3347_v49 = vmul.f32 %v6003_v13, %v9302_v56 }
 0x475   :  { %v3425_v22 = vrot.slane %v3343_v48, %v11173_v18  ;;  %v3429_v41 = vrot.slane %v3344_v39, %v11173_v18  ;;  %v3433_v0 = vrot.slane %v3345_v6, %v11173_v18  ;;  %v3437_v28 = vrot.slane %v3346_v8, %v11173_v18 }
 0x476   :  { %3532 = vadd.xlane.f32.xlu1 %v3481_v2  ;;  %3530 = vadd.xlane.f32.xlu0 %v3480_v29  ;;  %v3491_v5 = vmul.f32 %v3413_v52, %v11186_v60  ;;  %v3490_v58 = vmul.f32 %v3413_v52, %v11187_v30  ;;  %v3493_v19 = vmul.f32 %v3417_v36, %v11188_v1  ;;  %v11195_v29 = vld [vmem:[#allocation30_spill] sm:$0xff] }
 0x477   :  { %v3492_v34 = vmul.f32 %v3417_v36, %v11189_v63  ;;  %v3495_v3 = vmul.f32 %v3421_v12, %v11190_v37  ;;  %v3494_v31 = vmul.f32 %v3421_v12, %v11191_v59  ;;  %v3497_v4 = vmul.f32 %v3425_v22, %v11192_v14 }
 0x478   :  { %v3496_v46 = vmul.f32 %v3425_v22, %v11193_v57  ;;  %v3499_v2 = vmul.f32 %v3429_v41, %v11194_v45  ;;  %v3498_v38 = vmul.f32 %v3429_v41, %v11195_v29  ;;  %v3501_v33 = vmul.f32 %v3433_v0, %v11143_v26 }
 0x479   :  { %v3502_v23 = vmul.f32 %v3437_v28, %v11196_v21  ;;  %v3441_v11 = vrot.slane %v3347_v49, %v11173_v18  ;;  %v3348_v43 = vmul.f32 %v6003_v13, %v9311_v54  ;;  %v3349_v56 = vmul.f32 %v6003_v13, %v9320_v24 }
 0x47a   :  { %3536 = vadd.xlane.f32.xlu1 %v3483_v53  ;;  %3534 = vadd.xlane.f32.xlu0 %v3482_v61  ;;  %v3500_v53 = vmul.f32 %v3433_v0, %v11141_v40  ;;  %v3503_v61 = vmul.f32 %v3437_v28, %v11145_v27 }
 0x47b   :  { %v3504_v40 = vmul.f32 %v3441_v11, %v11198_v47  ;;  %v3449_v7 = vrot.slane %v3349_v56, %v11173_v18 }
 0x47d   :  { %v3509_v54 = vmul.f32 %v3449_v7, %v11164_v62 }
 0x47e   :  { %3540 = vadd.xlane.f32.xlu1 %v3485_v20  ;;  %3538 = vadd.xlane.f32.xlu0 %v3484_v50  ;;  %v11197_v20 = vld [vmem:[#allocation34_spill] sm:$0xff]  ;;  %v3445_v50 = vrot.slane %v3348_v43, %v11173_v18 }
 0x47f   :  { %v3505_v26 = vmul.f32 %v3441_v11, %v11197_v20 }
 0x480   :  { %v3507_v27 = vmul.f32 %v3445_v50, %v11160_v42  ;;  %v3506_v55 = vmul.f32 %v3445_v50, %v11159_v16 }
 0x482   :  { %3544 = vadd.xlane.f32.xlu1 %v3487_v51  ;;  %3542 = vadd.xlane.f32.xlu0 %v3486_v25  ;;  %v3508_v51 = vmul.f32 %v3449_v7, %v11163_v15  ;;  %v6138_v25 = vmov 0  }
 0x483   :  { %5601 = vset.pattern.permute.xlu1 %v6138_v25  ;;  %5600 = vset.pattern.permute.xlu0 %v6138_v25 }
 0x486   :  { %3548 = vadd.xlane.f32.xlu1 %v3489_v9  ;;  %3546 = vadd.xlane.f32.xlu0 %v3488_v44 }
 0x48a   :  { %3552 = vadd.xlane.f32.xlu1 %v3491_v5  ;;  %3550 = vadd.xlane.f32.xlu0 %v3490_v58 }
 0x48e   :  { %3556 = vadd.xlane.f32.xlu1 %v3493_v19  ;;  %3554 = vadd.xlane.f32.xlu0 %v3492_v34 }
 0x492   :  { %3560 = vadd.xlane.f32.xlu1 %v3495_v3  ;;  %3558 = vadd.xlane.f32.xlu0 %v3494_v31 }
 0x496   :  { %3564 = vadd.xlane.f32.xlu1 %v3497_v4  ;;  %3562 = vadd.xlane.f32.xlu0 %v3496_v46 }
 0x49a   :  { %3568 = vadd.xlane.f32.xlu1 %v3499_v2  ;;  %3566 = vadd.xlane.f32.xlu0 %v3498_v38 }
 0x49e   :  { %3572 = vadd.xlane.f32.xlu1 %v3501_v33  ;;  %3570 = vadd.xlane.f32.xlu0 %v3500_v53 }
 0x4a2   :  { %3576 = vadd.xlane.f32.xlu1 %v3503_v61  ;;  %3574 = vadd.xlane.f32.xlu0 %v3502_v23 }
 0x4a6   :  { %3580 = vadd.xlane.f32.xlu1 %v3505_v26  ;;  %3578 = vadd.xlane.f32.xlu0 %v3504_v40 }
 0x4aa   :  { %3584 = vadd.xlane.f32.xlu1 %v3507_v27  ;;  %3582 = vadd.xlane.f32.xlu0 %v3506_v55 }
 0x4ae   :  { %3588 = vadd.xlane.f32.xlu1 %v3509_v54  ;;  %3586 = vadd.xlane.f32.xlu0 %v3508_v51 }
 0x4ef   :  { %v9394_v24 = vpop.xlane.xlu1 %3512  ;;  %v9396_v13 = vpop.xlane.xlu0 %3510 }
 0x4f0   :  { %v3591_v16 = vmul.f32 %v9394_v24, %v9394_v24  ;;  %v3590_v42 = vmul.f32 %v9396_v13, %v9396_v13 }
 0x4f2   :  { %v3630_v32 = vadd.f32 %v3591_v16, %v3590_v42 }
 0x4f3   :  { %v9402_v17 = vpop.xlane.xlu1 %3516  ;;  %v9404_v62 = vpop.xlane.xlu0 %3514 }
 0x4f4   :  { %v3631_v15 = vrot.slane %v3630_v32, 4  ;;  %v3593_v9 = vmul.f32 %v9402_v17, %v9402_v17  ;;  %v3592_v44 = vmul.f32 %v9404_v62, %v9404_v62 }
 0x4f6   :  { %v3632_v52 = vadd.f32 %v3631_v15, %v3630_v32  ;;  %v3637_v35 = vadd.f32 %v3593_v9, %v3592_v44 }
 0x4f7   :  { %v9410_v60 = vpop.xlane.xlu1 %3520  ;;  %v9412_v5 = vpop.xlane.xlu0 %3518 }
 0x4f8   :  { %v3633_v30 = vrot.slane %v3632_v52, 2  ;;  %v3638_v58 = vrot.slane %v3637_v35, 4  ;;  %v3595_v36 = vmul.f32 %v9410_v60, %v9410_v60  ;;  %v3594_v10 = vmul.f32 %v9412_v5, %v9412_v5 }
 0x4fa   :  { %v3634_v1 = vadd.f32 %v3633_v30, %v3632_v52  ;;  %v3639_v19 = vadd.f32 %v3638_v58, %v3637_v35  ;;  %v3644_v63 = vadd.f32 %v3595_v36, %v3594_v10 }
 0x4fb   :  { %v9418_v34 = vpop.xlane.xlu1 %3524  ;;  %v9420_v12 = vpop.xlane.xlu0 %3522 }
 0x4fc   :  { %v3635_v48 = vrot.slane %v3634_v1, 1  ;;  %v3640_v37 = vrot.slane %v3639_v19, 2  ;;  %v3645_v3 = vrot.slane %v3644_v63, 4  ;;  %v3597_v59 = vmul.f32 %v9418_v34, %v9418_v34 }
 0x4fd   :  { %v3596_v31 = vmul.f32 %v9420_v12, %v9420_v12 }
 0x4fe   :  { %v3636_v22 = vadd.f32 %v3635_v48, %v3634_v1  ;;  %v3641_v39 = vadd.f32 %v3640_v37, %v3639_v19  ;;  %v3646_v14 = vadd.f32 %v3645_v3, %v3644_v63 }
 0x4ff   :  { %v3651_v4 = vadd.f32 %v3597_v59, %v3596_v31  ;;  %v9426_v57 = vpop.xlane.xlu1 %3528  ;;  %v9428_v46 = vpop.xlane.xlu0 %3526 }
 0x500   :  { %v3770_v41 = vadd.f32 1e-08, %v3636_v22  ;;  %v3830_v6 = vadd.f32 1.0, %v3636_v22  ;;  %v3642_v45 = vrot.slane %v3641_v39, 1  ;;  %v3647_v2 = vrot.slane %v3646_v14, 2 }
 0x501   :  { %v3652_v29 = vrot.slane %v3651_v4, 4  ;;  %v3599_v38 = vmul.f32 %v9426_v57, %v9426_v57  ;;  %v3598_v0 = vmul.f32 %v9428_v46, %v9428_v46 }
 0x502   :  { %6004 = vrsqrt.f32 %v3770_v41  ;;  %v3643_v8 = vadd.f32 %v3642_v45, %v3641_v39  ;;  %v3648_v33 = vadd.f32 %v3647_v2, %v3646_v14 }
 0x503   :  { %6006 = vrcp.f32 %v3830_v6  ;;  %v3653_v53 = vadd.f32 %v3652_v29, %v3651_v4  ;;  %v3658_v28 = vadd.f32 %v3599_v38, %v3598_v0  ;;  %v9434_v49 = vpop.xlane.xlu1 %3532  ;;  %v9436_v61 = vpop.xlane.xlu0 %3530 }
 0x504   :  { %v3771_v21 = vadd.f32 1e-08, %v3643_v8  ;;  %v3831_v23 = vadd.f32 1.0, %v3643_v8  ;;  %v3649_v11 = vrot.slane %v3648_v33, 1  ;;  %v3601_v43 = vmul.f32 %v9434_v49, %v9434_v49 }
 0x505   :  { %v3654_v20 = vrot.slane %v3653_v53, 2  ;;  %v3659_v26 = vrot.slane %v3658_v28, 4  ;;  %v3600_v47 = vmul.f32 %v9436_v61, %v9436_v61 }
 0x506   :  { %6008 = vrsqrt.f32 %v3771_v21  ;;  %v9442_v40 = vadd.f32 %v3649_v11, %v3648_v33 }
 0x507   :  { %v3655_v50 = vadd.f32 %v3654_v20, %v3653_v53  ;;  %v3660_v56 = vadd.f32 %v3659_v26, %v3658_v28  ;;  %v3665_v27 = vadd.f32 %v3601_v43, %v3600_v47  ;;  %v9444_v55 = vpop.xlane.xlu1 %3536  ;;  %v9446_v7 = vpop.xlane.xlu0 %3534  ;;  %6010 = vrcp.f32 %v3831_v23  ;;  %v9481_v53 = vld [vmem:[%s10539_s3] sm:$0xff]  ;;  %v9486_v28 = vld [vmem:[%s10539_s3 + $0x8] sm:$0xff] }
 0x508   :  { %v3772_v54 = vadd.f32 1e-08, %v9442_v40  ;;  %v3603_v51 = vmul.f32 %v9444_v55, %v9444_v55  ;;  %v3602_v25 = vmul.f32 %v9446_v7, %v9446_v7  ;;  %v3832_v16 = vadd.f32 1.0, %v9442_v40 }
 0x509   :  { %v3656_v42 = vrot.slane %v3655_v50, 1  ;;  %v3661_v32 = vrot.slane %v3660_v56, 2  ;;  %v3666_v15 = vrot.slane %v3665_v27, 4 }
 0x50a   :  { %6012 = vrsqrt.f32 %v3772_v54  ;;  %v3672_v9 = vadd.f32 %v3603_v51, %v3602_v25  ;;  %v9505_v25 = vld [vmem:[%s10539_s3 + $0x10] sm:$0xff] }
 0x50b   :  { %v9454_v44 = vadd.f32 %v3656_v42, %v3655_v50  ;;  %v3662_v52 = vadd.f32 %v3661_v32, %v3660_v56  ;;  %v3667_v35 = vadd.f32 %v3666_v15, %v3665_v27  ;;  %6014 = vrcp.f32 %v3832_v16  ;;  %v9457_v63 = vpop.xlane.xlu1 %3540  ;;  %v9459_v48 = vpop.xlane.xlu0 %3538  ;;  %v9510_v16 = vld [vmem:[%s10539_s3 + $0x18] sm:$0xff] }
 0x50c   :  { %v6005_v30 = vpop.eup %6004  ;;  %v3673_v58 = vrot.slane %v3672_v9, 4  ;;  %v3605_v6 = vmul.f32 %v9457_v63, %v9457_v63  ;;  %v3604_v45 = vmul.f32 %v9459_v48, %v9459_v48  ;;  %11199 = vst [vmem:[#allocation60_spill] sm:$0xff] %v9510_v16 }
 0x50d   :  { %v6007_v36 = vpop.eup %6006  ;;  %v3810_v10 = vmul.f32 %v6005_v30, %v3636_v22  ;;  %v3773_v1 = vadd.f32 1e-08, %v9454_v44  ;;  %v3663_v19 = vrot.slane %v3662_v52, 1  ;;  %v3833_v37 = vadd.f32 1.0, %v9454_v44  ;;  %v9467_v22 = vld [vmem:[%s10540_s4] ss:$0 sm:$0xff] }
 0x50e   :  { %v3668_v3 = vrot.slane %v3667_v35, 2  ;;  %v3674_v59 = vadd.f32 %v3673_v58, %v3672_v9  ;;  %v3679_v50 = vadd.f32 %v3605_v6, %v3604_v45  ;;  %v9542_v6 = vld [vmem:[%s10539_s3 + $0x28] sm:$0xff] }
 0x50f   :  { %v3870_v31 = vmul.f32 %v6007_v36, %v3810_v10  ;;  %6016 = vrsqrt.f32 %v3773_v1  ;;  %v9462_v39 = vadd.f32 %v3663_v19, %v3662_v52  ;;  %11201 = vst [vmem:[#allocation62_spill] sm:$0xff] %v9542_v6 }
 0x510   :  { %v6009_v14 = vpop.eup %6008  ;;  %v3669_v4 = vadd.f32 %v3668_v3, %v3667_v35  ;;  %v3675_v41 = vrot.slane %v3674_v59, 2  ;;  %6018 = vrcp.f32 %v3833_v37 }
 0x511   :  { %v3890_v2 = vmul.f32 %v3870_v31, %v9396_v13  ;;  %v9475_v29 = vmul.f32 %v3870_v31, %v9394_v24  ;;  %v3811_v38 = vmul.f32 %v6009_v14, %v3643_v8  ;;  %v3774_v0 = vadd.f32 1e-08, %v9462_v39  ;;  %v6011_v33 = vpop.eup %6010 }
 0x512   :  { %v3834_v13 = vadd.f32 1.0, %v9462_v39  ;;  %v3670_v21 = vrot.slane %v3669_v4, 1  ;;  %v3676_v24 = vadd.f32 %v3675_v41, %v3674_v59  ;;  %v9537_v41 = vld [vmem:[%s10539_s3 + $0x20] sm:$0xff] }
 0x513   :  { %v3930_v23 = vmul.f32 %v3890_v2, %v3890_v2  ;;  %v3931_v8 = vmul.f32 %v9475_v29, %v9475_v29  ;;  %v4408_v11 = vmul.f32 %v9467_v22, %v3890_v2  ;;  %v3871_v43 = vmul.f32 %v6011_v33, %v3811_v38  ;;  %11200 = vst [vmem:[#allocation61_spill] sm:$0xff] %v9537_v41 }
 0x514   :  { %v6013_v20 = vpop.eup %6012  ;;  %6020 = vrsqrt.f32 %v3774_v0  ;;  %v9492_v26 = vadd.f32 %v3670_v21, %v3669_v4  ;;  %v3677_v47 = vrot.slane %v3676_v24, 1 }
 0x515   :  { %v3990_v56 = vmul.f32 %v9481_v53, %v3930_v23  ;;  %v3991_v27 = vmul.f32 %v9486_v28, %v3931_v8  ;;  %v9497_v54 = vmul.f32 %v3871_v43, %v9404_v62  ;;  %v9500_v51 = vmul.f32 %v3871_v43, %v9402_v17  ;;  %4470 = vperm.xlu0 %5600, %v4408_v11   ;;  %v6015_v17 = vpop.eup %6014 }
 0x516   :  { %v3812_v42 = vmul.f32 %v6013_v20, %v9442_v40  ;;  %6022 = vrcp.f32 %v3834_v13  ;;  %v3775_v62 = vadd.f32 1e-08, %v9492_v26  ;;  %v3835_v32 = vadd.f32 1.0, %v9492_v26 }
 0x517   :  { %v4031_v15 = vsel %vm4030_vm2, %v3990_v56, 0.0  ;;  %v4032_v9 = vsel %vm4030_vm2, %v3991_v27, 0.0  ;;  %v3932_v52 = vmul.f32 %v9497_v54, %v9497_v54  ;;  %v3933_v35 = vmul.f32 %v9500_v51, %v9500_v51 }
 0x518   :  { %v4033_v30 = vadd.f32 %v4032_v9, %v4031_v15  ;;  %v3872_v58 = vmul.f32 %v6015_v17, %v3812_v42  ;;  %6024 = vrsqrt.f32 %v3775_v62  ;;  %v3680_v40 = vrot.slane %v3679_v50, 4  ;;  %v9564_v42 = vld [vmem:[%s10539_s3 + $0x30] sm:$0xff] }
 0x519   :  { %v6017_v36 = vpop.eup %6016  ;;  %v3992_v10 = vmul.f32 %v9505_v25, %v3932_v52  ;;  %v3993_v1 = vmul.f32 %v9510_v16, %v3933_v35  ;;  %v9523_v19 = vadd.f32 %v3677_v47, %v3676_v24  ;;  %6026 = vrcp.f32 %v3835_v32  ;;  %11202 = vst [vmem:[#allocation14_spill] sm:$0xff] %v9564_v42 }
 0x51a   :  { %v4034_v37 = vrot.slane %v4033_v30, 4  ;;  %v9526_v3 = vmul.f32 %v3872_v58, %v9412_v5  ;;  %v9529_v59 = vmul.f32 %v3872_v58, %v9410_v60  ;;  %v3813_v31 = vmul.f32 %v6017_v36, %v9454_v44  ;;  %v6019_v5 = vpop.eup %6018 }
 0x51b   :  { %v4040_v14 = vsel %vm4030_vm2, %v3992_v10, 0.0  ;;  %v4041_v4 = vsel %vm4030_vm2, %v3993_v1, 0.0  ;;  %v3776_v60 = vadd.f32 1e-08, %v9523_v19  ;;  %v3681_v38 = vadd.f32 %v3680_v40, %v3679_v50  ;;  %v9581_v1 = vpop.xlane.xlu1 %3544 }
 0x51c   :  { %v4042_v45 = vadd.f32 %v4041_v4, %v4040_v14  ;;  %v3934_v44 = vmul.f32 %v9526_v3, %v9526_v3  ;;  %v3935_v2 = vmul.f32 %v9529_v59, %v9529_v59  ;;  %v3873_v0 = vmul.f32 %v6019_v5, %v3813_v31 }
 0x51d   :  { %v3836_v33 = vadd.f32 1.0, %v9523_v19  ;;  %v4035_v21 = vadd.f32 %v4034_v37, %v4033_v30  ;;  %6028 = vrsqrt.f32 %v3776_v60  ;;  %v9583_v37 = vpop.xlane.xlu0 %3542 }
 0x51e   :  { %v6021_v13 = vpop.eup %6020  ;;  %v4043_v24 = vrot.slane %v4042_v45, 4  ;;  %v3994_v23 = vmul.f32 %v9537_v41, %v3934_v44  ;;  %v3995_v8 = vmul.f32 %v9542_v6, %v3935_v2  ;;  %v9553_v11 = vmul.f32 %v3873_v0, %v9420_v12  ;;  %v9569_v12 = vld [vmem:[%s10539_s3 + $0x38] sm:$0xff] }
 0x51f   :  { %v9556_v43 = vmul.f32 %v3873_v0, %v9418_v34  ;;  %v3814_v20 = vmul.f32 %v6021_v13, %v9462_v39  ;;  %11203 = vst [vmem:[#allocation53_spill] sm:$0xff] %v9569_v12  ;;  %v3682_v34 = vrot.slane %v3681_v38, 2  ;;  %v4036_v15 = vrot.slane %v4035_v21, 2 }
 0x520   :  { %v6023_v47 = vpop.eup %6022  ;;  %v4044_v50 = vadd.f32 %v4043_v24, %v4042_v45  ;;  %v4049_v56 = vsel %vm4030_vm2, %v3994_v23, 0.0  ;;  %v4050_v27 = vsel %vm4030_vm2, %v3995_v8, 0.0  ;;  %v3936_v39 = vmul.f32 %v9553_v11, %v9553_v11  ;;  %v9605_v8 = vpop.xlane.xlu1 %3548 }
 0x521   :  { %v4051_v62 = vadd.f32 %v4050_v27, %v4049_v56  ;;  %v3937_v32 = vmul.f32 %v9556_v43, %v9556_v43  ;;  %v3874_v9 = vmul.f32 %v6023_v47, %v3814_v20  ;;  %6030 = vrcp.f32 %v3836_v33  ;;  %v9595_v33 = vld [vmem:[%s10539_s3 + $0x40] sm:$0xff]  ;;  %v9607_v20 = vpop.xlane.xlu0 %3546 }
 0x522   :  { %v6025_v17 = vpop.eup %6024  ;;  %v3996_v35 = vmul.f32 %v9564_v42, %v3936_v39  ;;  %v4045_v40 = vrot.slane %v4044_v50, 2  ;;  %v3683_v10 = vadd.f32 %v3682_v34, %v3681_v38  ;;  %v4037_v45 = vadd.f32 %v4036_v15, %v4035_v21  ;;  %11204 = vst [vmem:[#allocation21_spill] sm:$0xff] %v9595_v33  ;;  %v9602_v21 = vld [vmem:[%s10539_s3 + $0x48] sm:$0xff]  ;;  %v9612_v47 = vld [vmem:[%s10540_s4 + $0x1] ss:$0 sm:$0xff] }
 0x523   :  { %v4052_v52 = vrot.slane %v4051_v62, 4  ;;  %v3997_v30 = vmul.f32 %v9569_v12, %v3937_v32  ;;  %v3815_v58 = vmul.f32 %v6025_v17, %v9492_v26  ;;  %v9579_v36 = vmul.f32 %v3874_v9, %v9428_v46  ;;  %v6027_v31 = vpop.eup %6026  ;;  %11205 = vst [vmem:[#allocation15_spill] sm:$0xff] %v9602_v21 }
 0x524   :  { %v4058_v4 = vsel %vm4030_vm2, %v3996_v35, 0.0  ;;  %v9588_v5 = vmul.f32 %v3874_v9, %v9426_v57  ;;  %v4046_v2 = vadd.f32 %v4045_v40, %v4044_v50  ;;  %v3684_v24 = vrot.slane %v3683_v10, 1 }
 0x525   :  { %v4053_v14 = vadd.f32 %v4052_v52, %v4051_v62  ;;  %v4059_v60 = vsel %vm4030_vm2, %v3997_v30, 0.0  ;;  %v3875_v26 = vmul.f32 %v6027_v31, %v3815_v58  ;;  %v3938_v46 = vmul.f32 %v9579_v36, %v9579_v36  ;;  %v9639_v58 = vld [vmem:[%s10539_s3 + $0x50] sm:$0xff] }
 0x526   :  { %v4060_v44 = vadd.f32 %v4059_v60, %v4058_v4  ;;  %v3939_v13 = vmul.f32 %v9588_v5, %v9588_v5  ;;  %v4038_v57 = vrot.slane %v4037_v45, 1  ;;  %v4047_v27 = vrot.slane %v4046_v2, 1  ;;  %11206 = vst [vmem:[#allocation58_spill] sm:$0xff] %v9639_v58 }
 0x527   :  { %v6029_v38 = vpop.eup %6028  ;;  %v4054_v0 = vrot.slane %v4053_v14, 2  ;;  %v3900_v23 = vmul.f32 %v3875_v26, %v9436_v61  ;;  %v3998_v34 = vmul.f32 %v9595_v33, %v3938_v46  ;;  %v9616_v62 = vmul.f32 %v3875_v26, %v9434_v49  ;;  %v9622_v61 = vld [vmem:[%s10540_s4 + $0x2] ss:$0 sm:$0xff]  ;;  %v9654_v26 = vpop.xlane.xlu0 %3550  ;;  %v9659_v46 = vld [vmem:[%s10540_s4 + $0x4] ss:$0 sm:$0xff] }
 0x528   :  { %v4061_v50 = vrot.slane %v4060_v44, 4  ;;  %v3816_v39 = vmul.f32 %v6029_v38, %v9523_v19  ;;  %v3999_v17 = vmul.f32 %v9602_v21, %v3939_v13  ;;  %v9625_v15 = vadd.f32 %v3684_v24, %v3683_v10  ;;  %v9634_v19 = vld [vmem:[%s10540_s4 + $0x3] ss:$0 sm:$0xff]  ;;  %v9677_v24 = vld [vmem:[%s10540_s4 + $0x5] ss:$0 sm:$0xff] }
 0x529   :  { %v4055_v32 = vadd.f32 %v4054_v0, %v4053_v14  ;;  %v4039_v9 = vadd.f32 %v4038_v57, %v4037_v45  ;;  %v9629_v52 = vmul.f32 %v9612_v47, %v9497_v54  ;;  %v3940_v35 = vmul.f32 %v3900_v23, %v3900_v23  ;;  %v9652_v45 = vpop.xlane.xlu1 %3552 }
 0x52a   :  { %v4062_v30 = vadd.f32 %v4061_v50, %v4060_v44  ;;  %v3777_v40 = vadd.f32 1e-08, %v9625_v15  ;;  %v3837_v10 = vadd.f32 1.0, %v9625_v15  ;;  %v3607_v54 = vmul.f32 %v9581_v1, %v9581_v1 }
 0x52b   :  { %v6031_v56 = vpop.eup %6030  ;;  %v4048_v31 = vadd.f32 %v4047_v27, %v4046_v2  ;;  %v9647_v14 = vmul.f32 %v9622_v61, %v9526_v3  ;;  %v4067_v4 = vsel %vm4030_vm2, %v3998_v34, 0.0  ;;  %v3941_v60 = vmul.f32 %v9616_v62, %v9616_v62  ;;  %v9665_v3 = vld [vmem:[%s10539_s3 + $0x58] sm:$0xff] }
 0x52c   :  { %v3876_v49 = vmul.f32 %v6031_v56, %v3816_v39  ;;  %v4056_v44 = vrot.slane %v4055_v32, 1  ;;  %v4068_v2 = vsel %vm4030_vm2, %v3999_v17, 0.0  ;;  %11207 = vst [vmem:[#allocation44_spill] sm:$0xff] %v9665_v3  ;;  %6032 = vrsqrt.f32 %v3777_v40 }
 0x52d   :  { %v3606_v38 = vmul.f32 %v9583_v37, %v9583_v37  ;;  %v4211_v0 = vsel %vm4030_vm2, %v4039_v9, 0.0  ;;  %v9672_v13 = vmul.f32 %v9634_v19, %v9553_v11  ;;  %v4000_v57 = vmul.f32 %v9639_v58, %v3940_v35 }
 0x52e   :  { %v9681_v50 = vmul.f32 %v3876_v49, %v9446_v7  ;;  %v4063_v56 = vrot.slane %v4062_v30, 2  ;;  %v9684_v27 = vmul.f32 %v3876_v49, %v9444_v55  ;;  %6034 = vrcp.f32 %v3837_v10 }
 0x52f   :  { %v3686_v34 = vadd.f32 %v3607_v54, %v3606_v38  ;;  %v4069_v39 = vadd.f32 %v4068_v2, %v4067_v4  ;;  %v9688_v11 = vmul.f32 %v9659_v46, %v9579_v36  ;;  %v4001_v17 = vmul.f32 %v9665_v3, %v3941_v60  ;;  %v9704_v4 = vpop.xlane.xlu1 %3556  ;;  %v9706_v60 = vpop.xlane.xlu0 %3554 }
 0x530   :  { %v3609_v9 = vmul.f32 %v9605_v8, %v9605_v8  ;;  %v4212_v35 = vsel %vm4030_vm2, %v4048_v31, 0.0  ;;  %v4057_v7 = vadd.f32 %v4056_v44, %v4055_v32  ;;  %v9695_v40 = vmul.f32 %v9677_v24, %v3900_v23  ;;  %v9713_v23 = vld [vmem:[%s10539_s3 + $0x60] sm:$0xff] }
 0x531   :  { %v3687_v55 = vrot.slane %v3686_v34, 4  ;;  %v4076_v49 = vsel %vm4030_vm2, %v4000_v57, 0.0  ;;  %v3942_v10 = vmul.f32 %v9681_v50, %v9681_v50  ;;  %v3608_v36 = vmul.f32 %v9607_v20, %v9607_v20 }
 0x532   :  { %v4409_v54 = vmul.f32 %v9467_v22, %v9475_v29  ;;  %v9708_v32 = vadd.f32 %v4063_v56, %v4062_v30  ;;  %v3943_v31 = vmul.f32 %v9684_v27, %v9684_v27  ;;  %v3611_v2 = vmul.f32 %v9652_v45, %v9652_v45  ;;  %v9723_v29 = vld [vmem:[%s10539_s3 + $0x68] sm:$0xff] }
 0x533   :  { %v3688_v44 = vadd.f32 %v3687_v55, %v3686_v34  ;;  %v4070_v38 = vrot.slane %v4069_v39, 4  ;;  %v4077_v22 = vsel %vm4030_vm2, %v4001_v17, 0.0  ;;  %v3693_v30 = vadd.f32 %v3609_v9, %v3608_v36 }
 0x534   :  { %4475 = vperm.xlu1 %5601, %v4409_v54   ;;  %v3610_v57 = vmul.f32 %v9654_v26, %v9654_v26  ;;  %v4214_v56 = vsel %vm4030_vm2, %v4057_v7, 0.0  ;;  %v3613_v34 = vmul.f32 %v9704_v4, %v9704_v4  ;;  %v3612_v55 = vmul.f32 %v9706_v60, %v9706_v60 }
 0x535   :  { %v3689_v18 = vrot.slane %v3688_v44, 2  ;;  %v4213_v17 = vadd.f32 %v4212_v35, %v4211_v0  ;;  %v4002_v3 = vmul.f32 %v9713_v23, %v3942_v10  ;;  %v3694_v58 = vrot.slane %v3693_v30, 4 }
 0x536   :  { %v3700_v21 = vadd.f32 %v3611_v2, %v3610_v57  ;;  %v6033_v33 = vpop.eup %6032  ;;  %v4078_v9 = vadd.f32 %v4077_v22, %v4076_v49  ;;  %v4003_v36 = vmul.f32 %v9723_v29, %v3943_v31  ;;  %v3707_v12 = vadd.f32 %v3613_v34, %v3612_v55 }
 0x537   :  { %v3690_v54 = vadd.f32 %v3689_v18, %v3688_v44  ;;  %v9734_v42 = vadd.f32 %v4214_v56, %v4213_v17  ;;  %v3817_v7 = vmul.f32 %v6033_v33, %v9625_v15  ;;  %v3695_v6 = vadd.f32 %v3694_v58, %v3693_v30  ;;  %v9742_v44 = vpop.xlane.xlu1 %3560  ;;  %v9747_v30 = vpop.xlane.xlu0 %3558 }
 0x538   :  { %v3701_v41 = vrot.slane %v3700_v21, 4  ;;  %4480 = vperm.xlu1 %5601, %v9629_v52   ;;  %v6035_v16 = vpop.eup %6034  ;;  %v4065_v0 = vrot.slane %v9708_v32, 1  ;;  %v4071_v35 = vadd.f32 %v4070_v38, %v4069_v39  ;;  %v3708_v2 = vrot.slane %v3707_v12, 4 }
 0x539   :  { %v3691_v10 = vrot.slane %v3690_v54, 1  ;;  %v4085_v49 = vsel %vm4030_vm2, %v4002_v3, 0.0  ;;  %v3877_v22 = vmul.f32 %v6035_v16, %v3817_v7  ;;  %v3696_v31 = vrot.slane %v3695_v6, 2  ;;  %v9752_v3 = vld [vmem:[%s10539_s3 + $0x70] sm:$0xff] }
 0x53a   :  { %v4411_v18 = vmul.f32 %v9612_v47, %v9500_v51  ;;  %v4086_v33 = vsel %vm4030_vm2, %v4003_v36, 0.0  ;;  %v3702_v52 = vadd.f32 %v3701_v41, %v3700_v21  ;;  %v3709_v58 = vadd.f32 %v3708_v2, %v3707_v12  ;;  %v9763_v41 = vld [vmem:[%s10539_s3 + $0x78] sm:$0xff] }
 0x53b   :  { %v9745_v15 = vadd.f32 %v3691_v10, %v3690_v54  ;;  %v4079_v39 = vrot.slane %v4078_v9, 4  ;;  %v9755_v16 = vmul.f32 %v3877_v22, %v9459_v48  ;;  %v9758_v51 = vmul.f32 %v3877_v22, %v9457_v63  ;;  %v9776_v10 = vpop.xlane.xlu1 %3564 }
 0x53c   :  { %v3697_v47 = vadd.f32 %v3696_v31, %v3695_v6  ;;  %4485 = vperm.xlu1 %5601, %v4411_v18   ;;  %v3703_v38 = vrot.slane %v3702_v52, 2  ;;  %v3710_v57 = vrot.slane %v3709_v58, 2  ;;  %v4072_v56 = vrot.slane %v4071_v35, 2  ;;  %v9782_v18 = vpop.xlane.xlu0 %3562 }
 0x53d   :  { %v3778_v12 = vadd.f32 1e-08, %v9745_v15  ;;  %v3838_v21 = vadd.f32 1.0, %v9745_v15  ;;  %v4087_v34 = vadd.f32 %v4086_v33, %v4085_v49  ;;  %v3944_v48 = vmul.f32 %v9755_v16, %v9755_v16 }
 0x53e   :  { %v3945_v63 = vmul.f32 %v9758_v51, %v9758_v51  ;;  %v3698_v6 = vrot.slane %v3697_v47, 1  ;;  %v3704_v55 = vadd.f32 %v3703_v38, %v3702_v52  ;;  %v3711_v17 = vadd.f32 %v3710_v57, %v3709_v58 }
 0x53f   :  { %6036 = vrsqrt.f32 %v3778_v12  ;;  %v4004_v36 = vmul.f32 %v9752_v3, %v3944_v48  ;;  %v3615_v7 = vmul.f32 %v9742_v44, %v9742_v44  ;;  %v3614_v31 = vmul.f32 %v9747_v30, %v9747_v30 }
 0x540   :  { %v4005_v54 = vmul.f32 %v9763_v41, %v3945_v63  ;;  %6038 = vrcp.f32 %v3838_v21  ;;  %4490 = vperm.xlu1 %5601, %v9647_v14   ;;  %v9778_v2 = vadd.f32 %v3698_v6, %v3697_v47  ;;  %v3705_v49 = vrot.slane %v3704_v55, 1 }
 0x541   :  { %v3712_v22 = vrot.slane %v3711_v17, 1  ;;  %v4066_v33 = vadd.f32 %v4065_v0, %v9708_v32  ;;  %v4073_v52 = vadd.f32 %v4072_v56, %v4071_v35  ;;  %v4080_v58 = vadd.f32 %v4079_v39, %v4078_v9 }
 0x542   :  { %v4088_v12 = vrot.slane %v4087_v34, 4  ;;  %v4094_v21 = vsel %vm4030_vm2, %v4004_v36, 0.0  ;;  %v3779_v14 = vadd.f32 1e-08, %v9778_v2  ;;  %v3839_v38 = vadd.f32 1.0, %v9778_v2 }
 0x543   :  { %v3617_v47 = vmul.f32 %v9776_v10, %v9776_v10  ;;  %v9790_v57 = vadd.f32 %v3705_v49, %v3704_v55  ;;  %v9792_v48 = vadd.f32 %v3712_v22, %v3711_v17  ;;  %v3714_v63 = vadd.f32 %v3615_v7, %v3614_v31  ;;  %v9806_v49 = vpop.xlane.xlu0 %3566 }
 0x544   :  { %v3616_v32 = vmul.f32 %v9782_v18, %v9782_v18  ;;  %v4095_v9 = vsel %vm4030_vm2, %v4005_v54, 0.0  ;;  %6040 = vrsqrt.f32 %v3779_v14  ;;  %v4413_v0 = vmul.f32 %v9622_v61, %v9529_v59  ;;  %v9804_v54 = vpop.xlane.xlu1 %3568  ;;  %v5577_v14 = vld [vmem:[%s10540_s4 + $0x6] ss:$0 sm:$0xff] }
 0x545   :  { %v4417_v35 = vmul.f32 %v9659_v46, %v9588_v5  ;;  %v4081_v39 = vrot.slane %v4080_v58, 2  ;;  %v3780_v56 = vadd.f32 1e-08, %v9790_v57  ;;  %v3840_v6 = vadd.f32 1.0, %v9790_v57 }
 0x546   :  { %v3781_v55 = vadd.f32 1e-08, %v9792_v48  ;;  %v4089_v17 = vadd.f32 %v4088_v12, %v4087_v34  ;;  %6042 = vrcp.f32 %v3839_v38  ;;  %v3715_v36 = vrot.slane %v3714_v63, 4  ;;  %4495 = vperm.xlu1 %5601, %v4413_v0  }
 0x547   :  { %v3721_v7 = vadd.f32 %v3617_v47, %v3616_v32  ;;  %4515 = vperm.xlu0 %5600, %v4417_v35   ;;  %v4096_v59 = vadd.f32 %v4095_v9, %v4094_v21  ;;  %6044 = vrsqrt.f32 %v3780_v56  ;;  %v3841_v5 = vadd.f32 1.0, %v9792_v48 }
 0x548   :  { %v4419_v61 = vmul.f32 %v9677_v24, %v9616_v62  ;;  %v4216_v22 = vsel %vm4030_vm2, %v4066_v33, 0.0  ;;  %6046 = vrcp.f32 %v3840_v6  ;;  %v3716_v34 = vadd.f32 %v3715_v36, %v3714_v63 }
 0x549   :  { %v6037_v46 = vpop.eup %6036  ;;  %v3722_v31 = vrot.slane %v3721_v7, 4  ;;  %6048 = vrsqrt.f32 %v3781_v55  ;;  %v3619_v21 = vmul.f32 %v9804_v54, %v9804_v54  ;;  %v3618_v62 = vmul.f32 %v9806_v49, %v9806_v49 }
 0x54a   :  { %v6039_v12 = vpop.eup %6038  ;;  %v3818_v38 = vmul.f32 %v6037_v46, %v9745_v15  ;;  %v4074_v24 = vrot.slane %v4073_v52, 1  ;;  %v9820_v47 = vadd.f32 %v4081_v39, %v4080_v58  ;;  %v3717_v33 = vrot.slane %v3716_v34, 2  ;;  %4500 = vperm.xlu1 %5601, %v9672_v13  }
 0x54b   :  { %v3723_v63 = vadd.f32 %v3722_v31, %v3721_v7  ;;  %4525 = vperm.xlu0 %5600, %v4419_v61   ;;  %v4090_v32 = vrot.slane %v4089_v17, 2  ;;  %v4097_v9 = vrot.slane %v4096_v59, 4  ;;  %6050 = vrcp.f32 %v3841_v5 }
 0x54c   :  { %v3878_v0 = vmul.f32 %v6039_v12, %v3818_v38  ;;  %v3718_v15 = vadd.f32 %v3717_v33, %v3716_v34  ;;  %v4415_v56 = vmul.f32 %v9634_v19, %v9556_v43  ;;  %v4421_v6 = vmul.f32 %v5577_v14, %v9684_v27  ;;  %v9843_v43 = vld [vmem:[%s10539_s3 + $0x80] sm:$0xff] }
 0x54d   :  { %v3724_v35 = vrot.slane %v3723_v63, 2  ;;  %v9827_v55 = vmul.f32 %v5577_v14, %v9681_v50  ;;  %v3728_v39 = vadd.f32 %v3619_v21, %v3618_v62  ;;  %v9836_v7 = vadd.f32 %v4216_v22, %v9734_v42 }
 0x54e   :  { %v9830_v58 = vmul.f32 %v3878_v0, %v9583_v37  ;;  %v9833_v13 = vmul.f32 %v3878_v0, %v9581_v1  ;;  %v6041_v36 = vpop.eup %6040  ;;  %v9838_v5 = vadd.f32 %v4074_v24, %v4073_v52  ;;  %v9848_v37 = vld [vmem:[%s10539_s3 + $0x88] sm:$0xff]  ;;  %v3719_v19 = vrot.slane %v3718_v15, 1  ;;  %4505 = vperm.xlu1 %5601, %v4415_v56  }
 0x54f   :  { %v3725_v1 = vadd.f32 %v3724_v35, %v3723_v63  ;;  %4535 = vperm.xlu0 %5600, %v4421_v6   ;;  %v4083_v50 = vrot.slane %v9820_v47, 1  ;;  %v3819_v52 = vmul.f32 %v6041_v36, %v9778_v2  ;;  %v9856_v46 = vadd.f32 %v4090_v32, %v4089_v17  ;;  %v9881_v35 = vld [vmem:[%s10539_s3 + $0x90] sm:$0xff] }
 0x550   :  { %v3946_v42 = vmul.f32 %v9830_v58, %v9830_v58  ;;  %v3947_v27 = vmul.f32 %v9833_v13, %v9833_v13  ;;  %v6043_v61 = vpop.eup %6042  ;;  %v9858_v22 = vadd.f32 %v4097_v9, %v4096_v59  ;;  %v9860_v34 = vadd.f32 %v3719_v19, %v3718_v15  ;;  %11210 = vst [vmem:[#allocation57_spill] sm:$0xff] %v9881_v35  ;;  %v9896_v19 = vld [vmem:[%s10540_s4 + $0xa] ss:$0 sm:$0xff] }
 0x551   :  { %v3726_v31 = vrot.slane %v3725_v1, 1  ;;  %v6045_v12 = vpop.eup %6044  ;;  %v3879_v21 = vmul.f32 %v6043_v61, %v3819_v52  ;;  %v3729_v62 = vrot.slane %v3728_v39, 4 }
 0x552   :  { %v4006_v14 = vmul.f32 %v9843_v43, %v3946_v42  ;;  %v4007_v38 = vmul.f32 %v9848_v37, %v3947_v27  ;;  %v6047_v24 = vpop.eup %6046  ;;  %v3820_v33 = vmul.f32 %v6045_v12, %v9790_v57  ;;  %v3782_v2 = vadd.f32 1e-08, %v9860_v34  ;;  %4510 = vperm.xlu1 %5601, %v9688_v11   ;;  %v9886_v11 = vld [vmem:[%s10539_s3 + $0x98] sm:$0xff]  ;;  %v9898_v42 = vpop.xlane.xlu1 %3572 }
 0x553   :  { %v3842_v17 = vadd.f32 1.0, %v9860_v34  ;;  %v9867_v63 = vadd.f32 %v3726_v31, %v3725_v1  ;;  %v6049_v59 = vpop.eup %6048  ;;  %v9873_v0 = vmul.f32 %v3879_v21, %v9607_v20  ;;  %v9876_v15 = vmul.f32 %v3879_v21, %v9605_v8  ;;  %11211 = vst [vmem:[#allocation31_spill] sm:$0xff] %v9886_v11  ;;  %v9900_v27 = vpop.xlane.xlu0 %3570 }
 0x554   :  { %v4103_v32 = vsel %vm4030_vm2, %v4006_v14, 0.0  ;;  %v4104_v9 = vsel %vm4030_vm2, %v4007_v38, 0.0  ;;  %v3880_v56 = vmul.f32 %v6047_v24, %v3820_v33  ;;  %v3821_v6 = vmul.f32 %v6049_v59, %v9792_v48  ;;  %v9925_v24 = vld [vmem:[%s10540_s4 + $0x7] ss:$0 sm:$0xff] }
 0x555   :  { %11208 = vst [vmem:[#allocation17_spill] sm:$0xff] %v9873_v0  ;;  %11209 = vst [vmem:[#allocation59_spill] sm:$0xff] %v9876_v15  ;;  %v4105_v57 = vadd.f32 %v4104_v9, %v4103_v32  ;;  %6052 = vrsqrt.f32 %v3782_v2  ;;  %v6051_v20 = vpop.eup %6050  ;;  %v3948_v8 = vmul.f32 %v9873_v0, %v9873_v0  ;;  %v3949_v36 = vmul.f32 %v9876_v15, %v9876_v15  ;;  %v11218_v15 = vld [vmem:[#allocation15_spill] sm:$0xff] }
 0x556   :  { %6054 = vrcp.f32 %v3842_v17  ;;  %v3730_v1 = vadd.f32 %v3729_v62, %v3728_v39  ;;  %v3910_v52 = vmul.f32 %v3880_v56, %v9654_v26  ;;  %v9904_v61 = vmul.f32 %v3880_v56, %v9652_v45  ;;  %4520 = vperm.xlu1 %5601, %v9695_v40   ;;  %v9915_v26 = vld [vmem:[%s10540_s4 + $0xb] ss:$0 sm:$0xff] }
 0x557   :  { %v4106_v48 = vrot.slane %v4105_v57, 4  ;;  %v3881_v31 = vmul.f32 %v6051_v20, %v3821_v6  ;;  %v4099_v12 = vrot.slane %v9858_v22, 2  ;;  %v4008_v14 = vmul.f32 %v9881_v35, %v3948_v8 }
 0x558   :  { %v4009_v38 = vmul.f32 %v9886_v11, %v3949_v36  ;;  %v3783_v39 = vadd.f32 1e-08, %v9867_v63  ;;  %v4428_v21 = vmul.f32 %v9896_v19, %v3910_v52  ;;  %v3843_v45 = vadd.f32 1.0, %v9867_v63 }
 0x559   :  { %v3621_v40 = vmul.f32 %v9898_v42, %v9898_v42  ;;  %v3620_v62 = vmul.f32 %v9900_v27, %v9900_v27  ;;  %v4107_v33 = vadd.f32 %v4106_v48, %v4105_v57  ;;  %v3950_v2 = vmul.f32 %v3910_v52, %v3910_v52 }
 0x55a   :  { %v3951_v17 = vmul.f32 %v9904_v61, %v9904_v61  ;;  %v3912_v59 = vmul.f32 %v3881_v31, %v9706_v60  ;;  %v4218_v32 = vsel %vm4030_vm2, %v9838_v5, 0.0  ;;  %v4084_v9 = vadd.f32 %v4083_v50, %v9820_v47  ;;  %4530 = vperm.xlu1 %5601, %v9827_v55   ;;  %4570 = vperm.xlu0 %5600, %v4428_v21  }
 0x55b   :  { %v4112_v56 = vsel %vm4030_vm2, %v4008_v14, 0.0  ;;  %v3731_v6 = vrot.slane %v3730_v1, 2  ;;  %v4113_v20 = vsel %vm4030_vm2, %v4009_v38, 0.0  ;;  %v9937_v57 = vmul.f32 %v3881_v31, %v9704_v4 }
 0x55c   :  { %v4430_v8 = vmul.f32 %v9915_v26, %v3912_v59  ;;  %6056 = vrsqrt.f32 %v3783_v39  ;;  %v4092_v60 = vrot.slane %v9856_v46, 1  ;;  %v4100_v5 = vadd.f32 %v4099_v12, %v9858_v22 }
 0x55d   :  { %v4422_v47 = vmul.f32 %v9925_v24, %v9755_v16  ;;  %v3735_v50 = vadd.f32 %v3621_v40, %v3620_v62  ;;  %v4108_v36 = vrot.slane %v4107_v33, 2  ;;  %v4010_v55 = vmul.f32 %v9481_v53, %v3950_v2 }
 0x55e   :  { %v4011_v48 = vmul.f32 %v9486_v28, %v3951_v17  ;;  %6058 = vrcp.f32 %v3843_v45  ;;  %v4219_v4 = vadd.f32 %v4218_v32, %v9836_v7  ;;  %v4114_v31 = vadd.f32 %v4113_v20, %v4112_v56  ;;  %4580 = vperm.xlu0 %5600, %v4430_v8   ;;  %v9957_v17 = vld [vmem:[%s10540_s4 + $0xc] ss:$0 sm:$0xff] }
 0x55f   :  { %v6053_v52 = vpop.eup %6052  ;;  %v3732_v14 = vadd.f32 %v3731_v6, %v3730_v1  ;;  %4540 = vperm.xlu1 %5601, %v4422_v47   ;;  %v4220_v22 = vsel %vm4030_vm2, %v4084_v9, 0.0  ;;  %v3952_v12 = vmul.f32 %v3912_v59, %v3912_v59  ;;  %v3953_v16 = vmul.f32 %v9937_v57, %v9937_v57  ;;  %v11212_v9 = vld [vmem:[#allocation60_spill] sm:$0xff] }
 0x560   :  { %v6055_v38 = vpop.eup %6054  ;;  %v3822_v39 = vmul.f32 %v6053_v52, %v9860_v34  ;;  %v4093_v53 = vadd.f32 %v4092_v60, %v9856_v46  ;;  %v4101_v28 = vrot.slane %v4100_v5, 1  ;;  %v3736_v45 = vrot.slane %v3735_v50, 4  ;;  %v9961_v34 = vpop.xlane.xlu1 %3576 }
 0x561   :  { %v3733_v21 = vrot.slane %v3732_v14, 1  ;;  %v4109_v40 = vadd.f32 %v4108_v36, %v4107_v33  ;;  %v4121_v7 = vsel %vm4030_vm2, %v4010_v55, 0.0  ;;  %v4122_v1 = vsel %vm4030_vm2, %v4011_v48, 0.0  ;;  %v9963_v46 = vpop.xlane.xlu0 %3574 }
 0x562   :  { %v3882_v62 = vmul.f32 %v6055_v38, %v3822_v39  ;;  %v4115_v2 = vrot.slane %v4114_v31, 4  ;;  %v4221_v32 = vadd.f32 %v4220_v22, %v4219_v4  ;;  %v4012_v33 = vmul.f32 %v9505_v25, %v3952_v12 }
 0x563   :  { %v9959_v59 = vadd.f32 %v3733_v21, %v3732_v14  ;;  %v4013_v56 = vmul.f32 %v11212_v9, %v3953_v16  ;;  %v4123_v20 = vadd.f32 %v4122_v1, %v4121_v7  ;;  %v3737_v47 = vadd.f32 %v3736_v45, %v3735_v50 }
 0x564   :  { %v3914_v6 = vmul.f32 %v3882_v62, %v9747_v30  ;;  %v4222_v55 = vsel %vm4030_vm2, %v4093_v53, 0.0  ;;  %v4102_v48 = vadd.f32 %v4101_v28, %v4100_v5  ;;  %v4110_v52 = vrot.slane %v4109_v40, 1  ;;  %v9982_v39 = vpop.xlane.xlu1 %3580 }
 0x565   :  { %v3784_v8 = vadd.f32 1e-08, %v9959_v59  ;;  %v3844_v60 = vadd.f32 1.0, %v9959_v59  ;;  %v4116_v4 = vadd.f32 %v4115_v2, %v4114_v31  ;;  %v3623_v30 = vmul.f32 %v9961_v34, %v9961_v34  ;;  %v9984_v53 = vpop.xlane.xlu0 %3578 }
 0x566   :  { %v6057_v36 = vpop.eup %6056  ;;  %v4432_v14 = vmul.f32 %v9957_v17, %v3914_v6  ;;  %v4130_v22 = vsel %vm4030_vm2, %v4012_v33, 0.0  ;;  %v4131_v12 = vsel %vm4030_vm2, %v4013_v56, 0.0  ;;  %v9978_v50 = vmul.f32 %v3882_v62, %v9742_v44  ;;  %v9992_v62 = vld [vmem:[%s10540_s4 + $0xd] ss:$0 sm:$0xff] }
 0x567   :  { %v3823_v25 = vmul.f32 %v6057_v36, %v9867_v63  ;;  %6060 = vrsqrt.f32 %v3784_v8  ;;  %v3622_v5 = vmul.f32 %v9963_v46, %v9963_v46  ;;  %v4124_v16 = vrot.slane %v4123_v20, 4 }
 0x568   :  { %v6059_v38 = vpop.eup %6058  ;;  %4590 = vperm.xlu0 %5600, %v4432_v14   ;;  %6062 = vrcp.f32 %v3844_v60  ;;  %v3738_v63 = vrot.slane %v3737_v47, 2  ;;  %v4223_v28 = vadd.f32 %v4222_v55, %v4221_v32  ;;  %v4224_v21 = vsel %vm4030_vm2, %v4102_v48, 0.0 }
 0x569   :  { %v3883_v31 = vmul.f32 %v6059_v38, %v3823_v25  ;;  %v4111_v45 = vadd.f32 %v4110_v52, %v4109_v40  ;;  %v4117_v7 = vrot.slane %v4116_v4, 2  ;;  %v9987_v1 = vadd.f32 %v4131_v12, %v4130_v22  ;;  %v10006_v25 = vpop.xlane.xlu1 %3584 }
 0x56a   :  { %v3954_v44 = vmul.f32 %v3914_v6, %v3914_v6  ;;  %v3955_v33 = vmul.f32 %v9978_v50, %v9978_v50  ;;  %v3739_v9 = vadd.f32 %v3738_v63, %v3737_v47  ;;  %v3742_v56 = vadd.f32 %v3623_v30, %v3622_v5 }
 0x56b   :  { %v3916_v2 = vmul.f32 %v3883_v31, %v9782_v18  ;;  %v4225_v32 = vadd.f32 %v4224_v21, %v4223_v28  ;;  %v4125_v8 = vadd.f32 %v4124_v16, %v4123_v20  ;;  %v9998_v40 = vmul.f32 %v3883_v31, %v9776_v10  ;;  %v11213_v18 = vld [vmem:[#allocation61_spill] sm:$0xff]  ;;  %v10008_v20 = vpop.xlane.xlu0 %3582  ;;  %v11214_v10 = vld [vmem:[#allocation62_spill] sm:$0xff] }
 0x56c   :  { %v4226_v60 = vsel %vm4030_vm2, %v4111_v45, 0.0  ;;  %v3740_v36 = vrot.slane %v3739_v9, 1  ;;  %v3743_v55 = vrot.slane %v3742_v56, 4  ;;  %v4118_v48 = vadd.f32 %v4117_v7, %v4116_v4 }
 0x56d   :  { %v4434_v6 = vmul.f32 %v9992_v62, %v3916_v2  ;;  %v4133_v52 = vrot.slane %v9987_v1, 4  ;;  %v4014_v14 = vmul.f32 %v11213_v18, %v3954_v44  ;;  %v3625_v47 = vmul.f32 %v9982_v39, %v9982_v39 }
 0x56e   :  { %v4015_v30 = vmul.f32 %v11214_v10, %v3955_v33  ;;  %v10011_v38 = vadd.f32 %v3740_v36, %v3739_v9  ;;  %v3744_v22 = vadd.f32 %v3743_v55, %v3742_v56  ;;  %v3624_v12 = vmul.f32 %v9984_v53, %v9984_v53  ;;  %v11216_v55 = vld [vmem:[#allocation53_spill] sm:$0xff]  ;;  %v10033_v10 = vld [vmem:[%s10540_s4 + $0xe] ss:$0 sm:$0xff] }
 0x56f   :  { %4600 = vperm.xlu0 %5600, %v4434_v6   ;;  %v10015_v5 = vadd.f32 %v4226_v60, %v4225_v32  ;;  %v4126_v16 = vrot.slane %v4125_v8, 2  ;;  %v3956_v31 = vmul.f32 %v3916_v2, %v3916_v2  ;;  %v3957_v63 = vmul.f32 %v9998_v40, %v9998_v40  ;;  %v10037_v0 = vpop.xlane.xlu0 %3586 }
 0x570   :  { %v3785_v21 = vadd.f32 1e-08, %v10011_v38  ;;  %v3845_v45 = vadd.f32 1.0, %v10011_v38  ;;  %v3627_v7 = vmul.f32 %v10006_v25, %v10006_v25  ;;  %v4119_v33 = vrot.slane %v4118_v48, 1 }
 0x571   :  { %v6061_v4 = vpop.eup %6060  ;;  %v3745_v9 = vrot.slane %v3744_v22, 2  ;;  %v3749_v56 = vadd.f32 %v3625_v47, %v3624_v12  ;;  %v3626_v32 = vmul.f32 %v10008_v20, %v10008_v20  ;;  %v4139_v2 = vsel %vm4030_vm2, %v4014_v14, 0.0  ;;  %v10035_v12 = vpop.xlane.xlu1 %3588 }
 0x572   :  { %v3824_v28 = vmul.f32 %v6061_v4, %v9959_v59  ;;  %v6063_v44 = vpop.eup %6062  ;;  %v4140_v60 = vsel %vm4030_vm2, %v4015_v30, 0.0  ;;  %6064 = vrsqrt.f32 %v3785_v21  ;;  %v11215_v59 = vld [vmem:[#allocation14_spill] sm:$0xff]  ;;  %v4017_v18 = vmul.f32 %v11216_v55, %v3957_v63 }
 0x573   :  { %v4016_v36 = vmul.f32 %v11215_v59, %v3956_v31  ;;  %v3746_v4 = vadd.f32 %v3745_v9, %v3744_v22  ;;  %v3750_v47 = vrot.slane %v3749_v56, 4  ;;  %6066 = vrcp.f32 %v3845_v45 }
 0x574   :  { %v3884_v6 = vmul.f32 %v6063_v44, %v3824_v28  ;;  %v3756_v31 = vadd.f32 %v3627_v7, %v3626_v32  ;;  %v4120_v28 = vadd.f32 %v4119_v33, %v4118_v48  ;;  %v4141_v63 = vadd.f32 %v4140_v60, %v4139_v2 }
 0x575   :  { %v3747_v21 = vrot.slane %v3746_v4, 1  ;;  %v3751_v44 = vadd.f32 %v3750_v47, %v3749_v56  ;;  %v3629_v22 = vmul.f32 %v10035_v12, %v10035_v12  ;;  %v3628_v9 = vmul.f32 %v10037_v0, %v10037_v0 }
 0x576   :  { %v3918_v14 = vmul.f32 %v3884_v6, %v9806_v49  ;;  %v10041_v30 = vmul.f32 %v3884_v6, %v9804_v54  ;;  %v3757_v7 = vrot.slane %v3756_v31, 4  ;;  %v10052_v48 = vadd.f32 %v4126_v16, %v4125_v8 }
 0x577   :  { %v10050_v54 = vadd.f32 %v3747_v21, %v3746_v4  ;;  %v3752_v45 = vrot.slane %v3751_v44, 2  ;;  %v10055_v33 = vadd.f32 %v4133_v52, %v9987_v1  ;;  %v4148_v56 = vsel %vm4030_vm2, %v4016_v36, 0.0  ;;  %v11217_v21 = vld [vmem:[#allocation21_spill] sm:$0xff] }
 0x578   :  { %v3958_v59 = vmul.f32 %v3918_v14, %v3918_v14  ;;  %v4436_v55 = vmul.f32 %v10033_v10, %v3918_v14  ;;  %v3959_v49 = vmul.f32 %v10041_v30, %v10041_v30  ;;  %v4149_v32 = vsel %vm4030_vm2, %v4017_v18, 0.0 }
 0x579   :  { %v3786_v2 = vadd.f32 1e-08, %v10050_v54  ;;  %v3846_v60 = vadd.f32 1.0, %v10050_v54  ;;  %v3753_v6 = vadd.f32 %v3752_v45, %v3751_v44  ;;  %v3758_v47 = vadd.f32 %v3757_v7, %v3756_v31 }
 0x57a   :  { %4610 = vperm.xlu0 %5600, %v4436_v55   ;;  %v4228_v4 = vsel %vm4030_vm2, %v4120_v28, 0.0  ;;  %v4142_v14 = vrot.slane %v4141_v63, 4  ;;  %v4018_v8 = vmul.f32 %v11217_v21, %v3958_v59  ;;  %v3763_v16 = vadd.f32 %v3629_v22, %v3628_v9 }
 0x57b   :  { %v4019_v1 = vmul.f32 %v11218_v15, %v3959_v49  ;;  %6068 = vrsqrt.f32 %v3786_v2  ;;  %v3754_v52 = vrot.slane %v3753_v6, 1  ;;  %v3759_v36 = vrot.slane %v3758_v47, 2 }
 0x57c   :  { %v6065_v11 = vpop.eup %6064  ;;  %v4135_v18 = vrot.slane %v10055_v33, 2  ;;  %v4150_v55 = vadd.f32 %v4149_v32, %v4148_v56  ;;  %v3764_v35 = vrot.slane %v3763_v16, 4  ;;  %v4429_v44 = vmul.f32 %v9896_v19, %v9904_v61 }
 0x57d   :  { %v3825_v31 = vmul.f32 %v6065_v11, %v10011_v38  ;;  %6070 = vrcp.f32 %v3846_v60  ;;  %v10068_v28 = vadd.f32 %v3754_v52, %v3753_v6  ;;  %v3760_v59 = vadd.f32 %v3759_v36, %v3758_v47  ;;  %v6067_v22 = vpop.eup %6066  ;;  %v10078_v11 = vld [vmem:[%s10540_s4 + $0xf] ss:$0 sm:$0xff] }
 0x57e   :  { %v4229_v15 = vadd.f32 %v4228_v4, %v10015_v5  ;;  %v4128_v9 = vrot.slane %v10052_v48, 1  ;;  %v4143_v49 = vadd.f32 %v4142_v14, %v4141_v63  ;;  %v3765_v45 = vadd.f32 %v3764_v35, %v3763_v16  ;;  %4575 = vperm.xlu1 %5601, %v4429_v44   ;;  %v11219_v44 = vld [vmem:[#allocation58_spill] sm:$0xff] }
 0x57f   :  { %v4157_v7 = vsel %vm4030_vm2, %v4018_v8, 0.0  ;;  %v4158_v56 = vsel %vm4030_vm2, %v4019_v1, 0.0  ;;  %v3885_v32 = vmul.f32 %v6067_v22, %v3825_v31  ;;  %v3787_v19 = vadd.f32 1e-08, %v10068_v28 }
 0x580   :  { %v3847_v61 = vadd.f32 1.0, %v10068_v28  ;;  %v3761_v38 = vrot.slane %v3760_v59, 1  ;;  %v3766_v5 = vrot.slane %v3765_v45, 2  ;;  %v4431_v35 = vmul.f32 %v9915_v26, %v9937_v57 }
 0x581   :  { %v4151_v63 = vrot.slane %v4150_v55, 4  ;;  %v3920_v2 = vmul.f32 %v3885_v32, %v9900_v27  ;;  %v10085_v60 = vmul.f32 %v3885_v32, %v9898_v42  ;;  %6072 = vrsqrt.f32 %v3787_v19 }
 0x582   :  { %v10087_v6 = vadd.f32 1e-08, %v4229_v15  ;;  %v4159_v47 = vadd.f32 %v4158_v56, %v4157_v7  ;;  %v10089_v4 = vadd.f32 %v3761_v38, %v3760_v59  ;;  %v3767_v14 = vadd.f32 %v3766_v5, %v3765_v45  ;;  %4585 = vperm.xlu1 %5601, %v4431_v35   ;;  %v11220_v59 = vld [vmem:[#allocation44_spill] sm:$0xff]  ;;  %v5587_v35 = vld [vmem:[%s10540_s4 + $0x10] ss:$0 sm:$0xff] }
 0x583   :  { %v3960_v21 = vmul.f32 %v3920_v2, %v3920_v2  ;;  %v3961_v8 = vmul.f32 %v10085_v60, %v10085_v60  ;;  %v4438_v26 = vmul.f32 %v10078_v11, %v3920_v2  ;;  %v4433_v27 = vmul.f32 %v9957_v17, %v9978_v50 }
 0x584   :  { %6074 = vrcp.f32 %v3847_v61  ;;  %v3788_v42 = vadd.f32 1e-08, %v10089_v4  ;;  %v3848_v57 = vadd.f32 1.0, %v10089_v4  ;;  %v3768_v16 = vrot.slane %v3767_v14, 1 }
 0x585   :  { %v6069_v1 = vpop.eup %6068  ;;  %v4144_v52 = vrot.slane %v4143_v49, 2  ;;  %v4152_v36 = vadd.f32 %v4151_v63, %v4150_v55  ;;  %v4020_v31 = vmul.f32 %v11219_v44, %v3960_v21  ;;  %v4021_v22 = vmul.f32 %v11220_v59, %v3961_v8  ;;  %4620 = vperm.xlu0 %5600, %v4438_v26   ;;  %v5588_v59 = vld [vmem:[%s10540_s4 + $0x11] ss:$0 sm:$0xff] }
 0x586   :  { %v4160_v15 = vrot.slane %v4159_v47, 4  ;;  %v3826_v45 = vmul.f32 %v6069_v1, %v10050_v54  ;;  %6076 = vrsqrt.f32 %v3788_v42  ;;  %v10101_v7 = vadd.f32 %v3768_v16, %v3767_v14  ;;  %4595 = vperm.xlu1 %5601, %v4433_v27  }
 0x587   :  { %v6071_v17 = vpop.eup %6070  ;;  %v4136_v50 = vadd.f32 %v4135_v18, %v10055_v33  ;;  %v4166_v56 = vsel %vm4030_vm2, %v4020_v31, 0.0  ;;  %v4167_v32 = vsel %vm4030_vm2, %v4021_v22, 0.0  ;;  %v4435_v55 = vmul.f32 %v9992_v62, %v9998_v40  ;;  %v5579_v33 = vld [vmem:[%s10540_s4 + $0x8] ss:$0 sm:$0xff] }
 0x588   :  { %v4168_v19 = vadd.f32 %v4167_v32, %v4166_v56  ;;  %v3886_v61 = vmul.f32 %v6071_v17, %v3826_v45  ;;  %6078 = vrcp.f32 %v3848_v57  ;;  %v3789_v38 = vadd.f32 1e-08, %v10101_v7 }
 0x589   :  { %v4145_v54 = vadd.f32 %v4144_v52, %v4143_v49  ;;  %v4153_v5 = vrot.slane %v4152_v36, 2  ;;  %6080 = vrsqrt.f32 %v10087_v6  ;;  %v4161_v18 = vadd.f32 %v4160_v15, %v4159_v47 }
 0x58a   :  { %v3922_v62 = vmul.f32 %v3886_v61, %v9963_v46  ;;  %v3923_v40 = vmul.f32 %v3886_v61, %v9961_v34  ;;  %v3849_v63 = vadd.f32 1.0, %v10101_v7  ;;  %4605 = vperm.xlu1 %5601, %v4435_v55   ;;  %v4129_v2 = vadd.f32 %v4128_v9, %v10052_v48 }
 0x58b   :  { %v6073_v49 = vpop.eup %6072  ;;  %v4137_v14 = vrot.slane %v4136_v50, 1  ;;  %6082 = vrsqrt.f32 %v3789_v38  ;;  %v4437_v21 = vmul.f32 %v10033_v10, %v10041_v30  ;;  %v4169_v8 = vrot.slane %v4168_v19, 4 }
 0x58c   :  { %v3962_v26 = vmul.f32 %v3922_v62, %v3922_v62  ;;  %v3963_v27 = vmul.f32 %v3923_v40, %v3923_v40  ;;  %v4440_v42 = vmul.f32 %v5587_v35, %v3922_v62  ;;  %v10123_v47 = vmul.f32 %v5579_v33, %v9830_v58 }
 0x58d   :  { %v4146_v46 = vrot.slane %v4145_v54, 1  ;;  %v10125_v34 = vadd.f32 %v4153_v5, %v4152_v36  ;;  %v3827_v57 = vmul.f32 %v6073_v49, %v10068_v28  ;;  %v4162_v1 = vrot.slane %v4161_v18, 2 }
 0x58e   :  { %v6075_v16 = vpop.eup %6074  ;;  %v4022_v48 = vmul.f32 %v9713_v23, %v3962_v26  ;;  %v4023_v9 = vmul.f32 %v9723_v29, %v3963_v27  ;;  %6084 = vrcp.f32 %v3849_v63  ;;  %4615 = vperm.xlu1 %5601, %v4437_v21   ;;  %4630 = vperm.xlu0 %5600, %v4440_v42   ;;  %v10131_v10 = vsel %vm4030_vm2, %v4129_v2, 0.0 }
 0x58f   :  { %v10133_v30 = vadd.f32 %v4137_v14, %v4136_v50  ;;  %v3887_v58 = vmul.f32 %v6075_v16, %v3827_v57  ;;  %v4439_v52 = vmul.f32 %v10078_v11, %v10085_v60  ;;  %v4170_v28 = vadd.f32 %v4169_v8, %v4168_v19 }
 0x590   :  { %v6077_v36 = vpop.eup %6076  ;;  %v4175_v44 = vsel %vm4030_vm2, %v4022_v48, 0.0  ;;  %v4176_v23 = vsel %vm4030_vm2, %v4023_v9, 0.0  ;;  %v4423_v29 = vmul.f32 %v9925_v24, %v9758_v51  ;;  %v4147_v45 = vadd.f32 %v4146_v46, %v4145_v54 }
 0x591   :  { %v4177_v31 = vadd.f32 %v4176_v23, %v4175_v44  ;;  %v3924_v22 = vmul.f32 %v3887_v58, %v9984_v53  ;;  %v3925_v15 = vmul.f32 %v3887_v58, %v9982_v39  ;;  %v3828_v11 = vmul.f32 %v6077_v36, %v10089_v4 }
 0x592   :  { %v6079_v60 = vpop.eup %6078  ;;  %v4155_v17 = vrot.slane %v10125_v34, 1  ;;  %v10148_v50 = vadd.f32 %v4162_v1, %v4161_v18  ;;  %4625 = vperm.xlu1 %5601, %v4439_v52   ;;  %4545 = vperm.xlu0 %5600, %v4423_v29   ;;  %v4425_v51 = vmul.f32 %v5579_v33, %v9833_v13  ;;  %vm4253_vm3 = vcmp.eq.f32.partialorder %v10087_v6, inf }
 0x593   :  { %v6081_v24 = vpop.eup %6080  ;;  %v4178_v56 = vrot.slane %v4177_v31, 4  ;;  %v3964_v32 = vmul.f32 %v3924_v22, %v3924_v22  ;;  %v3965_v55 = vmul.f32 %v3925_v15, %v3925_v15  ;;  %v4171_v53 = vrot.slane %v4170_v28, 2 }
 0x594   :  { %v3888_v39 = vmul.f32 %v6079_v60, %v3828_v11  ;;  %v4441_v19 = vmul.f32 %v5587_v35, %v3923_v40  ;;  %v4443_v4 = vmul.f32 %v5588_v59, %v3925_v15  ;;  %v4252_v18 = vmul.f32 %v6081_v24, %v10087_v6  ;;  %v11222_v11 = vld [vmem:[#allocation31_spill] sm:$0xff] }
 0x595   :  { %v6083_v61 = vpop.eup %6082  ;;  %v4179_v38 = vadd.f32 %v4178_v56, %v4177_v31  ;;  %v4024_v54 = vmul.f32 %v9752_v3, %v3964_v32  ;;  %v4025_v5 = vmul.f32 %v9763_v41, %v3965_v55  ;;  %v4256_v63 = vand.u32 2147483648, %v10087_v6  ;;  %v11223_v56 = vld [vmem:[#allocation59_spill] sm:$0xff] }
 0x596   :  { %v3926_v13 = vmul.f32 %v3888_v39, %v10008_v20  ;;  %v3927_v33 = vmul.f32 %v3888_v39, %v10006_v25  ;;  %v3829_v62 = vmul.f32 %v6083_v61, %v10101_v7  ;;  %4635 = vperm.xlu1 %5601, %v4441_v19   ;;  %4645 = vperm.xlu0 %5600, %v4443_v4   ;;  %v5589_v25 = vld [vmem:[%s10540_s4 + $0x12] ss:$0 sm:$0xff]  ;;  %vm4255_vm5 = vcmp.eq.f32.partialorder %v10087_v6, 0.0  ;;  %v11224_v4 = vld [vmem:[#allocation17_spill] sm:$0xff] }
 0x597   :  { %v4180_v35 = vrot.slane %v4179_v38, 2  ;;  %v4184_v40 = vsel %vm4030_vm2, %v4024_v54, 0.0  ;;  %v4185_v49 = vsel %vm4030_vm2, %v4025_v5, 0.0  ;;  %v4442_v2 = vmul.f32 %v5588_v59, %v3924_v22  ;;  %v11221_v22 = vld [vmem:[#allocation57_spill] sm:$0xff] }
 0x598   :  { %v6085_v3 = vpop.eup %6084  ;;  %v4186_v41 = vadd.f32 %v4185_v49, %v4184_v40  ;;  %v3966_v14 = vmul.f32 %v3926_v13, %v3926_v13  ;;  %v3967_v21 = vmul.f32 %v3927_v33, %v3927_v33  ;;  %v4172_v20 = vadd.f32 %v4171_v53, %v4170_v28 }
 0x599   :  { %v3889_v7 = vmul.f32 %v6085_v3, %v3829_v62  ;;  %v4254_v8 = vsel %vm4253_vm3, %v10087_v6, %v4252_v18  ;;  %v4164_v57 = vrot.slane %v10148_v50, 1  ;;  %v4181_v16 = vadd.f32 %v4180_v35, %v4179_v38 }
 0x59a   :  { %v4187_v26 = vrot.slane %v4186_v41, 4  ;;  %v4026_v27 = vmul.f32 %v9843_v43, %v3966_v14  ;;  %v4027_v42 = vmul.f32 %v9848_v37, %v3967_v21  ;;  %4640 = vperm.xlu1 %5601, %v4442_v2   ;;  %4555 = vperm.xlu0 %5600, %v4425_v51   ;;  %v4257_v46 = vsel %vm4255_vm5, %v4256_v63, %v4254_v8  ;;  %v5580_v37 = vld [vmem:[%s10540_s4 + $0x9] ss:$0 sm:$0xff] }
 0x59b   :  { %v3928_v1 = vmul.f32 %v3889_v7, %v10037_v0  ;;  %v3929_v48 = vmul.f32 %v3889_v7, %v10035_v12  ;;  %4266 = vst.msk [vmem:[#allocation2] sm:$0x1] %vm4265_vm4, %v4257_v46  ;;  %v4445_v43 = vmul.f32 %v5589_v25, %v3927_v33  ;;  %v4231_v52 = vsel %vm4030_vm2, %v10133_v30, 0.0 }
 0x59c   :  { %v4188_v9 = vadd.f32 %v4187_v26, %v4186_v41  ;;  %v4193_v6 = vsel %vm4030_vm2, %v4026_v27, 0.0  ;;  %v4194_v58 = vsel %vm4030_vm2, %v4027_v42, 0.0  ;;  %v4233_v12 = vsel %vm4030_vm2, %v4147_v45, 0.0 }
 0x59d   :  { %v4195_v36 = vadd.f32 %v4194_v58, %v4193_v6  ;;  %v3968_v28 = vmul.f32 %v3928_v1, %v3928_v1  ;;  %v3969_v0 = vmul.f32 %v3929_v48, %v3929_v48  ;;  %v4156_v44 = vadd.f32 %v4155_v17, %v10125_v34 }
 0x59e   :  { %v4173_v23 = vrot.slane %v4172_v20, 1  ;;  %v4189_v29 = vrot.slane %v4188_v9, 2  ;;  %4550 = vperm.xlu1 %5601, %v10123_v47   ;;  %4655 = vperm.xlu0 %5600, %v4445_v43   ;;  %v4165_v31 = vadd.f32 %v4164_v57, %v10148_v50  ;;  %v4182_v30 = vrot.slane %v4181_v16, 1  ;;  %v5590_v47 = vld [vmem:[%s10540_s4 + $0x13] ss:$0 sm:$0xff] }
 0x59f   :  { %v4196_v59 = vrot.slane %v4195_v36, 4  ;;  %v4028_v15 = vmul.f32 %v11221_v22, %v3968_v28  ;;  %v4029_v60 = vmul.f32 %v11222_v11, %v3969_v0  ;;  %v4444_v24 = vmul.f32 %v5589_v25, %v3926_v13 }
 0x5a0   :  { %v4190_v51 = vadd.f32 %v4189_v29, %v4188_v9  ;;  %v4427_v32 = vmul.f32 %v5580_v37, %v11223_v56  ;;  %v4232_v45 = vadd.f32 %v4231_v52, %v10131_v10  ;;  %v4235_v55 = vsel %vm4030_vm2, %v4156_v44, 0.0  ;;  %v4471_v44 = vpop.permute.xlu0 %4470 }
 0x5a1   :  { %v4197_v34 = vadd.f32 %v4196_v59, %v4195_v36  ;;  %v4202_v17 = vsel %vm4030_vm2, %v4028_v15, 0.0  ;;  %v4203_v50 = vsel %vm4030_vm2, %v4029_v60, 0.0  ;;  %v4174_v53 = vadd.f32 %v4173_v23, %v4172_v20 }
 0x5a2   :  { %v4191_v39 = vrot.slane %v4190_v51, 1  ;;  %v4204_v19 = vadd.f32 %v4203_v50, %v4202_v17  ;;  %4650 = vperm.xlu1 %5601, %v4444_v24   ;;  %4565 = vperm.xlu0 %5600, %v4427_v32   ;;  %v4426_v61 = vmul.f32 %v5580_v37, %v11224_v4  ;;  %v4234_v38 = vadd.f32 %v4233_v12, %v4232_v45  ;;  %v4449_v24 = vld [vmem:[%s10541_s5 + $0x8] sm:$0xff] }
 0x5a3   :  { %v4198_v10 = vrot.slane %v4197_v34, 2  ;;  %v4237_v54 = vsel %vm4030_vm2, %v4165_v31, 0.0  ;;  %v4183_v5 = vadd.f32 %v4182_v30, %v4181_v16  ;;  %v4447_v13 = vmul.f32 %v5590_v47, %v3929_v48  ;;  %v4453_v50 = vld [vmem:[%s10541_s5 + $0x28] sm:$0xff] }
 0x5a4   :  { %v4205_v18 = vrot.slane %v4204_v19, 4  ;;  %v4236_v33 = vadd.f32 %v4235_v55, %v4234_v38  ;;  %v4239_v63 = vsel %vm4030_vm2, %v4174_v53, 0.0  ;;  %v4192_v35 = vadd.f32 %v4191_v39, %v4190_v51  ;;  %v4448_v51 = vld [vmem:[%s10541_s5] sm:$0xff] }
 0x5a5   :  { %v4199_v62 = vadd.f32 %v4198_v10, %v4197_v34  ;;  %v4241_v41 = vsel %vm4030_vm2, %v4183_v5, 0.0  ;;  %v4446_v14 = vmul.f32 %v5590_v47, %v3928_v1  ;;  %v4668_v32 = vmul.f32 %v4471_v44, %v4448_v51  ;;  %v4451_v34 = vld [vmem:[%s10541_s5 + $0x18] sm:$0xff]  ;;  %v4450_v47 = vld [vmem:[%s10541_s5 + $0x10] sm:$0xff] }
 0x5a6   :  { %v4206_v40 = vadd.f32 %v4205_v18, %v4204_v19  ;;  %4560 = vperm.xlu1 %5601, %v4426_v61   ;;  %4665 = vperm.xlu0 %5600, %v4447_v13   ;;  %v4238_v49 = vadd.f32 %v4237_v54, %v4236_v33  ;;  %v4243_v25 = vsel %vm4030_vm2, %v4192_v35, 0.0  ;;  %v4452_v19 = vld [vmem:[%s10541_s5 + $0x20] sm:$0xff]  ;;  %v4455_v54 = vld [vmem:[%s10541_s5 + $0x38] sm:$0xff] }
 0x5a7   :  { %v4200_v3 = vrot.slane %v4199_v62, 1 }
 0x5a8   :  { %v4207_v2 = vrot.slane %v4206_v40, 2  ;;  %v4240_v21 = vadd.f32 %v4239_v63, %v4238_v49 }
 0x5a9   :  { %v4201_v20 = vadd.f32 %v4200_v3, %v4199_v62  ;;  %v4454_v62 = vld [vmem:[%s10541_s5 + $0x30] sm:$0xff] }
 0x5aa   :  { %v4208_v7 = vadd.f32 %v4207_v2, %v4206_v40  ;;  %4660 = vperm.xlu1 %5601, %v4446_v14   ;;  %v4242_v8 = vadd.f32 %v4241_v41, %v4240_v21  ;;  %v4456_v41 = vld [vmem:[%s10541_s5 + $0x40] sm:$0xff] }
 0x5ab   :  { %v4245_v26 = vsel %vm4030_vm2, %v4201_v20, 0.0 }
 0x5ac   :  { %v4209_v27 = vrot.slane %v4208_v7, 1  ;;  %v4244_v42 = vadd.f32 %v4243_v25, %v4242_v8  ;;  %v4457_v25 = vld [vmem:[%s10541_s5 + $0x48] sm:$0xff] }
 0x5ae   :  { %v4210_v46 = vadd.f32 %v4209_v27, %v4208_v7  ;;  %v4246_v57 = vadd.f32 %v4245_v26, %v4244_v42 }
 0x5b0   :  { %v4247_v16 = vsel %vm4030_vm2, %v4210_v46, 0.0 }
 0x5b1   :  { %v4248_v48 = vadd.f32 %v4247_v16, %v4246_v57  ;;  %v4458_v16 = vld [vmem:[%s10541_s5 + $0x50] sm:$0xff] }
 0x5b3   :  { %v4250_v9 = vadd.f32 1e-08, %v4248_v48  ;;  %v4476_v6 = vpop.permute.xlu1 %4475 }
 0x5b4   :  { %v4669_v45 = vmul.f32 %v4476_v6, %v4449_v24 }
 0x5b5   :  { %6086 = vrsqrt.f32 %v4250_v9  ;;  %vm4260_vm6 = vcmp.eq.f32.partialorder %v4250_v9, inf  ;;  %v4263_v37 = vand.u32 2147483648, %v4250_v9  ;;  %vm4262_vm7 = vcmp.eq.f32.partialorder %v4250_v9, 0.0 }
 0x5b6   :  { %v4708_v39 = vadd.f32 %v4669_v45, %v4668_v32 }
 0x5b7   :  { %v4481_v43 = vpop.permute.xlu1 %4480 }
 0x5b8   :  { %v4670_v4 = vmul.f32 %v4481_v43, %v4450_v47  ;;  %v4709_v5 = vrot.slane %v4708_v39, 4  ;;  %v4460_v43 = vld [vmem:[%s10541_s5 + $0x60] sm:$0xff] }
 0x5ba   :  { %v4710_v40 = vadd.f32 %v4709_v5, %v4708_v39 }
 0x5bb   :  { %v4486_v28 = vpop.permute.xlu1 %4485 }
 0x5bc   :  { %v4671_v55 = vmul.f32 %v4486_v28, %v4451_v34  ;;  %v4711_v7 = vrot.slane %v4710_v40, 2 }
 0x5be   :  { %v4715_v38 = vadd.f32 %v4671_v55, %v4670_v4  ;;  %v4712_v48 = vadd.f32 %v4711_v7, %v4710_v40 }
 0x5bf   :  { %v6087_v1 = vpop.eup %6086  ;;  %v4491_v0 = vpop.permute.xlu1 %4490 }
 0x5c0   :  { %v4259_v58 = vmul.f32 %v6087_v1, %v4250_v9  ;;  %v4672_v10 = vmul.f32 %v4491_v0, %v4452_v19  ;;  %v4716_v35 = vrot.slane %v4715_v38, 4  ;;  %v4713_v44 = vrot.slane %v4712_v48, 1 }
 0x5c2   :  { %v4261_v52 = vsel %vm4260_vm6, %v4250_v9, %v4259_v58  ;;  %v4717_v21 = vadd.f32 %v4716_v35, %v4715_v38  ;;  %v4459_v58 = vld [vmem:[%s10541_s5 + $0x58] sm:$0xff] }
 0x5c3   :  { %v4264_v36 = vsel %vm4262_vm7, %v4263_v37, %v4261_v52 }
 0x5c4   :  { %4267 = vst.msk [vmem:[#allocation2 + $0x1] sm:$0x1] %vm4265_vm4, %v4264_v36  ;;  %v4718_v46 = vrot.slane %v4717_v21, 2 }
 0x5c5   :  { %v4496_v12 = vpop.permute.xlu1 %4495 }
 0x5c6   :  { %v4516_v23 = vpop.permute.xlu0 %4515  ;;  %v4673_v61 = vmul.f32 %v4496_v12, %v4453_v50  ;;  %v4719_v28 = vadd.f32 %v4718_v46, %v4717_v21 }
 0x5c7   :  { %v4677_v42 = vmul.f32 %v4516_v23, %v4457_v25 }
 0x5c8   :  { %v4722_v13 = vadd.f32 %v4673_v61, %v4672_v10  ;;  %v4720_v10 = vrot.slane %v4719_v28, 1 }
 0x5c9   :  { %v4501_v29 = vpop.permute.xlu1 %4500 }
 0x5ca   :  { %v10203_v31 = vpop.permute.xlu0 %4525  ;;  %v4723_v49 = vrot.slane %v4722_v13, 4  ;;  %v4674_v3 = vmul.f32 %v4501_v29, %v4454_v62 }
 0x5cc   :  { %v4724_v26 = vadd.f32 %v4723_v49, %v4722_v13  ;;  %v4721_v49 = vadd.f32 %v4720_v10, %v4719_v28 }
 0x5cd   :  { %v4506_v59 = vpop.permute.xlu1 %4505 }
 0x5ce   :  { %v10205_v22 = vpop.permute.xlu0 %4535  ;;  %v4675_v63 = vmul.f32 %v4506_v59, %v4455_v54  ;;  %v4725_v1 = vrot.slane %v4724_v26, 2  ;;  %v4679_v59 = vmul.f32 %v10203_v31, %v4459_v58 }
 0x5d0   :  { %v4729_v20 = vadd.f32 %v4675_v63, %v4674_v3  ;;  %v4726_v55 = vadd.f32 %v4725_v1, %v4724_v26 }
 0x5d1   :  { %v4511_v15 = vpop.permute.xlu1 %4510 }
 0x5d2   :  { %v4676_v8 = vmul.f32 %v4511_v15, %v4456_v41  ;;  %v4730_v57 = vrot.slane %v4729_v20, 4  ;;  %v4461_v15 = vld [vmem:[%s10541_s5 + $0x68] sm:$0xff] }
 0x5d4   :  { %v4736_v6 = vadd.f32 %v4677_v42, %v4676_v8  ;;  %v4731_v0 = vadd.f32 %v4730_v57, %v4729_v20 }
 0x5d5   :  { %v4521_v60 = vpop.permute.xlu1 %4520 }
 0x5d6   :  { %v4678_v36 = vmul.f32 %v4521_v60, %v4458_v16  ;;  %v4737_v32 = vrot.slane %v4736_v6, 4 }
 0x5d8   :  { %v4738_v13 = vadd.f32 %v4737_v32, %v4736_v6  ;;  %v4465_v32 = vld [vmem:[%s10541_s5 + $0x88] sm:$0xff] }
 0x5d9   :  { %v10207_v11 = vpop.permute.xlu0 %4570  ;;  %v4531_v56 = vpop.permute.xlu1 %4530 }
 0x5da   :  { %v4680_v45 = vmul.f32 %v4531_v56, %v4460_v43  ;;  %v4688_v39 = vmul.f32 %v10207_v11, %v4448_v51  ;;  %v4463_v11 = vld [vmem:[%s10541_s5 + $0x78] sm:$0xff]  ;;  %v4714_v56 = vadd.f32 %v4713_v44, %v4712_v48 }
 0x5dd   :  { %v4581_v30 = vpop.permute.xlu0 %4580 }
 0x5de   :  { %v10224_v53 = vpop.permute.xlu1 %4540  ;;  %v4690_v23 = vmul.f32 %v4581_v30, %v4450_v47  ;;  %v4732_v30 = vrot.slane %v4731_v0, 2  ;;  %v4681_v47 = vmul.f32 %v10205_v22, %v4461_v15  ;;  %v4462_v22 = vld [vmem:[%s10541_s5 + $0x70] sm:$0xff] }
 0x5df   :  { %v4682_v42 = vmul.f32 %v10224_v53, %v4462_v22 }
 0x5e0   :  { %v4750_v51 = vadd.f32 %v4681_v47, %v4680_v45 }
 0x5e7   :  { %v4591_v17 = vpop.permute.xlu0 %4590 }
 0x5e8   :  { %v4692_v4 = vmul.f32 %v4591_v17, %v4452_v19 }
 0x5ee   :  { %v4601_v18 = vpop.permute.xlu0 %4600 }
 0x5ef   :  { %v4694_v5 = vmul.f32 %v4601_v18, %v4454_v62  ;;  %v4733_v18 = vadd.f32 %v4732_v30, %v4731_v0  ;;  %v4848_v0 = vadd.f32 %v4721_v49, %v4714_v56 }
 0x5f1   :  { %v4734_v1 = vrot.slane %v4733_v18, 1 }
 0x5f9   :  { %v4611_v14 = vpop.permute.xlu0 %4610 }
 0x5fa   :  { %v4696_v62 = vmul.f32 %v4611_v14, %v4456_v41 }
 0x5fd   :  { %v4576_v33 = vpop.permute.xlu1 %4575 }
 0x5fe   :  { %v4689_v12 = vmul.f32 %v4576_v33, %v4449_v24  ;;  %v4743_v24 = vadd.f32 %v4679_v59, %v4678_v36  ;;  %v4727_v33 = vrot.slane %v4726_v55, 1 }
 0x600   :  { %v4778_v31 = vadd.f32 %v4689_v12, %v4688_v39  ;;  %v4744_v40 = vrot.slane %v4743_v24, 4  ;;  %v4728_v7 = vadd.f32 %v4727_v33, %v4726_v55 }
 0x601   :  { %v4586_v2 = vpop.permute.xlu1 %4585 }
 0x602   :  { %v4691_v37 = vmul.f32 %v4586_v2, %v4451_v34  ;;  %v4779_v3 = vrot.slane %v4778_v31, 4  ;;  %v4745_v41 = vadd.f32 %v4744_v40, %v4743_v24 }
 0x604   :  { %v4621_v9 = vpop.permute.xlu0 %4620  ;;  %v4785_v34 = vadd.f32 %v4691_v37, %v4690_v23  ;;  %v4780_v14 = vadd.f32 %v4779_v3, %v4778_v31 }
 0x605   :  { %v4596_v27 = vpop.permute.xlu1 %4595  ;;  %v4698_v26 = vmul.f32 %v4621_v9, %v4458_v16 }
 0x606   :  { %v4693_v29 = vmul.f32 %v4596_v27, %v4453_v50  ;;  %v4786_v17 = vrot.slane %v4785_v34, 4  ;;  %v4751_v27 = vrot.slane %v4750_v51, 4 }
 0x608   :  { %v4792_v50 = vadd.f32 %v4693_v29, %v4692_v4  ;;  %v4787_v46 = vadd.f32 %v4786_v17, %v4785_v34  ;;  %v4752_v9 = vadd.f32 %v4751_v27, %v4750_v51  ;;  %v4746_v34 = vrot.slane %v4745_v41, 2 }
 0x609   :  { %v4606_v52 = vpop.permute.xlu1 %4605  ;;  %v4781_v4 = vrot.slane %v4780_v14, 2 }
 0x60a   :  { %v4695_v60 = vmul.f32 %v4606_v52, %v4455_v54  ;;  %v4793_v2 = vrot.slane %v4792_v50, 4  ;;  %v4788_v29 = vrot.slane %v4787_v46, 2 }
 0x60c   :  { %v4799_v19 = vadd.f32 %v4695_v60, %v4694_v5  ;;  %v4794_v28 = vadd.f32 %v4793_v2, %v4792_v50  ;;  %v4753_v50 = vrot.slane %v4752_v9, 2  ;;  %v4789_v5 = vadd.f32 %v4788_v29, %v4787_v46  ;;  %v4467_v46 = vld [vmem:[%s10541_s5 + $0x98] sm:$0xff] }
 0x60d   :  { %v4616_v61 = vpop.permute.xlu1 %4615  ;;  %v4631_v38 = vpop.permute.xlu0 %4630 }
 0x60e   :  { %v4697_v63 = vmul.f32 %v4616_v61, %v4457_v25  ;;  %v4739_v25 = vrot.slane %v4738_v13, 2  ;;  %v4800_v57 = vrot.slane %v4799_v19, 4  ;;  %v4700_v52 = vmul.f32 %v4631_v38, %v4460_v43  ;;  %v4464_v38 = vld [vmem:[%s10541_s5 + $0x80] sm:$0xff] }
 0x60f   :  { %v4849_v43 = vadd.f32 %v4848_v0, %v4728_v7  ;;  %v4795_v60 = vrot.slane %v4794_v28, 2  ;;  %v4754_v2 = vadd.f32 %v4753_v50, %v4752_v9 }
 0x610   :  { %v4806_v8 = vadd.f32 %v4697_v63, %v4696_v62  ;;  %v4740_v16 = vadd.f32 %v4739_v25, %v4738_v13  ;;  %v4801_v53 = vadd.f32 %v4800_v57, %v4799_v19  ;;  %v4747_v19 = vadd.f32 %v4746_v34, %v4745_v41 }
 0x611   :  { %v4626_v54 = vpop.permute.xlu1 %4625  ;;  %v4546_v35 = vpop.permute.xlu0 %4545 }
 0x612   :  { %v4699_v21 = vmul.f32 %v4626_v54, %v4459_v58  ;;  %v4683_v20 = vmul.f32 %v4546_v35, %v4463_v11  ;;  %v4807_v12 = vrot.slane %v4806_v8, 4  ;;  %v4741_v31 = vrot.slane %v4740_v16, 1 }
 0x613   :  { %v4802_v13 = vrot.slane %v4801_v53, 2  ;;  %v4782_v54 = vadd.f32 %v4781_v4, %v4780_v14  ;;  %v4796_v35 = vadd.f32 %v4795_v60, %v4794_v28  ;;  %v4748_v57 = vrot.slane %v4747_v19, 1  ;;  %v4466_v14 = vld [vmem:[%s10541_s5 + $0x90] sm:$0xff] }
 0x614   :  { %v4813_v37 = vadd.f32 %v4699_v21, %v4698_v26  ;;  %v4757_v58 = vadd.f32 %v4683_v20, %v4682_v42  ;;  %v4808_v24 = vadd.f32 %v4807_v12, %v4806_v8  ;;  %v4742_v3 = vadd.f32 %v4741_v31, %v4740_v16 }
 0x615   :  { %v4636_v48 = vpop.permute.xlu1 %4635  ;;  %v4646_v6 = vpop.permute.xlu0 %4645  ;;  %v4790_v21 = vrot.slane %v4789_v5, 1  ;;  %v4803_v20 = vadd.f32 %v4802_v13, %v4801_v53  ;;  %v4755_v28 = vrot.slane %v4754_v2, 1  ;;  %v4749_v50 = vadd.f32 %v4748_v57, %v4747_v19 }
 0x616   :  { %v4701_v36 = vmul.f32 %v4636_v48, %v4461_v15  ;;  %v4703_v23 = vmul.f32 %v4646_v6, %v4463_v11  ;;  %v4735_v15 = vadd.f32 %v4734_v1, %v4733_v18  ;;  %v4814_v55 = vrot.slane %v4813_v37, 4 }
 0x617   :  { %v4758_v61 = vrot.slane %v4757_v58, 4  ;;  %v4783_v48 = vrot.slane %v4782_v54, 1  ;;  %v4797_v6 = vrot.slane %v4796_v35, 1  ;;  %v4804_v0 = vrot.slane %v4803_v20, 1 }
 0x618   :  { %v4820_v44 = vadd.f32 %v4701_v36, %v4700_v52  ;;  %v10269_v11 = vadd.f32 %v4849_v43, %v4735_v15  ;;  %v4815_v51 = vadd.f32 %v4814_v55, %v4813_v37 }
 0x619   :  { %v4641_v59 = vpop.permute.xlu1 %4640  ;;  %v4556_v45 = vpop.permute.xlu0 %4555  ;;  %v4759_v40 = vadd.f32 %v4758_v61, %v4757_v58  ;;  %v4791_v58 = vadd.f32 %v4790_v21, %v4789_v5  ;;  %v4805_v60 = vadd.f32 %v4804_v0, %v4803_v20 }
 0x61a   :  { %v4702_v39 = vmul.f32 %v4641_v59, %v4462_v22  ;;  %v4821_v10 = vrot.slane %v4820_v44, 4  ;;  %v4685_v47 = vmul.f32 %v4556_v45, %v4465_v32  ;;  %v4809_v22 = vrot.slane %v4808_v24, 2 }
 0x61b   :  { %v4816_v8 = vrot.slane %v4815_v51, 2  ;;  %v4760_v1 = vrot.slane %v4759_v40, 2  ;;  %v4784_v59 = vadd.f32 %v4783_v48, %v4782_v54  ;;  %v4756_v54 = vadd.f32 %v4755_v28, %v4754_v2  ;;  %v4866_v28 = vld [vmem:[%s10542_s6] sm:$0x1] }
 0x61c   :  { %v4827_v30 = vadd.f32 %v4703_v23, %v4702_v39  ;;  %v4822_v49 = vadd.f32 %v4821_v10, %v4820_v44  ;;  %v4810_v37 = vadd.f32 %v4809_v22, %v4808_v24 }
 0x61d   :  { %v4551_v33 = vpop.permute.xlu1 %4550  ;;  %v4656_v63 = vpop.permute.xlu0 %4655  ;;  %v4817_v16 = vadd.f32 %v4816_v8, %v4815_v51  ;;  %v4761_v45 = vadd.f32 %v4760_v1, %v4759_v40  ;;  %v4857_v4 = vadd.f32 %v4791_v58, %v4784_v59  ;;  %v4871_v59 = vld [vmem:[%s10543_s7] sm:$0xff] }
 0x61e   :  { %v4828_v56 = vrot.slane %v4827_v30, 4  ;;  %v4684_v17 = vmul.f32 %v4551_v33, %v4464_v38  ;;  %v4705_v62 = vmul.f32 %v4656_v63, %v4465_v32  ;;  %v4823_v52 = vrot.slane %v4822_v49, 2 }
 0x61f   :  { %v4798_v32 = vadd.f32 %v4797_v6, %v4796_v35  ;;  %v4811_v15 = vrot.slane %v4810_v37, 1  ;;  %v4818_v10 = vrot.slane %v4817_v16, 1  ;;  %v4762_v13 = vrot.slane %v4761_v45, 1 }
 0x620   :  { %v4764_v18 = vadd.f32 %v4685_v47, %v4684_v17  ;;  %v4829_v26 = vadd.f32 %v4828_v56, %v4827_v30  ;;  %v4824_v55 = vadd.f32 %v4823_v52, %v4822_v49  ;;  %v4851_v35 = vadd.f32 %v10269_v11, %v4742_v3 }
 0x621   :  { %v4651_v25 = vpop.permute.xlu1 %4650  ;;  %v4566_v7 = vpop.permute.xlu0 %4565  ;;  %v4858_v5 = vadd.f32 %v4857_v4, %v4798_v32  ;;  %v4812_v63 = vadd.f32 %v4811_v15, %v4810_v37  ;;  %v11225_v32 = vld [vmem:[#allocation7_spill] sm:$0xff] }
 0x622   :  { %v4765_v27 = vrot.slane %v4764_v18, 4  ;;  %v4704_v42 = vmul.f32 %v4651_v25, %v4464_v38  ;;  %v4687_v44 = vmul.f32 %v4566_v7, %v4467_v46  ;;  %v4830_v9 = vrot.slane %v4829_v26, 2 }
 0x623   :  { %v4825_v51 = vrot.slane %v4824_v55, 1  ;;  %v4859_v49 = vadd.f32 %v4858_v5, %v4805_v60  ;;  %v4852_v20 = vadd.f32 %v4851_v35, %v4749_v50  ;;  %v4763_v25 = vadd.f32 %v4762_v13, %v4761_v45  ;;  %v4873_v60 = vld [vmem:[%s10543_s7 + $0x10] sm:$0xff]  ;;  %v4876_v5 = vld [vmem:[%s10543_s7 + $0x28] sm:$0xff] }
 0x624   :  { %v4766_v36 = vadd.f32 %v4765_v27, %v4764_v18  ;;  %v4834_v41 = vadd.f32 %v4705_v62, %v4704_v42  ;;  %v4831_v30 = vadd.f32 %v4830_v9, %v4829_v26  ;;  %v4819_v18 = vadd.f32 %v4818_v10, %v4817_v16 }
 0x625   :  { %v4561_v12 = vpop.permute.xlu1 %4560  ;;  %v4666_v23 = vpop.permute.xlu0 %4665  ;;  %v4860_v19 = vadd.f32 %v4859_v49, %v4812_v63  ;;  %v4826_v8 = vadd.f32 %v4825_v51, %v4824_v55  ;;  %v4853_v42 = vadd.f32 %v4852_v20, %v4756_v54  ;;  %v4877_v63 = vld [vmem:[%s10543_s7 + $0x30] sm:$0xff] }
 0x626   :  { %v4767_v29 = vrot.slane %v4766_v36, 2  ;;  %v4835_v53 = vrot.slane %v4834_v41, 4  ;;  %v4686_v43 = vmul.f32 %v4561_v12, %v4466_v14  ;;  %v4707_v34 = vmul.f32 %v4666_v23, %v4467_v46  ;;  %v4881_v20 = vld [vmem:[%s10543_s7 + $0x50] sm:$0xff] }
 0x627   :  { %v4832_v62 = vrot.slane %v4831_v30, 1  ;;  %v4861_v48 = vadd.f32 %v4860_v19, %v4819_v18  ;;  %v4854_v11 = vadd.f32 %v4853_v42, %v4763_v25  ;;  %v4880_v18 = vld [vmem:[%s10543_s7 + $0x48] sm:$0xff]  ;;  %v4882_v19 = vld [vmem:[%s10543_s7 + $0x58] sm:$0xff] }
 0x628   :  { %v4836_v39 = vadd.f32 %v4835_v53, %v4834_v41  ;;  %v4768_v61 = vadd.f32 %v4767_v29, %v4766_v36  ;;  %v4771_v38 = vadd.f32 %v4687_v44, %v4686_v43  ;;  %v4872_v53 = vld [vmem:[%s10543_s7 + $0x8] sm:$0xff] }
 0x629   :  { %v4661_v24 = vpop.permute.xlu1 %4660  ;;  %v4833_v2 = vadd.f32 %v4832_v62, %v4831_v30  ;;  %v4862_v1 = vadd.f32 %v4861_v48, %v4826_v8 }
 0x62a   :  { %v4837_v47 = vrot.slane %v4836_v39, 2  ;;  %v4706_v31 = vmul.f32 %v4661_v24, %v4466_v14  ;;  %v4772_v33 = vrot.slane %v4771_v38, 4  ;;  %v4769_v40 = vrot.slane %v4768_v61, 1  ;;  %v4874_v24 = vld [vmem:[%s10543_s7 + $0x18] sm:$0xff] }
 0x62b   :  { %v4863_v14 = vadd.f32 %v4862_v1, %v4833_v2  ;;  %v4886_v1 = vld [vmem:[%s10543_s7 + $0x78] sm:$0xff] }
 0x62c   :  { %v4838_v56 = vadd.f32 %v4837_v47, %v4836_v39  ;;  %v4841_v17 = vadd.f32 %v4707_v34, %v4706_v31  ;;  %v4773_v22 = vadd.f32 %v4772_v33, %v4771_v38  ;;  %v4770_v46 = vadd.f32 %v4769_v40, %v4768_v61  ;;  %v4875_v47 = vld [vmem:[%s10543_s7 + $0x20] sm:$0xff] }
 0x62d   :  { %v4879_v40 = vld [vmem:[%s10543_s7 + $0x40] sm:$0xff] }
 0x62e   :  { %v4842_v21 = vrot.slane %v4841_v17, 4  ;;  %v4774_v7 = vrot.slane %v4773_v22, 2  ;;  %v4839_v26 = vrot.slane %v4838_v56, 1  ;;  %v4855_v36 = vadd.f32 %v4854_v11, %v4770_v46 }
 0x630   :  { %v4843_v27 = vadd.f32 %v4842_v21, %v4841_v17  ;;  %v4775_v57 = vadd.f32 %v4774_v7, %v4773_v22  ;;  %v4840_v37 = vadd.f32 %v4839_v26, %v4838_v56  ;;  %v4878_v17 = vld [vmem:[%s10543_s7 + $0x38] sm:$0xff] }
 0x632   :  { %v4844_v6 = vrot.slane %v4843_v27, 2  ;;  %v4776_v3 = vrot.slane %v4775_v57, 1  ;;  %v4864_v12 = vadd.f32 %v4863_v14, %v4840_v37 }
 0x634   :  { %v4845_v52 = vadd.f32 %v4844_v6, %v4843_v27  ;;  %v4777_v41 = vadd.f32 %v4776_v3, %v4775_v57  ;;  %v4883_v27 = vld [vmem:[%s10543_s7 + $0x60] sm:$0xff]  ;;  %v4884_v57 = vld [vmem:[%s10543_s7 + $0x68] sm:$0xff]  ;;  %v4885_v6 = vld [vmem:[%s10543_s7 + $0x70] sm:$0xff] }
 0x636   :  { %v4846_v58 = vrot.slane %v4845_v52, 1  ;;  %v4856_v0 = vadd.f32 %v4855_v36, %v4777_v41  ;;  %v4991_v36 = vld [vmem:[%s10544_s8] sm:$0xff]  ;;  %v4992_v41 = vld [vmem:[%s10544_s8 + $0x8] sm:$0xff] }
 0x638   :  { %v4847_v44 = vadd.f32 %v4846_v58, %v4845_v52  ;;  %v4867_v23 = vadd.f32 %v4866_v28, %v4856_v0 }
 0x63a   :  { %v4865_v16 = vadd.f32 %v4864_v12, %v4847_v44  ;;  %v4869_v9 = vmax.f32 %v4867_v23, 0.0 }
 0x63c   :  { %v4868_v29 = vadd.f32 %v4866_v28, %v4865_v16  ;;  %v10288_v45 = vrot.slane %v4869_v9, %v11225_v32 }
 0x63e   :  { %v4870_v43 = vmax.f32 %v4868_v29, 0.0  ;;  %v4896_v15 = vmul.f32 %v10288_v45, %v4872_v53  ;;  %v4895_v55 = vmul.f32 %v10288_v45, %v4871_v59  ;;  %v4897_v38 = vmul.f32 %v10288_v45, %v4873_v60 }
 0x63f   :  { %v4898_v30 = vmul.f32 %v10288_v45, %v4874_v24  ;;  %v4899_v50 = vmul.f32 %v10288_v45, %v4875_v47  ;;  %v4900_v33 = vmul.f32 %v10288_v45, %v4876_v5  ;;  %v4901_v56 = vmul.f32 %v10288_v45, %v4877_v63 }
 0x640   :  { %v10293_v39 = vrot.slane %v4870_v43, %v11225_v32  ;;  %4929 = vadd.xlane.f32.xlu0 %v4896_v15  ;;  %4927 = vadd.xlane.f32.xlu1 %v4895_v55  ;;  %v4902_v35 = vmul.f32 %v10288_v45, %v4878_v17  ;;  %v4903_v49 = vmul.f32 %v10288_v45, %v4879_v40 }
 0x641   :  { %v4904_v21 = vmul.f32 %v10288_v45, %v4880_v18  ;;  %v4905_v7 = vmul.f32 %v10288_v45, %v4881_v20  ;;  %v4906_v26 = vmul.f32 %v10288_v45, %v4882_v19  ;;  %v4907_v46 = vmul.f32 %v10288_v45, %v4883_v27 }
 0x642   :  { %v4912_v34 = vmul.f32 %v10293_v39, %v4872_v53  ;;  %v4911_v4 = vmul.f32 %v10293_v39, %v4871_v59  ;;  %v4913_v61 = vmul.f32 %v10293_v39, %v4873_v60  ;;  %v4914_v10 = vmul.f32 %v10293_v39, %v4874_v24  ;;  %v4993_v53 = vld [vmem:[%s10544_s8 + $0x10] sm:$0xff] }
 0x643   :  { %v4915_v31 = vmul.f32 %v10293_v39, %v4875_v47  ;;  %v4916_v13 = vmul.f32 %v10293_v39, %v4876_v5  ;;  %v4917_v51 = vmul.f32 %v10293_v39, %v4877_v63  ;;  %v4918_v54 = vmul.f32 %v10293_v39, %v4878_v17  ;;  %v4996_v63 = vld [vmem:[%s10544_s8 + $0x28] sm:$0xff] }
 0x644   :  { %4961 = vadd.xlane.f32.xlu1 %v4912_v34  ;;  %4959 = vadd.xlane.f32.xlu0 %v4911_v4  ;;  %v4919_v22 = vmul.f32 %v10293_v39, %v4879_v40  ;;  %v4920_v62 = vmul.f32 %v10293_v39, %v4880_v18  ;;  %v4921_v25 = vmul.f32 %v10293_v39, %v4881_v20  ;;  %v4994_v34 = vld [vmem:[%s10544_s8 + $0x18] sm:$0xff] }
 0x645   :  { %v4922_v8 = vmul.f32 %v10293_v39, %v4882_v19  ;;  %v4923_v42 = vmul.f32 %v10293_v39, %v4883_v27  ;;  %v4924_v48 = vmul.f32 %v10293_v39, %v4884_v57  ;;  %v4908_v2 = vmul.f32 %v10288_v45, %v4884_v57  ;;  %v4999_v57 = vld [vmem:[%s10544_s8 + $0x40] sm:$0xff] }
 0x646   :  { %v4925_v11 = vmul.f32 %v10293_v39, %v4885_v6  ;;  %v4909_v3 = vmul.f32 %v10288_v45, %v4885_v6  ;;  %v4926_v37 = vmul.f32 %v10293_v39, %v4886_v1  ;;  %v4910_v52 = vmul.f32 %v10288_v45, %v4886_v1 }
 0x648   :  { %4963 = vadd.xlane.f32.xlu1 %v4913_v61  ;;  %4931 = vadd.xlane.f32.xlu0 %v4897_v38 }
 0x64c   :  { %4965 = vadd.xlane.f32.xlu1 %v4914_v10  ;;  %4933 = vadd.xlane.f32.xlu0 %v4898_v30  ;;  %v4995_v30 = vld [vmem:[%s10544_s8 + $0x20] sm:$0xff] }
 0x650   :  { %4967 = vadd.xlane.f32.xlu1 %v4915_v31  ;;  %4935 = vadd.xlane.f32.xlu0 %v4899_v50 }
 0x654   :  { %4969 = vadd.xlane.f32.xlu1 %v4916_v13  ;;  %4937 = vadd.xlane.f32.xlu0 %v4900_v33 }
 0x658   :  { %4971 = vadd.xlane.f32.xlu1 %v4917_v51  ;;  %4939 = vadd.xlane.f32.xlu0 %v4901_v56 }
 0x65c   :  { %4973 = vadd.xlane.f32.xlu1 %v4918_v54  ;;  %4941 = vadd.xlane.f32.xlu0 %v4902_v35 }
 0x660   :  { %4975 = vadd.xlane.f32.xlu1 %v4919_v22  ;;  %4943 = vadd.xlane.f32.xlu0 %v4903_v49  ;;  %v4997_v22 = vld [vmem:[%s10544_s8 + $0x30] sm:$0xff] }
 0x664   :  { %4977 = vadd.xlane.f32.xlu1 %v4920_v62  ;;  %4945 = vadd.xlane.f32.xlu0 %v4904_v21 }
 0x668   :  { %4979 = vadd.xlane.f32.xlu1 %v4921_v25  ;;  %4947 = vadd.xlane.f32.xlu0 %v4905_v7  ;;  %v4998_v7 = vld [vmem:[%s10544_s8 + $0x38] sm:$0xff] }
 0x66c   :  { %4981 = vadd.xlane.f32.xlu1 %v4922_v8  ;;  %4949 = vadd.xlane.f32.xlu0 %v4906_v26 }
 0x670   :  { %4983 = vadd.xlane.f32.xlu1 %v4923_v42  ;;  %4951 = vadd.xlane.f32.xlu0 %v4907_v46 }
 0x674   :  { %4985 = vadd.xlane.f32.xlu1 %v4924_v48  ;;  %4953 = vadd.xlane.f32.xlu0 %v4908_v2 }
 0x678   :  { %4987 = vadd.xlane.f32.xlu1 %v4925_v11  ;;  %4955 = vadd.xlane.f32.xlu0 %v4909_v3 }
 0x67c   :  { %4989 = vadd.xlane.f32.xlu1 %v4926_v37  ;;  %4957 = vadd.xlane.f32.xlu0 %v4910_v52  ;;  %v5000_v37 = vld [vmem:[%s10544_s8 + $0x48] sm:$0xff] }
 0x6cd   :  { %v4928_v14 = vpop.xlane.xlu1 %4927  ;;  %v4930_v28 = vpop.xlane.xlu0 %4929 }
 0x6ce   :  { %v5007_v58 = vadd.f32 %v4991_v36, %v4928_v14  ;;  %v5008_v0 = vadd.f32 %v4992_v41, %v4930_v28 }
 0x6d0   :  { %v5039_v12 = vmax.f32 %v5007_v58, 0.0  ;;  %v5040_v44 = vmax.f32 %v5008_v0, 0.0  ;;  %v5001_v0 = vld [vmem:[%s10544_s8 + $0x50] sm:$0xff] }
 0x6d1   :  { %v4962_v23 = vpop.xlane.xlu1 %4961  ;;  %v4960_v16 = vpop.xlane.xlu0 %4959 }
 0x6d2   :  { %v5024_v9 = vadd.f32 %v4992_v41, %v4962_v23  ;;  %v5023_v29 = vadd.f32 %v4991_v36, %v4960_v16  ;;  %5105 = vperm.xlu0 %5600, %v5039_v12   ;;  %5110 = vperm.xlu1 %5601, %v5040_v44  }
 0x6d4   :  { %v5056_v59 = vmax.f32 %v5024_v9, 0.0  ;;  %v5055_v45 = vmax.f32 %v5023_v29, 0.0 }
 0x6d5   :  { %v4964_v43 = vpop.xlane.xlu1 %4963  ;;  %v4932_v15 = vpop.xlane.xlu0 %4931 }
 0x6d6   :  { %v5025_v55 = vadd.f32 %v4993_v53, %v4964_v43  ;;  %v5009_v39 = vadd.f32 %v4993_v53, %v4932_v15  ;;  %5190 = vperm.xlu0 %5600, %v5056_v59   ;;  %5185 = vperm.xlu1 %5601, %v5055_v45   ;;  %v5002_v53 = vld [vmem:[%s10544_s8 + $0x58] sm:$0xff] }
 0x6d8   :  { %v5057_v4 = vmax.f32 %v5025_v55, 0.0  ;;  %v5041_v60 = vmax.f32 %v5009_v39, 0.0 }
 0x6d9   :  { %v4966_v61 = vpop.xlane.xlu1 %4965  ;;  %v4934_v38 = vpop.xlane.xlu0 %4933 }
 0x6da   :  { %v5026_v24 = vadd.f32 %v4994_v34, %v4966_v61  ;;  %v5010_v10 = vadd.f32 %v4994_v34, %v4934_v38  ;;  %5195 = vperm.xlu0 %5600, %v5057_v4   ;;  %5115 = vperm.xlu1 %5601, %v5041_v60   ;;  %v5003_v34 = vld [vmem:[%s10544_s8 + $0x60] sm:$0xff] }
 0x6dc   :  { %v5058_v47 = vmax.f32 %v5026_v24, 0.0  ;;  %v5042_v31 = vmax.f32 %v5010_v10, 0.0 }
 0x6dd   :  { %v4968_v50 = vpop.xlane.xlu1 %4967  ;;  %v4936_v5 = vpop.xlane.xlu0 %4935 }
 0x6de   :  { %v5027_v13 = vadd.f32 %v4995_v30, %v4968_v50  ;;  %v5011_v33 = vadd.f32 %v4995_v30, %v4936_v5  ;;  %5200 = vperm.xlu0 %5600, %v5058_v47   ;;  %5120 = vperm.xlu1 %5601, %v5042_v31   ;;  %v5004_v30 = vld [vmem:[%s10544_s8 + $0x68] sm:$0xff] }
 0x6e0   :  { %v5059_v51 = vmax.f32 %v5027_v13, 0.0  ;;  %v5043_v56 = vmax.f32 %v5011_v33, 0.0 }
 0x6e1   :  { %v4970_v17 = vpop.xlane.xlu1 %4969  ;;  %v4938_v54 = vpop.xlane.xlu0 %4937 }
 0x6e2   :  { %v5028_v35 = vadd.f32 %v4996_v63, %v4970_v17  ;;  %v5012_v40 = vadd.f32 %v4996_v63, %v4938_v54  ;;  %5205 = vperm.xlu0 %5600, %v5059_v51   ;;  %5125 = vperm.xlu1 %5601, %v5043_v56   ;;  %v5005_v63 = vld [vmem:[%s10544_s8 + $0x70] sm:$0xff] }
 0x6e4   :  { %v5060_v49 = vmax.f32 %v5028_v35, 0.0  ;;  %v5044_v18 = vmax.f32 %v5012_v40, 0.0 }
 0x6e5   :  { %v4972_v62 = vpop.xlane.xlu1 %4971  ;;  %v4940_v21 = vpop.xlane.xlu0 %4939 }
 0x6e6   :  { %v5029_v20 = vadd.f32 %v4997_v22, %v4972_v62  ;;  %v5013_v25 = vadd.f32 %v4997_v22, %v4940_v21  ;;  %5210 = vperm.xlu0 %5600, %v5060_v49   ;;  %5130 = vperm.xlu1 %5601, %v5044_v18   ;;  %v5006_v22 = vld [vmem:[%s10544_s8 + $0x78] sm:$0xff] }
 0x6e8   :  { %v5061_v19 = vmax.f32 %v5029_v20, 0.0  ;;  %v5045_v8 = vmax.f32 %v5013_v25, 0.0 }
 0x6e9   :  { %v4974_v26 = vpop.xlane.xlu1 %4973  ;;  %v4942_v27 = vpop.xlane.xlu0 %4941 }
 0x6ea   :  { %v5030_v42 = vadd.f32 %v4998_v7, %v4974_v26  ;;  %v5014_v46 = vadd.f32 %v4998_v7, %v4942_v27  ;;  %5215 = vperm.xlu0 %5600, %v5061_v19   ;;  %5135 = vperm.xlu1 %5601, %v5045_v8  }
 0x6ec   :  { %v5062_v48 = vmax.f32 %v5030_v42, 0.0  ;;  %v5046_v2 = vmax.f32 %v5014_v46, 0.0 }
 0x6ed   :  { %v4976_v6 = vpop.xlane.xlu1 %4975  ;;  %v4944_v11 = vpop.xlane.xlu0 %4943 }
 0x6ee   :  { %v5031_v3 = vadd.f32 %v4999_v57, %v4976_v6  ;;  %v5015_v1 = vadd.f32 %v4999_v57, %v4944_v11  ;;  %5220 = vperm.xlu0 %5600, %v5062_v48   ;;  %5140 = vperm.xlu1 %5601, %v5046_v2  }
 0x6f0   :  { %v5063_v52 = vmax.f32 %v5031_v3, 0.0  ;;  %v5047_v36 = vmax.f32 %v5015_v1, 0.0 }
 0x6f1   :  { %v4978_v41 = vpop.xlane.xlu1 %4977  ;;  %v4946_v14 = vpop.xlane.xlu0 %4945 }
 0x6f2   :  { %v5032_v28 = vadd.f32 %v5000_v37, %v4978_v41  ;;  %v5016_v58 = vadd.f32 %v5000_v37, %v4946_v14  ;;  %5225 = vperm.xlu0 %5600, %v5063_v52   ;;  %5145 = vperm.xlu1 %5601, %v5047_v36  }
 0x6f4   :  { %v5064_v12 = vmax.f32 %v5032_v28, 0.0  ;;  %v5048_v44 = vmax.f32 %v5016_v58, 0.0 }
 0x6f5   :  { %v4980_v23 = vpop.xlane.xlu1 %4979  ;;  %v4948_v16 = vpop.xlane.xlu0 %4947 }
 0x6f6   :  { %v5033_v9 = vadd.f32 %v5001_v0, %v4980_v23  ;;  %v5017_v29 = vadd.f32 %v5001_v0, %v4948_v16  ;;  %5230 = vperm.xlu0 %5600, %v5064_v12   ;;  %5150 = vperm.xlu1 %5601, %v5048_v44  }
 0x6f8   :  { %v5065_v59 = vmax.f32 %v5033_v9, 0.0  ;;  %v5049_v45 = vmax.f32 %v5017_v29, 0.0 }
 0x6f9   :  { %v4982_v43 = vpop.xlane.xlu1 %4981  ;;  %v4950_v15 = vpop.xlane.xlu0 %4949 }
 0x6fa   :  { %v5034_v55 = vadd.f32 %v5002_v53, %v4982_v43  ;;  %v5018_v39 = vadd.f32 %v5002_v53, %v4950_v15  ;;  %5235 = vperm.xlu0 %5600, %v5065_v59   ;;  %5155 = vperm.xlu1 %5601, %v5049_v45  }
 0x6fc   :  { %v5066_v4 = vmax.f32 %v5034_v55, 0.0  ;;  %v5050_v60 = vmax.f32 %v5018_v39, 0.0 }
 0x6fd   :  { %v4984_v61 = vpop.xlane.xlu1 %4983  ;;  %v4952_v38 = vpop.xlane.xlu0 %4951 }
 0x6fe   :  { %v5035_v24 = vadd.f32 %v5003_v34, %v4984_v61  ;;  %v5019_v10 = vadd.f32 %v5003_v34, %v4952_v38  ;;  %5240 = vperm.xlu0 %5600, %v5066_v4   ;;  %5160 = vperm.xlu1 %5601, %v5050_v60  }
 0x700   :  { %v5067_v47 = vmax.f32 %v5035_v24, 0.0  ;;  %v5051_v31 = vmax.f32 %v5019_v10, 0.0 }
 0x701   :  { %v4986_v50 = vpop.xlane.xlu1 %4985  ;;  %v4954_v5 = vpop.xlane.xlu0 %4953 }
 0x702   :  { %v5036_v13 = vadd.f32 %v5004_v30, %v4986_v50  ;;  %v5020_v33 = vadd.f32 %v5004_v30, %v4954_v5  ;;  %5245 = vperm.xlu0 %5600, %v5067_v47   ;;  %5165 = vperm.xlu1 %5601, %v5051_v31  }
 0x704   :  { %v5068_v51 = vmax.f32 %v5036_v13, 0.0  ;;  %v5052_v56 = vmax.f32 %v5020_v33, 0.0 }
 0x705   :  { %v4988_v17 = vpop.xlane.xlu1 %4987  ;;  %v4956_v54 = vpop.xlane.xlu0 %4955 }
 0x706   :  { %v5037_v35 = vadd.f32 %v5005_v63, %v4988_v17  ;;  %v5021_v40 = vadd.f32 %v5005_v63, %v4956_v54  ;;  %5250 = vperm.xlu0 %5600, %v5068_v51   ;;  %5170 = vperm.xlu1 %5601, %v5052_v56  }
 0x708   :  { %v5069_v49 = vmax.f32 %v5037_v35, 0.0  ;;  %v5053_v18 = vmax.f32 %v5021_v40, 0.0 }
 0x709   :  { %v4990_v62 = vpop.xlane.xlu1 %4989  ;;  %v4958_v21 = vpop.xlane.xlu0 %4957 }
 0x70a   :  { %v5038_v20 = vadd.f32 %v5006_v22, %v4990_v62  ;;  %v5022_v25 = vadd.f32 %v5006_v22, %v4958_v21  ;;  %5255 = vperm.xlu0 %5600, %v5069_v49   ;;  %5175 = vperm.xlu1 %5601, %v5053_v18  }
 0x70c   :  { %v5070_v7 = vmax.f32 %v5038_v20, 0.0  ;;  %v5054_v19 = vmax.f32 %v5022_v25, 0.0 }
 0x70e   :  { %5260 = vperm.xlu0 %5600, %v5070_v7   ;;  %5180 = vperm.xlu1 %5601, %v5054_v19  }
 0x70f   :  { %6125 = shalt.err (!%p6122_p4)
}
 0x710   :  { %s6126_s30 = scalar_lea.hbm %s10547_s11, 32 }
 0x711   :  { %p6127_p5 = scmp.ne.s32.totalorder %s10547_s11, %s6126_s30  ;;  %p6130_p6 = scmp.lt.u32.totalorder %s6126_s30, %s10547_s11 }
 0x713   :  { %p6132_p7 = pnand %p6130_p6, %p6127_p5 }
 0x715   :  { %6135 = shalt.err (!%p6132_p7)
}
 0x716   :  { %s6140_s0 = smov 16   ;;  %s6141_s17 = smov 1   ;;  %v5073_v3 = vld [vmem:[%s10545_s9 + $0x10] sm:$0xff]  ;;  %v5074_v1 = vld [vmem:[%s10545_s9 + $0x18] sm:$0xff]  ;;  %v5071_v37 = vld [vmem:[%s10545_s9] sm:$0xff] }
 0x717   :  { %5502 = dma.vmem_to_hbm [thread:$0]  %s5497_s2, 32, %s10547_s11, [#allocation3], %s6140_s0, %s6140_s0, %s6141_s17  }
 0x718   :  { %v5072_v52 = vld [vmem:[%s10545_s9 + $0x8] sm:$0xff]  ;;  %v5075_v9 = vld [vmem:[%s10545_s9 + $0x20] sm:$0xff]  ;;  %v5077_v45 = vld [vmem:[%s10545_s9 + $0x30] sm:$0xff] }
 0x719   :  { %v5076_v29 = vld [vmem:[%s10545_s9 + $0x28] sm:$0xff]  ;;  %v5078_v43 = vld [vmem:[%s10545_s9 + $0x38] sm:$0xff]  ;;  %v5079_v5 = vld [vmem:[%s10545_s9 + $0x40] sm:$0xff] }
 0x71a   :  { %v5080_v13 = vld [vmem:[%s10545_s9 + $0x48] sm:$0xff]  ;;  %v5081_v17 = vld [vmem:[%s10545_s9 + $0x50] sm:$0xff]  ;;  %v5082_v54 = vld [vmem:[%s10545_s9 + $0x58] sm:$0xff] }
 0x751   :  { %v5111_v8 = vpop.permute.xlu1 %5110  ;;  %v5106_v26 = vpop.permute.xlu0 %5105 }
 0x752   :  { %v5265_v14 = vmul.f32 %v5111_v8, %v5073_v3  ;;  %v5266_v28 = vmul.f32 %v5111_v8, %v5074_v1  ;;  %v5263_v58 = vmul.f32 %v5106_v26, %v5071_v37  ;;  %v5264_v0 = vmul.f32 %v5106_v26, %v5072_v52 }
 0x754   :  { %v5327_v4 = vadd.f32 %v5265_v14, %v5263_v58  ;;  %v5348_v60 = vadd.f32 %v5266_v28, %v5264_v0 }
 0x755   :  { %v5186_v27 = vpop.permute.xlu1 %5185  ;;  %v5191_v42 = vpop.permute.xlu0 %5190 }
 0x756   :  { %v5295_v12 = vmul.f32 %v5186_v27, %v5071_v37  ;;  %v5296_v44 = vmul.f32 %v5186_v27, %v5072_v52  ;;  %v5297_v23 = vmul.f32 %v5191_v42, %v5073_v3  ;;  %v5298_v16 = vmul.f32 %v5191_v42, %v5074_v1  ;;  %v5083_v42 = vld [vmem:[%s10545_s9 + $0x60] sm:$0xff]  ;;  %v5086_v3 = vld [vmem:[%s10545_s9 + $0x78] sm:$0xff] }
 0x758   :  { %v5369_v61 = vadd.f32 %v5297_v23, %v5295_v12  ;;  %v5390_v38 = vadd.f32 %v5298_v16, %v5296_v44 }
 0x759   :  { %v5116_v46 = vpop.permute.xlu1 %5115  ;;  %v5196_v57 = vpop.permute.xlu0 %5195 }
 0x75a   :  { %v5267_v15 = vmul.f32 %v5116_v46, %v5075_v9  ;;  %v5268_v55 = vmul.f32 %v5116_v46, %v5076_v29  ;;  %v5299_v39 = vmul.f32 %v5196_v57, %v5075_v9  ;;  %v5300_v34 = vmul.f32 %v5196_v57, %v5076_v29  ;;  %v5084_v46 = vld [vmem:[%s10545_s9 + $0x68] sm:$0xff]  ;;  %v5087_v29 = vld [vmem:[%s10545_s9 + $0x80] sm:$0xff] }
 0x75c   :  { %v5328_v33 = vadd.f32 %v5327_v4, %v5267_v15  ;;  %v5349_v63 = vadd.f32 %v5348_v60, %v5268_v55  ;;  %v5370_v51 = vadd.f32 %v5369_v61, %v5299_v39  ;;  %v5391_v56 = vadd.f32 %v5390_v38, %v5300_v34  ;;  %v5089_v34 = vld [vmem:[%s10545_s9 + $0x90] sm:$0xff]  ;;  %v5090_v4 = vld [vmem:[%s10545_s9 + $0x98] sm:$0xff] }
 0x75d   :  { %v5121_v48 = vpop.permute.xlu1 %5120  ;;  %v5201_v2 = vpop.permute.xlu0 %5200 }
 0x75e   :  { %v5269_v30 = vmul.f32 %v5121_v48, %v5077_v45  ;;  %v5270_v47 = vmul.f32 %v5121_v48, %v5078_v43  ;;  %v5301_v31 = vmul.f32 %v5201_v2, %v5077_v45  ;;  %v5302_v50 = vmul.f32 %v5201_v2, %v5078_v43  ;;  %v5088_v45 = vld [vmem:[%s10545_s9 + $0x88] sm:$0xff] }
 0x760   :  { %v5329_v21 = vadd.f32 %v5328_v33, %v5269_v30  ;;  %v5350_v20 = vadd.f32 %v5349_v63, %v5270_v47  ;;  %v5371_v25 = vadd.f32 %v5370_v51, %v5301_v31  ;;  %v5392_v7 = vadd.f32 %v5391_v56, %v5302_v50  ;;  %v5091_v63 = vld [vmem:[%s10545_s9 + $0xa0] sm:$0xff]  ;;  %v5092_v51 = vld [vmem:[%s10545_s9 + $0xa8] sm:$0xff] }
 0x761   :  { %v5126_v6 = vpop.permute.xlu1 %5125  ;;  %v5206_v11 = vpop.permute.xlu0 %5205 }
 0x762   :  { %v5271_v35 = vmul.f32 %v5126_v6, %v5079_v5  ;;  %v5272_v40 = vmul.f32 %v5126_v6, %v5080_v13  ;;  %v5303_v22 = vmul.f32 %v5206_v11, %v5079_v5  ;;  %v5304_v49 = vmul.f32 %v5206_v11, %v5080_v13  ;;  %v5085_v11 = vld [vmem:[%s10545_s9 + $0x70] sm:$0xff] }
 0x764   :  { %v5330_v57 = vadd.f32 %v5329_v21, %v5271_v35  ;;  %v5351_v48 = vadd.f32 %v5350_v20, %v5272_v40  ;;  %v5372_v2 = vadd.f32 %v5371_v25, %v5303_v22  ;;  %v5393_v6 = vadd.f32 %v5392_v7, %v5304_v49  ;;  %v5093_v49 = vld [vmem:[%s10545_s9 + $0xb0] sm:$0xff] }
 0x765   :  { %v5131_v36 = vpop.permute.xlu1 %5130  ;;  %v5211_v41 = vpop.permute.xlu0 %5210 }
 0x766   :  { %v5273_v19 = vmul.f32 %v5131_v36, %v5081_v17  ;;  %v5274_v8 = vmul.f32 %v5131_v36, %v5082_v54  ;;  %v5305_v26 = vmul.f32 %v5211_v41, %v5081_v17  ;;  %v5306_v27 = vmul.f32 %v5211_v41, %v5082_v54 }
 0x768   :  { %v5331_v28 = vadd.f32 %v5330_v57, %v5273_v19  ;;  %v5352_v58 = vadd.f32 %v5351_v48, %v5274_v8  ;;  %v5373_v0 = vadd.f32 %v5372_v2, %v5305_v26  ;;  %v5394_v12 = vadd.f32 %v5393_v6, %v5306_v27  ;;  %v5095_v6 = vld [vmem:[%s10545_s9 + $0xc0] sm:$0xff] }
 0x769   :  { %v5136_v53 = vpop.permute.xlu1 %5135  ;;  %v5216_v59 = vpop.permute.xlu0 %5215 }
 0x76a   :  { %v5275_v52 = vmul.f32 %v5136_v53, %v5083_v42  ;;  %v5276_v36 = vmul.f32 %v5136_v53, %v5084_v46  ;;  %v5307_v41 = vmul.f32 %v5216_v59, %v5083_v42  ;;  %v5308_v14 = vmul.f32 %v5216_v59, %v5084_v46 }
 0x76c   :  { %v5332_v15 = vadd.f32 %v5331_v28, %v5275_v52  ;;  %v5353_v59 = vadd.f32 %v5352_v58, %v5276_v36  ;;  %v5374_v55 = vadd.f32 %v5373_v0, %v5307_v41  ;;  %v5395_v39 = vadd.f32 %v5394_v12, %v5308_v14  ;;  %v5097_v36 = vld [vmem:[%s10545_s9 + $0xd0] sm:$0xff]  ;;  %v5098_v41 = vld [vmem:[%s10545_s9 + $0xd8] sm:$0xff] }
 0x76d   :  { %v5141_v24 = vpop.permute.xlu1 %5140  ;;  %v5221_v10 = vpop.permute.xlu0 %5220 }
 0x76e   :  { %v5277_v44 = vmul.f32 %v5141_v24, %v5085_v11  ;;  %v5278_v23 = vmul.f32 %v5141_v24, %v5086_v3  ;;  %v5309_v16 = vmul.f32 %v5221_v10, %v5085_v11  ;;  %v5310_v9 = vmul.f32 %v5221_v10, %v5086_v3  ;;  %v5096_v11 = vld [vmem:[%s10545_s9 + $0xc8] sm:$0xff] }
 0x770   :  { %v5333_v10 = vadd.f32 %v5332_v15, %v5277_v44  ;;  %v5354_v30 = vadd.f32 %v5353_v59, %v5278_v23  ;;  %v5375_v47 = vadd.f32 %v5374_v55, %v5309_v16  ;;  %v5396_v31 = vadd.f32 %v5395_v39, %v5310_v9  ;;  %v5099_v59 = vld [vmem:[%s10545_s9 + $0xe0] sm:$0xff]  ;;  %v5100_v55 = vld [vmem:[%s10545_s9 + $0xe8] sm:$0xff] }
 0x771   :  { %v5146_v18 = vpop.permute.xlu1 %5145  ;;  %v5226_v62 = vpop.permute.xlu0 %5225 }
 0x772   :  { %v5279_v60 = vmul.f32 %v5146_v18, %v5087_v29  ;;  %v5280_v61 = vmul.f32 %v5146_v18, %v5088_v45  ;;  %v5311_v38 = vmul.f32 %v5226_v62, %v5087_v29  ;;  %v5312_v24 = vmul.f32 %v5226_v62, %v5088_v45  ;;  %v5094_v18 = vld [vmem:[%s10545_s9 + $0xb8] sm:$0xff] }
 0x774   :  { %v5334_v54 = vadd.f32 %v5333_v10, %v5279_v60  ;;  %v5355_v35 = vadd.f32 %v5354_v30, %v5280_v61  ;;  %v5376_v40 = vadd.f32 %v5375_v47, %v5311_v38  ;;  %v5397_v22 = vadd.f32 %v5396_v31, %v5312_v24 }
 0x775   :  { %v5151_v1 = vpop.permute.xlu1 %5150  ;;  %v5231_v37 = vpop.permute.xlu0 %5230 }
 0x776   :  { %v5281_v50 = vmul.f32 %v5151_v1, %v5089_v34  ;;  %v5282_v5 = vmul.f32 %v5151_v1, %v5090_v4  ;;  %v5313_v13 = vmul.f32 %v5231_v37, %v5089_v34  ;;  %v5314_v33 = vmul.f32 %v5231_v37, %v5090_v4 }
 0x778   :  { %v5335_v7 = vadd.f32 %v5334_v54, %v5281_v50  ;;  %v5356_v19 = vadd.f32 %v5355_v35, %v5282_v5  ;;  %v5377_v8 = vadd.f32 %v5376_v40, %v5313_v13  ;;  %v5398_v26 = vadd.f32 %v5397_v22, %v5314_v33  ;;  %v5101_v33 = vld [vmem:[%s10545_s9 + $0xf0] sm:$0xff] }
 0x779   :  { %v5156_v43 = vpop.permute.xlu1 %5155  ;;  %v5236_v53 = vpop.permute.xlu0 %5235 }
 0x77a   :  { %v5283_v62 = vmul.f32 %v5156_v43, %v5091_v63  ;;  %v5284_v21 = vmul.f32 %v5156_v43, %v5092_v51  ;;  %v5315_v20 = vmul.f32 %v5236_v53, %v5091_v63  ;;  %v5316_v25 = vmul.f32 %v5236_v53, %v5092_v51  ;;  %v5102_v63 = vld [vmem:[%s10545_s9 + $0xf8] sm:$0xff] }
 0x77c   :  { %v5336_v3 = vadd.f32 %v5335_v7, %v5283_v62  ;;  %v5357_v1 = vadd.f32 %v5356_v19, %v5284_v21  ;;  %v5378_v37 = vadd.f32 %v5377_v8, %v5315_v20  ;;  %v5399_v52 = vadd.f32 %v5398_v26, %v5316_v25 }
 0x77d   :  { %v5161_v56 = vpop.permute.xlu1 %5160  ;;  %v5241_v17 = vpop.permute.xlu0 %5240 }
 0x77e   :  { %v5285_v46 = vmul.f32 %v5161_v56, %v5093_v49  ;;  %v5286_v57 = vmul.f32 %v5161_v56, %v5094_v18  ;;  %v5317_v48 = vmul.f32 %v5241_v17, %v5093_v49  ;;  %v5318_v2 = vmul.f32 %v5241_v17, %v5094_v18 }
 0x780   :  { %v5337_v23 = vadd.f32 %v5336_v3, %v5285_v46  ;;  %v5358_v16 = vadd.f32 %v5357_v1, %v5286_v57  ;;  %v5379_v9 = vadd.f32 %v5378_v37, %v5317_v48  ;;  %v5400_v29 = vadd.f32 %v5399_v52, %v5318_v2  ;;  %v11226_v2 = vld [vmem:[#allocation6_spill] sm:$0xff] }
 0x781   :  { %v5166_v27 = vpop.permute.xlu1 %5165  ;;  %v5246_v42 = vpop.permute.xlu0 %5245 }
 0x782   :  { %v5287_v14 = vmul.f32 %v5166_v27, %v5095_v6  ;;  %v5288_v28 = vmul.f32 %v5166_v27, %v5096_v11  ;;  %v5319_v58 = vmul.f32 %v5246_v42, %v5095_v6  ;;  %v5320_v0 = vmul.f32 %v5246_v42, %v5096_v11  ;;  %v5411_v11 = vld [vmem:[%s10546_s10] sm:$0x3] }
 0x783   :  { %v5419_v6 = vsub.s32 1, %v11226_v2 }
 0x784   :  { %v5338_v39 = vadd.f32 %v5337_v23, %v5287_v14  ;;  %v5359_v34 = vadd.f32 %v5358_v16, %v5288_v28  ;;  %v5380_v4 = vadd.f32 %v5379_v9, %v5319_v58  ;;  %v5401_v60 = vadd.f32 %v5400_v29, %v5320_v0 }
 0x785   :  { %v5171_v12 = vpop.permute.xlu1 %5170  ;;  %v5251_v44 = vpop.permute.xlu0 %5250  ;;  %v5416_v58 = vrot.slane %v5411_v11, %v11225_v32  ;;  %v5420_v0 = vrot.slane %v5411_v11, %v5419_v6 }
 0x786   :  { %v5289_v45 = vmul.f32 %v5171_v12, %v5097_v36  ;;  %v5290_v43 = vmul.f32 %v5171_v12, %v5098_v41  ;;  %v5321_v53 = vmul.f32 %v5251_v44, %v5097_v36  ;;  %v5322_v15 = vmul.f32 %v5251_v44, %v5098_v41 }
 0x788   :  { %v5339_v31 = vadd.f32 %v5338_v39, %v5289_v45  ;;  %v5360_v50 = vadd.f32 %v5359_v34, %v5290_v43  ;;  %v5381_v5 = vadd.f32 %v5380_v4, %v5321_v53  ;;  %v5402_v13 = vadd.f32 %v5401_v60, %v5322_v15 }
 0x789   :  { %v5176_v61 = vpop.permute.xlu1 %5175  ;;  %v5256_v38 = vpop.permute.xlu0 %5255 }
 0x78a   :  { %v5291_v24 = vmul.f32 %v5176_v61, %v5099_v59  ;;  %v5292_v10 = vmul.f32 %v5176_v61, %v5100_v55  ;;  %v5323_v30 = vmul.f32 %v5256_v38, %v5099_v59  ;;  %v5324_v47 = vmul.f32 %v5256_v38, %v5100_v55 }
 0x78c   :  { %v5340_v51 = vadd.f32 %v5339_v31, %v5291_v24  ;;  %v5361_v56 = vadd.f32 %v5360_v50, %v5292_v10  ;;  %v5382_v17 = vadd.f32 %v5381_v5, %v5323_v30  ;;  %v5403_v54 = vadd.f32 %v5402_v13, %v5324_v47 }
 0x78d   :  { %v5181_v35 = vpop.permute.xlu1 %5180  ;;  %v5261_v40 = vpop.permute.xlu0 %5260  ;;  %v6142_v50 = vmov 1966171168  }
 0x78e   :  { %v5293_v22 = vmul.f32 %v5181_v35, %v5101_v33  ;;  %v5294_v49 = vmul.f32 %v5181_v35, %v5102_v63  ;;  %v5325_v18 = vmul.f32 %v5261_v40, %v5101_v33  ;;  %v5326_v62 = vmul.f32 %v5261_v40, %v5102_v63 }
 0x78f   :  { %v5457_v5 = vunpack.c.l.s4 %v6142_v50 }
 0x790   :  { %v5341_v21 = vadd.f32 %v5340_v51, %v5293_v22  ;;  %v5362_v20 = vadd.f32 %v5361_v56, %v5294_v49  ;;  %v5383_v25 = vadd.f32 %v5382_v17, %v5325_v18  ;;  %v5404_v7 = vadd.f32 %v5403_v54, %v5326_v62 }
 0x791   :  { %v5458_v13 = vunpack.c.0.s8 %v5457_v5  ;;  %v11227_v22 = vlaneseq }
 0x792   :  { %v5342_v19 = vrot.slane %v5341_v21, 4  ;;  %v5363_v8 = vrot.slane %v5362_v20, 4  ;;  %v5384_v26 = vrot.slane %v5383_v25, 4  ;;  %v5405_v27 = vrot.slane %v5404_v7, 4 }
 0x793   :  { %v5461_v63 = vsub.s32 %v5458_v13, %v11226_v2  ;;  %vm5487_vm8 = vcmp.lt.s32.totalorder %v11227_v22, 256 }
 0x794   :  { %v5343_v42 = vadd.f32 %v5342_v19, %v5341_v21  ;;  %v5364_v46 = vadd.f32 %v5363_v8, %v5362_v20  ;;  %v5385_v57 = vadd.f32 %v5384_v26, %v5383_v25  ;;  %v5406_v48 = vadd.f32 %v5405_v27, %v5404_v7 }
 0x796   :  { %v5344_v3 = vrot.slane %v5343_v42, 2  ;;  %v5365_v1 = vrot.slane %v5364_v46, 2  ;;  %v5386_v37 = vrot.slane %v5385_v57, 2  ;;  %v5407_v52 = vrot.slane %v5406_v48, 2 }
 0x798   :  { %v5345_v36 = vadd.f32 %v5344_v3, %v5343_v42  ;;  %v5366_v41 = vadd.f32 %v5365_v1, %v5364_v46  ;;  %v5387_v14 = vadd.f32 %v5386_v37, %v5385_v57  ;;  %v5408_v28 = vadd.f32 %v5407_v52, %v5406_v48 }
 0x79a   :  { %v5346_v12 = vrot.slane %v5345_v36, 1  ;;  %v5367_v44 = vrot.slane %v5366_v41, 1  ;;  %v5388_v23 = vrot.slane %v5387_v14, 1  ;;  %v5409_v16 = vrot.slane %v5408_v28, 1 }
 0x79c   :  { %v5347_v9 = vadd.f32 %v5346_v12, %v5345_v36  ;;  %v5368_v29 = vadd.f32 %v5367_v44, %v5366_v41  ;;  %v5389_v45 = vadd.f32 %v5388_v23, %v5387_v14  ;;  %v5410_v43 = vadd.f32 %v5409_v16, %v5408_v28 }
 0x79e   :  { %v5423_v53 = vadd.f32 %v5416_v58, %v5347_v9  ;;  %v5424_v15 = vadd.f32 %v5420_v0, %v5368_v29  ;;  %v5425_v59 = vadd.f32 %v5416_v58, %v5389_v45  ;;  %v5426_v55 = vadd.f32 %v5420_v0, %v5410_v43 }
 0x7a0   :  { %v5591_v39 = vmul.f32 -1.442695, %v5423_v53  ;;  %v5592_v34 = vmul.f32 -1.442695, %v5424_v15  ;;  %v5593_v4 = vmul.f32 -1.442695, %v5425_v59 }
 0x7a1   :  { %v5594_v60 = vmul.f32 -1.442695, %v5426_v55 }
 0x7a2   :  { %6088 = vpow2.f32 %v5591_v39 }
 0x7a3   :  { %6090 = vpow2.f32 %v5592_v34 }
 0x7a4   :  { %6092 = vpow2.f32 %v5593_v4 }
 0x7a5   :  { %6094 = vpow2.f32 %v5594_v60 }
 0x7ac   :  { %v6089_v32 = vpop.eup %6088 }
 0x7ad   :  { %v6091_v61 = vpop.eup %6090  ;;  %v5439_v38 = vadd.f32 1.0, %v6089_v32 }
 0x7ae   :  { %v6093_v24 = vpop.eup %6092  ;;  %v5440_v10 = vadd.f32 1.0, %v6091_v61 }
 0x7af   :  { %v6095_v30 = vpop.eup %6094  ;;  %6096 = vrcp.f32 %v5439_v38  ;;  %v5441_v47 = vadd.f32 1.0, %v6093_v24 }
 0x7b0   :  { %6098 = vrcp.f32 %v5440_v10  ;;  %v5442_v31 = vadd.f32 1.0, %v6095_v30 }
 0x7b1   :  { %6100 = vrcp.f32 %v5441_v47 }
 0x7b2   :  { %6102 = vrcp.f32 %v5442_v31 }
 0x7b9   :  { %v6097_v33 = vpop.eup %6096 }
 0x7ba   :  { %v6099_v51 = vpop.eup %6098 }
 0x7bb   :  { %v6101_v56 = vpop.eup %6100  ;;  %v5455_v17 = vcombine.low %v6097_v33, %v6099_v51 }
 0x7bc   :  { %v6103_v54 = vpop.eup %6102 }
 0x7bd   :  { %v5462_v35 = vrot.slane %v5455_v17, %v5461_v63  ;;  %v5470_v40 = vcombine.low %v6101_v56, %v6103_v54 }
 0x7bf   :  { %v5469_v49 = vrot.slane %v5462_v35, %v5461_v63  ;;  %v5477_v18 = vrot.slane %v5470_v40, %v5461_v63 }
 0x7c1   :  { %5489 = vst.msk [vmem:[%s10548_s12] sm:$0x3] %vm5487_vm8, %v5469_v49  ;;  %v5484_v62 = vrot.slane %v5477_v18, %v5461_v63 }
 0x7c3   :  { %5490 = vst.msk [vmem:[%s10548_s12 + $0x2] sm:$0x3] %vm5487_vm8, %v5484_v62 }
 0x7c4   :  { %6136 = dma.done.wait [#allocation3], 32  }
 0x7c5   :  { %6137 = vsyncadd [#allocation3], 4294967264 }
 0x7c6   :  { %5510 = vsyncpa [#allocation3], 1 }

</bundles_post_ra>
